<compile_context>
chip_gen: v7x
topology: tpu7x:2x2x1
jax: 0.10.0
libtpu: 0.0.40
codegen_flags: <defaults>
</compile_context>

<pallas_src>
import jax
import jax.numpy as jnp
import numpy as np
from jax import lax
from jax.experimental import pallas as pl
from jax.experimental.pallas import tpu as pltpu

# Geometry implied by the PyTorch module (28x28 single-channel -> 320 feats).
H0 = W0 = 28
K = 5
C1, C2 = 10, 20
H1, W1 = H0 - K + 1, W0 - K + 1          # 24, 24   conv1 output
P1H, P1W = H1 // 2, W1 // 2              # 12, 12   pool1 output
H2, W2 = P1H - K + 1, P1W - K + 1        # 8, 8     conv2 output
P2H, P2W = H2 // 2, W2 // 2              # 4, 4     pool2 output
FLAT = C2 * P2H * P2W                    # 320
TB = 128                                 # batch rows per grid step
LANE = 128                               # lane-padded width of pooled feature maps
OUT_LANES = 128                          # lane-padded logits width


# ----------------------------------------------------------------------------
# Fused kernel
# ----------------------------------------------------------------------------
def _make_kernel(n_hidden):
    def kernel(x_ref, m1_ref, b1_ref, s1_ref, m2_ref, b2_ref, s2_ref, *rest):
        o_ref = rest[-1]
        fc = rest[:-1]   # wfc1, bfc1, (w_h, b_h) * (n_hidden-1), w_out, b_out
        bf16 = jnp.bfloat16

        # ---- conv1: one wide-K MXU matmul over the H-im2col'd input --------
        # x_ref: (H1, TB, K*W0) bf16, rows ordered (oh, b).
        lhs1 = x_ref[...].reshape(H1 * TB, K * W0)                  # (3072, 140)
        acc1 = jnp.dot(lhs1, m1_ref[...],
                       preferred_element_type=jnp.float32)          # (3072, 240)
        acc1 = acc1 + b1_ref[...]

        # ---- 2x2 max-pool + ReLU (stage 1) ----------------------------------
        # H direction: pairwise max of adjacent oh row-blocks.
        r = acc1.reshape(P1H, 2, TB, W1 * C1)
        rm = jnp.maximum(r[:, 0], r[:, 1]).reshape(P1H * TB, W1 * C1)   # (1536, 240)
        # W direction: one selection matmul into [even | pad | odd | pad] lanes,
        # then an aligned split + VPU max (+ fused ReLU).
        sel = jnp.dot(rm.astype(bf16), s1_ref[...],
                      preferred_element_type=jnp.float32)               # (1536, 256)
        p1 = jnp.maximum(jnp.maximum(sel[:, :LANE], sel[:, LANE:]), 0.0)  # (1536, 128)

        # ---- conv2: K-concatenate the 5 row-shifted slabs (128-lane aligned) -
        p1r = p1.astype(bf16).reshape(P1H, TB, LANE)                 # (12, TB, 128)
        lhs2 = jnp.concatenate(
            [p1r[kh:kh + H2].reshape(H2 * TB, LANE) for kh in range(K)],
            axis=-1)                                                 # (1024, 640)
        acc2 = jnp.dot(lhs2, m2_ref[...],
                       preferred_element_type=jnp.float32)           # (1024, 160)
        acc2 = acc2 + b2_ref[...]

        # ---- 2x2 max-pool + ReLU (stage 2) ----------------------------------
        r = acc2.reshape(P2H, 2, TB, W2 * C2)
        rm = jnp.maximum(r[:, 0], r[:, 1]).reshape(P2H * TB, W2 * C2)   # (512, 160)
        sel = jnp.dot(rm.astype(bf16), s2_ref[...],
                      preferred_element_type=jnp.float32)               # (512, 256)
        p2 = jnp.maximum(jnp.maximum(sel[:, :LANE], sel[:, LANE:]), 0.0)  # (512, 128)

        # ---- fc1: flatten pooled features into one (TB, 512) slab, one dot --
        p2r = p2.astype(bf16).reshape(P2H, TB, LANE)
        lhs3 = jnp.concatenate([p2r[h] for h in range(P2H)], axis=-1)    # (TB, 512)
        wfc1_ref, bfc1_ref = fc[0], fc[1]
        h = jnp.dot(lhs3, wfc1_ref[...], preferred_element_type=jnp.float32)
        h = jnp.maximum(h + bfc1_ref[...], 0.0)

        # remaining hidden layers
        for li in range(n_hidden - 1):
            w_r, b_r = fc[2 + 2 * li], fc[3 + 2 * li]
            h = jnp.maximum(
                jnp.dot(h.astype(bf16), w_r[...],
                        preferred_element_type=jnp.float32) + b_r[...], 0.0)

        # fc_out (lane-padded to 128; pad biases are -1e30 so they vanish in
        # the softmax) + f32 log_softmax epilogue.
        w_o, b_o = fc[2 + 2 * (n_hidden - 1)], fc[3 + 2 * (n_hidden - 1)]
        z = jnp.dot(h.astype(bf16), w_o[...],
                    preferred_element_type=jnp.float32) + b_o[...]       # (TB, 128)
        m = jnp.max(z, axis=-1, keepdims=True)
        s = z - m
        lse = jnp.log(jnp.sum(jnp.exp(s), axis=-1, keepdims=True))
        o_ref[...] = s - lse

    return kernel


# ----------------------------------------------------------------------------
# Wrapper: weight preprocessing (structured conv matrices, pool selectors)
# ----------------------------------------------------------------------------
def _prep_operands(params):
    f32, bf16 = jnp.float32, jnp.bfloat16
    w1, b1 = params["conv1_w"], params["conv1_b"]            # (10,1,5,5), (10,)
    w2, b2 = params["conv2_w"], params["conv2_b"]            # (20,10,5,5), (20,)

    # conv1 -> m1: (K*W0, W1*C1); m1[kh*W0+w, ow*C1+oc] = w1[oc,0,kh,w-ow]
    sel_h1 = (jnp.arange(W0)[:, None, None]
              - jnp.arange(W1)[None, :, None]
              == jnp.arange(K)[None, None, :]).astype(f32)   # (28,24,5)
    w1t = jnp.transpose(w1[:, 0], (1, 2, 0))                 # (kh,kw,oc)
    m1 = jnp.einsum("wok,hkc->hwoc", sel_h1, w1t).reshape(K * W0, W1 * C1)

    # conv2 -> m2: (K*128, W2*C2), zero rows at the lane padding (cols 120..127
    # of the pooled stage-1 feature map are zero / garbage-free).
    sel_h2 = (jnp.arange(P1W)[:, None, None]
              - jnp.arange(W2)[None, :, None]
              == jnp.arange(K)[None, None, :]).astype(f32)   # (12,8,5)
    w2t = jnp.transpose(w2, (2, 3, 1, 0))                    # (kh,kw,ic,oc)
    m2 = jnp.einsum("wok,hkic->hwioc", sel_h2, w2t).reshape(K, P1W * C1, W2 * C2)
    m2 = jnp.pad(m2, ((0, 0), (0, LANE - P1W * C1), (0, 0)))
    m2 = m2.reshape(K * LANE, W2 * C2)                       # (640, 160)

    # Pool selection matrices: [even | 0-pad | odd | 0-pad] -> 256 lanes.
    def pool_select(w_in, w_out, c):
        even = jnp.kron((jnp.arange(w_in)[:, None]
                         == 2 * jnp.arange(w_out)[None, :]).astype(f32),
                        jnp.eye(c, dtype=f32))               # (w_in*c, w_out*c)
        odd = jnp.kron((jnp.arange(w_in)[:, None]
                        == 2 * jnp.arange(w_out)[None, :] + 1).astype(f32),
                       jnp.eye(c, dtype=f32))
        z = jnp.zeros((w_in * c, LANE - w_out * c), f32)
        return jnp.concatenate([even, z, odd, z], axis=1)    # (w_in*c, 256)

    s1 = pool_select(W1, P1W, C1)                            # (240, 256)
    s2 = pool_select(W2, P2W, C2)                            # (160, 256)

    b1t = jnp.tile(b1.astype(f32), W1).reshape(1, W1 * C1)   # (1, 240)
    b2t = jnp.tile(b2.astype(f32), W2).reshape(1, W2 * C2)   # (1, 160)

    # fc1 weight rows reordered from PyTorch (c,h,w) flatten to the kernel's
    # (h, lane=[w,c]) layout, lane-padded to 128 per h-group -> (512, n_nodes).
    wfc1, bfc1 = params["hidden"][0]                         # (320, N), (N,)
    n_nodes = wfc1.shape[1]
    wfc1_r = wfc1.reshape(C2, P2H, P2W, n_nodes)             # (c, h, w, n)
    wfc1_r = jnp.transpose(wfc1_r, (1, 2, 0, 3)).reshape(P2H, P2W * C2, n_nodes)
    wfc1_r = jnp.pad(wfc1_r, ((0, 0), (0, LANE - P2W * C2), (0, 0)))
    wfc1_r = wfc1_r.reshape(P2H * LANE, n_nodes)             # (512, n_nodes)

    ops = [m1.astype(bf16), b1t, s1.astype(bf16),
           m2.astype(bf16), b2t, s2.astype(bf16),
           wfc1_r.astype(bf16), bfc1.astype(f32).reshape(1, -1)]
    for w, b in params["hidden"][1:]:
        ops += [w.astype(bf16), b.astype(f32).reshape(1, -1)]

    # fc_out padded to 128 lanes; padded bias lanes get -1e30 so they are
    # annihilated by the in-kernel softmax.
    w_out, b_out = params["fc_out_w"], params["fc_out_b"]
    n_labels = b_out.shape[0]
    w_out_p = jnp.pad(w_out.astype(f32), ((0, 0), (0, OUT_LANES - n_labels)))
    b_out_p = jnp.full((1, OUT_LANES), -1e30, f32)
    b_out_p = b_out_p.at[0, :n_labels].set(b_out.astype(f32))
    ops += [w_out_p.astype(bf16), b_out_p]
    return ops


def fc_cnn_ewc_forward(params, x_nchw):
    """x_nchw: (B, 1, 28, 28) float32 -> (B, n_labels) log-probabilities."""
    B = x_nchw.shape[0]
    assert x_nchw.shape[1:] == (1, H0, W0)
    n_hidden = len(params["hidden"])
    n_labels = params["fc_out_b"].shape[0]

    b_pad = ((B + TB - 1) // TB) * TB
    x = x_nchw.reshape(B, H0, W0).astype(jnp.bfloat16)       # bf16 input (halved DMA)
    if b_pad != B:
        x = jnp.pad(x, ((0, b_pad - B), (0, 0), (0, 0)))

    # H-only im2col in the wrapper (one tiny XLA op): each output row oh gets
    # the 5 consecutive input rows concatenated along lanes (width 140), and
    # the result is stored oh-major so every in-kernel slice is a cheap
    # leading-dim slice.
    x_cat = jnp.concatenate([x[:, kh:kh + H1, :] for kh in range(K)], axis=-1)
    x_cat = jnp.transpose(x_cat, (1, 0, 2))                  # (H1, b_pad, K*W0)

    ops = _prep_operands(params)

    in_specs = [pl.BlockSpec((H1, TB, K * W0), lambda i: (0, i, 0))]
    in_specs += [pl.BlockSpec(a.shape, lambda i: (0, 0)) for a in ops]

    out = pl.pallas_call(
        _make_kernel(n_hidden),
        out_shape=jax.ShapeDtypeStruct((b_pad, OUT_LANES), jnp.float32),
        grid=(b_pad // TB,),
        in_specs=in_specs,
        out_specs=pl.BlockSpec((TB, OUT_LANES), lambda i: (i, 0)),
        compiler_params=pltpu.CompilerParams(
            dimension_semantics=("parallel",),
            # ~10 MiB actual footprint at TB=128; 32 MiB leaves headroom and
            # stays well under v7x's 64 MiB physical VMEM.
            vmem_limit_bytes=32 * 1024 * 1024,
        ),
    )(x_cat, *ops)
    return out[:B, :n_labels]


# ----------------------------------------------------------------------------
# Parameter init (PyTorch-style fan-in uniform) and plain-JAX reference
# ----------------------------------------------------------------------------
def init_params(key, n_hidden=2, n_nodes=64, available_labels=10, kernel_size=5):
    assert kernel_size == K
    keys = jax.random.split(key, 6 + 2 * n_hidden)

    def uinit(k, shape, fan_in):
        bound = 1.0 / np.sqrt(fan_in)
        return jax.random.uniform(k, shape, jnp.float32, -bound, bound)

    params = {
        "conv1_w": uinit(keys[0], (C1, 1, K, K), K * K),
        "conv1_b": uinit(keys[1], (C1,), K * K),
        "conv2_w": uinit(keys[2], (C2, C1, K, K), C1 * K * K),
        "conv2_b": uinit(keys[3], (C2,), C1 * K * K),
    }
    hidden = []
    fan_in = FLAT
    for h in range(n_hidden):
        kw_, kb_ = keys[4 + 2 * h], keys[5 + 2 * h]
        hidden.append((uinit(kw_, (fan_in, n_nodes), fan_in),
                       uinit(kb_, (n_nodes,), fan_in)))
        fan_in = n_nodes
    params["hidden"] = hidden
    params["fc_out_w"] = uinit(keys[4 + 2 * n_hidden], (n_nodes, available_labels), n_nodes)
    params["fc_out_b"] = uinit(keys[5 + 2 * n_hidden], (available_labels,), n_nodes)
    return params


def _reference_forward(params, x):
    def conv(x, w, b):
        y = lax.conv_general_dilated(
            x, w, (1, 1), "VALID", dimension_numbers=("NCHW", "OIHW", "NCHW"))
        return y + b[None, :, None, None]

    def pool_relu(y):
        B, C, H, W = y.shape
        y = y.reshape(B, C, H // 2, 2, W // 2, 2).max(axis=(3, 5))
        return jax.nn.relu(y)

    y = pool_relu(conv(x, params["conv1_w"], params["conv1_b"]))
    y = pool_relu(conv(y, params["conv2_w"], params["conv2_b"]))
    y = y.reshape(y.shape[0], -1)
    for w, b in params["hidden"]:
        y = jax.nn.relu(y @ w + b)
    y = y @ params["fc_out_w"] + params["fc_out_b"]
    return jax.nn.log_softmax(y, axis=-1)


# ----------------------------------------------------------------------------
if __name__ == "__main__":
    key = jax.random.PRNGKey(0)
    k_param, k_x = jax.random.split(key)

    params = init_params(k_param, n_hidden=2, n_nodes=64, available_labels=10)
    x = jax.random.normal(k_x, (4, 1, 28, 28), dtype=jnp.float32)

    fwd = jax.jit(fc_cnn_ewc_forward)
    out = jax.block_until_ready(fwd(params, x))

    ref = jax.block_until_ready(_reference_forward(params, x))
    np.testing.assert_allclose(np.asarray(out), np.asarray(ref), rtol=3e-2, atol=3e-2)
    assert out.shape == (4, 10)

    print("KERNEL_OK")
</pallas_src>

<mosaic_0001>
module attributes {stable_mosaic.version = 11 : i64} {
  func.func @kernel(%arg0: i32, %arg1: memref<24x128x140xbf16, #tpu.memory_space<vmem>>, %arg2: memref<140x240xbf16, #tpu.memory_space<vmem>>, %arg3: memref<1x240xf32, #tpu.memory_space<vmem>>, %arg4: memref<240x256xbf16, #tpu.memory_space<vmem>>, %arg5: memref<640x160xbf16, #tpu.memory_space<vmem>>, %arg6: memref<1x160xf32, #tpu.memory_space<vmem>>, %arg7: memref<160x256xbf16, #tpu.memory_space<vmem>>, %arg8: memref<512x64xbf16, #tpu.memory_space<vmem>>, %arg9: memref<1x64xf32, #tpu.memory_space<vmem>>, %arg10: memref<64x64xbf16, #tpu.memory_space<vmem>>, %arg11: memref<1x64xf32, #tpu.memory_space<vmem>>, %arg12: memref<64x128xbf16, #tpu.memory_space<vmem>>, %arg13: memref<1x128xf32, #tpu.memory_space<vmem>>, %arg14: memref<128x128xf32, #tpu.memory_space<vmem>>) attributes {dimension_semantics = [#tpu.dimension_semantics<parallel>], iteration_bounds = array<i64: 1>, scalar_prefetch = 0 : i64, scratch_operands = 0 : i64, tpu.core_type = #tpu.core_type<tc>, window_params = [{transform_indices = @transform_0, window_bounds = array<i64: 24, 128, 140>}, {pipeline_mode = #tpu.pipeline_mode<synchronous>, transform_indices = @transform_1, window_bounds = array<i64: 140, 240>}, {pipeline_mode = #tpu.pipeline_mode<synchronous>, transform_indices = @transform_2, window_bounds = array<i64: 1, 240>}, {pipeline_mode = #tpu.pipeline_mode<synchronous>, transform_indices = @transform_3, window_bounds = array<i64: 240, 256>}, {pipeline_mode = #tpu.pipeline_mode<synchronous>, transform_indices = @transform_4, window_bounds = array<i64: 640, 160>}, {pipeline_mode = #tpu.pipeline_mode<synchronous>, transform_indices = @transform_5, window_bounds = array<i64: 1, 160>}, {pipeline_mode = #tpu.pipeline_mode<synchronous>, transform_indices = @transform_6, window_bounds = array<i64: 160, 256>}, {pipeline_mode = #tpu.pipeline_mode<synchronous>, transform_indices = @transform_7, window_bounds = array<i64: 512, 64>}, {pipeline_mode = #tpu.pipeline_mode<synchronous>, transform_indices = @transform_8, window_bounds = array<i64: 1, 64>}, {pipeline_mode = #tpu.pipeline_mode<synchronous>, transform_indices = @transform_9, window_bounds = array<i64: 64, 64>}, {pipeline_mode = #tpu.pipeline_mode<synchronous>, transform_indices = @transform_10, window_bounds = array<i64: 1, 64>}, {pipeline_mode = #tpu.pipeline_mode<synchronous>, transform_indices = @transform_11, window_bounds = array<i64: 64, 128>}, {pipeline_mode = #tpu.pipeline_mode<synchronous>, transform_indices = @transform_12, window_bounds = array<i64: 1, 128>}, {transform_indices = @transform_13, window_bounds = array<i64: 128, 128>}]} {
    %c0 = arith.constant 0 : index
    %c0_0 = arith.constant 0 : index
    %c0_1 = arith.constant 0 : index
    %0 = vector.load %arg1[%c0, %c0_0, %c0_1] : memref<24x128x140xbf16, #tpu.memory_space<vmem>>, vector<24x128x140xbf16>
    %1 = vector.shape_cast %0 : vector<24x128x140xbf16> to vector<3072x140xbf16>
    %c0_2 = arith.constant 0 : index
    %c0_3 = arith.constant 0 : index
    %2 = vector.load %arg2[%c0_2, %c0_3] : memref<140x240xbf16, #tpu.memory_space<vmem>>, vector<140x240xbf16>
    %cst = arith.constant dense<0.000000e+00> : vector<3072x240xf32>
    %3 = tpu.matmul %1, %2, %cst {dimension_numbers = #tpu.dot_dimension_numbers<[1], [0], [0], [1], [0, 0, 1, 1], [], []>} : vector<3072x140xbf16>, vector<140x240xbf16>, vector<3072x240xf32> -> vector<3072x240xf32>
    %c0_4 = arith.constant 0 : index
    %c0_5 = arith.constant 0 : index
    %4 = vector.load %arg3[%c0_4, %c0_5] : memref<1x240xf32, #tpu.memory_space<vmem>>, vector<1x240xf32>
    %5 = vector.broadcast %4 : vector<1x240xf32> to vector<3072x240xf32>
    %6 = arith.addf %3, %5 : vector<3072x240xf32>
    %7 = vector.shape_cast %6 : vector<3072x240xf32> to vector<12x2x128x240xf32>
    %8 = vector.extract_strided_slice %7 {offsets = [0, 0, 0, 0], sizes = [12, 1, 128, 240], strides = [1, 1, 1, 1]} : vector<12x2x128x240xf32> to vector<12x1x128x240xf32>
    %9 = vector.shape_cast %8 : vector<12x1x128x240xf32> to vector<12x128x240xf32>
    %10 = vector.extract_strided_slice %7 {offsets = [0, 1, 0, 0], sizes = [12, 1, 128, 240], strides = [1, 1, 1, 1]} : vector<12x2x128x240xf32> to vector<12x1x128x240xf32>
    %11 = vector.shape_cast %10 : vector<12x1x128x240xf32> to vector<12x128x240xf32>
    %12 = arith.maximumf %9, %11 : vector<12x128x240xf32>
    %13 = vector.shape_cast %12 : vector<12x128x240xf32> to vector<1536x240xf32>
    %14 = arith.truncf %13 : vector<1536x240xf32> to vector<1536x240xbf16>
    %c0_6 = arith.constant 0 : index
    %c0_7 = arith.constant 0 : index
    %15 = vector.load %arg4[%c0_6, %c0_7] : memref<240x256xbf16, #tpu.memory_space<vmem>>, vector<240x256xbf16>
    %cst_8 = arith.constant dense<0.000000e+00> : vector<1536x256xf32>
    %16 = tpu.matmul %14, %15, %cst_8 {dimension_numbers = #tpu.dot_dimension_numbers<[1], [0], [0], [1], [0, 0, 1, 1], [], []>} : vector<1536x240xbf16>, vector<240x256xbf16>, vector<1536x256xf32> -> vector<1536x256xf32>
    %17 = vector.extract_strided_slice %16 {offsets = [0, 0], sizes = [1536, 128], strides = [1, 1]} : vector<1536x256xf32> to vector<1536x128xf32>
    %18 = vector.extract_strided_slice %16 {offsets = [0, 128], sizes = [1536, 128], strides = [1, 1]} : vector<1536x256xf32> to vector<1536x128xf32>
    %19 = arith.maximumf %17, %18 : vector<1536x128xf32>
    %cst_9 = arith.constant 0.000000e+00 : f32
    %20 = vector.broadcast %cst_9 : f32 to vector<1536x128xf32>
    %21 = arith.maximumf %19, %20 : vector<1536x128xf32>
    %22 = arith.truncf %21 : vector<1536x128xf32> to vector<1536x128xbf16>
    %23 = vector.shape_cast %22 : vector<1536x128xbf16> to vector<12x128x128xbf16>
    %24 = vector.extract_strided_slice %23 {offsets = [0, 0, 0], sizes = [8, 128, 128], strides = [1, 1, 1]} : vector<12x128x128xbf16> to vector<8x128x128xbf16>
    %25 = vector.shape_cast %24 : vector<8x128x128xbf16> to vector<1024x128xbf16>
    %26 = vector.extract_strided_slice %23 {offsets = [1, 0, 0], sizes = [8, 128, 128], strides = [1, 1, 1]} : vector<12x128x128xbf16> to vector<8x128x128xbf16>
    %27 = vector.shape_cast %26 : vector<8x128x128xbf16> to vector<1024x128xbf16>
    %28 = vector.extract_strided_slice %23 {offsets = [2, 0, 0], sizes = [8, 128, 128], strides = [1, 1, 1]} : vector<12x128x128xbf16> to vector<8x128x128xbf16>
    %29 = vector.shape_cast %28 : vector<8x128x128xbf16> to vector<1024x128xbf16>
    %30 = vector.extract_strided_slice %23 {offsets = [3, 0, 0], sizes = [8, 128, 128], strides = [1, 1, 1]} : vector<12x128x128xbf16> to vector<8x128x128xbf16>
    %31 = vector.shape_cast %30 : vector<8x128x128xbf16> to vector<1024x128xbf16>
    %32 = vector.extract_strided_slice %23 {offsets = [4, 0, 0], sizes = [8, 128, 128], strides = [1, 1, 1]} : vector<12x128x128xbf16> to vector<8x128x128xbf16>
    %33 = vector.shape_cast %32 : vector<8x128x128xbf16> to vector<1024x128xbf16>
    %34 = tpu.concatenate %25, %27, %29, %31, %33 in 1 : vector<1024x128xbf16>, vector<1024x128xbf16>, vector<1024x128xbf16>, vector<1024x128xbf16>, vector<1024x128xbf16> -> vector<1024x640xbf16>
    %c0_10 = arith.constant 0 : index
    %c0_11 = arith.constant 0 : index
    %35 = vector.load %arg5[%c0_10, %c0_11] : memref<640x160xbf16, #tpu.memory_space<vmem>>, vector<640x160xbf16>
    %cst_12 = arith.constant dense<0.000000e+00> : vector<1024x160xf32>
    %36 = tpu.matmul %34, %35, %cst_12 {dimension_numbers = #tpu.dot_dimension_numbers<[1], [0], [0], [1], [0, 0, 1, 1], [], []>} : vector<1024x640xbf16>, vector<640x160xbf16>, vector<1024x160xf32> -> vector<1024x160xf32>
    %c0_13 = arith.constant 0 : index
    %c0_14 = arith.constant 0 : index
    %37 = vector.load %arg6[%c0_13, %c0_14] : memref<1x160xf32, #tpu.memory_space<vmem>>, vector<1x160xf32>
    %38 = vector.broadcast %37 : vector<1x160xf32> to vector<1024x160xf32>
    %39 = arith.addf %36, %38 : vector<1024x160xf32>
    %40 = vector.shape_cast %39 : vector<1024x160xf32> to vector<4x2x128x160xf32>
    %41 = vector.extract_strided_slice %40 {offsets = [0, 0, 0, 0], sizes = [4, 1, 128, 160], strides = [1, 1, 1, 1]} : vector<4x2x128x160xf32> to vector<4x1x128x160xf32>
    %42 = vector.shape_cast %41 : vector<4x1x128x160xf32> to vector<4x128x160xf32>
    %43 = vector.extract_strided_slice %40 {offsets = [0, 1, 0, 0], sizes = [4, 1, 128, 160], strides = [1, 1, 1, 1]} : vector<4x2x128x160xf32> to vector<4x1x128x160xf32>
    %44 = vector.shape_cast %43 : vector<4x1x128x160xf32> to vector<4x128x160xf32>
    %45 = arith.maximumf %42, %44 : vector<4x128x160xf32>
    %46 = vector.shape_cast %45 : vector<4x128x160xf32> to vector<512x160xf32>
    %47 = arith.truncf %46 : vector<512x160xf32> to vector<512x160xbf16>
    %c0_15 = arith.constant 0 : index
    %c0_16 = arith.constant 0 : index
    %48 = vector.load %arg7[%c0_15, %c0_16] : memref<160x256xbf16, #tpu.memory_space<vmem>>, vector<160x256xbf16>
    %cst_17 = arith.constant dense<0.000000e+00> : vector<512x256xf32>
    %49 = tpu.matmul %47, %48, %cst_17 {dimension_numbers = #tpu.dot_dimension_numbers<[1], [0], [0], [1], [0, 0, 1, 1], [], []>} : vector<512x160xbf16>, vector<160x256xbf16>, vector<512x256xf32> -> vector<512x256xf32>
    %50 = vector.extract_strided_slice %49 {offsets = [0, 0], sizes = [512, 128], strides = [1, 1]} : vector<512x256xf32> to vector<512x128xf32>
    %51 = vector.extract_strided_slice %49 {offsets = [0, 128], sizes = [512, 128], strides = [1, 1]} : vector<512x256xf32> to vector<512x128xf32>
    %52 = arith.maximumf %50, %51 : vector<512x128xf32>
    %cst_18 = arith.constant 0.000000e+00 : f32
    %53 = vector.broadcast %cst_18 : f32 to vector<512x128xf32>
    %54 = arith.maximumf %52, %53 : vector<512x128xf32>
    %55 = arith.truncf %54 : vector<512x128xf32> to vector<512x128xbf16>
    %56 = vector.shape_cast %55 : vector<512x128xbf16> to vector<4x128x128xbf16>
    %57 = vector.extract_strided_slice %56 {offsets = [0, 0, 0], sizes = [1, 128, 128], strides = [1, 1, 1]} : vector<4x128x128xbf16> to vector<1x128x128xbf16>
    %58 = vector.shape_cast %57 : vector<1x128x128xbf16> to vector<128x128xbf16>
    %59 = vector.extract_strided_slice %56 {offsets = [1, 0, 0], sizes = [1, 128, 128], strides = [1, 1, 1]} : vector<4x128x128xbf16> to vector<1x128x128xbf16>
    %60 = vector.shape_cast %59 : vector<1x128x128xbf16> to vector<128x128xbf16>
    %61 = vector.extract_strided_slice %56 {offsets = [2, 0, 0], sizes = [1, 128, 128], strides = [1, 1, 1]} : vector<4x128x128xbf16> to vector<1x128x128xbf16>
    %62 = vector.shape_cast %61 : vector<1x128x128xbf16> to vector<128x128xbf16>
    %63 = vector.extract_strided_slice %56 {offsets = [3, 0, 0], sizes = [1, 128, 128], strides = [1, 1, 1]} : vector<4x128x128xbf16> to vector<1x128x128xbf16>
    %64 = vector.shape_cast %63 : vector<1x128x128xbf16> to vector<128x128xbf16>
    %65 = tpu.concatenate %58, %60, %62, %64 in 1 : vector<128x128xbf16>, vector<128x128xbf16>, vector<128x128xbf16>, vector<128x128xbf16> -> vector<128x512xbf16>
    %c0_19 = arith.constant 0 : index
    %c0_20 = arith.constant 0 : index
    %66 = vector.load %arg8[%c0_19, %c0_20] : memref<512x64xbf16, #tpu.memory_space<vmem>>, vector<512x64xbf16>
    %cst_21 = arith.constant dense<0.000000e+00> : vector<128x64xf32>
    %67 = tpu.matmul %65, %66, %cst_21 {dimension_numbers = #tpu.dot_dimension_numbers<[1], [0], [0], [1], [0, 0, 1, 1], [], []>} : vector<128x512xbf16>, vector<512x64xbf16>, vector<128x64xf32> -> vector<128x64xf32>
    %c0_22 = arith.constant 0 : index
    %c0_23 = arith.constant 0 : index
    %68 = vector.load %arg9[%c0_22, %c0_23] : memref<1x64xf32, #tpu.memory_space<vmem>>, vector<1x64xf32>
    %69 = vector.broadcast %68 : vector<1x64xf32> to vector<128x64xf32>
    %70 = arith.addf %67, %69 : vector<128x64xf32>
    %cst_24 = arith.constant 0.000000e+00 : f32
    %71 = vector.broadcast %cst_24 : f32 to vector<128x64xf32>
    %72 = arith.maximumf %70, %71 : vector<128x64xf32>
    %73 = arith.truncf %72 : vector<128x64xf32> to vector<128x64xbf16>
    %c0_25 = arith.constant 0 : index
    %c0_26 = arith.constant 0 : index
    %74 = vector.load %arg10[%c0_25, %c0_26] : memref<64x64xbf16, #tpu.memory_space<vmem>>, vector<64x64xbf16>
    %cst_27 = arith.constant dense<0.000000e+00> : vector<128x64xf32>
    %75 = tpu.matmul %73, %74, %cst_27 {dimension_numbers = #tpu.dot_dimension_numbers<[1], [0], [0], [1], [0, 0, 1, 1], [], []>} : vector<128x64xbf16>, vector<64x64xbf16>, vector<128x64xf32> -> vector<128x64xf32>
    %c0_28 = arith.constant 0 : index
    %c0_29 = arith.constant 0 : index
    %76 = vector.load %arg11[%c0_28, %c0_29] : memref<1x64xf32, #tpu.memory_space<vmem>>, vector<1x64xf32>
    %77 = vector.broadcast %76 : vector<1x64xf32> to vector<128x64xf32>
    %78 = arith.addf %75, %77 : vector<128x64xf32>
    %cst_30 = arith.constant 0.000000e+00 : f32
    %79 = vector.broadcast %cst_30 : f32 to vector<128x64xf32>
    %80 = arith.maximumf %78, %79 : vector<128x64xf32>
    %81 = arith.truncf %80 : vector<128x64xf32> to vector<128x64xbf16>
    %c0_31 = arith.constant 0 : index
    %c0_32 = arith.constant 0 : index
    %82 = vector.load %arg12[%c0_31, %c0_32] : memref<64x128xbf16, #tpu.memory_space<vmem>>, vector<64x128xbf16>
    %cst_33 = arith.constant dense<0.000000e+00> : vector<128x128xf32>
    %83 = tpu.matmul %81, %82, %cst_33 {dimension_numbers = #tpu.dot_dimension_numbers<[1], [0], [0], [1], [0, 0, 1, 1], [], []>} : vector<128x64xbf16>, vector<64x128xbf16>, vector<128x128xf32> -> vector<128x128xf32>
    %c0_34 = arith.constant 0 : index
    %c0_35 = arith.constant 0 : index
    %84 = vector.load %arg13[%c0_34, %c0_35] : memref<1x128xf32, #tpu.memory_space<vmem>>, vector<1x128xf32>
    %85 = vector.broadcast %84 : vector<1x128xf32> to vector<128x128xf32>
    %86 = arith.addf %83, %85 : vector<128x128xf32>
    %cst_36 = arith.constant dense<0xFF800000> : vector<128xf32>
    %87 = vector.multi_reduction <maximumf>, %86, %cst_36 [1] : vector<128x128xf32> to vector<128xf32>
    %88 = vector.shape_cast %87 : vector<128xf32> to vector<128x1xf32>
    %89 = vector.broadcast %88 : vector<128x1xf32> to vector<128x128xf32>
    %90 = arith.subf %86, %89 : vector<128x128xf32>
    %91 = math.exp %90 : vector<128x128xf32>
    %cst_37 = arith.constant dense<0.000000e+00> : vector<128xf32>
    %92 = vector.multi_reduction <add>, %91, %cst_37 [1] : vector<128x128xf32> to vector<128xf32>
    %93 = vector.shape_cast %92 : vector<128xf32> to vector<128x1xf32>
    %94 = math.log %93 : vector<128x1xf32>
    %95 = vector.broadcast %94 : vector<128x1xf32> to vector<128x128xf32>
    %96 = arith.subf %90, %95 : vector<128x128xf32>
    %c0_38 = arith.constant 0 : index
    %c0_39 = arith.constant 0 : index
    %97 = vector.load %arg14[%c0_38, %c0_39] : memref<128x128xf32, #tpu.memory_space<vmem>>, vector<128x128xf32>
    tpu.vector_store %arg14[%c0_38, %c0_39], %96 {strides = array<i32>} : memref<128x128xf32, #tpu.memory_space<vmem>>, vector<128x128xf32>,
    return
  }
  func.func @transform_0(%arg0: i32) -> (i32, i32, i32) {
    %c0_i32 = arith.constant 0 : i32
    %c0_i32_0 = arith.constant 0 : i32
    %c0_i32_1 = arith.constant 0 : i32
    return %c0_i32, %arg0, %c0_i32_0 : i32, i32, i32
  }
  func.func @transform_1(%arg0: i32) -> (i32, i32) {
    %c0_i32 = arith.constant 0 : i32
    %c0_i32_0 = arith.constant 0 : i32
    %c0_i32_1 = arith.constant 0 : i32
    return %c0_i32, %c0_i32_0 : i32, i32
  }
  func.func @transform_2(%arg0: i32) -> (i32, i32) {
    %c0_i32 = arith.constant 0 : i32
    %c0_i32_0 = arith.constant 0 : i32
    %c0_i32_1 = arith.constant 0 : i32
    return %c0_i32, %c0_i32_0 : i32, i32
  }
  func.func @transform_3(%arg0: i32) -> (i32, i32) {
    %c0_i32 = arith.constant 0 : i32
    %c0_i32_0 = arith.constant 0 : i32
    %c0_i32_1 = arith.constant 0 : i32
    return %c0_i32, %c0_i32_0 : i32, i32
  }
  func.func @transform_4(%arg0: i32) -> (i32, i32) {
    %c0_i32 = arith.constant 0 : i32
    %c0_i32_0 = arith.constant 0 : i32
    %c0_i32_1 = arith.constant 0 : i32
    return %c0_i32, %c0_i32_0 : i32, i32
  }
  func.func @transform_5(%arg0: i32) -> (i32, i32) {
    %c0_i32 = arith.constant 0 : i32
    %c0_i32_0 = arith.constant 0 : i32
    %c0_i32_1 = arith.constant 0 : i32
    return %c0_i32, %c0_i32_0 : i32, i32
  }
  func.func @transform_6(%arg0: i32) -> (i32, i32) {
    %c0_i32 = arith.constant 0 : i32
    %c0_i32_0 = arith.constant 0 : i32
    %c0_i32_1 = arith.constant 0 : i32
    return %c0_i32, %c0_i32_0 : i32, i32
  }
  func.func @transform_7(%arg0: i32) -> (i32, i32) {
    %c0_i32 = arith.constant 0 : i32
    %c0_i32_0 = arith.constant 0 : i32
    %c0_i32_1 = arith.constant 0 : i32
    return %c0_i32, %c0_i32_0 : i32, i32
  }
  func.func @transform_8(%arg0: i32) -> (i32, i32) {
    %c0_i32 = arith.constant 0 : i32
    %c0_i32_0 = arith.constant 0 : i32
    %c0_i32_1 = arith.constant 0 : i32
    return %c0_i32, %c0_i32_0 : i32, i32
  }
  func.func @transform_9(%arg0: i32) -> (i32, i32) {
    %c0_i32 = arith.constant 0 : i32
    %c0_i32_0 = arith.constant 0 : i32
    %c0_i32_1 = arith.constant 0 : i32
    return %c0_i32, %c0_i32_0 : i32, i32
  }
  func.func @transform_10(%arg0: i32) -> (i32, i32) {
    %c0_i32 = arith.constant 0 : i32
    %c0_i32_0 = arith.constant 0 : i32
    %c0_i32_1 = arith.constant 0 : i32
    return %c0_i32, %c0_i32_0 : i32, i32
  }
  func.func @transform_11(%arg0: i32) -> (i32, i32) {
    %c0_i32 = arith.constant 0 : i32
    %c0_i32_0 = arith.constant 0 : i32
    %c0_i32_1 = arith.constant 0 : i32
    return %c0_i32, %c0_i32_0 : i32, i32
  }
  func.func @transform_12(%arg0: i32) -> (i32, i32) {
    %c0_i32 = arith.constant 0 : i32
    %c0_i32_0 = arith.constant 0 : i32
    %c0_i32_1 = arith.constant 0 : i32
    return %c0_i32, %c0_i32_0 : i32, i32
  }
  func.func @transform_13(%arg0: i32) -> (i32, i32) {
    %c0_i32 = arith.constant 0 : i32
    %c0_i32_0 = arith.constant 0 : i32
    return %arg0, %c0_i32 : i32, i32
  }
}

</mosaic_0001>

<bundles_post_ra>
// kernel: tile.13
= control target key start
LH: loop header
LB: loop body
LE: loop exit
PB: predicated region body
PF: predicated region fallthrough
CT: control target
= control target key end

     0   :  { %s34_s0 = inlined_call_operand.vmem [shape: f32[10], index: 0, kind: input, shape index: {}]   ;;  %s35_s1 = inlined_call_operand.vmem [shape: f32[24,10], index: 1, kind: output, shape index: {}]  }
   0x1   :  { %v4_v0 = vld [vmem:[%s34_s0] ss:$0 sm:$0xff] }
   0x2   :  { %5 = vst [vmem:[%s35_s1] sm:$0xff] %v4_v0  ;;  %10 = vst [vmem:[%s35_s1 + $0x8] sm:$0xff] %v4_v0 }
   0x3   :  { %11 = vst [vmem:[%s35_s1 + $0x10] sm:$0xff] %v4_v0 }

// kernel: tile.14
= control target key start
LH: loop header
LB: loop body
LE: loop exit
PB: predicated region body
PF: predicated region fallthrough
CT: control target
= control target key end

     0   :  { %vm9_vm0 = vcmask 64512   ;;  %s220_s12 = smov 120   ;;  %s221_s13 = smov 102   ;;  %vm3_vm1 = vcmask 80896   ;;  %vm13_vm2 = vcmask 15360   ;;  %vm16_vm3 = vcmask 1048512   ;;  %s334_s0 = inlined_call_operand.vmem [shape: f32[24,10], index: 0, kind: input, shape index: {}]   ;;  %s335_s1 = inlined_call_operand.vmem [shape: f32[1,240], index: 1, kind: output, shape index: {}]  }
   0x1   :  { %v172_v0 = vld [vmem:[%s334_s0 + $0xc] sm:$0x1]   ;;  %v175_v3 = vld [vmem:[%s334_s0 + $0x17] sm:$0x1]   ;;  %v174_v4 = vld [vmem:[%s334_s0 + $0xb] sm:$0x1]  }
   0x2   :  { %v173_v1 = vld [vmem:[%s334_s0 + $0xc] sm:$0x1]   ;;  %26 = vrot.lane.b32.xlu1 %v175_v3, %s221_s13  ;;  %v176_v5 = vld [vmem:[%s334_s0 + $0xa] sm:$0x1]   ;;  %s222_s18 = smov 110   ;;  %s223_s19 = smov 100  }
   0x3   :  { %v10_v2 = vsel %vm9_vm0, %v173_v1, %v172_v0  ;;  %v177_v6 = vld [vmem:[%s334_s0 + $0x16] sm:$0x1]   ;;  %v178_v7 = vld [vmem:[%s334_s0 + $0x9] sm:$0x1]   ;;  %s224_s24 = smov 92   ;;  %s225_s25 = smov 90  }
   0x4   :  { %11 = vrot.lane.b32.xlu0 %v10_v2, %s220_s12  ;;  %v179_v8 = vld [vmem:[%s334_s0 + $0x15] sm:$0x1]   ;;  %v180_v9 = vld [vmem:[%s334_s0 + $0x8] sm:$0x1]   ;;  %v2_v10 = vld [vmem:[%s334_s0] sm:$0x1]  }
   0x5   :  { %4 = vst.msk [vmem:[#allocation0] sm:$0x1] %vm3_vm1, %v2_v10   ;;  %s226_s3 = smov 82   ;;  %s227_s4 = smov 80   ;;  %v181_v11 = vld [vmem:[%s334_s0 + $0x14] sm:$0x1]  }
   0x6   :  { %33 = vrot.lane.b32.xlu1 %v176_v5, %s223_s19  ;;  %v182_v12 = vld [vmem:[%s334_s0 + $0x7] sm:$0x1]   ;;  %s228_s9 = smov 72   ;;  %s229_s10 = smov 70   ;;  %v183_v13 = vld [vmem:[%s334_s0 + $0x13] sm:$0x1]  }
   0x7   :  { %v184_v14 = vld [vmem:[%s334_s0 + $0x6] sm:$0x1]   ;;  %s230_s15 = smov 62   ;;  %s231_s16 = smov 60   ;;  %v185_v15 = vld [vmem:[%s334_s0 + $0x12] sm:$0x1]  }
   0x8   :  { %20 = vrot.lane.b32.xlu0 %v174_v4, %s222_s18  ;;  %v186_v16 = vld [vmem:[%s334_s0 + $0x5] sm:$0x1]   ;;  %s232_s21 = smov 52   ;;  %s233_s22 = smov 50   ;;  %v187_v17 = vld [vmem:[%s334_s0 + $0x11] sm:$0x1]  }
   0x9   :  { %v188_v18 = vld [vmem:[%s334_s0 + $0x4] sm:$0x1]   ;;  %s234_s27 = smov 42   ;;  %s235_s28 = smov 40   ;;  %v189_v19 = vld [vmem:[%s334_s0 + $0x10] sm:$0x1]  }
   0xa   :  { %46 = vrot.lane.b32.xlu1 %v178_v7, %s225_s25  ;;  %v190_v20 = vld [vmem:[%s334_s0 + $0x3] sm:$0x1]   ;;  %s237_s5 = smov 30   ;;  %v191_v21 = vld [vmem:[%s334_s0 + $0xf] sm:$0x1]   ;;  %s239_s11 = smov 20  }
   0xb   :  { %v192_v22 = vld [vmem:[%s334_s0 + $0x2] sm:$0x1]   ;;  %v193_v23 = vld [vmem:[%s334_s0 + $0xe] sm:$0x1]   ;;  %v194_v24 = vld [vmem:[%s334_s0 + $0x1] sm:$0x1]  }
   0xc   :  { %39 = vrot.lane.b32.xlu0 %v177_v6, %s224_s24  ;;  %s241_s17 = smov 10   ;;  %v195_v25 = vld [vmem:[%s334_s0 + $0xd] sm:$0x1]   ;;  %s242_s0 = smov 2   ;;  %vm28_vm4 = vcmask 917296   ;;  %vm22_vm5 = vcmask 982896  }
   0xd   :  { %vm35_vm6 = vcmask 900896   ;;  %vm41_vm7 = vcmask 835296   ;;  %vm48_vm8 = vcmask 818896   ;;  %vm54_vm9 = vcmask 753296  }
   0xe   :  { %59 = vrot.lane.b32.xlu1 %v180_v9, %s227_s4  ;;  %s236_s4 = smov 32   ;;  %vm61_vm10 = vcmask 736896   ;;  %vm67_vm11 = vcmask 671296   ;;  %vm74_vm12 = vcmask 654896   ;;  %vm80_vm13 = vcmask 589296  }
   0xf   :  { %vm87_vm14 = vcmask 572896   ;;  %vm93_vm15 = vcmask 507296   ;;  %vm100_vm0 = vcmask 490896   ;;  %vm106_vm1 = vcmask 425296  }
  0x10   :  { %52 = vrot.lane.b32.xlu0 %v179_v8, %s226_s3 }
  0x12   :  { %72 = vrot.lane.b32.xlu1 %v182_v12, %s229_s10  ;;  %s238_s10 = smov 22  }
  0x14   :  { %65 = vrot.lane.b32.xlu0 %v181_v11, %s228_s9 }
  0x16   :  { %85 = vrot.lane.b32.xlu1 %v184_v14, %s231_s16  ;;  %s240_s16 = smov 12  }
  0x18   :  { %78 = vrot.lane.b32.xlu0 %v183_v13, %s230_s15 }
  0x1a   :  { %98 = vrot.lane.b32.xlu1 %v186_v16, %s233_s22 }
  0x1c   :  { %91 = vrot.lane.b32.xlu0 %v185_v15, %s232_s21 }
  0x1e   :  { %111 = vrot.lane.b32.xlu1 %v188_v18, %s235_s28 }
  0x20   :  { %104 = vrot.lane.b32.xlu0 %v187_v17, %s234_s27 }
  0x22   :  { %124 = vrot.lane.b32.xlu1 %v190_v20, %s237_s5 }
  0x24   :  { %117 = vrot.lane.b32.xlu0 %v189_v19, %s236_s4 }
  0x26   :  { %137 = vrot.lane.b32.xlu1 %v192_v22, %s239_s11 }
  0x28   :  { %130 = vrot.lane.b32.xlu0 %v191_v21, %s238_s10 }
  0x2a   :  { %150 = vrot.lane.b32.xlu1 %v194_v24, %s241_s17 }
  0x2c   :  { %143 = vrot.lane.b32.xlu0 %v193_v23, %s240_s16 }
  0x30   :  { %156 = vrot.lane.b32.xlu0 %v195_v25, %s242_s0 }
  0x74   :  { %v27_v27 = vpop.permute.xlu1 %26  }
  0x76   :  { %v12_v26 = vpop.permute.xlu0 %11  }
  0x77   :  { %15 = vst.msk [vmem:[#allocation0 + $0x8] sm:$0x1] %vm13_vm2, %v12_v26   ;;  %vm113_vm2 = vcmask 408896  }
  0x78   :  { %17 = vst.msk [vmem:[#allocation0] sm:$0x1] %vm16_vm3, %v12_v26   ;;  %v34_v29 = vpop.permute.xlu1 %33   ;;  %vm119_vm3 = vcmask 343296  }
  0x79   :  { %30 = vst.msk [vmem:[#allocation0 + $0x8] sm:$0x1] %vm28_vm4, %v27_v27   ;;  %vm126_vm4 = vcmask 326896  }
  0x7a   :  { %v21_v28 = vpop.permute.xlu0 %20  }
  0x7b   :  { %23 = vst.msk [vmem:[#allocation0] sm:$0x1] %vm22_vm5, %v21_v28   ;;  %vm132_vm5 = vcmask 261296  }
  0x7c   :  { %36 = vst.msk [vmem:[#allocation0] sm:$0x1] %vm35_vm6, %v34_v29   ;;  %v47_v31 = vpop.permute.xlu1 %46   ;;  %vm139_vm6 = vcmask 244896  }
  0x7d   :  { %49 = vst.msk [vmem:[#allocation0] sm:$0x1] %vm48_vm8, %v47_v31   ;;  %vm152_vm8 = vcmask 162896  }
  0x7e   :  { %v40_v30 = vpop.permute.xlu0 %39  }
  0x7f   :  { %43 = vst.msk [vmem:[#allocation0 + $0x8] sm:$0x1] %vm41_vm7, %v40_v30   ;;  %vm145_vm7 = vcmask 179296  }
  0x80   :  { %v60_v33 = vpop.permute.xlu1 %59  }
  0x81   :  { %62 = vst.msk [vmem:[#allocation0] sm:$0x1] %vm61_vm10, %v60_v33  }
  0x82   :  { %v53_v32 = vpop.permute.xlu0 %52  }
  0x83   :  { %56 = vst.msk [vmem:[#allocation0 + $0x8] sm:$0x1] %vm54_vm9, %v53_v32   ;;  %vm158_vm9 = vcmask 97296  }
  0x84   :  { %v73_v35 = vpop.permute.xlu1 %72  }
  0x85   :  { %75 = vst.msk [vmem:[#allocation0] sm:$0x1] %vm74_vm12, %v73_v35  }
  0x86   :  { %v66_v34 = vpop.permute.xlu0 %65  }
  0x87   :  { %69 = vst.msk [vmem:[#allocation0 + $0x8] sm:$0x1] %vm67_vm11, %v66_v34  }
  0x88   :  { %v86_v37 = vpop.permute.xlu1 %85  }
  0x89   :  { %88 = vst.msk [vmem:[#allocation0] sm:$0x1] %vm87_vm14, %v86_v37  }
  0x8a   :  { %v79_v36 = vpop.permute.xlu0 %78  }
  0x8b   :  { %82 = vst.msk [vmem:[#allocation0 + $0x8] sm:$0x1] %vm80_vm13, %v79_v36  }
  0x8c   :  { %v99_v39 = vpop.permute.xlu1 %98  }
  0x8d   :  { %101 = vst.msk [vmem:[#allocation0] sm:$0x1] %vm100_vm0, %v99_v39  }
  0x8e   :  { %v92_v38 = vpop.permute.xlu0 %91  }
  0x8f   :  { %95 = vst.msk [vmem:[#allocation0 + $0x8] sm:$0x1] %vm93_vm15, %v92_v38  }
  0x90   :  { %v112_v41 = vpop.permute.xlu1 %111  }
  0x91   :  { %114 = vst.msk [vmem:[#allocation0] sm:$0x1] %vm113_vm2, %v112_v41  }
  0x92   :  { %v105_v40 = vpop.permute.xlu0 %104  }
  0x93   :  { %108 = vst.msk [vmem:[#allocation0 + $0x8] sm:$0x1] %vm106_vm1, %v105_v40  }
  0x94   :  { %v125_v43 = vpop.permute.xlu1 %124  }
  0x95   :  { %127 = vst.msk [vmem:[#allocation0] sm:$0x1] %vm126_vm4, %v125_v43  }
  0x96   :  { %v118_v42 = vpop.permute.xlu0 %117  }
  0x97   :  { %121 = vst.msk [vmem:[#allocation0 + $0x8] sm:$0x1] %vm119_vm3, %v118_v42  }
  0x98   :  { %v138_v45 = vpop.permute.xlu1 %137  }
  0x99   :  { %140 = vst.msk [vmem:[#allocation0] sm:$0x1] %vm139_vm6, %v138_v45  }
  0x9a   :  { %v131_v44 = vpop.permute.xlu0 %130  }
  0x9b   :  { %134 = vst.msk [vmem:[#allocation0 + $0x8] sm:$0x1] %vm132_vm5, %v131_v44  }
  0x9c   :  { %v151_v47 = vpop.permute.xlu1 %150  }
  0x9d   :  { %153 = vst.msk [vmem:[#allocation0] sm:$0x1] %vm152_vm8, %v151_v47  }
  0x9e   :  { %v144_v46 = vpop.permute.xlu0 %143  }
  0x9f   :  { %147 = vst.msk [vmem:[#allocation0 + $0x8] sm:$0x1] %vm145_vm7, %v144_v46  }
  0xa2   :  { %v157_v48 = vpop.permute.xlu0 %156  }
  0xa3   :  { %160 = vst.msk [vmem:[#allocation0 + $0x8] sm:$0x1] %vm158_vm9, %v157_v48  }
  0xa4   :  { %v164_v49 = vld [vmem:[#allocation0] sm:$0x1] }
  0xa5   :  { %166 = vst [vmem:[%s335_s1] sm:$0x1] %v164_v49 }
  0xaa   :  { %v168_v50 = vld [vmem:[#allocation0 + $0x8] sm:$0x1] }
  0xab   :  { %196 = vst [vmem:[%s335_s1 + $0x1] sm:$0x1] %v168_v50 }

// kernel: tile.18
= control target key start
LH: loop header
LB: loop body
LE: loop exit
PB: predicated region body
PF: predicated region fallthrough
CT: control target
= control target key end

     0   :  { %s22_s0 = inlined_call_operand.vmem [shape: f32[20], index: 0, kind: input, shape index: {}]   ;;  %s23_s1 = inlined_call_operand.vmem [shape: f32[8,20], index: 1, kind: output, shape index: {}]  }
   0x1   :  { %v4_v0 = vld [vmem:[%s22_s0] ss:$0 sm:$0xff] }
   0x2   :  { %5 = vst [vmem:[%s23_s1] sm:$0xff] %v4_v0 }

// kernel: tile.19
= control target key start
LH: loop header
LB: loop body
LE: loop exit
PB: predicated region body
PF: predicated region fallthrough
CT: control target
= control target key end

     0   :  { %vm9_vm0 = vcmask 64512   ;;  %s82_s12 = smov 120   ;;  %s83_s13 = smov 80   ;;  %vm3_vm1 = vcmask 162816   ;;  %vm13_vm2 = vcmask 97280   ;;  %vm16_vm3 = vcmask 1048512   ;;  %s132_s0 = inlined_call_operand.vmem [shape: f32[8,20], index: 0, kind: input, shape index: {}]   ;;  %s133_s1 = inlined_call_operand.vmem [shape: f32[1,160], index: 1, kind: output, shape index: {}]  }
   0x1   :  { %v66_v0 = vld [vmem:[%s132_s0 + $0x6] sm:$0x1]   ;;  %v69_v3 = vld [vmem:[%s132_s0 + $0x4] sm:$0x1]   ;;  %v68_v4 = vld [vmem:[%s132_s0 + $0x5] sm:$0x1]  }
   0x2   :  { %v67_v1 = vld [vmem:[%s132_s0 + $0x6] sm:$0x1]   ;;  %26 = vrot.lane.b32.xlu1 %v69_v3, %s83_s13  ;;  %v70_v5 = vld [vmem:[%s132_s0 + $0x3] sm:$0x1]   ;;  %v2_v6 = vld [vmem:[%s132_s0] sm:$0x1]  }
   0x3   :  { %v10_v2 = vsel %vm9_vm0, %v67_v1, %v66_v0  ;;  %4 = vst.msk [vmem:[#allocation0] sm:$0x1] %vm3_vm1, %v2_v6   ;;  %s84_s20 = smov 100   ;;  %s85_s21 = smov 60   ;;  %v71_v7 = vld [vmem:[%s132_s0 + $0x2] sm:$0x1]  }
   0x4   :  { %11 = vrot.lane.b32.xlu0 %v10_v2, %s82_s12  ;;  %v72_v8 = vld [vmem:[%s132_s0 + $0x1] sm:$0x1]   ;;  %s86_s26 = smov 40   ;;  %s87_s27 = smov 20   ;;  %v73_v9 = vld [vmem:[%s132_s0 + $0x7] sm:$0x1]  }
   0x5   :  { %s88_s0 = smov 12   ;;  %vm22_vm4 = vcmask 982816   ;;  %vm28_vm5 = vcmask 818816   ;;  %vm34_vm6 = vcmask 654816   ;;  %vm40_vm7 = vcmask 490816  }
   0x6   :  { %32 = vrot.lane.b32.xlu1 %v70_v5, %s85_s21  ;;  %vm46_vm8 = vcmask 326816   ;;  %vm52_vm9 = vcmask 261216  }
   0x8   :  { %20 = vrot.lane.b32.xlu0 %v68_v4, %s84_s20 }
   0xa   :  { %44 = vrot.lane.b32.xlu1 %v72_v8, %s87_s27 }
   0xc   :  { %38 = vrot.lane.b32.xlu0 %v71_v7, %s86_s26 }
  0x10   :  { %50 = vrot.lane.b32.xlu0 %v73_v9, %s88_s0 }
  0x74   :  { %v27_v11 = vpop.permute.xlu1 %26  }
  0x76   :  { %v12_v10 = vpop.permute.xlu0 %11  }
  0x77   :  { %15 = vst.msk [vmem:[#allocation0 + $0x8] sm:$0x1] %vm13_vm2, %v12_v10  }
  0x78   :  { %17 = vst.msk [vmem:[#allocation0] sm:$0x1] %vm16_vm3, %v12_v10   ;;  %v33_v13 = vpop.permute.xlu1 %32  }
  0x7a   :  { %v21_v12 = vpop.permute.xlu0 %20  }
  0x7b   :  { %23 = vst.msk [vmem:[#allocation0] sm:$0x1] %vm22_vm4, %v21_v12  }
  0x7c   :  { %29 = vst.msk [vmem:[#allocation0] sm:$0x1] %vm28_vm5, %v27_v11   ;;  %v45_v15 = vpop.permute.xlu1 %44  }
  0x7d   :  { %35 = vst.msk [vmem:[#allocation0] sm:$0x1] %vm34_vm6, %v33_v13  }
  0x7e   :  { %v39_v14 = vpop.permute.xlu0 %38  }
  0x7f   :  { %41 = vst.msk [vmem:[#allocation0] sm:$0x1] %vm40_vm7, %v39_v14  }
  0x80   :  { %47 = vst.msk [vmem:[#allocation0] sm:$0x1] %vm46_vm8, %v45_v15  }
  0x82   :  { %v51_v16 = vpop.permute.xlu0 %50  }
  0x83   :  { %54 = vst.msk [vmem:[#allocation0 + $0x8] sm:$0x1] %vm52_vm9, %v51_v16  }
  0x87   :  { %v58_v17 = vld [vmem:[#allocation0] sm:$0x1] }
  0x88   :  { %60 = vst [vmem:[%s133_s1] sm:$0x1] %v58_v17 }
  0x8a   :  { %v62_v18 = vld [vmem:[#allocation0 + $0x8] sm:$0x1] }
  0x8b   :  { %74 = vst [vmem:[%s133_s1 + $0x1] sm:$0x1] %v62_v18 }

// kernel: fc_cnn_ewc_forward.1
= control target key start
LH: loop header
LB: loop body
LE: loop exit
PB: predicated region body
PF: predicated region fallthrough
CT: control target
= control target key end

     0   :  { %vm2275_vm0 = vcmask 97280   ;;  %vm2852_vm1 = vcmask 1045504   ;;  %vm5568_vm2 = vcmask 916480   ;;  %vm10153_vm3 = vcmask 261120   ;;  %s20494_s1 = inlined_call_operand.vmem [shape: bf16[140,240], index: 1, kind: input, shape index: {}]   ;;  %s20495_s0 = inlined_call_operand.vmem [shape: bf16[24,128,140], index: 0, kind: input, shape index: {}]   ;;  %s20496_s3 = inlined_call_operand.vmem [shape: bf16[240,256], index: 3, kind: input, shape index: {}]   ;;  %s20497_s2 = inlined_call_operand.vmem [shape: f32[1,240], index: 2, kind: input, shape index: {}]   ;;  %s20498_s4 = inlined_call_operand.vmem [shape: bf16[640,160], index: 4, kind: input, shape index: {}]   ;;  %s20499_s6 = inlined_call_operand.vmem [shape: bf16[160,256], index: 6, kind: input, shape index: {}]   ;;  %s20500_s5 = inlined_call_operand.vmem [shape: f32[1,160], index: 5, kind: input, shape index: {}]   ;;  %s20501_s7 = inlined_call_operand.vmem [shape: bf16[512,64], index: 7, kind: input, shape index: {}]   ;;  %s20502_s9 = inlined_call_operand.vmem [shape: bf16[64,64], index: 9, kind: input, shape index: {}]   ;;  %s20503_s11 = inlined_call_operand.vmem [shape: bf16[64,128], index: 11, kind: input, shape index: {}]   ;;  %s20504_s8 = inlined_call_operand.vmem [shape: f32[1,64], index: 8, kind: input, shape index: {}]   ;;  %s20505_s10 = inlined_call_operand.vmem [shape: f32[1,64], index: 10, kind: input, shape index: {}]   ;;  %s20506_s12 = inlined_call_operand.vmem [shape: f32[1,128], index: 12, kind: input, shape index: {}]   ;;  %s20507_s13 = inlined_call_operand.vmem [shape: f32[128,128], index: 13, kind: output, shape index: {}]  }
   0x1   :  { %v13680_v0 = vld [vmem:[%s20494_s1 + $0x4] ss:$8 sps:$4 sm:$0xff]   ;;  %v13682_v1 = vld [vmem:[%s20494_s1] ss:$8 sps:$4 sm:$0xff]   ;;  %v13683_v2 = vld [vmem:[%s20494_s1 + $0x14] ss:$8 sps:$4 sm:$0xff]  }
   0x2   :  { %2859 = vmatprep.subr.bf16.mxu0 %v13680_v0  ;;  %v13685_v3 = vld [vmem:[%s20494_s1 + $0x10] ss:$8 sps:$4 sm:$0xff]   ;;  %v13686_v4 = vld [vmem:[%s20494_s1 + $0x24] ss:$8 sps:$4 sm:$0xff]   ;;  %v13688_v5 = vld [vmem:[%s20494_s1 + $0x20] ss:$8 sps:$4 sm:$0xff]  }
   0x3   :  { %2860 = vmatpush1.bf16.msra.mxu0 %v13682_v1  ;;  %v13689_v6 = vld [vmem:[%s20494_s1 + $0x34] ss:$8 sps:$4 sm:$0xff]   ;;  %v13691_v7 = vld [vmem:[%s20494_s1 + $0x30] ss:$8 sps:$4 sm:$0xff]   ;;  %v13692_v8 = vld [vmem:[%s20494_s1 + $0x44] ss:$8 sps:$4 sm:$0xff]  }
   0x4   :  { %2861 = vmatprep.subr.bf16.mxu0 %v13683_v2  ;;  %v13709_v9 = vld [vmem:[%s20495_s0 + $0x4] ss:$8 sps:$4 sm:$0xff]   ;;  %v13710_v10 = vld [vmem:[%s20496_s3] ss:$8 sps:$4 sm:$0xff]   ;;  %v13695_v13 = vld [vmem:[%s20494_s1 + $0x54] ss:$8 sps:$4 sm:$0xff]  }
   0x5   :  { %v13712_v11 = vld [vmem:[%s20496_s3 + $0x4] ss:$8 sps:$4 sm:$0xff]   ;;  %v13694_v12 = vld [vmem:[%s20494_s1 + $0x40] ss:$8 sps:$4 sm:$0xff]   ;;  %12172 = vmatprep.mubr.msk.bf16.mxu0 %vm2275_vm0, %v13709_v9  ;;  %v13697_v14 = vld [vmem:[%s20494_s1 + $0x50] ss:$8 sps:$4 sm:$0xff]  }
   0x6   :  { %12881 = vmatprep.subr.bf16.mxu1 %v13712_v11  ;;  %v13698_v15 = vld [vmem:[%s20494_s1 + $0x64] ss:$8 sps:$4 sm:$0xff]   ;;  %v13700_v16 = vld [vmem:[%s20494_s1 + $0x60] ss:$8 sps:$4 sm:$0xff]   ;;  %v13701_v17 = vld [vmem:[%s20494_s1 + $0x74] ss:$8 sps:$4 sm:$0xff]  }
   0x7   :  { %2862 = vmatpush1.bf16.msra.mxu0 %v13685_v3  ;;  %12896 = vmatpush1.bf16.msra.mxu1 %v13710_v10  ;;  %v13703_v18 = vld [vmem:[%s20494_s1 + $0x70] ss:$8 sps:$4 sm:$0xff]   ;;  %v13704_v19 = vld [vmem:[%s20494_s1 + $0x84] ss:$8 sps:$4 sm:$0x3f]   ;;  %vm11283_vm4 = vcmask 523264  }
   0x8   :  { %2863 = vmatprep.subr.bf16.mxu0 %v13686_v4  ;;  %v13706_v20 = vld [vmem:[%s20494_s1 + $0x80] ss:$8 sps:$4 sm:$0x3f]   ;;  %v13751_v22 = vld [vmem:[%s20496_s3 + $0x10] ss:$8 sps:$4 sm:$0xff]  }
   0x9   :  { %v2854_v21 = vsel %vm2852_vm1, %v13706_v20, 0  ;;  %v13753_v23 = vld [vmem:[%s20496_s3 + $0x14] ss:$8 sps:$4 sm:$0xff]   ;;  %v13707_v24 = vld [vmem:[%s20495_s0] ss:$8 sps:$4 sm:$0xff]  }
   0xa   :  { %12882 = vmatprep.subr.bf16.mxu1 %v13753_v23  ;;  %v13713_v25 = vld [vmem:[%s20495_s0 + $0x14] ss:$8 sps:$4 sm:$0xff]   ;;  %v13715_v26 = vld [vmem:[%s20495_s0 + $0x10] ss:$8 sps:$4 sm:$0xff]   ;;  %v13716_v27 = vld [vmem:[%s20495_s0 + $0x24] ss:$8 sps:$4 sm:$0xff]  }
   0xb   :  { %2864 = vmatpush1.bf16.msra.mxu0 %v13688_v5  ;;  %12897 = vmatpush1.bf16.msra.mxu1 %v13751_v22  ;;  %v13718_v28 = vld [vmem:[%s20495_s0 + $0x20] ss:$8 sps:$4 sm:$0xff]   ;;  %v13719_v29 = vld [vmem:[%s20495_s0 + $0x34] ss:$8 sps:$4 sm:$0xff]   ;;  %v13721_v30 = vld [vmem:[%s20495_s0 + $0x30] ss:$8 sps:$4 sm:$0xff]  }
   0xc   :  { %2865 = vmatprep.subr.bf16.mxu0 %v13689_v6  ;;  %v13722_v31 = vld [vmem:[%s20495_s0 + $0x44] ss:$8 sps:$4 sm:$0xff]   ;;  %v13724_v32 = vld [vmem:[%s20495_s0 + $0x40] ss:$8 sps:$4 sm:$0xff]   ;;  %v13725_v33 = vld [vmem:[%s20495_s0 + $0x54] ss:$8 sps:$4 sm:$0xff]  }
   0xd   :  { %v13727_v34 = vld [vmem:[%s20495_s0 + $0x50] ss:$8 sps:$4 sm:$0xff]   ;;  %v13728_v35 = vld [vmem:[%s20495_s0 + $0x64] ss:$8 sps:$4 sm:$0xff]   ;;  %v13730_v36 = vld [vmem:[%s20495_s0 + $0x60] ss:$8 sps:$4 sm:$0xff]  }
   0xe   :  { %v13731_v37 = vld [vmem:[%s20495_s0 + $0x74] ss:$8 sps:$4 sm:$0xff]   ;;  %v13733_v38 = vld [vmem:[%s20495_s0 + $0x70] ss:$8 sps:$4 sm:$0xff]   ;;  %v13734_v39 = vld [vmem:[%s20495_s0 + $0x84] ss:$8 sps:$4 sm:$0xff]  }
   0xf   :  { %2866 = vmatpush1.bf16.msra.mxu0 %v13691_v7  ;;  %v13736_v40 = vld [vmem:[%s20495_s0 + $0x80] ss:$8 sps:$4 sm:$0xff]   ;;  %v13737_v41 = vld [vmem:[%s20495_s0 + $0x94] ss:$8 sps:$4 sm:$0xff]   ;;  %v13739_v42 = vld [vmem:[%s20495_s0 + $0x90] ss:$8 sps:$4 sm:$0xff]  }
  0x10   :  { %2867 = vmatprep.subr.bf16.mxu0 %v13692_v8  ;;  %v13740_v43 = vld [vmem:[%s20495_s0 + $0xa4] ss:$8 sps:$4 sm:$0xff]   ;;  %v13791_v44 = vld [vmem:[%s20496_s3 + $0x20] ss:$8 sps:$4 sm:$0xff]   ;;  %v13743_v47 = vld [vmem:[%s20495_s0 + $0xb4] ss:$8 sps:$4 sm:$0xff]  }
  0x11   :  { %v13793_v45 = vld [vmem:[%s20496_s3 + $0x24] ss:$8 sps:$4 sm:$0xff]   ;;  %v13742_v46 = vld [vmem:[%s20495_s0 + $0xa0] ss:$8 sps:$4 sm:$0xff]   ;;  %v13745_v48 = vld [vmem:[%s20495_s0 + $0xb0] ss:$8 sps:$4 sm:$0xff]  }
  0x12   :  { %12883 = vmatprep.subr.bf16.mxu1 %v13793_v45  ;;  %v13746_v49 = vld [vmem:[%s20495_s0 + $0xc4] ss:$8 sps:$4 sm:$0xff]   ;;  %v13748_v50 = vld [vmem:[%s20495_s0 + $0xc0] ss:$8 sps:$4 sm:$0xff]   ;;  %v13749_v51 = vld [vmem:[%s20495_s0 + $0xd4] ss:$8 sps:$4 sm:$0xff]  }
  0x13   :  { %2868 = vmatpush1.bf16.msra.mxu0 %v13694_v12  ;;  %12898 = vmatpush1.bf16.msra.mxu1 %v13791_v44  ;;  %v13754_v52 = vld [vmem:[%s20495_s0 + $0xd0] ss:$8 sps:$4 sm:$0xff]   ;;  %v13755_v53 = vld [vmem:[%s20495_s0 + $0xe4] ss:$8 sps:$4 sm:$0xff]   ;;  %v13757_v54 = vld [vmem:[%s20495_s0 + $0xe0] ss:$8 sps:$4 sm:$0xff]  }
  0x14   :  { %2869 = vmatprep.subr.bf16.mxu0 %v13695_v13  ;;  %v13758_v55 = vld [vmem:[%s20495_s0 + $0xf4] ss:$8 sps:$4 sm:$0xff]   ;;  %v13760_v56 = vld [vmem:[%s20495_s0 + $0xf0] ss:$8 sps:$4 sm:$0xff]   ;;  %v13761_v57 = vld [vmem:[%s20495_s0 + $0x104] ss:$8 sps:$4 sm:$0xff]  }
  0x15   :  { %v13763_v58 = vld [vmem:[%s20495_s0 + $0x100] ss:$8 sps:$4 sm:$0xff]   ;;  %v13764_v59 = vld [vmem:[%s20495_s0 + $0x114] ss:$8 sps:$4 sm:$0xff]   ;;  %v13766_v60 = vld [vmem:[%s20495_s0 + $0x110] ss:$8 sps:$4 sm:$0xff]  }
  0x16   :  { %v13767_v61 = vld [vmem:[%s20495_s0 + $0x124] ss:$8 sps:$4 sm:$0xff]   ;;  %v13769_v62 = vld [vmem:[%s20495_s0 + $0x120] ss:$8 sps:$4 sm:$0xff]   ;;  %v13770_v63 = vld [vmem:[%s20495_s0 + $0x134] ss:$8 sps:$4 sm:$0xff]  }
  0x17   :  { %2870 = vmatpush1.bf16.msra.mxu0 %v13697_v14  ;;  %v13772_v0 = vld [vmem:[%s20495_s0 + $0x130] ss:$8 sps:$4 sm:$0xff]   ;;  %v13773_v1 = vld [vmem:[%s20495_s0 + $0x144] ss:$8 sps:$4 sm:$0xff]   ;;  %v13775_v2 = vld [vmem:[%s20495_s0 + $0x140] ss:$8 sps:$4 sm:$0xff]  }
  0x18   :  { %2871 = vmatprep.subr.bf16.mxu0 %v13698_v15  ;;  %v13776_v3 = vld [vmem:[%s20495_s0 + $0x154] ss:$8 sps:$4 sm:$0xff]   ;;  %v13778_v4 = vld [vmem:[%s20495_s0 + $0x150] ss:$8 sps:$4 sm:$0xff]   ;;  %v13779_v5 = vld [vmem:[%s20495_s0 + $0x164] ss:$8 sps:$4 sm:$0xff]  }
  0x19   :  { %v13781_v6 = vld [vmem:[%s20495_s0 + $0x160] ss:$8 sps:$4 sm:$0xff]   ;;  %v13782_v7 = vld [vmem:[%s20495_s0 + $0x174] ss:$8 sps:$4 sm:$0xff]   ;;  %v13784_v8 = vld [vmem:[%s20495_s0 + $0x170] ss:$8 sps:$4 sm:$0xff]  }
  0x1a   :  { %v13785_v9 = vld [vmem:[%s20495_s0 + $0x184] ss:$8 sps:$4 sm:$0xff]   ;;  %v13787_v12 = vld [vmem:[%s20495_s0 + $0x180] ss:$8 sps:$4 sm:$0xff]   ;;  %v13788_v13 = vld [vmem:[%s20495_s0 + $0x194] ss:$8 sps:$4 sm:$0xff]  }
  0x1b   :  { %2872 = vmatpush1.bf16.msra.mxu0 %v13700_v16  ;;  %v13790_v14 = vld [vmem:[%s20495_s0 + $0x190] ss:$8 sps:$4 sm:$0xff]   ;;  %v13794_v15 = vld [vmem:[%s20495_s0 + $0x1a4] ss:$8 sps:$4 sm:$0xff]   ;;  %v13796_v16 = vld [vmem:[%s20495_s0 + $0x1a0] ss:$8 sps:$4 sm:$0xff]  }
  0x1c   :  { %2873 = vmatprep.subr.bf16.mxu0 %v13701_v17  ;;  %v13797_v17 = vld [vmem:[%s20495_s0 + $0x1b4] ss:$8 sps:$4 sm:$0xff]   ;;  %v13799_v20 = vld [vmem:[%s20495_s0 + $0x1b0] ss:$8 sps:$4 sm:$0xff]  }
  0x1f   :  { %2874 = vmatpush1.bf16.msra.mxu0 %v13703_v18 }
  0x20   :  { %12171 = vmatprep.subr.msk.bf16.mxu0 %vm2852_vm1, %v13704_v19 }
  0x23   :  { %2876 = vmatpush1.bf16.msra.mxu0 %v2854_v21 }
  0x24   :  { %5857 = vmatprep.subr.bf16.mxu0 %v13712_v11  ;;  %v13835_v11 = vld [vmem:[%s20496_s3 + $0x34] ss:$8 sps:$4 sm:$0xff]  }
  0x25   :  { %12884 = vmatprep.subr.bf16.mxu1 %v13835_v11 }
  0x26   :  { %2892 = vmatmul.mubr.bf16.vlgmr.msra.gmra.mrb[0].mxu0 %v13707_v24 }
  0x27   :  { %5858 = vmatpush1.bf16.msra.mxu0 %v13710_v10  ;;  %12173 = vmatprep.mubr.msk.bf16.mxu0 %vm2275_vm0, %v13713_v25  ;;  %v13833_v10 = vld [vmem:[%s20496_s3 + $0x30] ss:$8 sps:$4 sm:$0xff]  }
  0x28   :  { %5859 = vmatprep.subr.bf16.mxu0 %v13753_v23  ;;  %12899 = vmatpush1.bf16.msra.mxu1 %v13833_v10 }
  0x2b   :  { %5860 = vmatpush1.bf16.msra.mxu0 %v13751_v22  ;;  %v13800_v22 = vld [vmem:[%s20495_s0 + $0x1c4] ss:$8 sps:$4 sm:$0xff]  }
  0x2c   :  { %5861 = vmatprep.subr.bf16.mxu0 %v13793_v45 }
  0x2e   :  { %2902 = vmatmul.mubr.bf16.gmra.mrb[4].mxu0 %v13715_v26  ;;  %v13802_v26 = vld [vmem:[%s20495_s0 + $0x1c0] ss:$8 sps:$4 sm:$0xff]  }
  0x2f   :  { %12174 = vmatprep.mubr.msk.bf16.mxu0 %vm2275_vm0, %v13716_v27  ;;  %5862 = vmatpush1.bf16.msra.mxu0 %v13791_v44  ;;  %v13811_v44 = vld [vmem:[%s20495_s0 + $0x1f0] ss:$8 sps:$4 sm:$0xff]  }
  0x30   :  { %5863 = vmatprep.subr.bf16.mxu0 %v13835_v11 }
  0x33   :  { %5864 = vmatpush1.bf16.msra.mxu0 %v13833_v10 }
  0x36   :  { %2912 = vmatmul.mubr.bf16.gmra.mrb[8].mxu0 %v13718_v28  ;;  %v13803_v28 = vld [vmem:[%s20495_s0 + $0x1d4] ss:$8 sps:$4 sm:$0xff]  }
  0x37   :  { %12175 = vmatprep.mubr.msk.bf16.mxu0 %vm2275_vm0, %v13719_v29 }
  0x3e   :  { %2922 = vmatmul.mubr.bf16.gmra.mrb[12].mxu0 %v13721_v30 }
  0x3f   :  { %12176 = vmatprep.mubr.msk.bf16.mxu0 %vm2275_vm0, %v13722_v31 }
  0x46   :  { %2932 = vmatmul.mubr.bf16.gmra.mrb[16].mxu0 %v13724_v32  ;;  %v13805_v32 = vld [vmem:[%s20495_s0 + $0x1d0] ss:$8 sps:$4 sm:$0xff]  }
  0x47   :  { %12177 = vmatprep.mubr.msk.bf16.mxu0 %vm2275_vm0, %v13725_v33 }
  0x4e   :  { %2942 = vmatmul.mubr.bf16.gmra.mrb[20].mxu0 %v13727_v34  ;;  %v13806_v34 = vld [vmem:[%s20495_s0 + $0x1e4] ss:$8 sps:$4 sm:$0xff]  }
  0x4f   :  { %12178 = vmatprep.mubr.msk.bf16.mxu0 %vm2275_vm0, %v13728_v35 }
  0x56   :  { %2952 = vmatmul.mubr.bf16.gmra.mrb[24].mxu0 %v13730_v36 }
  0x57   :  { %12179 = vmatprep.mubr.msk.bf16.mxu0 %vm2275_vm0, %v13731_v37 }
  0x5e   :  { %2962 = vmatmul.mubr.bf16.gmra.mrb[28].mxu0 %v13733_v38  ;;  %v13808_v38 = vld [vmem:[%s20495_s0 + $0x1e0] ss:$8 sps:$4 sm:$0xff]  }
  0x5f   :  { %12180 = vmatprep.mubr.msk.bf16.mxu0 %vm2275_vm0, %v13734_v39 }
  0x66   :  { %2972 = vmatmul.mubr.bf16.gmra.mrb[32].mxu0 %v13736_v40  ;;  %v13809_v40 = vld [vmem:[%s20495_s0 + $0x1f4] ss:$8 sps:$4 sm:$0xff]  }
  0x67   :  { %12181 = vmatprep.mubr.msk.bf16.mxu0 %vm2275_vm0, %v13737_v41 }
  0x6e   :  { %2982 = vmatmul.mubr.bf16.gmra.mrb[36].mxu0 %v13739_v42 }
  0x6f   :  { %12182 = vmatprep.mubr.msk.bf16.mxu0 %vm2275_vm0, %v13740_v43 }
  0x76   :  { %2992 = vmatmul.mubr.bf16.gmra.mrb[40].mxu0 %v13742_v46  ;;  %v13812_v46 = vld [vmem:[%s20495_s0 + $0x204] ss:$8 sps:$4 sm:$0xff]  }
  0x77   :  { %12183 = vmatprep.mubr.msk.bf16.mxu0 %vm2275_vm0, %v13743_v47 }
  0x7e   :  { %3002 = vmatmul.mubr.bf16.gmra.mrb[44].mxu0 %v13745_v48 }
  0x7f   :  { %12184 = vmatprep.mubr.msk.bf16.mxu0 %vm2275_vm0, %v13746_v49 }
  0x86   :  { %3012 = vmatmul.mubr.bf16.gmra.mrb[48].mxu0 %v13748_v50  ;;  %v13814_v50 = vld [vmem:[%s20495_s0 + $0x200] ss:$8 sps:$4 sm:$0xff]  }
  0x87   :  { %12185 = vmatprep.mubr.msk.bf16.mxu0 %vm2275_vm0, %v13749_v51 }
  0x8e   :  { %3022 = vmatmul.mubr.bf16.gmra.mrb[52].mxu0 %v13754_v52  ;;  %v13815_v52 = vld [vmem:[%s20495_s0 + $0x214] ss:$8 sps:$4 sm:$0xff]  }
  0x8f   :  { %12186 = vmatprep.mubr.msk.bf16.mxu0 %vm2275_vm0, %v13755_v53 }
  0x96   :  { %3032 = vmatmul.mubr.bf16.gmra.mrb[56].mxu0 %v13757_v54 }
  0x97   :  { %12187 = vmatprep.mubr.msk.bf16.mxu0 %vm2275_vm0, %v13758_v55  ;;  %v449_v55 = vlaneseq }
  0x9e   :  { %3042 = vmatmul.mubr.bf16.gmra.mrb[60].mxu0 %v13760_v56 }
  0x9f   :  { %12188 = vmatprep.mubr.msk.bf16.mxu0 %vm2275_vm0, %v13761_v57  ;;  %v13817_v57 = vld [vmem:[%s20495_s0 + $0x210] ss:$8 sps:$4 sm:$0xff]  }
  0xa6   :  { %3052 = vmatmul.mubr.bf16.gmra.mrb[64].mxu0 %v13763_v58 }
  0xa7   :  { %12189 = vmatprep.mubr.msk.bf16.mxu0 %vm2275_vm0, %v13764_v59  ;;  %v13818_v59 = vld [vmem:[%s20495_s0 + $0x224] ss:$8 sps:$4 sm:$0xff]  }
  0xae   :  { %3062 = vmatmul.mubr.bf16.gmra.mrb[68].mxu0 %v13766_v60 }
  0xaf   :  { %12190 = vmatprep.mubr.msk.bf16.mxu0 %vm2275_vm0, %v13767_v61  ;;  %v15028_v61 = vshrl.u32 %v449_v55, 7 }
  0xb1   :  { %20597 = vst [vmem:[#allocation2_spill] sm:$0xff] %v15028_v61 }
  0xb6   :  { %3072 = vmatmul.mubr.bf16.gmra.mrb[72].mxu0 %v13769_v62 }
  0xb7   :  { %12191 = vmatprep.mubr.msk.bf16.mxu0 %vm2275_vm0, %v13770_v63  ;;  %v20509_v63 = vsub.s32 0, %v15028_v61 }
  0xbe   :  { %3082 = vmatmul.mubr.bf16.gmra.mrb[76].mxu0 %v13772_v0 }
  0xbf   :  { %12192 = vmatprep.mubr.msk.bf16.mxu0 %vm2275_vm0, %v13773_v1  ;;  %v13820_v1 = vld [vmem:[%s20495_s0 + $0x220] ss:$8 sps:$4 sm:$0xff]  }
  0xc6   :  { %3092 = vmatmul.mubr.bf16.gmra.mrb[80].mxu0 %v13775_v2  ;;  %v447_v2 = vld [vmem:[%s20497_s2] sm:$0x3] }
  0xc7   :  { %12193 = vmatprep.mubr.msk.bf16.mxu0 %vm2275_vm0, %v13776_v3  ;;  %v20508_v3 = vsub.s32 1, %v15028_v61 }
  0xce   :  { %3102 = vmatmul.mubr.bf16.gmra.mrb[84].mxu0 %v13778_v4 }
  0xcf   :  { %12194 = vmatprep.mubr.msk.bf16.mxu0 %vm2275_vm0, %v13779_v5  ;;  %v13821_v5 = vld [vmem:[%s20495_s0 + $0x234] ss:$8 sps:$4 sm:$0xff]  }
  0xd6   :  { %3112 = vmatmul.mubr.bf16.gmra.mrb[88].mxu0 %v13781_v6 }
  0xd7   :  { %12195 = vmatprep.mubr.msk.bf16.mxu0 %vm2275_vm0, %v13782_v7  ;;  %v15052_v7 = vrot.slane %v447_v2, %v20509_v63 }
  0xde   :  { %3122 = vmatmul.mubr.bf16.gmra.mrb[92].mxu0 %v13784_v8  ;;  %v15056_v8 = vrot.slane %v447_v2, %v20508_v3 }
  0xdf   :  { %12196 = vmatprep.mubr.msk.bf16.mxu0 %vm2275_vm0, %v13785_v9 }
  0xe6   :  { %3132 = vmatmul.mubr.bf16.gmra.mrb[96].mxu0 %v13787_v12 }
  0xe7   :  { %12197 = vmatprep.mubr.msk.bf16.mxu0 %vm2275_vm0, %v13788_v13  ;;  %v13823_v13 = vld [vmem:[%s20495_s0 + $0x230] ss:$8 sps:$4 sm:$0xff]  }
  0xee   :  { %3142 = vmatmul.mubr.bf16.gmra.mrb[100].mxu0 %v13790_v14 }
  0xef   :  { %12198 = vmatprep.mubr.msk.bf16.mxu0 %vm2275_vm0, %v13794_v15 }
  0xf6   :  { %3152 = vmatmul.mubr.bf16.gmra.mrb[104].mxu0 %v13796_v16 }
  0xf7   :  { %12199 = vmatprep.mubr.msk.bf16.mxu0 %vm2275_vm0, %v13797_v17  ;;  %v13824_v17 = vld [vmem:[%s20495_s0 + $0x244] ss:$8 sps:$4 sm:$0xff]  }
  0xf9   :  { %v14924_v18 = vpop.f32.mrb[0].mxu0 }
  0xfa   :  { %v14926_v19 = vpop.f32.mrb[1].mxu0  ;;  %v2894_v10 = vadd.f32 %v14924_v18, %v15052_v7 }
  0xfb   :  { %v14931_v21 = vpop.f32.mrb[2].mxu0  ;;  %v2896_v14 = vadd.f32 %v14926_v19, %v15056_v8 }
  0xfc   :  { %v14936_v23 = vpop.f32.mrb[3].mxu0  ;;  %v2898_v18 = vadd.f32 %v14931_v21, %v15052_v7  ;;  %v13875_v21 = vld [vmem:[%s20496_s3 + $0x40] ss:$8 sps:$4 sm:$0xff]  }
  0xfe   :  { %3162 = vmatmul.mubr.bf16.gmra.mrb[108].mxu0 %v13799_v20 }
  0xff   :  { %12200 = vmatprep.mubr.msk.bf16.mxu0 %vm2275_vm0, %v13800_v22 }
 0x101   :  { %v14939_v24 = vpop.f32.mrb[4].mxu0 }
 0x102   :  { %v14941_v25 = vpop.f32.mrb[5].mxu0 }
 0x103   :  { %v14946_v27 = vpop.f32.mrb[6].mxu0 }
 0x104   :  { %v14951_v29 = vpop.f32.mrb[7].mxu0 }
 0x106   :  { %3172 = vmatmul.mubr.bf16.gmra.mrb[112].mxu0 %v13802_v26 }
 0x107   :  { %12201 = vmatprep.mubr.msk.bf16.mxu0 %vm2275_vm0, %v13803_v28  ;;  %v2900_v28 = vadd.f32 %v14936_v23, %v15056_v8 }
 0x109   :  { %v14954_v30 = vpop.f32.mrb[8].mxu0 }
 0x10a   :  { %v14956_v31 = vpop.f32.mrb[9].mxu0 }
 0x10b   :  { %v14961_v33 = vpop.f32.mrb[10].mxu0 }
 0x10c   :  { %v14966_v35 = vpop.f32.mrb[11].mxu0 }
 0x10e   :  { %3182 = vmatmul.mubr.bf16.gmra.mrb[116].mxu0 %v13805_v32 }
 0x10f   :  { %12202 = vmatprep.mubr.msk.bf16.mxu0 %vm2275_vm0, %v13806_v34 }
 0x111   :  { %v14969_v36 = vpop.f32.mrb[12].mxu0 }
 0x112   :  { %v14971_v37 = vpop.f32.mrb[13].mxu0 }
 0x113   :  { %v14976_v39 = vpop.f32.mrb[14].mxu0 }
 0x114   :  { %v14981_v41 = vpop.f32.mrb[15].mxu0 }
 0x116   :  { %3192 = vmatmul.mubr.bf16.gmra.mrb[120].mxu0 %v13808_v38 }
 0x117   :  { %12203 = vmatprep.mubr.msk.bf16.mxu0 %vm2275_vm0, %v13809_v40 }
 0x119   :  { %v14984_v42 = vpop.f32.mrb[16].mxu0 }
 0x11a   :  { %v14986_v43 = vpop.f32.mrb[17].mxu0 }
 0x11b   :  { %v14991_v45 = vpop.f32.mrb[18].mxu0 }
 0x11c   :  { %v14996_v47 = vpop.f32.mrb[19].mxu0 }
 0x11e   :  { %3202 = vmatmul.mubr.bf16.gmra.mrb[124].mxu0 %v13811_v44  ;;  %v13877_v44 = vld [vmem:[%s20496_s3 + $0x44] ss:$8 sps:$4 sm:$0xff]  }
 0x11f   :  { %12204 = vmatprep.mubr.msk.bf16.mxu0 %vm2275_vm0, %v13812_v46  ;;  %5865 = vmatprep.subr.bf16.mxu0 %v13877_v44 }
 0x120   :  { %12885 = vmatprep.subr.bf16.mxu1 %v13877_v44  ;;  %5866 = vmatpush1.bf16.msra.mxu0 %v13875_v21  ;;  %v2920_v44 = vadd.f32 %v14966_v35, %v15056_v8  ;;  %v13832_v35 = vld [vmem:[%s20495_s0 + $0x260] ss:$8 sps:$4 sm:$0xff]  }
 0x121   :  { %v14999_v48 = vpop.f32.mrb[20].mxu0  ;;  %12900 = vmatpush1.bf16.msra.mxu1 %v13875_v21 }
 0x122   :  { %v15001_v49 = vpop.f32.mrb[21].mxu0 }
 0x123   :  { %v15006_v51 = vpop.f32.mrb[22].mxu0 }
 0x124   :  { %v15011_v53 = vpop.f32.mrb[23].mxu0 }
 0x126   :  { %3212 = vmatmul.mubr.bf16.gmra.mrb[128].mxu0 %v13814_v50  ;;  %v2904_v50 = vadd.f32 %v14939_v24, %v15052_v7  ;;  %v2908_v24 = vadd.f32 %v14946_v27, %v15052_v7  ;;  %v2914_v27 = vadd.f32 %v14954_v30, %v15052_v7  ;;  %v2918_v30 = vadd.f32 %v14961_v33, %v15052_v7 }
 0x127   :  { %12205 = vmatprep.mubr.msk.bf16.mxu0 %vm2275_vm0, %v13815_v52  ;;  %v2924_v33 = vadd.f32 %v14969_v36, %v15052_v7  ;;  %v2928_v36 = vadd.f32 %v14976_v39, %v15052_v7  ;;  %v2934_v39 = vadd.f32 %v14984_v42, %v15052_v7  ;;  %v2938_v42 = vadd.f32 %v14991_v45, %v15052_v7 }
 0x128   :  { %v2944_v45 = vadd.f32 %v14999_v48, %v15052_v7  ;;  %v2948_v48 = vadd.f32 %v15006_v51, %v15052_v7 }
 0x129   :  { %v15014_v54 = vpop.f32.mrb[24].mxu0 }
 0x12a   :  { %v15016_v56 = vpop.f32.mrb[25].mxu0  ;;  %v2954_v51 = vadd.f32 %v15014_v54, %v15052_v7 }
 0x12b   :  { %v15021_v58 = vpop.f32.mrb[26].mxu0 }
 0x12c   :  { %v15026_v60 = vpop.f32.mrb[27].mxu0  ;;  %v2958_v54 = vadd.f32 %v15021_v58, %v15052_v7 }
 0x12e   :  { %3222 = vmatmul.mubr.bf16.gmra.mrb[132].mxu0 %v13817_v57  ;;  %v13826_v57 = vld [vmem:[%s20495_s0 + $0x240] ss:$8 sps:$4 sm:$0xff]  }
 0x12f   :  { %12206 = vmatprep.mubr.msk.bf16.mxu0 %vm2275_vm0, %v13818_v59  ;;  %v2906_v59 = vadd.f32 %v14941_v25, %v15056_v8 }
 0x131   :  { %v15031_v62 = vpop.f32.mrb[28].mxu0 }
 0x132   :  { %v15034_v0 = vpop.f32.mrb[29].mxu0  ;;  %v2964_v58 = vadd.f32 %v15031_v62, %v15052_v7 }
 0x133   :  { %v15043_v4 = vpop.f32.mrb[30].mxu0 }
 0x134   :  { %v15048_v6 = vpop.f32.mrb[31].mxu0  ;;  %v2968_v62 = vadd.f32 %v15043_v4, %v15052_v7 }
 0x136   :  { %3232 = vmatmul.mubr.bf16.gmra.mrb[136].mxu0 %v13820_v1 }
 0x137   :  { %12207 = vmatprep.mubr.msk.bf16.mxu0 %vm2275_vm0, %v13821_v5  ;;  %v13827_v5 = vld [vmem:[%s20495_s0 + $0x254] ss:$8 sps:$4 sm:$0xff]  }
 0x139   :  { %v2973_v9 = vpop.f32.mrb[32].mxu0 }
 0x13a   :  { %v2974_v11 = vadd.f32 %v2973_v9, %v15052_v7  ;;  %v2975_v12 = vpop.f32.mrb[33].mxu0 }
 0x13b   :  { %v2976_v15 = vadd.f32 %v2975_v12, %v15056_v8  ;;  %v2977_v16 = vpop.f32.mrb[34].mxu0  ;;  %v2910_v12 = vadd.f32 %v14951_v29, %v15056_v8  ;;  %v13829_v29 = vld [vmem:[%s20495_s0 + $0x250] ss:$8 sps:$4 sm:$0xff]  }
 0x13c   :  { %v4812_v20 = vmax.f32 %v2894_v10, %v2974_v11  ;;  %v2978_v22 = vadd.f32 %v2977_v16, %v15052_v7  ;;  %v2979_v26 = vpop.f32.mrb[35].mxu0 }
 0x13d   :  { %v4813_v32 = vmax.f32 %v2896_v14, %v2976_v15  ;;  %v2980_v19 = vadd.f32 %v2979_v26, %v15056_v8  ;;  %v2916_v26 = vadd.f32 %v14956_v31, %v15056_v8 }
 0x13e   :  { %v4814_v34 = vmax.f32 %v2898_v18, %v2978_v22  ;;  %3242 = vmatmul.mubr.bf16.gmra.mrb[140].mxu0 %v13823_v13 }
 0x13f   :  { %v4815_v38 = vmax.f32 %v2900_v28, %v2980_v19  ;;  %12208 = vmatprep.mubr.msk.bf16.mxu0 %vm2275_vm0, %v13824_v17  ;;  %v13830_v19 = vld [vmem:[%s20495_s0 + $0x264] ss:$8 sps:$4 sm:$0xff]  }
 0x140   :  { %v15078_v40 = vpack.c.bf16 %v4814_v34, %v4812_v20 }
 0x141   :  { %v2983_v46 = vpop.f32.mrb[36].mxu0  ;;  %v15086_v23 = vpack.c.bf16 %v4815_v38, %v4813_v32 }
 0x142   :  { %v2984_v52 = vadd.f32 %v2983_v46, %v15052_v7  ;;  %v2985_v55 = vpop.f32.mrb[37].mxu0 }
 0x143   :  { %v2986_v1 = vadd.f32 %v2985_v55, %v15056_v8  ;;  %v2987_v2 = vpop.f32.mrb[38].mxu0 }
 0x144   :  { %v4816_v9 = vmax.f32 %v2904_v50, %v2984_v52  ;;  %v2988_v10 = vadd.f32 %v2987_v2, %v15052_v7  ;;  %v2989_v11 = vpop.f32.mrb[39].mxu0 }
 0x145   :  { %v4817_v25 = vmax.f32 %v2906_v59, %v2986_v1  ;;  %v2990_v13 = vadd.f32 %v2989_v11, %v15056_v8 }
 0x146   :  { %v4818_v14 = vmax.f32 %v2908_v24, %v2988_v10  ;;  %3252 = vmatmul.mubr.bf16.gmra.mrb[144].mxu0 %v13826_v57  ;;  %v13836_v10 = vld [vmem:[%s20495_s0 + $0x274] ss:$8 sps:$4 sm:$0xff]  }
 0x147   :  { %v4819_v15 = vmax.f32 %v2910_v12, %v2990_v13  ;;  %12209 = vmatprep.mubr.msk.bf16.mxu0 %vm2275_vm0, %v13827_v5  ;;  %v2926_v5 = vadd.f32 %v14971_v37, %v15056_v8  ;;  %v2930_v13 = vadd.f32 %v14981_v41, %v15056_v8  ;;  %v13838_v41 = vld [vmem:[%s20495_s0 + $0x270] ss:$8 sps:$4 sm:$0xff]  }
 0x148   :  { %v15107_v16 = vpack.c.bf16 %v4818_v14, %v4816_v9 }
 0x149   :  { %v2993_v17 = vpop.f32.mrb[40].mxu0  ;;  %v15109_v18 = vpack.c.bf16 %v4819_v15, %v4817_v25 }
 0x14a   :  { %v2994_v20 = vadd.f32 %v2993_v17, %v15052_v7  ;;  %v2995_v22 = vpop.f32.mrb[41].mxu0 }
 0x14b   :  { %v2996_v28 = vadd.f32 %v2995_v22, %v15056_v8  ;;  %v2997_v32 = vpop.f32.mrb[42].mxu0 }
 0x14c   :  { %v4820_v34 = vmax.f32 %v2914_v27, %v2994_v20  ;;  %v2998_v38 = vadd.f32 %v2997_v32, %v15052_v7  ;;  %v2999_v21 = vpop.f32.mrb[43].mxu0 }
 0x14d   :  { %v4821_v46 = vmax.f32 %v2916_v26, %v2996_v28  ;;  %v3000_v31 = vadd.f32 %v2999_v21, %v15056_v8  ;;  %v2936_v28 = vadd.f32 %v14986_v43, %v15056_v8 }
 0x14e   :  { %v4822_v50 = vmax.f32 %v2918_v30, %v2998_v38  ;;  %3262 = vmatmul.mubr.bf16.gmra.mrb[148].mxu0 %v13829_v29  ;;  %v13839_v30 = vld [vmem:[%s20495_s0 + $0x284] ss:$8 sps:$4 sm:$0xff]  }
 0x14f   :  { %v4823_v52 = vmax.f32 %v2920_v44, %v3000_v31  ;;  %12210 = vmatprep.mubr.msk.bf16.mxu0 %vm2275_vm0, %v13830_v19  ;;  %v2940_v44 = vadd.f32 %v14996_v47, %v15056_v8  ;;  %v13841_v47 = vld [vmem:[%s20495_s0 + $0x280] ss:$8 sps:$4 sm:$0xff]  }
 0x150   :  { %v15130_v55 = vpack.c.bf16 %v4822_v50, %v4820_v34 }
 0x151   :  { %v3003_v57 = vpop.f32.mrb[44].mxu0  ;;  %v15132_v59 = vpack.c.bf16 %v4823_v52, %v4821_v46 }
 0x152   :  { %v3004_v1 = vadd.f32 %v3003_v57, %v15052_v7  ;;  %v3005_v2 = vpop.f32.mrb[45].mxu0 }
 0x153   :  { %v3006_v24 = vadd.f32 %v3005_v2, %v15056_v8  ;;  %v3007_v9 = vpop.f32.mrb[46].mxu0 }
 0x154   :  { %v4824_v11 = vmax.f32 %v2924_v33, %v3004_v1  ;;  %v3008_v12 = vadd.f32 %v3007_v9, %v15052_v7  ;;  %v3009_v25 = vpop.f32.mrb[47].mxu0  ;;  %v13842_v9 = vld [vmem:[%s20495_s0 + $0x294] ss:$8 sps:$4 sm:$0xff]  }
 0x155   :  { %v4825_v14 = vmax.f32 %v2926_v5, %v3006_v24  ;;  %v3010_v37 = vadd.f32 %v3009_v25, %v15056_v8 }
 0x156   :  { %v4826_v15 = vmax.f32 %v2928_v36, %v3008_v12  ;;  %3272 = vmatmul.mubr.bf16.gmra.mrb[152].mxu0 %v13832_v35  ;;  %v2946_v35 = vadd.f32 %v15001_v49, %v15056_v8  ;;  %v2950_v12 = vadd.f32 %v15011_v53, %v15056_v8  ;;  %v13844_v53 = vld [vmem:[%s20495_s0 + $0x290] ss:$8 sps:$4 sm:$0xff]  }
 0x157   :  { %v4827_v17 = vmax.f32 %v2930_v13, %v3010_v37  ;;  %12211 = vmatprep.mubr.msk.bf16.mxu0 %vm2275_vm0, %v13836_v10 }
 0x158   :  { %v15153_v27 = vpack.c.bf16 %v4826_v15, %v4824_v11 }
 0x159   :  { %v3013_v20 = vpop.f32.mrb[48].mxu0  ;;  %v15155_v22 = vpack.c.bf16 %v4827_v17, %v4825_v14 }
 0x15a   :  { %v3014_v29 = vadd.f32 %v3013_v20, %v15052_v7  ;;  %v3015_v26 = vpop.f32.mrb[49].mxu0 }
 0x15b   :  { %v3016_v32 = vadd.f32 %v3015_v26, %v15056_v8  ;;  %v3017_v19 = vpop.f32.mrb[50].mxu0 }
 0x15c   :  { %v4828_v34 = vmax.f32 %v2934_v39, %v3014_v29  ;;  %v3018_v38 = vadd.f32 %v3017_v19, %v15052_v7  ;;  %v3019_v21 = vpop.f32.mrb[51].mxu0  ;;  %v2956_v29 = vadd.f32 %v15016_v56, %v15056_v8 }
 0x15d   :  { %v4829_v46 = vmax.f32 %v2936_v28, %v3016_v32  ;;  %v3020_v43 = vadd.f32 %v3019_v21, %v15056_v8  ;;  %v13845_v28 = vld [vmem:[%s20495_s0 + $0x2a4] ss:$8 sps:$4 sm:$0xff]  }
 0x15e   :  { %v4830_v31 = vmax.f32 %v2938_v42, %v3018_v38  ;;  %3282 = vmatmul.mubr.bf16.gmra.mrb[156].mxu0 %v13838_v41  ;;  %v2960_v42 = vadd.f32 %v15026_v60, %v15056_v8  ;;  %v13847_v60 = vld [vmem:[%s20495_s0 + $0x2a0] ss:$8 sps:$4 sm:$0xff]  }
 0x15f   :  { %v4831_v50 = vmax.f32 %v2940_v44, %v3020_v43  ;;  %12212 = vmatprep.mubr.msk.bf16.mxu0 %vm2275_vm0, %v13839_v30 }
 0x160   :  { %v15176_v52 = vpack.c.bf16 %v4830_v31, %v4828_v34 }
 0x161   :  { %v3023_v57 = vpop.f32.mrb[52].mxu0  ;;  %v15178_v33 = vpack.c.bf16 %v4831_v50, %v4829_v46 }
 0x162   :  { %20598 = vst [vmem:[#allocation3_spill] sm:$0xff] %v15176_v52  ;;  %v3024_v1 = vadd.f32 %v3023_v57, %v15052_v7  ;;  %v3025_v2 = vpop.f32.mrb[53].mxu0  ;;  %v2966_v57 = vadd.f32 %v15034_v0, %v15056_v8 }
 0x163   :  { %v3026_v5 = vadd.f32 %v3025_v2, %v15056_v8  ;;  %v3027_v24 = vpop.f32.mrb[54].mxu0  ;;  %v13848_v2 = vld [vmem:[%s20495_s0 + $0x2b4] ss:$8 sps:$4 sm:$0xff]  }
 0x164   :  { %v4832_v10 = vmax.f32 %v2944_v45, %v3024_v1  ;;  %v3028_v36 = vadd.f32 %v3027_v24, %v15052_v7  ;;  %v3029_v11 = vpop.f32.mrb[55].mxu0  ;;  %v2970_v24 = vadd.f32 %v15048_v6, %v15056_v8  ;;  %v13850_v6 = vld [vmem:[%s20495_s0 + $0x2b0] ss:$8 sps:$4 sm:$0xff]  }
 0x165   :  { %v4833_v25 = vmax.f32 %v2946_v35, %v3026_v5  ;;  %v3030_v49 = vadd.f32 %v3029_v11, %v15056_v8 }
 0x166   :  { %v4834_v13 = vmax.f32 %v2948_v48, %v3028_v36  ;;  %3292 = vmatmul.mubr.bf16.gmra.mrb[160].mxu0 %v13841_v47 }
 0x167   :  { %v4835_v14 = vmax.f32 %v2950_v12, %v3030_v49  ;;  %12213 = vmatprep.mubr.msk.bf16.mxu0 %vm2275_vm0, %v13842_v9  ;;  %v13851_v49 = vld [vmem:[%s20495_s0 + $0x2c4] ss:$8 sps:$4 sm:$0xff]  }
 0x168   :  { %v15199_v37 = vpack.c.bf16 %v4834_v13, %v4832_v10 }
 0x169   :  { %v3033_v15 = vpop.f32.mrb[56].mxu0  ;;  %v15201_v17 = vpack.c.bf16 %v4835_v14, %v4833_v25 }
 0x16a   :  { %20599 = vst [vmem:[#allocation4_spill] sm:$0xff] %v15199_v37  ;;  %v3034_v20 = vadd.f32 %v3033_v15, %v15052_v7  ;;  %v3035_v39 = vpop.f32.mrb[57].mxu0 }
 0x16b   :  { %20600 = vst [vmem:[#allocation5_spill] sm:$0xff] %v15201_v17  ;;  %v3036_v26 = vadd.f32 %v3035_v39, %v15056_v8  ;;  %v3037_v41 = vpop.f32.mrb[58].mxu0  ;;  %v13854_v39 = vld [vmem:[%s20495_s0 + $0x2d4] ss:$8 sps:$4 sm:$0xff]  }
 0x16c   :  { %v4836_v32 = vmax.f32 %v2954_v51, %v3034_v20  ;;  %v3038_v19 = vadd.f32 %v3037_v41, %v15052_v7  ;;  %v3039_v30 = vpop.f32.mrb[59].mxu0  ;;  %v13853_v51 = vld [vmem:[%s20495_s0 + $0x2c0] ss:$8 sps:$4 sm:$0xff]   ;;  %v13856_v41 = vld [vmem:[%s20495_s0 + $0x2d0] ss:$8 sps:$4 sm:$0xff]  }
 0x16d   :  { %v4837_v34 = vmax.f32 %v2956_v29, %v3036_v26  ;;  %v3040_v56 = vadd.f32 %v3039_v30, %v15056_v8 }
 0x16e   :  { %v4838_v38 = vmax.f32 %v2958_v54, %v3038_v19  ;;  %3302 = vmatmul.mubr.bf16.gmra.mrb[164].mxu0 %v13844_v53  ;;  %v13857_v54 = vld [vmem:[%s20495_s0 + $0x2e4] ss:$8 sps:$4 sm:$0xff]  }
 0x16f   :  { %v4839_v21 = vmax.f32 %v2960_v42, %v3040_v56  ;;  %12214 = vmatprep.mubr.msk.bf16.mxu0 %vm2275_vm0, %v13845_v28  ;;  %v13859_v42 = vld [vmem:[%s20495_s0 + $0x2e0] ss:$8 sps:$4 sm:$0xff]   ;;  %v13860_v56 = vld [vmem:[%s20495_s0 + $0x2f4] ss:$8 sps:$4 sm:$0xff]  }
 0x170   :  { %v15222_v44 = vpack.c.bf16 %v4838_v38, %v4836_v32 }
 0x171   :  { %v3043_v46 = vpop.f32.mrb[60].mxu0  ;;  %v15224_v43 = vpack.c.bf16 %v4839_v21, %v4837_v34 }
 0x172   :  { %20601 = vst [vmem:[#allocation6_spill] sm:$0xff] %v15222_v44  ;;  %v3044_v31 = vadd.f32 %v3043_v46, %v15052_v7  ;;  %v3045_v50 = vpop.f32.mrb[61].mxu0 }
 0x173   :  { %20602 = vst [vmem:[#allocation7_spill] sm:$0xff] %v15224_v43  ;;  %v3046_v45 = vadd.f32 %v3045_v50, %v15056_v8  ;;  %v3047_v1 = vpop.f32.mrb[62].mxu0  ;;  %v13863_v50 = vld [vmem:[%s20495_s0 + $0x304] ss:$8 sps:$4 sm:$0xff]  }
 0x174   :  { %v4840_v47 = vmax.f32 %v2964_v58, %v3044_v31  ;;  %v3048_v35 = vadd.f32 %v3047_v1, %v15052_v7  ;;  %v3049_v5 = vpop.f32.mrb[63].mxu0  ;;  %v13862_v58 = vld [vmem:[%s20495_s0 + $0x2f0] ss:$8 sps:$4 sm:$0xff]   ;;  %v13865_v1 = vld [vmem:[%s20495_s0 + $0x300] ss:$8 sps:$4 sm:$0xff]  }
 0x175   :  { %v4841_v9 = vmax.f32 %v2966_v57, %v3046_v45  ;;  %v3050_v0 = vadd.f32 %v3049_v5, %v15056_v8  ;;  %v13919_v5 = vld [vmem:[%s20496_s3 + $0x54] ss:$8 sps:$4 sm:$0xff]  }
 0x176   :  { %v4842_v48 = vmax.f32 %v2968_v62, %v3048_v35  ;;  %3312 = vmatmul.mubr.bf16.gmra.mrb[168].mxu0 %v13847_v60  ;;  %v13866_v62 = vld [vmem:[%s20495_s0 + $0x314] ss:$8 sps:$4 sm:$0xff]   ;;  %v13917_v35 = vld [vmem:[%s20496_s3 + $0x50] ss:$8 sps:$4 sm:$0xff]   ;;  %5867 = vmatprep.subr.bf16.mxu0 %v13919_v5 }
 0x177   :  { %v4843_v10 = vmax.f32 %v2970_v24, %v3050_v0  ;;  %12215 = vmatprep.mubr.msk.bf16.mxu0 %vm2275_vm0, %v13848_v2  ;;  %12886 = vmatprep.subr.bf16.mxu1 %v13919_v5  ;;  %v13868_v0 = vld [vmem:[%s20495_s0 + $0x310] ss:$8 sps:$4 sm:$0xff]  }
 0x178   :  { %v15245_v36 = vpack.c.bf16 %v4842_v48, %v4840_v47  ;;  %5868 = vmatpush1.bf16.msra.mxu0 %v13917_v35  ;;  %12901 = vmatpush1.bf16.msra.mxu1 %v13917_v35 }
 0x179   :  { %v15247_v11 = vpop.f32.mrb[64].mxu0  ;;  %v15249_v4 = vpack.c.bf16 %v4843_v10, %v4841_v9  ;;  %v13869_v10 = vld [vmem:[%s20495_s0 + $0x324] ss:$8 sps:$4 sm:$0xff]  }
 0x17a   :  { %20603 = vst [vmem:[#allocation8_spill] sm:$0xff] %v15245_v36  ;;  %v15251_v12 = vpop.f32.mrb[65].mxu0 }
 0x17b   :  { %20604 = vst [vmem:[#allocation9_spill] sm:$0xff] %v15249_v4  ;;  %v15256_v25 = vpop.f32.mrb[66].mxu0  ;;  %v3056_v35 = vadd.f32 %v15251_v12, %v15056_v8 }
 0x17c   :  { %v15261_v13 = vpop.f32.mrb[67].mxu0 }
 0x17d   :  { %v3060_v3 = vadd.f32 %v15261_v13, %v15056_v8  ;;  %v13880_v13 = vld [vmem:[%s20495_s0 + $0x340] ss:$8 sps:$4 sm:$0xff]  }
 0x17e   :  { %3322 = vmatmul.mubr.bf16.gmra.mrb[172].mxu0 %v13850_v6 }
 0x17f   :  { %12216 = vmatprep.mubr.msk.bf16.mxu0 %vm2275_vm0, %v13851_v49 }
 0x181   :  { %v15264_v14 = vpop.f32.mrb[68].mxu0 }
 0x182   :  { %v15266_v15 = vpop.f32.mrb[69].mxu0 }
 0x183   :  { %v15271_v20 = vpop.f32.mrb[70].mxu0 }
 0x184   :  { %v15276_v53 = vpop.f32.mrb[71].mxu0 }
 0x186   :  { %3332 = vmatmul.mubr.bf16.gmra.mrb[176].mxu0 %v13853_v51 }
 0x187   :  { %12217 = vmatprep.mubr.msk.bf16.mxu0 %vm2275_vm0, %v13854_v39  ;;  %v13871_v39 = vld [vmem:[%s20495_s0 + $0x320] ss:$8 sps:$4 sm:$0xff]  }
 0x189   :  { %v15279_v29 = vpop.f32.mrb[72].mxu0 }
 0x18a   :  { %v15281_v26 = vpop.f32.mrb[73].mxu0 }
 0x18b   :  { %v15286_v28 = vpop.f32.mrb[74].mxu0 }
 0x18c   :  { %v15291_v32 = vpop.f32.mrb[75].mxu0 }
 0x18e   :  { %3342 = vmatmul.mubr.bf16.gmra.mrb[180].mxu0 %v13856_v41 }
 0x18f   :  { %12218 = vmatprep.mubr.msk.bf16.mxu0 %vm2275_vm0, %v13857_v54  ;;  %v13872_v54 = vld [vmem:[%s20495_s0 + $0x334] ss:$8 sps:$4 sm:$0xff]  }
 0x191   :  { %v15294_v19 = vpop.f32.mrb[76].mxu0 }
 0x192   :  { %v15296_v30 = vpop.f32.mrb[77].mxu0 }
 0x193   :  { %v15301_v34 = vpop.f32.mrb[78].mxu0 }
 0x194   :  { %v15306_v38 = vpop.f32.mrb[79].mxu0 }
 0x196   :  { %3352 = vmatmul.mubr.bf16.gmra.mrb[184].mxu0 %v13859_v42 }
 0x197   :  { %12219 = vmatprep.mubr.msk.bf16.mxu0 %vm2275_vm0, %v13860_v56 }
 0x199   :  { %v15309_v21 = vpop.f32.mrb[80].mxu0 }
 0x19a   :  { %v15311_v46 = vpop.f32.mrb[81].mxu0 }
 0x19b   :  { %v15316_v31 = vpop.f32.mrb[82].mxu0 }
 0x19c   :  { %v15321_v60 = vpop.f32.mrb[83].mxu0 }
 0x19e   :  { %3362 = vmatmul.mubr.bf16.gmra.mrb[188].mxu0 %v13862_v58  ;;  %v3054_v58 = vadd.f32 %v15247_v11, %v15052_v7  ;;  %v3058_v11 = vadd.f32 %v15256_v25, %v15052_v7  ;;  %v3064_v25 = vadd.f32 %v15264_v14, %v15052_v7  ;;  %v3068_v14 = vadd.f32 %v15271_v20, %v15052_v7  ;;  %v13934_v20 = vld [vmem:[%s20496_s3 + $0x60] ss:$8 sps:$4 sm:$0xff]  }
 0x19f   :  { %12220 = vmatprep.mubr.msk.bf16.mxu0 %vm2275_vm0, %v13863_v50 }
 0x1a1   :  { %v15324_v57 = vpop.f32.mrb[84].mxu0 }
 0x1a2   :  { %v15326_v45 = vpop.f32.mrb[85].mxu0 }
 0x1a3   :  { %v15331_v2 = vpop.f32.mrb[86].mxu0 }
 0x1a4   :  { %v15336_v47 = vpop.f32.mrb[87].mxu0 }
 0x1a6   :  { %3372 = vmatmul.mubr.bf16.gmra.mrb[192].mxu0 %v13865_v1 }
 0x1a7   :  { %12221 = vmatprep.mubr.msk.bf16.mxu0 %vm2275_vm0, %v13866_v62  ;;  %v13874_v62 = vld [vmem:[%s20495_s0 + $0x330] ss:$8 sps:$4 sm:$0xff]  }
 0x1a9   :  { %v15345_v24 = vpop.f32.mrb[88].mxu0 }
 0x1aa   :  { %v15347_v9 = vpop.f32.mrb[89].mxu0 }
 0x1ab   :  { %v15352_v48 = vpop.f32.mrb[90].mxu0 }
 0x1ac   :  { %v15357_v6 = vpop.f32.mrb[91].mxu0 }
 0x1ae   :  { %3382 = vmatmul.mubr.bf16.gmra.mrb[196].mxu0 %v13868_v0 }
 0x1af   :  { %12222 = vmatprep.mubr.msk.bf16.mxu0 %vm2275_vm0, %v13869_v10  ;;  %v13878_v10 = vld [vmem:[%s20495_s0 + $0x344] ss:$8 sps:$4 sm:$0xff]  }
 0x1b1   :  { %v15360_v49 = vpop.f32.mrb[92].mxu0 }
 0x1b2   :  { %v15362_v51 = vpop.f32.mrb[93].mxu0 }
 0x1b3   :  { %v15367_v41 = vpop.f32.mrb[94].mxu0 }
 0x1b4   :  { %v15372_v42 = vpop.f32.mrb[95].mxu0 }
 0x1b6   :  { %3392 = vmatmul.mubr.bf16.gmra.mrb[200].mxu0 %v13871_v39 }
 0x1b7   :  { %12223 = vmatprep.mubr.msk.bf16.mxu0 %vm2275_vm0, %v13872_v54 }
 0x1b9   :  { %v3133_v56 = vpop.f32.mrb[96].mxu0 }
 0x1ba   :  { %v3134_v50 = vadd.f32 %v3133_v56, %v15052_v7  ;;  %v3135_v1 = vpop.f32.mrb[97].mxu0 }
 0x1bb   :  { %v3136_v5 = vadd.f32 %v3135_v1, %v15056_v8  ;;  %v3137_v0 = vpop.f32.mrb[98].mxu0 }
 0x1bc   :  { %v4844_v39 = vmax.f32 %v3054_v58, %v3134_v50  ;;  %v3138_v54 = vadd.f32 %v3137_v0, %v15052_v7  ;;  %v3139_v56 = vpop.f32.mrb[99].mxu0  ;;  %v3070_v0 = vadd.f32 %v15276_v53, %v15056_v8 }
 0x1bd   :  { %v4845_v63 = vmax.f32 %v3056_v35, %v3136_v5  ;;  %v3140_v12 = vadd.f32 %v3139_v56, %v15056_v8 }
 0x1be   :  { %v4846_v61 = vmax.f32 %v3058_v11, %v3138_v54  ;;  %3402 = vmatmul.mubr.bf16.gmra.mrb[204].mxu0 %v13874_v62 }
 0x1bf   :  { %v4847_v1 = vmax.f32 %v3060_v3, %v3140_v12  ;;  %12224 = vmatprep.mubr.msk.bf16.mxu0 %vm2275_vm0, %v13878_v10  ;;  %v3066_v3 = vadd.f32 %v15266_v15, %v15056_v8 }
 0x1c0   :  { %v15394_v36 = vpack.c.bf16 %v4846_v61, %v4844_v39  ;;  %v13932_v39 = vld [vmem:[%s20496_s3 + $0x64] ss:$8 sps:$4 sm:$0xff]  }
 0x1c1   :  { %v3143_v4 = vpop.f32.mrb[100].mxu0  ;;  %v15396_v44 = vpack.c.bf16 %v4847_v1, %v4845_v63  ;;  %v13881_v63 = vld [vmem:[%s20495_s0 + $0x354] ss:$8 sps:$4 sm:$0xff]   ;;  %12887 = vmatprep.subr.bf16.mxu1 %v13932_v39  ;;  %5869 = vmatprep.subr.bf16.mxu0 %v13932_v39  ;;  %v3074_v1 = vadd.f32 %v15279_v29, %v15052_v7  ;;  %v13884_v29 = vld [vmem:[%s20495_s0 + $0x364] ss:$8 sps:$4 sm:$0xff]  }
 0x1c2   :  { %20605 = vst [vmem:[#allocation10_spill] sm:$0xff] %v15394_v36  ;;  %v3144_v58 = vadd.f32 %v3143_v4, %v15052_v7  ;;  %v3145_v50 = vpop.f32.mrb[101].mxu0  ;;  %12902 = vmatpush1.bf16.msra.mxu1 %v13934_v20  ;;  %5870 = vmatpush1.bf16.msra.mxu0 %v13934_v20  ;;  %v13943_v39 = vld [vmem:[%s20496_s3 + $0x80] ss:$8 sps:$4 sm:$0xff]  }
 0x1c3   :  { %20606 = vst [vmem:[#allocation11_spill] sm:$0xff] %v15396_v44  ;;  %v3146_v62 = vadd.f32 %v3145_v50, %v15056_v8  ;;  %v3147_v61 = vpop.f32.mrb[102].mxu0  ;;  %v13883_v50 = vld [vmem:[%s20495_s0 + $0x350] ss:$8 sps:$4 sm:$0xff]  }
 0x1c4   :  { %v4848_v35 = vmax.f32 %v3064_v25, %v3144_v58  ;;  %v3148_v4 = vadd.f32 %v3147_v61, %v15052_v7  ;;  %v3149_v5 = vpop.f32.mrb[103].mxu0 }
 0x1c5   :  { %v4849_v10 = vmax.f32 %v3066_v3, %v3146_v62  ;;  %v3150_v15 = vadd.f32 %v3149_v5, %v15056_v8  ;;  %v3076_v3 = vadd.f32 %v15281_v26, %v15056_v8  ;;  %v3080_v26 = vadd.f32 %v15291_v32, %v15056_v8 }
 0x1c6   :  { %v4850_v11 = vmax.f32 %v3068_v14, %v3148_v4  ;;  %3412 = vmatmul.mubr.bf16.gmra.mrb[208].mxu0 %v13880_v13  ;;  %v13935_v13 = vld [vmem:[%s20496_s3 + $0x74] ss:$8 sps:$4 sm:$0xff]   ;;  %v3078_v14 = vadd.f32 %v15286_v28, %v15052_v7  ;;  %v13941_v28 = vld [vmem:[%s20496_s3 + $0x84] ss:$8 sps:$4 sm:$0xff]  }
 0x1c7   :  { %v4851_v54 = vmax.f32 %v3070_v0, %v3150_v15  ;;  %12225 = vmatprep.mubr.msk.bf16.mxu0 %vm2275_vm0, %v13881_v63  ;;  %v13940_v63 = vld [vmem:[%s20496_s3 + $0x70] ss:$8 sps:$4 sm:$0xff]   ;;  %12888 = vmatprep.subr.bf16.mxu1 %v13935_v13 }
 0x1c8   :  { %v15423_v56 = vpack.c.bf16 %v4850_v11, %v4848_v35  ;;  %5871 = vmatprep.subr.bf16.mxu0 %v13935_v13  ;;  %12903 = vmatpush1.bf16.msra.mxu1 %v13940_v63  ;;  %v3086_v13 = vadd.f32 %v15296_v30, %v15056_v8  ;;  %v3090_v30 = vadd.f32 %v15306_v38, %v15056_v8 }
 0x1c9   :  { %v3153_v53 = vpop.f32.mrb[104].mxu0  ;;  %v15425_v12 = vpack.c.bf16 %v4851_v54, %v4849_v10  ;;  %5872 = vmatpush1.bf16.msra.mxu0 %v13940_v63  ;;  %12889 = vmatprep.subr.bf16.mxu1 %v13941_v28 }
 0x1ca   :  { %20607 = vst [vmem:[#allocation12_spill] sm:$0xff] %v15423_v56  ;;  %v3154_v25 = vadd.f32 %v3153_v53, %v15052_v7  ;;  %v3155_v58 = vpop.f32.mrb[105].mxu0  ;;  %5873 = vmatprep.subr.bf16.mxu0 %v13941_v28  ;;  %v3084_v53 = vadd.f32 %v15294_v19, %v15052_v7  ;;  %v13887_v19 = vld [vmem:[%s20495_s0 + $0x374] ss:$8 sps:$4 sm:$0xff]  }
 0x1cb   :  { %20608 = vst [vmem:[#allocation13_spill] sm:$0xff] %v15425_v12  ;;  %v3156_v62 = vadd.f32 %v3155_v58, %v15056_v8  ;;  %v3157_v61 = vpop.f32.mrb[106].mxu0  ;;  %v13886_v58 = vld [vmem:[%s20495_s0 + $0x360] ss:$8 sps:$4 sm:$0xff]  }
 0x1cc   :  { %v4852_v35 = vmax.f32 %v3074_v1, %v3154_v25  ;;  %v3158_v4 = vadd.f32 %v3157_v61, %v15052_v7  ;;  %v3159_v5 = vpop.f32.mrb[107].mxu0  ;;  %12904 = vmatpush1.bf16.msra.mxu1 %v13943_v39  ;;  %v13949_v61 = vld [vmem:[%s20496_s3 + $0x90] ss:$8 sps:$4 sm:$0xff]  }
 0x1cd   :  { %v4853_v0 = vmax.f32 %v3076_v3, %v3156_v62  ;;  %v3160_v10 = vadd.f32 %v3159_v5, %v15056_v8  ;;  %5874 = vmatpush1.bf16.msra.mxu0 %v13943_v39 }
 0x1ce   :  { %v4854_v15 = vmax.f32 %v3078_v14, %v3158_v4  ;;  %3422 = vmatmul.mubr.bf16.gmra.mrb[212].mxu0 %v13883_v50  ;;  %v13944_v50 = vld [vmem:[%s20496_s3 + $0x94] ss:$8 sps:$4 sm:$0xff]  }
 0x1cf   :  { %v4855_v11 = vmax.f32 %v3080_v26, %v3160_v10  ;;  %12226 = vmatprep.mubr.msk.bf16.mxu0 %vm2275_vm0, %v13884_v29  ;;  %v3088_v29 = vadd.f32 %v15301_v34, %v15052_v7  ;;  %12890 = vmatprep.subr.bf16.mxu1 %v13944_v50  ;;  %v13950_v34 = vld [vmem:[%s20496_s3 + $0xa4] ss:$8 sps:$4 sm:$0xff]   ;;  %v13952_v10 = vld [vmem:[%s20496_s3 + $0xa0] ss:$8 sps:$4 sm:$0xff]  }
 0x1d0   :  { %v15458_v54 = vpack.c.bf16 %v4854_v15, %v4852_v35  ;;  %5875 = vmatprep.subr.bf16.mxu0 %v13944_v50  ;;  %12905 = vmatpush1.bf16.msra.mxu1 %v13949_v61 }
 0x1d1   :  { %v3163_v32 = vpop.f32.mrb[108].mxu0  ;;  %v15460_v20 = vpack.c.bf16 %v4855_v11, %v4853_v0  ;;  %5876 = vmatpush1.bf16.msra.mxu0 %v13949_v61  ;;  %12891 = vmatprep.subr.bf16.mxu1 %v13950_v34  ;;  %v3094_v11 = vadd.f32 %v15309_v21, %v15052_v7  ;;  %v13890_v21 = vld [vmem:[%s20495_s0 + $0x384] ss:$8 sps:$4 sm:$0xff]  }
 0x1d2   :  { %20609 = vst [vmem:[#allocation14_spill] sm:$0xff] %v15458_v54  ;;  %v3164_v1 = vadd.f32 %v3163_v32, %v15052_v7  ;;  %v3165_v25 = vpop.f32.mrb[109].mxu0  ;;  %5877 = vmatprep.subr.bf16.mxu0 %v13950_v34 }
 0x1d3   :  { %20610 = vst [vmem:[#allocation15_spill] sm:$0xff] %v15460_v20  ;;  %v3166_v3 = vadd.f32 %v3165_v25, %v15056_v8  ;;  %v3167_v62 = vpop.f32.mrb[110].mxu0  ;;  %v3096_v25 = vadd.f32 %v15311_v46, %v15056_v8  ;;  %v3100_v46 = vadd.f32 %v15321_v60, %v15056_v8 }
 0x1d4   :  { %v4856_v63 = vmax.f32 %v3084_v53, %v3164_v1  ;;  %v3168_v14 = vadd.f32 %v3167_v62, %v15052_v7  ;;  %v3169_v35 = vpop.f32.mrb[111].mxu0  ;;  %12906 = vmatpush1.bf16.msra.mxu1 %v13952_v10  ;;  %v13889_v53 = vld [vmem:[%s20495_s0 + $0x370] ss:$8 sps:$4 sm:$0xff]   ;;  %v13953_v1 = vld [vmem:[%s20496_s3 + $0xb4] ss:$8 sps:$4 sm:$0xff]  }
 0x1d5   :  { %v4857_v4 = vmax.f32 %v3086_v13, %v3166_v3  ;;  %v3170_v5 = vadd.f32 %v3169_v35, %v15056_v8  ;;  %5878 = vmatpush1.bf16.msra.mxu0 %v13952_v10  ;;  %v13958_v13 = vld [vmem:[%s20496_s3 + $0xb0] ss:$8 sps:$4 sm:$0xff]   ;;  %v3098_v3 = vadd.f32 %v15316_v31, %v15052_v7  ;;  %12892 = vmatprep.subr.bf16.mxu1 %v13953_v1  ;;  %v13959_v31 = vld [vmem:[%s20496_s3 + $0xc4] ss:$8 sps:$4 sm:$0xff]   ;;  %v13892_v10 = vld [vmem:[%s20495_s0 + $0x380] ss:$8 sps:$4 sm:$0xff]  }
 0x1d6   :  { %v4858_v26 = vmax.f32 %v3088_v29, %v3168_v14  ;;  %3432 = vmatmul.mubr.bf16.gmra.mrb[216].mxu0 %v13886_v58  ;;  %5879 = vmatprep.subr.bf16.mxu0 %v13953_v1  ;;  %v3108_v1 = vadd.f32 %v15331_v2, %v15052_v7  ;;  %v13968_v2 = vld [vmem:[%s20496_s3 + $0xe4] ss:$8 sps:$4 sm:$0xff]  }
 0x1d7   :  { %v4859_v0 = vmax.f32 %v3090_v30, %v3170_v5  ;;  %12227 = vmatprep.mubr.msk.bf16.mxu0 %vm2275_vm0, %v13887_v19  ;;  %v13961_v30 = vld [vmem:[%s20496_s3 + $0xc0] ss:$8 sps:$4 sm:$0xff]  }
 0x1d8   :  { %v15493_v15 = vpack.c.bf16 %v4858_v26, %v4856_v63  ;;  %12907 = vmatpush1.bf16.msra.mxu1 %v13958_v13  ;;  %v3104_v26 = vadd.f32 %v15324_v57, %v15052_v7  ;;  %v13893_v57 = vld [vmem:[%s20495_s0 + $0x394] ss:$8 sps:$4 sm:$0xff]  }
 0x1d9   :  { %v3173_v38 = vpop.f32.mrb[112].mxu0  ;;  %v15495_v28 = vpack.c.bf16 %v4859_v0, %v4857_v4  ;;  %5880 = vmatpush1.bf16.msra.mxu0 %v13958_v13  ;;  %12893 = vmatprep.subr.bf16.mxu1 %v13959_v31 }
 0x1da   :  { %20611 = vst [vmem:[#allocation16_spill] sm:$0xff] %v15493_v15  ;;  %v3174_v39 = vadd.f32 %v3173_v38, %v15052_v7  ;;  %v3175_v32 = vpop.f32.mrb[113].mxu0  ;;  %5881 = vmatprep.subr.bf16.mxu0 %v13959_v31  ;;  %v13962_v38 = vld [vmem:[%s20496_s3 + $0xd4] ss:$8 sps:$4 sm:$0xff]   ;;  %v13895_v31 = vld [vmem:[%s20495_s0 + $0x390] ss:$8 sps:$4 sm:$0xff]  }
 0x1db   :  { %20612 = vst [vmem:[#allocation17_spill] sm:$0xff] %v15495_v28  ;;  %v3176_v58 = vadd.f32 %v3175_v32, %v15056_v8  ;;  %v3177_v50 = vpop.f32.mrb[114].mxu0 }
 0x1dc   :  { %v4860_v62 = vmax.f32 %v3094_v11, %v3174_v39  ;;  %v3178_v19 = vadd.f32 %v3177_v50, %v15052_v7  ;;  %v3179_v61 = vpop.f32.mrb[115].mxu0  ;;  %12908 = vmatpush1.bf16.msra.mxu1 %v13961_v30  ;;  %v3106_v11 = vadd.f32 %v15326_v45, %v15056_v8  ;;  %v3110_v45 = vadd.f32 %v15336_v47, %v15056_v8 }
 0x1dd   :  { %v4861_v29 = vmax.f32 %v3096_v25, %v3176_v58  ;;  %v3180_v63 = vadd.f32 %v3179_v61, %v15056_v8  ;;  %5882 = vmatpush1.bf16.msra.mxu0 %v13961_v30  ;;  %12894 = vmatprep.subr.bf16.mxu1 %v13962_v38 }
 0x1de   :  { %v4862_v14 = vmax.f32 %v3098_v3, %v3178_v19  ;;  %3442 = vmatmul.mubr.bf16.gmra.mrb[220].mxu0 %v13889_v53  ;;  %v13967_v53 = vld [vmem:[%s20496_s3 + $0xd0] ss:$8 sps:$4 sm:$0xff]   ;;  %5883 = vmatprep.subr.bf16.mxu0 %v13962_v38  ;;  %v13970_v19 = vld [vmem:[%s20496_s3 + $0xe0] ss:$8 sps:$4 sm:$0xff]   ;;  %v3120_v38 = vadd.f32 %v15357_v6, %v15056_v8 }
 0x1df   :  { %v4863_v35 = vmax.f32 %v3100_v46, %v3180_v63  ;;  %12228 = vmatprep.mubr.msk.bf16.mxu0 %vm2275_vm0, %v13890_v21  ;;  %v13898_v6 = vld [vmem:[%s20495_s0 + $0x3a0] ss:$8 sps:$4 sm:$0xff]  }
 0x1e0   :  { %v15528_v4 = vpack.c.bf16 %v4862_v14, %v4860_v62  ;;  %12909 = vmatpush1.bf16.msra.mxu1 %v13967_v53 }
 0x1e1   :  { %v3183_v60 = vpop.f32.mrb[116].mxu0  ;;  %v15530_v5 = vpack.c.bf16 %v4863_v35, %v4861_v29  ;;  %5884 = vmatpush1.bf16.msra.mxu0 %v13967_v53  ;;  %12895 = vmatprep.subr.bf16.mxu1 %v13968_v2  ;;  %v3114_v29 = vadd.f32 %v15345_v24, %v15052_v7  ;;  %v3116_v35 = vadd.f32 %v15347_v9, %v15056_v8 }
 0x1e2   :  { %20613 = vst [vmem:[#allocation18_spill] sm:$0xff] %v15528_v4  ;;  %v3184_v34 = vadd.f32 %v3183_v60, %v15052_v7  ;;  %v3185_v0 = vpop.f32.mrb[117].mxu0  ;;  %5885 = vmatprep.subr.bf16.mxu0 %v13968_v2  ;;  %v3118_v24 = vadd.f32 %v15352_v48, %v15052_v7  ;;  %v3124_v48 = vadd.f32 %v15360_v49, %v15052_v7 }
 0x1e3   :  { %20614 = vst [vmem:[#allocation19_spill] sm:$0xff] %v15530_v5  ;;  %v3186_v39 = vadd.f32 %v3185_v0, %v15056_v8  ;;  %v3187_v32 = vpop.f32.mrb[118].mxu0  ;;  %v3128_v49 = vadd.f32 %v15367_v41, %v15052_v7 }
 0x1e4   :  { %v4864_v25 = vmax.f32 %v3104_v26, %v3184_v34  ;;  %v3188_v58 = vadd.f32 %v3187_v32, %v15052_v7  ;;  %v3189_v50 = vpop.f32.mrb[119].mxu0  ;;  %12910 = vmatpush1.bf16.msra.mxu1 %v13970_v19  ;;  %v13896_v26 = vld [vmem:[%s20495_s0 + $0x3a4] ss:$8 sps:$4 sm:$0xff]  }
 0x1e5   :  { %v4865_v21 = vmax.f32 %v3106_v11, %v3186_v39  ;;  %v3190_v13 = vadd.f32 %v3189_v50, %v15056_v8  ;;  %5886 = vmatpush1.bf16.msra.mxu0 %v13970_v19  ;;  %v3126_v50 = vadd.f32 %v15362_v51, %v15056_v8  ;;  %v3130_v19 = vadd.f32 %v15372_v42, %v15056_v8  ;;  %v13901_v42 = vld [vmem:[%s20495_s0 + $0x3b0] ss:$8 sps:$4 sm:$0xff]  }
 0x1e6   :  { %v4866_v3 = vmax.f32 %v3108_v1, %v3188_v58  ;;  %3452 = vmatmul.mubr.bf16.gmra.mrb[224].mxu0 %v13892_v10 }
 0x1e7   :  { %v4867_v62 = vmax.f32 %v3110_v45, %v3190_v13  ;;  %12229 = vmatprep.mubr.msk.bf16.mxu0 %vm2275_vm0, %v13893_v57  ;;  %v13899_v13 = vld [vmem:[%s20495_s0 + $0x3b4] ss:$8 sps:$4 sm:$0xff]  }
 0x1e8   :  { %v15563_v61 = vpack.c.bf16 %v4866_v3, %v4864_v25 }
 0x1e9   :  { %v3193_v47 = vpop.f32.mrb[120].mxu0  ;;  %v15565_v46 = vpack.c.bf16 %v4867_v62, %v4865_v21 }
 0x1ea   :  { %20615 = vst [vmem:[#allocation20_spill] sm:$0xff] %v15563_v61  ;;  %v3194_v63 = vadd.f32 %v3193_v47, %v15052_v7  ;;  %v3195_v14 = vpop.f32.mrb[121].mxu0 }
 0x1eb   :  { %20616 = vst [vmem:[#allocation21_spill] sm:$0xff] %v15565_v46  ;;  %v3196_v30 = vadd.f32 %v3195_v14, %v15056_v8  ;;  %v3197_v60 = vpop.f32.mrb[122].mxu0  ;;  %v13926_v46 = vld [vmem:[%s20495_s0 + $0x430] ss:$8 sps:$4 sm:$0xff]  }
 0x1ec   :  { %v4868_v34 = vmax.f32 %v3114_v29, %v3194_v63  ;;  %v3198_v0 = vadd.f32 %v3197_v60, %v15052_v7  ;;  %v3199_v10 = vpop.f32.mrb[123].mxu0  ;;  %v13902_v60 = vld [vmem:[%s20495_s0 + $0x3c4] ss:$8 sps:$4 sm:$0xff]  }
 0x1ed   :  { %v4869_v11 = vmax.f32 %v3116_v35, %v3196_v30  ;;  %v3200_v9 = vadd.f32 %v3199_v10, %v15056_v8 }
 0x1ee   :  { %v4870_v39 = vmax.f32 %v3118_v24, %v3198_v0  ;;  %3462 = vmatmul.mubr.bf16.gmra.mrb[228].mxu0 %v13895_v31  ;;  %v13904_v0 = vld [vmem:[%s20495_s0 + $0x3c0] ss:$8 sps:$4 sm:$0xff]  }
 0x1ef   :  { %v4871_v32 = vmax.f32 %v3120_v38, %v3200_v9  ;;  %12230 = vmatprep.mubr.msk.bf16.mxu0 %vm2275_vm0, %v13896_v26  ;;  %v13905_v38 = vld [vmem:[%s20495_s0 + $0x3d4] ss:$8 sps:$4 sm:$0xff]  }
 0x1f0   :  { %v15586_v57 = vpack.c.bf16 %v4870_v39, %v4868_v34 }
 0x1f1   :  { %v3203_v53 = vpop.f32.mrb[124].mxu0  ;;  %v15588_v1 = vpack.c.bf16 %v4871_v32, %v4869_v11  ;;  %v13907_v32 = vld [vmem:[%s20495_s0 + $0x3d0] ss:$8 sps:$4 sm:$0xff]  }
 0x1f2   :  { %20617 = vst [vmem:[#allocation22_spill] sm:$0xff] %v15586_v57  ;;  %v3204_v25 = vadd.f32 %v3203_v53, %v15052_v7  ;;  %v3205_v58 = vpop.f32.mrb[125].mxu0 }
 0x1f3   :  { %20618 = vst [vmem:[#allocation23_spill] sm:$0xff] %v15588_v1  ;;  %v3206_v45 = vadd.f32 %v3205_v58, %v15056_v8  ;;  %v3207_v21 = vpop.f32.mrb[126].mxu0 }
 0x1f4   :  { %v4872_v3 = vmax.f32 %v3124_v48, %v3204_v25  ;;  %v3208_v2 = vadd.f32 %v3207_v21, %v15052_v7  ;;  %v3209_v62 = vpop.f32.mrb[127].mxu0  ;;  %v13908_v48 = vld [vmem:[%s20495_s0 + $0x3e4] ss:$8 sps:$4 sm:$0xff]   ;;  %v13911_v21 = vld [vmem:[%s20495_s0 + $0x3f4] ss:$8 sps:$4 sm:$0xff]  }
 0x1f5   :  { %v4873_v47 = vmax.f32 %v3126_v50, %v3206_v45  ;;  %v3210_v51 = vadd.f32 %v3209_v62, %v15056_v8  ;;  %v13910_v50 = vld [vmem:[%s20495_s0 + $0x3e0] ss:$8 sps:$4 sm:$0xff]  }
 0x1f6   :  { %v4874_v29 = vmax.f32 %v3128_v49, %v3208_v2  ;;  %3472 = vmatmul.mubr.bf16.gmra.mrb[232].mxu0 %v13898_v6  ;;  %v13913_v2 = vld [vmem:[%s20495_s0 + $0x3f0] ss:$8 sps:$4 sm:$0xff]  }
 0x1f7   :  { %v4875_v63 = vmax.f32 %v3130_v19, %v3210_v51  ;;  %12231 = vmatprep.mubr.msk.bf16.mxu0 %vm2275_vm0, %v13899_v13  ;;  %v13916_v19 = vld [vmem:[%s20495_s0 + $0x404] ss:$8 sps:$4 sm:$0xff]  }
 0x1f8   :  { %v15609_v14 = vpack.c.bf16 %v4874_v29, %v4872_v3 }
 0x1f9   :  { %v15611_v31 = vpop.f32.mrb[128].mxu0  ;;  %v15613_v41 = vpack.c.bf16 %v4875_v63, %v4873_v47  ;;  %v13914_v63 = vld [vmem:[%s20495_s0 + $0x400] ss:$8 sps:$4 sm:$0xff]  }
 0x1fa   :  { %20619 = vst [vmem:[#allocation24_spill] sm:$0xff] %v15609_v14  ;;  %v15615_v35 = vpop.f32.mrb[129].mxu0 }
 0x1fb   :  { %20620 = vst [vmem:[#allocation25_spill] sm:$0xff] %v15613_v41  ;;  %v15620_v30 = vpop.f32.mrb[130].mxu0  ;;  %v13928_v41 = vld [vmem:[%s20495_s0 + $0x434] ss:$8 sps:$4 sm:$0xff]   ;;  %v3216_v4 = vadd.f32 %v15615_v35, %v15056_v8 }
 0x1fc   :  { %v15625_v26 = vpop.f32.mrb[131].mxu0 }
 0x1fd   :  { %v3220_v54 = vadd.f32 %v15625_v26, %v15056_v8 }
 0x1fe   :  { %3482 = vmatmul.mubr.bf16.gmra.mrb[236].mxu0 %v13901_v42 }
 0x1ff   :  { %12232 = vmatprep.mubr.msk.bf16.mxu0 %vm2275_vm0, %v13902_v60  ;;  %v13922_v60 = vld [vmem:[%s20495_s0 + $0x414] ss:$8 sps:$4 sm:$0xff]  }
 0x201   :  { %v15628_v24 = vpop.f32.mrb[132].mxu0 }
 0x202   :  { %v15630_v34 = vpop.f32.mrb[133].mxu0 }
 0x203   :  { %v15635_v10 = vpop.f32.mrb[134].mxu0 }
 0x204   :  { %v15640_v11 = vpop.f32.mrb[135].mxu0 }
 0x206   :  { %3492 = vmatmul.mubr.bf16.gmra.mrb[240].mxu0 %v13904_v0 }
 0x207   :  { %12233 = vmatprep.mubr.msk.bf16.mxu0 %vm2275_vm0, %v13905_v38 }
 0x209   :  { %v15643_v9 = vpop.f32.mrb[136].mxu0 }
 0x20a   :  { %v15645_v39 = vpop.f32.mrb[137].mxu0 }
 0x20b   :  { %v15650_v53 = vpop.f32.mrb[138].mxu0 }
 0x20c   :  { %v15655_v25 = vpop.f32.mrb[139].mxu0 }
 0x20e   :  { %3502 = vmatmul.mubr.bf16.gmra.mrb[244].mxu0 %v13907_v32 }
 0x20f   :  { %12234 = vmatprep.mubr.msk.bf16.mxu0 %vm2275_vm0, %v13908_v48  ;;  %v13920_v48 = vld [vmem:[%s20495_s0 + $0x410] ss:$8 sps:$4 sm:$0xff]  }
 0x211   :  { %v15658_v58 = vpop.f32.mrb[140].mxu0 }
 0x212   :  { %v15660_v6 = vpop.f32.mrb[141].mxu0 }
 0x213   :  { %v15665_v45 = vpop.f32.mrb[142].mxu0 }
 0x214   :  { %v15670_v13 = vpop.f32.mrb[143].mxu0 }
 0x216   :  { %3512 = vmatmul.mubr.bf16.gmra.mrb[248].mxu0 %v13910_v50 }
 0x217   :  { %12235 = vmatprep.mubr.msk.bf16.mxu0 %vm2275_vm0, %v13911_v21  ;;  %v13925_v21 = vld [vmem:[%s20495_s0 + $0x424] ss:$8 sps:$4 sm:$0xff]  }
 0x219   :  { %v15673_v49 = vpop.f32.mrb[144].mxu0 }
 0x21a   :  { %v15675_v3 = vpop.f32.mrb[145].mxu0 }
 0x21b   :  { %v15680_v62 = vpop.f32.mrb[146].mxu0 }
 0x21c   :  { %v15685_v47 = vpop.f32.mrb[147].mxu0 }
 0x21e   :  { %3522 = vmatmul.mubr.bf16.gmra.mrb[252].mxu0 %v13913_v2 }
 0x21f   :  { %12236 = vmatprep.mubr.msk.bf16.mxu0 %vm2275_vm0, %v13916_v19 }
 0x221   :  { %v15688_v51 = vpop.f32.mrb[148].mxu0 }
 0x222   :  { %v15690_v29 = vpop.f32.mrb[149].mxu0 }
 0x223   :  { %v15695_v42 = vpop.f32.mrb[150].mxu0 }
 0x224   :  { %v15700_v0 = vpop.f32.mrb[151].mxu0 }
 0x226   :  { %3532 = vmatmul.mubr.bf16.gmra.mrb[0].mxu0 %v13914_v63 }
 0x227   :  { %12237 = vmatprep.mubr.msk.bf16.mxu0 %vm2275_vm0, %v13922_v60  ;;  %v13923_v60 = vld [vmem:[%s20495_s0 + $0x420] ss:$8 sps:$4 sm:$0xff]  }
 0x229   :  { %v15703_v38 = vpop.f32.mrb[152].mxu0 }
 0x22a   :  { %v15705_v32 = vpop.f32.mrb[153].mxu0 }
 0x22b   :  { %v15710_v50 = vpop.f32.mrb[154].mxu0 }
 0x22c   :  { %v15715_v2 = vpop.f32.mrb[155].mxu0 }
 0x22e   :  { %3542 = vmatmul.mubr.bf16.gmra.mrb[4].mxu0 %v13920_v48 }
 0x22f   :  { %12238 = vmatprep.mubr.msk.bf16.mxu0 %vm2275_vm0, %v13925_v21  ;;  %v3214_v21 = vadd.f32 %v15611_v31, %v15052_v7  ;;  %v3218_v31 = vadd.f32 %v15620_v30, %v15052_v7 }
 0x231   :  { %v15718_v19 = vpop.f32.mrb[156].mxu0 }
 0x232   :  { %v15720_v63 = vpop.f32.mrb[157].mxu0 }
 0x233   :  { %v15725_v14 = vpop.f32.mrb[158].mxu0 }
 0x234   :  { %v15730_v57 = vpop.f32.mrb[159].mxu0 }
 0x236   :  { %3552 = vmatmul.mubr.bf16.gmra.mrb[8].mxu0 %v13923_v60 }
 0x237   :  { %12239 = vmatprep.mubr.msk.bf16.mxu0 %vm2275_vm0, %v13928_v41  ;;  %v13931_v41 = vld [vmem:[%s20495_s0 + $0x444] ss:$8 sps:$4 sm:$0xff]  }
 0x239   :  { %v3293_v48 = vpop.f32.mrb[160].mxu0 }
 0x23a   :  { %v3294_v1 = vadd.f32 %v3293_v48, %v15052_v7  ;;  %v3295_v61 = vpop.f32.mrb[161].mxu0 }
 0x23b   :  { %v3296_v5 = vadd.f32 %v3295_v61, %v15056_v8  ;;  %v3297_v15 = vpop.f32.mrb[162].mxu0 }
 0x23c   :  { %v4876_v60 = vmax.f32 %v3214_v21, %v3294_v1  ;;  %v3298_v48 = vadd.f32 %v3297_v15, %v15052_v7  ;;  %v3299_v28 = vpop.f32.mrb[163].mxu0  ;;  %v3224_v15 = vadd.f32 %v15628_v24, %v15052_v7  ;;  %v3230_v24 = vadd.f32 %v15640_v11, %v15056_v8  ;;  %v13937_v11 = vld [vmem:[%s20495_s0 + $0x450] ss:$8 sps:$4 sm:$0xff]  }
 0x23d   :  { %v4877_v20 = vmax.f32 %v3216_v4, %v3296_v5  ;;  %v3300_v35 = vadd.f32 %v3299_v28, %v15056_v8  ;;  %v13929_v28 = vld [vmem:[%s20495_s0 + $0x440] ss:$8 sps:$4 sm:$0xff]   ;;  %v3228_v5 = vadd.f32 %v15635_v10, %v15052_v7  ;;  %v3234_v10 = vadd.f32 %v15643_v9, %v15052_v7 }
 0x23e   :  { %v4878_v56 = vmax.f32 %v3218_v31, %v3298_v48  ;;  %3562 = vmatmul.mubr.bf16.gmra.mrb[12].mxu0 %v13926_v46  ;;  %v3238_v9 = vadd.f32 %v15650_v53, %v15052_v7  ;;  %v3244_v53 = vadd.f32 %v15658_v58, %v15052_v7  ;;  %v3248_v58 = vadd.f32 %v15665_v45, %v15052_v7 }
 0x23f   :  { %v4879_v61 = vmax.f32 %v3220_v54, %v3300_v35  ;;  %12240 = vmatprep.mubr.msk.bf16.mxu0 %vm2275_vm0, %v13931_v41  ;;  %v3226_v54 = vadd.f32 %v15630_v34, %v15056_v8  ;;  %v3254_v45 = vadd.f32 %v15673_v49, %v15052_v7  ;;  %v3258_v49 = vadd.f32 %v15680_v62, %v15052_v7 }
 0x240   :  { %v15752_v12 = vpack.c.bf16 %v4878_v56, %v4876_v60  ;;  %v3264_v62 = vadd.f32 %v15688_v51, %v15052_v7  ;;  %v3268_v51 = vadd.f32 %v15695_v42, %v15052_v7  ;;  %v3274_v42 = vadd.f32 %v15703_v38, %v15052_v7 }
 0x241   :  { %v3303_v36 = vpop.f32.mrb[164].mxu0  ;;  %v15754_v44 = vpack.c.bf16 %v4879_v61, %v4877_v20  ;;  %v13939_v20 = vld [vmem:[%s20495_s0 + $0x454] ss:$8 sps:$4 sm:$0xff]   ;;  %v3278_v38 = vadd.f32 %v15710_v50, %v15052_v7  ;;  %v3284_v50 = vadd.f32 %v15718_v19, %v15052_v7  ;;  %v3288_v19 = vadd.f32 %v15725_v14, %v15052_v7 }
 0x242   :  { %20621 = vst [vmem:[#allocation26_spill] sm:$0xff] %v15752_v12  ;;  %v3304_v1 = vadd.f32 %v3303_v36, %v15052_v7  ;;  %v3305_v30 = vpop.f32.mrb[165].mxu0 }
 0x243   :  { %20622 = vst [vmem:[#allocation27_spill] sm:$0xff] %v15754_v44  ;;  %v3306_v4 = vadd.f32 %v3305_v30, %v15056_v8  ;;  %v3307_v56 = vpop.f32.mrb[166].mxu0 }
 0x244   :  { %v4880_v46 = vmax.f32 %v3224_v15, %v3304_v1  ;;  %v3308_v36 = vadd.f32 %v3307_v56, %v15052_v7  ;;  %v3309_v26 = vpop.f32.mrb[167].mxu0  ;;  %v3236_v1 = vadd.f32 %v15645_v39, %v15056_v8 }
 0x245   :  { %v4881_v21 = vmax.f32 %v3226_v54, %v3306_v4  ;;  %v3310_v34 = vadd.f32 %v3309_v26, %v15056_v8  ;;  %v13948_v54 = vld [vmem:[%s20495_s0 + $0x464] ss:$8 sps:$4 sm:$0xff]  }
 0x246   :  { %v4882_v41 = vmax.f32 %v3228_v5, %v3308_v36  ;;  %3572 = vmatmul.mubr.bf16.gmra.mrb[16].mxu0 %v13929_v28  ;;  %v3240_v5 = vadd.f32 %v15655_v25, %v15056_v8  ;;  %v13946_v25 = vld [vmem:[%s20495_s0 + $0x460] ss:$8 sps:$4 sm:$0xff]  }
 0x247   :  { %v4883_v31 = vmax.f32 %v3230_v24, %v3310_v34  ;;  %12241 = vmatprep.mubr.msk.bf16.mxu0 %vm2275_vm0, %v13939_v20 }
 0x248   :  { %v15775_v60 = vpack.c.bf16 %v4882_v41, %v4880_v46 }
 0x249   :  { %v3313_v48 = vpop.f32.mrb[168].mxu0  ;;  %v15777_v35 = vpack.c.bf16 %v4883_v31, %v4881_v21 }
 0x24a   :  { %20623 = vst [vmem:[#allocation28_spill] sm:$0xff] %v15775_v60  ;;  %v3314_v61 = vadd.f32 %v3313_v48, %v15052_v7  ;;  %v3315_v15 = vpop.f32.mrb[169].mxu0  ;;  %v3246_v48 = vadd.f32 %v15660_v6, %v15056_v8 }
 0x24b   :  { %20624 = vst [vmem:[#allocation29_spill] sm:$0xff] %v15777_v35  ;;  %v3316_v30 = vadd.f32 %v3315_v15, %v15056_v8  ;;  %v3317_v28 = vpop.f32.mrb[170].mxu0  ;;  %v13957_v15 = vld [vmem:[%s20495_s0 + $0x474] ss:$8 sps:$4 sm:$0xff]  }
 0x24c   :  { %v4884_v4 = vmax.f32 %v3234_v10, %v3314_v61  ;;  %v3318_v56 = vadd.f32 %v3317_v28, %v15052_v7  ;;  %v3319_v20 = vpop.f32.mrb[171].mxu0  ;;  %v3250_v28 = vadd.f32 %v15670_v13, %v15056_v8  ;;  %v13955_v13 = vld [vmem:[%s20495_s0 + $0x470] ss:$8 sps:$4 sm:$0xff]  }
 0x24d   :  { %v4885_v46 = vmax.f32 %v3236_v1, %v3316_v30  ;;  %v3320_v39 = vadd.f32 %v3319_v20, %v15056_v8 }
 0x24e   :  { %v4886_v36 = vmax.f32 %v3238_v9, %v3318_v56  ;;  %3582 = vmatmul.mubr.bf16.gmra.mrb[20].mxu0 %v13937_v11 }
 0x24f   :  { %v4887_v26 = vmax.f32 %v3240_v5, %v3320_v39  ;;  %12242 = vmatprep.mubr.msk.bf16.mxu0 %vm2275_vm0, %v13948_v54 }
 0x250   :  { %v15798_v24 = vpack.c.bf16 %v4886_v36, %v4884_v4  ;;  %v3256_v36 = vadd.f32 %v15675_v3, %v15056_v8 }
 0x251   :  { %v3323_v21 = vpop.f32.mrb[172].mxu0  ;;  %v15800_v34 = vpack.c.bf16 %v4887_v26, %v4885_v46 }
 0x252   :  { %20625 = vst [vmem:[#allocation30_spill] sm:$0xff] %v15798_v24  ;;  %v3324_v41 = vadd.f32 %v3323_v21, %v15052_v7  ;;  %v3325_v31 = vpop.f32.mrb[173].mxu0 }
 0x253   :  { %20626 = vst [vmem:[#allocation31_spill] sm:$0xff] %v15800_v34  ;;  %v3326_v10 = vadd.f32 %v3325_v31, %v15056_v8  ;;  %v3327_v61 = vpop.f32.mrb[174].mxu0 }
 0x254   :  { %v4888_v11 = vmax.f32 %v3244_v53, %v3324_v41  ;;  %v3328_v1 = vadd.f32 %v3327_v61, %v15052_v7  ;;  %v3329_v30 = vpop.f32.mrb[175].mxu0  ;;  %v13966_v53 = vld [vmem:[%s20495_s0 + $0x484] ss:$8 sps:$4 sm:$0xff]  }
 0x255   :  { %v4889_v54 = vmax.f32 %v3246_v48, %v3326_v10  ;;  %v3330_v6 = vadd.f32 %v3329_v30, %v15056_v8  ;;  %v3260_v48 = vadd.f32 %v15685_v47, %v15056_v8  ;;  %v13964_v47 = vld [vmem:[%s20495_s0 + $0x480] ss:$8 sps:$4 sm:$0xff]  }
 0x256   :  { %v4890_v9 = vmax.f32 %v3248_v58, %v3328_v1  ;;  %3592 = vmatmul.mubr.bf16.gmra.mrb[24].mxu0 %v13946_v25 }
 0x257   :  { %v4891_v4 = vmax.f32 %v3250_v28, %v3330_v6  ;;  %12243 = vmatprep.mubr.msk.bf16.mxu0 %vm2275_vm0, %v13957_v15 }
 0x258   :  { %v15821_v56 = vpack.c.bf16 %v4890_v9, %v4888_v11 }
 0x259   :  { %v3333_v20 = vpop.f32.mrb[176].mxu0  ;;  %v15823_v5 = vpack.c.bf16 %v4891_v4, %v4889_v54  ;;  %v3266_v54 = vadd.f32 %v15690_v29, %v15056_v8  ;;  %v13973_v4 = vld [vmem:[%s20495_s0 + $0x494] ss:$8 sps:$4 sm:$0xff]  }
 0x25a   :  { %20627 = vst [vmem:[#allocation32_spill] sm:$0xff] %v15821_v56  ;;  %v3334_v46 = vadd.f32 %v3333_v20, %v15052_v7  ;;  %v3335_v39 = vpop.f32.mrb[177].mxu0 }
 0x25b   :  { %20628 = vst [vmem:[#allocation33_spill] sm:$0xff] %v15823_v5  ;;  %v3336_v26 = vadd.f32 %v3335_v39, %v15056_v8  ;;  %v3337_v21 = vpop.f32.mrb[178].mxu0  ;;  %v3270_v39 = vadd.f32 %v15700_v0, %v15056_v8  ;;  %v13971_v0 = vld [vmem:[%s20495_s0 + $0x490] ss:$8 sps:$4 sm:$0xff]  }
 0x25c   :  { %v4892_v41 = vmax.f32 %v3254_v45, %v3334_v46  ;;  %v3338_v31 = vadd.f32 %v3337_v21, %v15052_v7  ;;  %v3339_v25 = vpop.f32.mrb[179].mxu0 }
 0x25d   :  { %v4893_v10 = vmax.f32 %v3256_v36, %v3336_v26  ;;  %v3340_v3 = vadd.f32 %v3339_v25, %v15056_v8  ;;  %v3276_v25 = vadd.f32 %v15705_v32, %v15056_v8  ;;  %v3280_v32 = vadd.f32 %v15715_v2, %v15056_v8  ;;  %v13974_v2 = vld [vmem:[%s20495_s0 + $0x4a0] ss:$8 sps:$4 sm:$0xff]  }
 0x25e   :  { %v4894_v61 = vmax.f32 %v3258_v49, %v3338_v31  ;;  %3602 = vmatmul.mubr.bf16.gmra.mrb[28].mxu0 %v13955_v13 }
 0x25f   :  { %v4895_v15 = vmax.f32 %v3260_v48, %v3340_v3  ;;  %12244 = vmatprep.mubr.msk.bf16.mxu0 %vm2275_vm0, %v13966_v53  ;;  %v13976_v3 = vld [vmem:[%s20495_s0 + $0x4a4] ss:$8 sps:$4 sm:$0xff]  }
 0x260   :  { %v15844_v58 = vpack.c.bf16 %v4894_v61, %v4892_v41 }
 0x261   :  { %v3343_v11 = vpop.f32.mrb[180].mxu0  ;;  %v15846_v1 = vpack.c.bf16 %v4895_v15, %v4893_v10 }
 0x262   :  { %20629 = vst [vmem:[#allocation34_spill] sm:$0xff] %v15844_v58  ;;  %v3344_v30 = vadd.f32 %v3343_v11, %v15052_v7  ;;  %v3345_v28 = vpop.f32.mrb[181].mxu0 }
 0x263   :  { %20630 = vst [vmem:[#allocation35_spill] sm:$0xff] %v15846_v1  ;;  %v3346_v6 = vadd.f32 %v3345_v28, %v15056_v8  ;;  %v3347_v9 = vpop.f32.mrb[182].mxu0 }
 0x264   :  { %v4896_v20 = vmax.f32 %v3264_v62, %v3344_v30  ;;  %v3348_v45 = vadd.f32 %v3347_v9, %v15052_v7  ;;  %v3349_v46 = vpop.f32.mrb[183].mxu0 }
 0x265   :  { %v3350_v13 = vadd.f32 %v3349_v46, %v15056_v8  ;;  %v4897_v29 = vmax.f32 %v3266_v54, %v3346_v6 }
 0x266   :  { %v4898_v36 = vmax.f32 %v3268_v51, %v3348_v45  ;;  %3612 = vmatmul.mubr.bf16.gmra.mrb[32].mxu0 %v13964_v47 }
 0x267   :  { %v4899_v26 = vmax.f32 %v3270_v39, %v3350_v13  ;;  %12245 = vmatprep.mubr.msk.bf16.mxu0 %vm2275_vm0, %v13973_v4  ;;  %v13979_v39 = vld [vmem:[%s20495_s0 + $0x4b4] ss:$8 sps:$4 sm:$0xff]  }
 0x268   :  { %v5238_v21 = vpack.c.bf16 %v4898_v36, %v4896_v20  ;;  %v3286_v20 = vadd.f32 %v15720_v63, %v15056_v8  ;;  %v3290_v63 = vadd.f32 %v15730_v57, %v15056_v8  ;;  %v13982_v57 = vld [vmem:[%s20495_s0 + $0x4c4] ss:$8 sps:$4 sm:$0xff]  }
 0x269   :  { %v3353_v53 = vpop.f32.mrb[184].mxu0  ;;  %v5239_v49 = vpack.c.bf16 %v4899_v26, %v4897_v29 }
 0x26a   :  { %v3354_v41 = vadd.f32 %v3353_v53, %v15052_v7  ;;  %v3355_v31 = vpop.f32.mrb[185].mxu0 }
 0x26b   :  { %v3356_v48 = vadd.f32 %v3355_v31, %v15056_v8  ;;  %v3357_v10 = vpop.f32.mrb[186].mxu0  ;;  %12415 = vmatprep.mubr.msk.bf16.mxu1 %vm5568_vm2, %v5239_v49 }
 0x26c   :  { %v4900_v61 = vmax.f32 %v3274_v42, %v3354_v41  ;;  %v3358_v15 = vadd.f32 %v3357_v10, %v15052_v7  ;;  %v3359_v11 = vpop.f32.mrb[187].mxu0  ;;  %6100 = vmatmul.mubr.bf16.vlgmr.msra.gmra.mrb[0].mxu1 %v5238_v21 }
 0x26d   :  { %v4901_v62 = vmax.f32 %v3276_v25, %v3356_v48  ;;  %v3360_v30 = vadd.f32 %v3359_v11, %v15056_v8 }
 0x26e   :  { %v4902_v28 = vmax.f32 %v3278_v38, %v3358_v15  ;;  %3622 = vmatmul.mubr.bf16.gmra.mrb[36].mxu0 %v13971_v0  ;;  %v13977_v0 = vld [vmem:[%s20495_s0 + $0x4b0] ss:$8 sps:$4 sm:$0xff]   ;;  %v13980_v38 = vld [vmem:[%s20495_s0 + $0x4c0] ss:$8 sps:$4 sm:$0xff]   ;;  %v13985_v15 = vld [vmem:[%s20495_s0 + $0x4d4] ss:$8 sps:$4 sm:$0xff]  }
 0x26f   :  { %v4903_v47 = vmax.f32 %v3280_v32, %v3360_v30  ;;  %12246 = vmatprep.mubr.msk.bf16.mxu0 %vm2275_vm0, %v13976_v3  ;;  %v13983_v30 = vld [vmem:[%s20495_s0 + $0x4d0] ss:$8 sps:$4 sm:$0xff]  }
 0x270   :  { %v5240_v54 = vpack.c.bf16 %v4902_v28, %v4900_v61 }
 0x271   :  { %v3363_v6 = vpop.f32.mrb[188].mxu0  ;;  %v5241_v9 = vpack.c.bf16 %v4903_v47, %v4901_v62  ;;  %v13988_v47 = vld [vmem:[%s20495_s0 + $0x4e4] ss:$8 sps:$4 sm:$0xff]  }
 0x272   :  { %v3364_v4 = vadd.f32 %v3363_v6, %v15052_v7  ;;  %v3365_v51 = vpop.f32.mrb[189].mxu0 }
 0x273   :  { %v3366_v45 = vadd.f32 %v3365_v51, %v15056_v8  ;;  %v3367_v46 = vpop.f32.mrb[190].mxu0  ;;  %12416 = vmatprep.mubr.msk.bf16.mxu1 %vm5568_vm2, %v5241_v9  ;;  %v13991_v51 = vld [vmem:[%s20495_s0 + $0x4f4] ss:$8 sps:$4 sm:$0xff]  }
 0x274   :  { %v4904_v13 = vmax.f32 %v3284_v50, %v3364_v4  ;;  %v3368_v29 = vadd.f32 %v3367_v46, %v15052_v7  ;;  %v3369_v36 = vpop.f32.mrb[191].mxu0  ;;  %6110 = vmatmul.mubr.bf16.gmra.mrb[4].mxu1 %v5240_v54  ;;  %v13986_v50 = vld [vmem:[%s20495_s0 + $0x4e0] ss:$8 sps:$4 sm:$0xff]   ;;  %v13989_v46 = vld [vmem:[%s20495_s0 + $0x4f0] ss:$8 sps:$4 sm:$0xff]  }
 0x275   :  { %v4905_v26 = vmax.f32 %v3286_v20, %v3366_v45  ;;  %v3370_v21 = vadd.f32 %v3369_v36, %v15056_v8 }
 0x276   :  { %v4906_v53 = vmax.f32 %v3288_v19, %v3368_v29  ;;  %3632 = vmatmul.mubr.bf16.gmra.mrb[40].mxu0 %v13974_v2  ;;  %v13994_v19 = vld [vmem:[%s20495_s0 + $0x504] ss:$8 sps:$4 sm:$0xff]  }
 0x277   :  { %v4907_v49 = vmax.f32 %v3290_v63, %v3370_v21  ;;  %12247 = vmatprep.mubr.msk.bf16.mxu0 %vm2275_vm0, %v13979_v39  ;;  %v13992_v63 = vld [vmem:[%s20495_s0 + $0x500] ss:$8 sps:$4 sm:$0xff]   ;;  %v13997_v21 = vld [vmem:[%s20495_s0 + $0x514] ss:$8 sps:$4 sm:$0xff]  }
 0x278   :  { %v5242_v42 = vpack.c.bf16 %v4906_v53, %v4904_v13 }
 0x279   :  { %v15907_v41 = vpop.f32.mrb[192].mxu0  ;;  %v5243_v14 = vpack.c.bf16 %v4907_v49, %v4905_v26 }
 0x27a   :  { %v15909_v31 = vpop.f32.mrb[193].mxu0 }
 0x27b   :  { %v15914_v25 = vpop.f32.mrb[194].mxu0  ;;  %12417 = vmatprep.mubr.msk.bf16.mxu1 %vm5568_vm2, %v5243_v14  ;;  %v13995_v14 = vld [vmem:[%s20495_s0 + $0x510] ss:$8 sps:$4 sm:$0xff]   ;;  %v3376_v58 = vadd.f32 %v15909_v31, %v15056_v8 }
 0x27c   :  { %v15920_v48 = vpop.f32.mrb[195].mxu0  ;;  %6120 = vmatmul.mubr.bf16.gmra.mrb[8].mxu1 %v5242_v42 }
 0x27d   :  { %v3380_v24 = vadd.f32 %v15920_v48, %v15056_v8 }
 0x27e   :  { %3642 = vmatmul.mubr.bf16.gmra.mrb[44].mxu0 %v13977_v0 }
 0x27f   :  { %12248 = vmatprep.mubr.msk.bf16.mxu0 %vm2275_vm0, %v13982_v57  ;;  %v14000_v57 = vld [vmem:[%s20495_s0 + $0x524] ss:$8 sps:$4 sm:$0xff]  }
 0x281   :  { %v15923_v10 = vpop.f32.mrb[196].mxu0 }
 0x282   :  { %v15925_v3 = vpop.f32.mrb[197].mxu0 }
 0x283   :  { %v15930_v61 = vpop.f32.mrb[198].mxu0 }
 0x284   :  { %v15935_v11 = vpop.f32.mrb[199].mxu0 }
 0x286   :  { %3652 = vmatmul.mubr.bf16.gmra.mrb[48].mxu0 %v13980_v38 }
 0x287   :  { %12249 = vmatprep.mubr.msk.bf16.mxu0 %vm2275_vm0, %v13985_v15 }
 0x289   :  { %v15938_v32 = vpop.f32.mrb[200].mxu0 }
 0x28a   :  { %v15940_v62 = vpop.f32.mrb[201].mxu0 }
 0x28b   :  { %v15945_v28 = vpop.f32.mrb[202].mxu0 }
 0x28c   :  { %v15950_v54 = vpop.f32.mrb[203].mxu0 }
 0x28e   :  { %3662 = vmatmul.mubr.bf16.gmra.mrb[52].mxu0 %v13983_v30 }
 0x28f   :  { %12250 = vmatprep.mubr.msk.bf16.mxu0 %vm2275_vm0, %v13988_v47  ;;  %v13998_v47 = vld [vmem:[%s20495_s0 + $0x520] ss:$8 sps:$4 sm:$0xff]  }
 0x291   :  { %v15953_v6 = vpop.f32.mrb[204].mxu0 }
 0x292   :  { %v15955_v9 = vpop.f32.mrb[205].mxu0 }
 0x293   :  { %v15960_v4 = vpop.f32.mrb[206].mxu0 }
 0x294   :  { %v15965_v2 = vpop.f32.mrb[207].mxu0 }
 0x296   :  { %3672 = vmatmul.mubr.bf16.gmra.mrb[56].mxu0 %v13986_v50 }
 0x297   :  { %12251 = vmatprep.mubr.msk.bf16.mxu0 %vm2275_vm0, %v13991_v51  ;;  %v14003_v51 = vld [vmem:[%s20495_s0 + $0x534] ss:$8 sps:$4 sm:$0xff]  }
 0x299   :  { %v15968_v20 = vpop.f32.mrb[208].mxu0 }
 0x29a   :  { %v15970_v45 = vpop.f32.mrb[209].mxu0 }
 0x29b   :  { %v15975_v39 = vpop.f32.mrb[210].mxu0 }
 0x29c   :  { %v15980_v13 = vpop.f32.mrb[211].mxu0 }
 0x29e   :  { %3682 = vmatmul.mubr.bf16.gmra.mrb[60].mxu0 %v13989_v46 }
 0x29f   :  { %12252 = vmatprep.mubr.msk.bf16.mxu0 %vm2275_vm0, %v13994_v19 }
 0x2a1   :  { %v15983_v29 = vpop.f32.mrb[212].mxu0 }
 0x2a2   :  { %v15985_v36 = vpop.f32.mrb[213].mxu0 }
 0x2a3   :  { %v15990_v26 = vpop.f32.mrb[214].mxu0 }
 0x2a4   :  { %v15995_v53 = vpop.f32.mrb[215].mxu0 }
 0x2a6   :  { %3692 = vmatmul.mubr.bf16.gmra.mrb[64].mxu0 %v13992_v63  ;;  %v3374_v63 = vadd.f32 %v15907_v41, %v15052_v7  ;;  %v3378_v41 = vadd.f32 %v15914_v25, %v15052_v7  ;;  %v3384_v25 = vadd.f32 %v15923_v10, %v15052_v7 }
 0x2a7   :  { %12253 = vmatprep.mubr.msk.bf16.mxu0 %vm2275_vm0, %v13997_v21 }
 0x2a9   :  { %v15998_v49 = vpop.f32.mrb[216].mxu0 }
 0x2aa   :  { %v16000_v42 = vpop.f32.mrb[217].mxu0 }
 0x2ab   :  { %v16005_v0 = vpop.f32.mrb[218].mxu0 }
 0x2ac   :  { %v16010_v38 = vpop.f32.mrb[219].mxu0 }
 0x2ae   :  { %3702 = vmatmul.mubr.bf16.gmra.mrb[68].mxu0 %v13995_v14 }
 0x2af   :  { %12254 = vmatprep.mubr.msk.bf16.mxu0 %vm2275_vm0, %v14000_v57  ;;  %v14001_v57 = vld [vmem:[%s20495_s0 + $0x530] ss:$8 sps:$4 sm:$0xff]  }
 0x2b1   :  { %v16013_v15 = vpop.f32.mrb[220].mxu0 }
 0x2b2   :  { %v16015_v30 = vpop.f32.mrb[221].mxu0 }
 0x2b3   :  { %v16020_v50 = vpop.f32.mrb[222].mxu0 }
 0x2b4   :  { %v16025_v46 = vpop.f32.mrb[223].mxu0 }
 0x2b6   :  { %3712 = vmatmul.mubr.bf16.gmra.mrb[72].mxu0 %v13998_v47  ;;  %v14006_v47 = vld [vmem:[%s20495_s0 + $0x544] ss:$8 sps:$4 sm:$0xff]  }
 0x2b7   :  { %12255 = vmatprep.mubr.msk.bf16.mxu0 %vm2275_vm0, %v14003_v51 }
 0x2b9   :  { %v3453_v19 = vpop.f32.mrb[224].mxu0 }
 0x2ba   :  { %v3454_v21 = vadd.f32 %v3453_v19, %v15052_v7  ;;  %v3455_v14 = vpop.f32.mrb[225].mxu0 }
 0x2bb   :  { %v3456_v1 = vadd.f32 %v3455_v14, %v15056_v8  ;;  %v3457_v56 = vpop.f32.mrb[226].mxu0 }
 0x2bc   :  { %v4908_v51 = vmax.f32 %v3374_v63, %v3454_v21  ;;  %v3458_v19 = vadd.f32 %v3457_v56, %v15052_v7  ;;  %v3459_v5 = vpop.f32.mrb[227].mxu0 }
 0x2bd   :  { %v4909_v34 = vmax.f32 %v3376_v58, %v3456_v1  ;;  %v3460_v31 = vadd.f32 %v3459_v5, %v15056_v8  ;;  %v14004_v58 = vld [vmem:[%s20495_s0 + $0x540] ss:$8 sps:$4 sm:$0xff]   ;;  %v3386_v5 = vadd.f32 %v15925_v3, %v15056_v8  ;;  %v3390_v3 = vadd.f32 %v15935_v11, %v15056_v8  ;;  %v14007_v11 = vld [vmem:[%s20495_s0 + $0x550] ss:$8 sps:$4 sm:$0xff]  }
 0x2be   :  { %v4910_v60 = vmax.f32 %v3378_v41, %v3458_v19  ;;  %3722 = vmatmul.mubr.bf16.gmra.mrb[76].mxu0 %v14001_v57 }
 0x2bf   :  { %v4911_v14 = vmax.f32 %v3380_v24, %v3460_v31  ;;  %12256 = vmatprep.mubr.msk.bf16.mxu0 %vm2275_vm0, %v14006_v47 }
 0x2c0   :  { %v5244_v35 = vpack.c.bf16 %v4910_v60, %v4908_v51  ;;  %v14009_v60 = vld [vmem:[%s20495_s0 + $0x554] ss:$8 sps:$4 sm:$0xff]  }
 0x2c1   :  { %v3463_v12 = vpop.f32.mrb[228].mxu0  ;;  %v5245_v44 = vpack.c.bf16 %v4911_v14, %v4909_v34  ;;  %v3396_v14 = vadd.f32 %v15940_v62, %v15056_v8  ;;  %v3400_v62 = vadd.f32 %v15950_v54, %v15056_v8  ;;  %v14010_v54 = vld [vmem:[%s20495_s0 + $0x560] ss:$8 sps:$4 sm:$0xff]  }
 0x2c2   :  { %v3464_v56 = vadd.f32 %v3463_v12, %v15052_v7  ;;  %v3465_v63 = vpop.f32.mrb[229].mxu0  ;;  %v3388_v12 = vadd.f32 %v15930_v61, %v15052_v7  ;;  %v3394_v61 = vadd.f32 %v15938_v32, %v15052_v7  ;;  %v3398_v32 = vadd.f32 %v15945_v28, %v15052_v7 }
 0x2c3   :  { %v3466_v24 = vadd.f32 %v3465_v63, %v15056_v8  ;;  %v3467_v1 = vpop.f32.mrb[230].mxu0  ;;  %12418 = vmatprep.mubr.msk.bf16.mxu1 %vm5568_vm2, %v5245_v44  ;;  %v14012_v63 = vld [vmem:[%s20495_s0 + $0x564] ss:$8 sps:$4 sm:$0xff]   ;;  %v3404_v28 = vadd.f32 %v15953_v6, %v15052_v7  ;;  %v3408_v6 = vadd.f32 %v15960_v4, %v15052_v7  ;;  %v3414_v4 = vadd.f32 %v15968_v20, %v15052_v7 }
 0x2c4   :  { %v4912_v34 = vmax.f32 %v3384_v25, %v3464_v56  ;;  %v3468_v48 = vadd.f32 %v3467_v1, %v15052_v7  ;;  %v3469_v10 = vpop.f32.mrb[231].mxu0  ;;  %6130 = vmatmul.mubr.bf16.gmra.mrb[12].mxu1 %v5244_v35  ;;  %v3418_v20 = vadd.f32 %v15975_v39, %v15052_v7  ;;  %v3424_v39 = vadd.f32 %v15983_v29, %v15052_v7 }
 0x2c5   :  { %v4913_v21 = vmax.f32 %v3386_v5, %v3466_v24  ;;  %v3470_v57 = vadd.f32 %v3469_v10, %v15056_v8  ;;  %v3428_v29 = vadd.f32 %v15990_v26, %v15052_v7  ;;  %v3434_v26 = vadd.f32 %v15998_v49, %v15052_v7 }
 0x2c6   :  { %v4914_v47 = vmax.f32 %v3388_v12, %v3468_v48  ;;  %3732 = vmatmul.mubr.bf16.gmra.mrb[80].mxu0 %v14004_v58  ;;  %v3438_v49 = vadd.f32 %v16005_v0, %v15052_v7  ;;  %v3444_v0 = vadd.f32 %v16013_v15, %v15052_v7  ;;  %v3448_v15 = vadd.f32 %v16020_v50, %v15052_v7 }
 0x2c7   :  { %v4915_v44 = vmax.f32 %v3390_v3, %v3470_v57  ;;  %12257 = vmatprep.mubr.msk.bf16.mxu0 %vm2275_vm0, %v14009_v60 }
 0x2c8   :  { %v5246_v41 = vpack.c.bf16 %v4914_v47, %v4912_v34  ;;  %v3406_v47 = vadd.f32 %v15955_v9, %v15056_v8  ;;  %v3410_v9 = vadd.f32 %v15965_v2, %v15056_v8  ;;  %v14013_v2 = vld [vmem:[%s20495_s0 + $0x570] ss:$8 sps:$4 sm:$0xff]  }
 0x2c9   :  { %v3473_v51 = vpop.f32.mrb[232].mxu0  ;;  %v5247_v19 = vpack.c.bf16 %v4915_v44, %v4913_v21 }
 0x2ca   :  { %v3474_v31 = vadd.f32 %v3473_v51, %v15052_v7  ;;  %v3475_v35 = vpop.f32.mrb[233].mxu0  ;;  %v14015_v51 = vld [vmem:[%s20495_s0 + $0x574] ss:$8 sps:$4 sm:$0xff]  }
 0x2cb   :  { %v3476_v25 = vadd.f32 %v3475_v35, %v15056_v8  ;;  %v3477_v56 = vpop.f32.mrb[234].mxu0  ;;  %12419 = vmatprep.mubr.msk.bf16.mxu1 %vm5568_vm2, %v5247_v19 }
 0x2cc   :  { %v4916_v58 = vmax.f32 %v3394_v61, %v3474_v31  ;;  %v3478_v5 = vadd.f32 %v3477_v56, %v15052_v7  ;;  %v3479_v24 = vpop.f32.mrb[235].mxu0  ;;  %6140 = vmatmul.mubr.bf16.gmra.mrb[16].mxu1 %v5246_v41 }
 0x2cd   :  { %v4917_v1 = vmax.f32 %v3396_v14, %v3476_v25  ;;  %v3480_v60 = vadd.f32 %v3479_v24, %v15056_v8  ;;  %v3416_v24 = vadd.f32 %v15970_v45, %v15056_v8  ;;  %v3420_v45 = vadd.f32 %v15980_v13, %v15056_v8  ;;  %v14016_v13 = vld [vmem:[%s20495_s0 + $0x580] ss:$8 sps:$4 sm:$0xff]  }
 0x2ce   :  { %v4918_v12 = vmax.f32 %v3398_v32, %v3478_v5  ;;  %3742 = vmatmul.mubr.bf16.gmra.mrb[84].mxu0 %v14007_v11 }
 0x2cf   :  { %v4919_v34 = vmax.f32 %v3400_v62, %v3480_v60  ;;  %12258 = vmatprep.mubr.msk.bf16.mxu0 %vm2275_vm0, %v14012_v63  ;;  %v14018_v60 = vld [vmem:[%s20495_s0 + $0x584] ss:$8 sps:$4 sm:$0xff]  }
 0x2d0   :  { %v5248_v48 = vpack.c.bf16 %v4918_v12, %v4916_v58 }
 0x2d1   :  { %v3483_v10 = vpop.f32.mrb[236].mxu0  ;;  %v5249_v3 = vpack.c.bf16 %v4919_v34, %v4917_v1 }
 0x2d2   :  { %v3484_v21 = vadd.f32 %v3483_v10, %v15052_v7  ;;  %v3485_v57 = vpop.f32.mrb[237].mxu0 }
 0x2d3   :  { %v3486_v44 = vadd.f32 %v3485_v57, %v15056_v8  ;;  %v3487_v41 = vpop.f32.mrb[238].mxu0  ;;  %12420 = vmatprep.mubr.msk.bf16.mxu1 %vm5568_vm2, %v5249_v3 }
 0x2d4   :  { %v4920_v19 = vmax.f32 %v3404_v28, %v3484_v21  ;;  %v3488_v61 = vadd.f32 %v3487_v41, %v15052_v7  ;;  %v3489_v31 = vpop.f32.mrb[239].mxu0  ;;  %6150 = vmatmul.mubr.bf16.gmra.mrb[20].mxu1 %v5248_v48 }
 0x2d5   :  { %v4921_v35 = vmax.f32 %v3406_v47, %v3486_v44  ;;  %v3490_v11 = vadd.f32 %v3489_v31, %v15056_v8 }
 0x2d6   :  { %v4922_v14 = vmax.f32 %v3408_v6, %v3488_v61  ;;  %3752 = vmatmul.mubr.bf16.gmra.mrb[88].mxu0 %v14010_v54  ;;  %v14021_v61 = vld [vmem:[%s20495_s0 + $0x594] ss:$8 sps:$4 sm:$0xff]  }
 0x2d7   :  { %v4923_v25 = vmax.f32 %v3410_v9, %v3490_v11  ;;  %12259 = vmatprep.mubr.msk.bf16.mxu0 %vm2275_vm0, %v14015_v51  ;;  %v3426_v51 = vadd.f32 %v15985_v36, %v15056_v8  ;;  %v3430_v36 = vadd.f32 %v15995_v53, %v15056_v8  ;;  %v14019_v53 = vld [vmem:[%s20495_s0 + $0x590] ss:$8 sps:$4 sm:$0xff]  }
 0x2d8   :  { %v5250_v56 = vpack.c.bf16 %v4922_v14, %v4920_v19 }
 0x2d9   :  { %v3493_v63 = vpop.f32.mrb[240].mxu0  ;;  %v5251_v32 = vpack.c.bf16 %v4923_v25, %v4921_v35 }
 0x2da   :  { %v3494_v58 = vadd.f32 %v3493_v63, %v15052_v7  ;;  %v3495_v5 = vpop.f32.mrb[241].mxu0 }
 0x2db   :  { %v3496_v62 = vadd.f32 %v3495_v5, %v15056_v8  ;;  %v3497_v1 = vpop.f32.mrb[242].mxu0  ;;  %12421 = vmatprep.mubr.msk.bf16.mxu1 %vm5568_vm2, %v5251_v32 }
 0x2dc   :  { %v4924_v12 = vmax.f32 %v3414_v4, %v3494_v58  ;;  %v3498_v34 = vadd.f32 %v3497_v1, %v15052_v7  ;;  %v3499_v48 = vpop.f32.mrb[243].mxu0  ;;  %6160 = vmatmul.mubr.bf16.gmra.mrb[24].mxu1 %v5250_v56  ;;  %v14024_v1 = vld [vmem:[%s20495_s0 + $0x5a4] ss:$8 sps:$4 sm:$0xff]  }
 0x2dd   :  { %v4925_v10 = vmax.f32 %v3416_v24, %v3496_v62  ;;  %v3500_v3 = vadd.f32 %v3499_v48, %v15056_v8 }
 0x2de   :  { %v4926_v28 = vmax.f32 %v3418_v20, %v3498_v34  ;;  %3762 = vmatmul.mubr.bf16.gmra.mrb[92].mxu0 %v14013_v2  ;;  %v3436_v2 = vadd.f32 %v16000_v42, %v15056_v8  ;;  %v3440_v42 = vadd.f32 %v16010_v38, %v15056_v8  ;;  %v14022_v38 = vld [vmem:[%s20495_s0 + $0x5a0] ss:$8 sps:$4 sm:$0xff]  }
 0x2df   :  { %v4927_v21 = vmax.f32 %v3420_v45, %v3500_v3  ;;  %12260 = vmatprep.mubr.msk.bf16.mxu0 %vm2275_vm0, %v14018_v60 }
 0x2e0   :  { %v5252_v57 = vpack.c.bf16 %v4926_v28, %v4924_v12 }
 0x2e1   :  { %v3503_v54 = vpop.f32.mrb[244].mxu0  ;;  %v5253_v47 = vpack.c.bf16 %v4927_v21, %v4925_v10 }
 0x2e2   :  { %v3504_v44 = vadd.f32 %v3503_v54, %v15052_v7  ;;  %v3505_v41 = vpop.f32.mrb[245].mxu0 }
 0x2e3   :  { %v3506_v6 = vadd.f32 %v3505_v41, %v15056_v8  ;;  %v3507_v19 = vpop.f32.mrb[246].mxu0  ;;  %12422 = vmatprep.mubr.msk.bf16.mxu1 %vm5568_vm2, %v5253_v47  ;;  %v3446_v47 = vadd.f32 %v16015_v30, %v15056_v8  ;;  %v14027_v41 = vld [vmem:[%s20495_s0 + $0x5b4] ss:$8 sps:$4 sm:$0xff]   ;;  %v3450_v30 = vadd.f32 %v16025_v46, %v15056_v8  ;;  %v14030_v46 = vld [vmem:[%s20495_s0 + $0x5c4] ss:$8 sps:$4 sm:$0xff]  }
 0x2e4   :  { %v4928_v31 = vmax.f32 %v3424_v39, %v3504_v44  ;;  %v3508_v9 = vadd.f32 %v3507_v19, %v15052_v7  ;;  %v3509_v35 = vpop.f32.mrb[247].mxu0  ;;  %6170 = vmatmul.mubr.bf16.gmra.mrb[28].mxu1 %v5252_v57 }
 0x2e5   :  { %v4929_v11 = vmax.f32 %v3426_v51, %v3506_v6  ;;  %v3510_v14 = vadd.f32 %v3509_v35, %v15056_v8 }
 0x2e6   :  { %v4930_v25 = vmax.f32 %v3428_v29, %v3508_v9  ;;  %3772 = vmatmul.mubr.bf16.gmra.mrb[96].mxu0 %v14016_v13 }
 0x2e7   :  { %v4931_v56 = vmax.f32 %v3430_v36, %v3510_v14  ;;  %12261 = vmatprep.mubr.msk.bf16.mxu0 %vm2275_vm0, %v14021_v61 }
 0x2e8   :  { %v5254_v63 = vpack.c.bf16 %v4930_v25, %v4928_v31 }
 0x2e9   :  { %v3513_v32 = vpop.f32.mrb[248].mxu0  ;;  %v5255_v4 = vpack.c.bf16 %v4931_v56, %v4929_v11  ;;  %v14025_v11 = vld [vmem:[%s20495_s0 + $0x5b0] ss:$8 sps:$4 sm:$0xff]  }
 0x2ea   :  { %v3514_v58 = vadd.f32 %v3513_v32, %v15052_v7  ;;  %v3515_v5 = vpop.f32.mrb[249].mxu0  ;;  %v14028_v32 = vld [vmem:[%s20495_s0 + $0x5c0] ss:$8 sps:$4 sm:$0xff]  }
 0x2eb   :  { %v3516_v24 = vadd.f32 %v3515_v5, %v15056_v8  ;;  %v3517_v62 = vpop.f32.mrb[250].mxu0  ;;  %12423 = vmatprep.mubr.msk.bf16.mxu1 %vm5568_vm2, %v5255_v4 }
 0x2ec   :  { %v4932_v60 = vmax.f32 %v3434_v26, %v3514_v58  ;;  %v3518_v20 = vadd.f32 %v3517_v62, %v15052_v7  ;;  %v3519_v12 = vpop.f32.mrb[251].mxu0  ;;  %6180 = vmatmul.mubr.bf16.gmra.mrb[32].mxu1 %v5254_v63  ;;  %v14033_v26 = vld [vmem:[%s20495_s0 + $0x5d4] ss:$8 sps:$4 sm:$0xff]   ;;  %v14036_v62 = vld [vmem:[%s20495_s0 + $0x5e4] ss:$8 sps:$4 sm:$0xff]  }
 0x2ed   :  { %v4933_v34 = vmax.f32 %v3436_v2, %v3516_v24  ;;  %v3520_v48 = vadd.f32 %v3519_v12, %v15056_v8  ;;  %v14031_v2 = vld [vmem:[%s20495_s0 + $0x5d0] ss:$8 sps:$4 sm:$0xff]  }
 0x2ee   :  { %v4934_v45 = vmax.f32 %v3438_v49, %v3518_v20  ;;  %3782 = vmatmul.mubr.bf16.gmra.mrb[100].mxu0 %v14019_v53  ;;  %v14034_v20 = vld [vmem:[%s20495_s0 + $0x5e0] ss:$8 sps:$4 sm:$0xff]  }
 0x2ef   :  { %v4935_v10 = vmax.f32 %v3440_v42, %v3520_v48  ;;  %12262 = vmatprep.mubr.msk.bf16.mxu0 %vm2275_vm0, %v14024_v1  ;;  %v14039_v42 = vld [vmem:[%s20495_s0 + $0x5f4] ss:$8 sps:$4 sm:$0xff]  }
 0x2f0   :  { %v5256_v3 = vpack.c.bf16 %v4934_v45, %v4932_v60 }
 0x2f1   :  { %v3523_v28 = vpop.f32.mrb[252].mxu0  ;;  %v5257_v21 = vpack.c.bf16 %v4935_v10, %v4933_v34  ;;  %v14037_v10 = vld [vmem:[%s20495_s0 + $0x5f0] ss:$8 sps:$4 sm:$0xff]  }
 0x2f2   :  { %v3524_v57 = vadd.f32 %v3523_v28, %v15052_v7  ;;  %v3525_v54 = vpop.f32.mrb[253].mxu0  ;;  %v14042_v28 = vld [vmem:[%s20495_s0 + $0x604] ss:$8 sps:$4 sm:$0xff]  }
 0x2f3   :  { %v3526_v39 = vadd.f32 %v3525_v54, %v15056_v8  ;;  %v3527_v44 = vpop.f32.mrb[254].mxu0  ;;  %12424 = vmatprep.mubr.msk.bf16.mxu1 %vm5568_vm2, %v5257_v21  ;;  %v14040_v54 = vld [vmem:[%s20495_s0 + $0x600] ss:$8 sps:$4 sm:$0xff]  }
 0x2f4   :  { %v4936_v13 = vmax.f32 %v3444_v0, %v3524_v57  ;;  %v3528_v51 = vadd.f32 %v3527_v44, %v15052_v7  ;;  %v3529_v6 = vpop.f32.mrb[255].mxu0  ;;  %6190 = vmatmul.mubr.bf16.gmra.mrb[36].mxu1 %v5256_v3 }
 0x2f5   :  { %v4937_v19 = vmax.f32 %v3446_v47, %v3526_v39  ;;  %v3530_v61 = vadd.f32 %v3529_v6, %v15056_v8  ;;  %v14045_v47 = vld [vmem:[%s20495_s0 + $0x614] ss:$8 sps:$4 sm:$0xff]  }
 0x2f6   :  { %v4938_v29 = vmax.f32 %v3448_v15, %v3528_v51  ;;  %3792 = vmatmul.mubr.bf16.gmra.mrb[104].mxu0 %v14022_v38  ;;  %v14043_v15 = vld [vmem:[%s20495_s0 + $0x610] ss:$8 sps:$4 sm:$0xff]   ;;  %v14048_v51 = vld [vmem:[%s20495_s0 + $0x624] ss:$8 sps:$4 sm:$0xff]  }
 0x2f7   :  { %v4939_v31 = vmax.f32 %v3450_v30, %v3530_v61  ;;  %12263 = vmatprep.mubr.msk.bf16.mxu0 %vm2275_vm0, %v14027_v41  ;;  %v14046_v61 = vld [vmem:[%s20495_s0 + $0x620] ss:$8 sps:$4 sm:$0xff]  }
 0x2f8   :  { %v5258_v9 = vpack.c.bf16 %v4938_v29, %v4936_v13 }
 0x2f9   :  { %v16187_v35 = vpop.f32.mrb[0].mxu0  ;;  %v5259_v50 = vpack.c.bf16 %v4939_v31, %v4937_v19  ;;  %v14051_v31 = vld [vmem:[%s20495_s0 + $0x634] ss:$8 sps:$4 sm:$0xff]  }
 0x2fa   :  { %v16189_v36 = vpop.f32.mrb[1].mxu0 }
 0x2fb   :  { %v16194_v14 = vpop.f32.mrb[2].mxu0  ;;  %12425 = vmatprep.mubr.msk.bf16.mxu1 %vm5568_vm2, %v5259_v50 }
 0x2fc   :  { %v16200_v25 = vpop.f32.mrb[3].mxu0  ;;  %6200 = vmatmul.mubr.bf16.gmra.mrb[40].mxu1 %v5258_v9 }
 0x2fe   :  { %3802 = vmatmul.mubr.bf16.gmra.mrb[108].mxu0 %v14025_v11  ;;  %v3534_v11 = vadd.f32 %v16187_v35, %v15052_v7  ;;  %v3538_v35 = vadd.f32 %v16194_v14, %v15052_v7 }
 0x2ff   :  { %12264 = vmatprep.mubr.msk.bf16.mxu0 %vm2275_vm0, %v14030_v46 }
 0x301   :  { %v16203_v56 = vpop.f32.mrb[4].mxu0 }
 0x302   :  { %v16205_v63 = vpop.f32.mrb[5].mxu0 }
 0x303   :  { %v16210_v4 = vpop.f32.mrb[6].mxu0 }
 0x304   :  { %v16215_v58 = vpop.f32.mrb[7].mxu0 }
 0x306   :  { %3812 = vmatmul.mubr.bf16.gmra.mrb[112].mxu0 %v14028_v32 }
 0x307   :  { %12265 = vmatprep.mubr.msk.bf16.mxu0 %vm2275_vm0, %v14033_v26  ;;  %v14049_v26 = vld [vmem:[%s20495_s0 + $0x630] ss:$8 sps:$4 sm:$0xff]  }
 0x309   :  { %v16218_v5 = vpop.f32.mrb[8].mxu0 }
 0x30a   :  { %v16220_v53 = vpop.f32.mrb[9].mxu0 }
 0x30b   :  { %v16225_v24 = vpop.f32.mrb[10].mxu0 }
 0x30c   :  { %v16230_v1 = vpop.f32.mrb[11].mxu0 }
 0x30e   :  { %3822 = vmatmul.mubr.bf16.gmra.mrb[116].mxu0 %v14031_v2  ;;  %v3536_v2 = vadd.f32 %v16189_v36, %v15056_v8 }
 0x30f   :  { %12266 = vmatprep.mubr.msk.bf16.mxu0 %vm2275_vm0, %v14036_v62 }
 0x311   :  { %v16233_v49 = vpop.f32.mrb[12].mxu0 }
 0x312   :  { %v16235_v60 = vpop.f32.mrb[13].mxu0 }
 0x313   :  { %v16240_v12 = vpop.f32.mrb[14].mxu0 }
 0x314   :  { %v16245_v34 = vpop.f32.mrb[15].mxu0 }
 0x316   :  { %3832 = vmatmul.mubr.bf16.gmra.mrb[120].mxu0 %v14034_v20 }
 0x317   :  { %12267 = vmatprep.mubr.msk.bf16.mxu0 %vm2275_vm0, %v14039_v42  ;;  %v14054_v42 = vld [vmem:[%s20495_s0 + $0x644] ss:$8 sps:$4 sm:$0xff]  }
 0x319   :  { %v16248_v48 = vpop.f32.mrb[16].mxu0 }
 0x31a   :  { %v16250_v45 = vpop.f32.mrb[17].mxu0 }
 0x31b   :  { %v16255_v3 = vpop.f32.mrb[18].mxu0 }
 0x31c   :  { %v16260_v21 = vpop.f32.mrb[19].mxu0 }
 0x31e   :  { %3842 = vmatmul.mubr.bf16.gmra.mrb[124].mxu0 %v14037_v10 }
 0x31f   :  { %12268 = vmatprep.mubr.msk.bf16.mxu0 %vm2275_vm0, %v14042_v28 }
 0x321   :  { %v16263_v0 = vpop.f32.mrb[20].mxu0 }
 0x322   :  { %v16265_v57 = vpop.f32.mrb[21].mxu0 }
 0x323   :  { %v16270_v38 = vpop.f32.mrb[22].mxu0 }
 0x324   :  { %v16275_v39 = vpop.f32.mrb[23].mxu0 }
 0x326   :  { %3852 = vmatmul.mubr.bf16.gmra.mrb[128].mxu0 %v14040_v54 }
 0x327   :  { %12269 = vmatprep.mubr.msk.bf16.mxu0 %vm2275_vm0, %v14045_v47  ;;  %v3540_v47 = vadd.f32 %v16200_v25, %v15056_v8 }
 0x329   :  { %v16278_v44 = vpop.f32.mrb[24].mxu0 }
 0x32a   :  { %v16280_v41 = vpop.f32.mrb[25].mxu0 }
 0x32b   :  { %v16285_v13 = vpop.f32.mrb[26].mxu0 }
 0x32c   :  { %v16290_v6 = vpop.f32.mrb[27].mxu0 }
 0x32e   :  { %3862 = vmatmul.mubr.bf16.gmra.mrb[132].mxu0 %v14043_v15 }
 0x32f   :  { %12270 = vmatprep.mubr.msk.bf16.mxu0 %vm2275_vm0, %v14048_v51 }
 0x331   :  { %v16293_v30 = vpop.f32.mrb[28].mxu0 }
 0x332   :  { %v16295_v19 = vpop.f32.mrb[29].mxu0 }
 0x333   :  { %v16300_v29 = vpop.f32.mrb[30].mxu0 }
 0x334   :  { %v16305_v9 = vpop.f32.mrb[31].mxu0 }
 0x336   :  { %3872 = vmatmul.mubr.bf16.gmra.mrb[136].mxu0 %v14046_v61 }
 0x337   :  { %12271 = vmatprep.mubr.msk.bf16.mxu0 %vm2275_vm0, %v14051_v31 }
 0x339   :  { %v3613_v50 = vpop.f32.mrb[32].mxu0 }
 0x33a   :  { %v3614_v46 = vadd.f32 %v3613_v50, %v15052_v7  ;;  %v3615_v32 = vpop.f32.mrb[33].mxu0 }
 0x33b   :  { %v3616_v62 = vadd.f32 %v3615_v32, %v15056_v8  ;;  %v3617_v20 = vpop.f32.mrb[34].mxu0 }
 0x33c   :  { %v4940_v10 = vmax.f32 %v3534_v11, %v3614_v46  ;;  %v3618_v28 = vadd.f32 %v3617_v20, %v15052_v7  ;;  %v3619_v54 = vpop.f32.mrb[35].mxu0  ;;  %v3544_v20 = vadd.f32 %v16203_v56, %v15052_v7  ;;  %v14057_v56 = vld [vmem:[%s20495_s0 + $0x654] ss:$8 sps:$4 sm:$0xff]  }
 0x33d   :  { %v4941_v15 = vmax.f32 %v3536_v2, %v3616_v62  ;;  %v3620_v36 = vadd.f32 %v3619_v54, %v15056_v8  ;;  %v3548_v54 = vadd.f32 %v16210_v4, %v15052_v7 }
 0x33e   :  { %v4942_v51 = vmax.f32 %v3538_v35, %v3618_v28  ;;  %3882 = vmatmul.mubr.bf16.gmra.mrb[140].mxu0 %v14049_v26  ;;  %v14052_v26 = vld [vmem:[%s20495_s0 + $0x640] ss:$8 sps:$4 sm:$0xff]  }
 0x33f   :  { %v4943_v61 = vmax.f32 %v3540_v47, %v3620_v36  ;;  %v6101_v31 = vpop.f32.mrb[0].mxu1  ;;  %12272 = vmatprep.mubr.msk.bf16.mxu0 %vm2275_vm0, %v14054_v42  ;;  %v3546_v42 = vadd.f32 %v16205_v63, %v15056_v8  ;;  %v3550_v47 = vadd.f32 %v16215_v58, %v15056_v8 }
 0x340   :  { %v6103_v50 = vpop.f32.mrb[1].mxu1  ;;  %v5260_v32 = vpack.c.bf16 %v4942_v51, %v4940_v10 }
 0x341   :  { %v6892_v43 = vmax.f32 %v6101_v31, %v6103_v50  ;;  %v3623_v14 = vpop.f32.mrb[36].mxu0  ;;  %v6105_v11 = vpop.f32.mrb[2].mxu1  ;;  %v5261_v46 = vpack.c.bf16 %v4943_v61, %v4941_v15 }
 0x342   :  { %v3624_v25 = vadd.f32 %v3623_v14, %v15052_v7  ;;  %v3625_v2 = vpop.f32.mrb[37].mxu0  ;;  %v6107_v62 = vpop.f32.mrb[3].mxu1 }
 0x343   :  { %v3626_v35 = vadd.f32 %v3625_v2, %v15056_v8  ;;  %v6893_v10 = vmax.f32 %v6105_v11, %v6107_v62  ;;  %v3627_v28 = vpop.f32.mrb[38].mxu0  ;;  %12426 = vmatprep.mubr.msk.bf16.mxu1 %vm5568_vm2, %v5261_v46  ;;  %v7084_v51 = vmax.f32 %v6892_v43, 0.0  ;;  %v3554_v43 = vadd.f32 %v16218_v5, %v15052_v7  ;;  %v14060_v5 = vld [vmem:[%s20495_s0 + $0x664] ss:$8 sps:$4 sm:$0xff]  }
 0x344   :  { %v4944_v15 = vmax.f32 %v3544_v20, %v3624_v25  ;;  %v3628_v36 = vadd.f32 %v3627_v28, %v15052_v7  ;;  %v3629_v63 = vpop.f32.mrb[39].mxu0  ;;  %6210 = vmatmul.mubr.bf16.gmra.mrb[44].mxu1 %v5260_v32 }
 0x345   :  { %v4945_v61 = vmax.f32 %v3546_v42, %v3626_v35  ;;  %v7085_v31 = vmax.f32 %v6893_v10, 0.0  ;;  %v3630_v50 = vadd.f32 %v3629_v63, %v15056_v8  ;;  %v3556_v10 = vadd.f32 %v16220_v53, %v15056_v8 }
 0x346   :  { %v4946_v14 = vmax.f32 %v3548_v54, %v3628_v36  ;;  %3892 = vmatmul.mubr.bf16.gmra.mrb[144].mxu0 %v14052_v26  ;;  %v14055_v26 = vld [vmem:[%s20495_s0 + $0x650] ss:$8 sps:$4 sm:$0xff]   ;;  %v3560_v36 = vadd.f32 %v16230_v1, %v15056_v8 }
 0x347   :  { %v4947_v11 = vmax.f32 %v3550_v47, %v3630_v50  ;;  %v6111_v46 = vpop.f32.mrb[4].mxu1  ;;  %12273 = vmatprep.mubr.msk.bf16.mxu0 %vm2275_vm0, %v14057_v56  ;;  %v16347_v4 = vpack.c.bf16 %v7085_v31, %v7084_v51 }
 0x348   :  { %v6113_v2 = vpop.f32.mrb[5].mxu1  ;;  %v5262_v58 = vpack.c.bf16 %v4946_v14, %v4944_v15  ;;  %v3558_v15 = vadd.f32 %v16225_v24, %v15052_v7 }
 0x349   :  { %20631 = vst [vmem:[#allocation36_spill] sm:$0xff] %v16347_v4  ;;  %v6894_v20 = vmax.f32 %v6111_v46, %v6113_v2  ;;  %v3633_v25 = vpop.f32.mrb[40].mxu0  ;;  %v6115_v62 = vpop.f32.mrb[6].mxu1  ;;  %v5263_v28 = vpack.c.bf16 %v4947_v11, %v4945_v61 }
 0x34a   :  { %v3634_v32 = vadd.f32 %v3633_v25, %v15052_v7  ;;  %v3635_v42 = vpop.f32.mrb[41].mxu0  ;;  %v6117_v35 = vpop.f32.mrb[7].mxu1 }
 0x34b   :  { %v3636_v56 = vadd.f32 %v3635_v42, %v15056_v8  ;;  %v6895_v54 = vmax.f32 %v6115_v62, %v6117_v35  ;;  %v3637_v47 = vpop.f32.mrb[42].mxu0  ;;  %12427 = vmatprep.mubr.msk.bf16.mxu1 %vm5568_vm2, %v5263_v28  ;;  %v7086_v61 = vmax.f32 %v6894_v20, 0.0 }
 0x34c   :  { %v4948_v63 = vmax.f32 %v3554_v43, %v3634_v32  ;;  %v3638_v51 = vadd.f32 %v3637_v47, %v15052_v7  ;;  %v3639_v53 = vpop.f32.mrb[43].mxu0  ;;  %6220 = vmatmul.mubr.bf16.gmra.mrb[48].mxu1 %v5262_v58  ;;  %v3564_v58 = vadd.f32 %v16233_v49, %v15052_v7  ;;  %v14063_v49 = vld [vmem:[%s20495_s0 + $0x674] ss:$8 sps:$4 sm:$0xff]  }
 0x34d   :  { %v4949_v31 = vmax.f32 %v3556_v10, %v3636_v56  ;;  %v7087_v50 = vmax.f32 %v6895_v54, 0.0  ;;  %v3640_v14 = vadd.f32 %v3639_v53, %v15056_v8  ;;  %v3566_v10 = vadd.f32 %v16235_v60, %v15056_v8 }
 0x34e   :  { %v4950_v11 = vmax.f32 %v3558_v15, %v3638_v51  ;;  %3902 = vmatmul.mubr.bf16.gmra.mrb[148].mxu0 %v14055_v26  ;;  %v14058_v26 = vld [vmem:[%s20495_s0 + $0x660] ss:$8 sps:$4 sm:$0xff]   ;;  %v3570_v15 = vadd.f32 %v16245_v34, %v15056_v8 }
 0x34f   :  { %v4951_v46 = vmax.f32 %v3560_v36, %v3640_v14  ;;  %v6121_v2 = vpop.f32.mrb[8].mxu1  ;;  %12274 = vmatprep.mubr.msk.bf16.mxu0 %vm2275_vm0, %v14060_v5  ;;  %v16369_v24 = vpack.c.bf16 %v7087_v50, %v7086_v61  ;;  %v3568_v5 = vadd.f32 %v16240_v12, %v15052_v7 }
 0x350   :  { %v6123_v25 = vpop.f32.mrb[9].mxu1  ;;  %v5264_v1 = vpack.c.bf16 %v4950_v11, %v4948_v63 }
 0x351   :  { %20632 = vst [vmem:[#allocation37_spill] sm:$0xff] %v16369_v24  ;;  %v6896_v62 = vmax.f32 %v6121_v2, %v6123_v25  ;;  %v3643_v28 = vpop.f32.mrb[44].mxu0  ;;  %v6125_v43 = vpop.f32.mrb[10].mxu1  ;;  %v5265_v32 = vpack.c.bf16 %v4951_v46, %v4949_v31  ;;  %v3574_v2 = vadd.f32 %v16248_v48, %v15052_v7  ;;  %v3578_v48 = vadd.f32 %v16255_v3, %v15052_v7 }
 0x352   :  { %v3644_v20 = vadd.f32 %v3643_v28, %v15052_v7  ;;  %v3645_v42 = vpop.f32.mrb[45].mxu0  ;;  %v6127_v35 = vpop.f32.mrb[11].mxu1  ;;  %v3576_v28 = vadd.f32 %v16250_v45, %v15056_v8  ;;  %v3580_v45 = vadd.f32 %v16260_v21, %v15056_v8  ;;  %v3584_v3 = vadd.f32 %v16263_v0, %v15052_v7  ;;  %v14064_v21 = vld [vmem:[%s20495_s0 + $0x680] ss:$8 sps:$4 sm:$0xff]  }
 0x353   :  { %v3646_v56 = vadd.f32 %v3645_v42, %v15056_v8  ;;  %v6897_v54 = vmax.f32 %v6125_v43, %v6127_v35  ;;  %v3647_v47 = vpop.f32.mrb[46].mxu0  ;;  %12428 = vmatprep.mubr.msk.bf16.mxu1 %vm5568_vm2, %v5265_v32  ;;  %v7088_v51 = vmax.f32 %v6896_v62, 0.0  ;;  %v14061_v62 = vld [vmem:[%s20495_s0 + $0x670] ss:$8 sps:$4 sm:$0xff]   ;;  %v3588_v0 = vadd.f32 %v16270_v38, %v15052_v7 }
 0x354   :  { %v4952_v36 = vmax.f32 %v3564_v58, %v3644_v20  ;;  %v3648_v63 = vadd.f32 %v3647_v47, %v15052_v7  ;;  %v3649_v60 = vpop.f32.mrb[47].mxu0  ;;  %6230 = vmatmul.mubr.bf16.gmra.mrb[52].mxu1 %v5264_v1  ;;  %v14066_v58 = vld [vmem:[%s20495_s0 + $0x684] ss:$8 sps:$4 sm:$0xff]   ;;  %v3594_v38 = vadd.f32 %v16278_v44, %v15052_v7  ;;  %v3598_v44 = vadd.f32 %v16285_v13, %v15052_v7 }
 0x355   :  { %v4953_v53 = vmax.f32 %v3566_v10, %v3646_v56  ;;  %v7089_v61 = vmax.f32 %v6897_v54, 0.0  ;;  %v3650_v31 = vadd.f32 %v3649_v60, %v15056_v8  ;;  %v3604_v13 = vadd.f32 %v16293_v30, %v15052_v7 }
 0x356   :  { %v4954_v50 = vmax.f32 %v3568_v5, %v3648_v63  ;;  %3912 = vmatmul.mubr.bf16.gmra.mrb[152].mxu0 %v14058_v26  ;;  %v3586_v63 = vadd.f32 %v16265_v57, %v15056_v8  ;;  %v3590_v57 = vadd.f32 %v16275_v39, %v15056_v8  ;;  %v14067_v39 = vld [vmem:[%s20495_s0 + $0x690] ss:$8 sps:$4 sm:$0xff]   ;;  %v3608_v30 = vadd.f32 %v16300_v29, %v15052_v7 }
 0x357   :  { %v4955_v14 = vmax.f32 %v3570_v15, %v3650_v31  ;;  %12275 = vmatprep.mubr.msk.bf16.mxu0 %vm2275_vm0, %v14063_v49  ;;  %v16391_v11 = vpack.c.bf16 %v7089_v61, %v7088_v51 }
 0x358   :  { %v5266_v12 = vpack.c.bf16 %v4954_v50, %v4952_v36 }
 0x359   :  { %20633 = vst [vmem:[#allocation38_spill] sm:$0xff] %v16391_v11  ;;  %v3653_v46 = vpop.f32.mrb[48].mxu0  ;;  %v5267_v34 = vpack.c.bf16 %v4955_v14, %v4953_v53  ;;  %v14069_v53 = vld [vmem:[%s20495_s0 + $0x694] ss:$8 sps:$4 sm:$0xff]  }
 0x35a   :  { %v3654_v25 = vadd.f32 %v3653_v46, %v15052_v7  ;;  %v3655_v1 = vpop.f32.mrb[49].mxu0 }
 0x35b   :  { %v3656_v43 = vadd.f32 %v3655_v1, %v15056_v8  ;;  %v3657_v32 = vpop.f32.mrb[50].mxu0  ;;  %12429 = vmatprep.mubr.msk.bf16.mxu1 %vm5568_vm2, %v5267_v34 }
 0x35c   :  { %v4956_v20 = vmax.f32 %v3574_v2, %v3654_v25  ;;  %v3658_v42 = vadd.f32 %v3657_v32, %v15052_v7  ;;  %v3659_v35 = vpop.f32.mrb[51].mxu0  ;;  %6240 = vmatmul.mubr.bf16.gmra.mrb[56].mxu1 %v5266_v12 }
 0x35d   :  { %v4957_v26 = vmax.f32 %v3576_v28, %v3656_v43  ;;  %v3660_v10 = vadd.f32 %v3659_v35, %v15056_v8  ;;  %v3596_v43 = vadd.f32 %v16280_v41, %v15056_v8  ;;  %v3600_v41 = vadd.f32 %v16290_v6, %v15056_v8  ;;  %v14070_v6 = vld [vmem:[%s20495_s0 + $0x6a0] ss:$8 sps:$4 sm:$0xff]  }
 0x35e   :  { %v4958_v56 = vmax.f32 %v3578_v48, %v3658_v42  ;;  %3922 = vmatmul.mubr.bf16.gmra.mrb[156].mxu0 %v14061_v62  ;;  %v14072_v48 = vld [vmem:[%s20495_s0 + $0x6a4] ss:$8 sps:$4 sm:$0xff]  }
 0x35f   :  { %v4959_v54 = vmax.f32 %v3580_v45, %v3660_v10  ;;  %12276 = vmatprep.mubr.msk.bf16.mxu0 %vm2275_vm0, %v14066_v58 }
 0x360   :  { %v5268_v47 = vpack.c.bf16 %v4958_v56, %v4956_v20 }
 0x361   :  { %v3663_v49 = vpop.f32.mrb[52].mxu0  ;;  %v5269_v5 = vpack.c.bf16 %v4959_v54, %v4957_v26 }
 0x362   :  { %v3664_v15 = vadd.f32 %v3663_v49, %v15052_v7  ;;  %v3665_v36 = vpop.f32.mrb[53].mxu0 }
 0x363   :  { %v3666_v60 = vadd.f32 %v3665_v36, %v15056_v8  ;;  %v3667_v51 = vpop.f32.mrb[54].mxu0  ;;  %12430 = vmatprep.mubr.msk.bf16.mxu1 %vm5568_vm2, %v5269_v5 }
 0x364   :  { %v4960_v61 = vmax.f32 %v3584_v3, %v3664_v15  ;;  %v3668_v31 = vadd.f32 %v3667_v51, %v15052_v7  ;;  %v3669_v50 = vpop.f32.mrb[55].mxu0  ;;  %6250 = vmatmul.mubr.bf16.gmra.mrb[60].mxu1 %v5268_v47  ;;  %v3606_v15 = vadd.f32 %v16295_v19, %v15056_v8  ;;  %v3610_v19 = vadd.f32 %v16305_v9, %v15056_v8  ;;  %v14078_v9 = vld [vmem:[%s20495_s0 + $0x6c4] ss:$8 sps:$4 sm:$0xff]  }
 0x365   :  { %v4961_v14 = vmax.f32 %v3586_v63, %v3666_v60  ;;  %v3670_v12 = vadd.f32 %v3669_v50, %v15056_v8  ;;  %v14075_v63 = vld [vmem:[%s20495_s0 + $0x6b4] ss:$8 sps:$4 sm:$0xff]  }
 0x366   :  { %v4962_v46 = vmax.f32 %v3588_v0, %v3668_v31  ;;  %3932 = vmatmul.mubr.bf16.gmra.mrb[160].mxu0 %v14064_v21 }
 0x367   :  { %v4963_v34 = vmax.f32 %v3590_v57, %v3670_v12  ;;  %12277 = vmatprep.mubr.msk.bf16.mxu0 %vm2275_vm0, %v14069_v53 }
 0x368   :  { %v5270_v2 = vpack.c.bf16 %v4962_v46, %v4960_v61  ;;  %v14073_v46 = vld [vmem:[%s20495_s0 + $0x6b0] ss:$8 sps:$4 sm:$0xff]  }
 0x369   :  { %v3673_v25 = vpop.f32.mrb[56].mxu0  ;;  %v5271_v1 = vpack.c.bf16 %v4963_v34, %v4961_v14 }
 0x36a   :  { %v3674_v62 = vadd.f32 %v3673_v25, %v15052_v7  ;;  %v3675_v28 = vpop.f32.mrb[57].mxu0 }
 0x36b   :  { %v3676_v32 = vadd.f32 %v3675_v28, %v15056_v8  ;;  %v3677_v58 = vpop.f32.mrb[58].mxu0  ;;  %12431 = vmatprep.mubr.msk.bf16.mxu1 %vm5568_vm2, %v5271_v1  ;;  %v14081_v28 = vld [vmem:[%s20495_s0 + $0x6d4] ss:$8 sps:$4 sm:$0xff]  }
 0x36c   :  { %v4964_v20 = vmax.f32 %v3594_v38, %v3674_v62  ;;  %v3678_v42 = vadd.f32 %v3677_v58, %v15052_v7  ;;  %v3679_v35 = vpop.f32.mrb[59].mxu0  ;;  %6260 = vmatmul.mubr.bf16.gmra.mrb[64].mxu1 %v5270_v2  ;;  %v14076_v38 = vld [vmem:[%s20495_s0 + $0x6c0] ss:$8 sps:$4 sm:$0xff]   ;;  %v14079_v58 = vld [vmem:[%s20495_s0 + $0x6d0] ss:$8 sps:$4 sm:$0xff]  }
 0x36d   :  { %v4965_v45 = vmax.f32 %v3596_v43, %v3676_v32  ;;  %v3680_v26 = vadd.f32 %v3679_v35, %v15056_v8 }
 0x36e   :  { %v4966_v10 = vmax.f32 %v3598_v44, %v3678_v42  ;;  %3942 = vmatmul.mubr.bf16.gmra.mrb[164].mxu0 %v14067_v39  ;;  %v14084_v44 = vld [vmem:[%s20495_s0 + $0x6e4] ss:$8 sps:$4 sm:$0xff]  }
 0x36f   :  { %v4967_v56 = vmax.f32 %v3600_v41, %v3680_v26  ;;  %12278 = vmatprep.mubr.msk.bf16.mxu0 %vm2275_vm0, %v14072_v48  ;;  %v14082_v41 = vld [vmem:[%s20495_s0 + $0x6e0] ss:$8 sps:$4 sm:$0xff]   ;;  %v14087_v26 = vld [vmem:[%s20495_s0 + $0x6f4] ss:$8 sps:$4 sm:$0xff]  }
 0x370   :  { %v5272_v54 = vpack.c.bf16 %v4966_v10, %v4964_v20 }
 0x371   :  { %v3683_v47 = vpop.f32.mrb[60].mxu0  ;;  %v5273_v49 = vpack.c.bf16 %v4967_v56, %v4965_v45 }
 0x372   :  { %v3684_v5 = vadd.f32 %v3683_v47, %v15052_v7  ;;  %v3685_v3 = vpop.f32.mrb[61].mxu0 }
 0x373   :  { %v3686_v36 = vadd.f32 %v3685_v3, %v15056_v8  ;;  %v3687_v21 = vpop.f32.mrb[62].mxu0  ;;  %12432 = vmatprep.mubr.msk.bf16.mxu1 %vm5568_vm2, %v5273_v49 }
 0x374   :  { %v4968_v60 = vmax.f32 %v3604_v13, %v3684_v5  ;;  %v3688_v51 = vadd.f32 %v3687_v21, %v15052_v7  ;;  %v3689_v53 = vpop.f32.mrb[63].mxu0  ;;  %6270 = vmatmul.mubr.bf16.gmra.mrb[68].mxu1 %v5272_v54  ;;  %v14090_v21 = vld [vmem:[%s20495_s0 + $0x704] ss:$8 sps:$4 sm:$0xff]  }
 0x375   :  { %v4969_v0 = vmax.f32 %v3606_v15, %v3686_v36  ;;  %v3690_v61 = vadd.f32 %v3689_v53, %v15056_v8 }
 0x376   :  { %v4970_v31 = vmax.f32 %v3608_v30, %v3688_v51  ;;  %3952 = vmatmul.mubr.bf16.gmra.mrb[168].mxu0 %v14070_v6  ;;  %v14085_v6 = vld [vmem:[%s20495_s0 + $0x6f0] ss:$8 sps:$4 sm:$0xff]  }
 0x377   :  { %v4971_v50 = vmax.f32 %v3610_v19, %v3690_v61  ;;  %12279 = vmatprep.mubr.msk.bf16.mxu0 %vm2275_vm0, %v14075_v63 }
 0x378   :  { %v5274_v57 = vpack.c.bf16 %v4970_v31, %v4968_v60 }
 0x379   :  { %v16473_v14 = vpop.f32.mrb[64].mxu0  ;;  %v5275_v29 = vpack.c.bf16 %v4971_v50, %v4969_v0 }
 0x37a   :  { %v16475_v12 = vpop.f32.mrb[65].mxu0 }
 0x37b   :  { %v16480_v34 = vpop.f32.mrb[66].mxu0  ;;  %12433 = vmatprep.mubr.msk.bf16.mxu1 %vm5568_vm2, %v5275_v29  ;;  %v14088_v29 = vld [vmem:[%s20495_s0 + $0x700] ss:$8 sps:$4 sm:$0xff]  }
 0x37c   :  { %v16486_v2 = vpop.f32.mrb[67].mxu0  ;;  %6280 = vmatmul.mubr.bf16.gmra.mrb[72].mxu1 %v5274_v57 }
 0x37e   :  { %3962 = vmatmul.mubr.bf16.gmra.mrb[172].mxu0 %v14073_v46 }
 0x37f   :  { %12280 = vmatprep.mubr.msk.bf16.mxu0 %vm2275_vm0, %v14078_v9 }
 0x381   :  { %v16489_v25 = vpop.f32.mrb[68].mxu0 }
 0x382   :  { %v16491_v1 = vpop.f32.mrb[69].mxu0 }
 0x383   :  { %v16496_v62 = vpop.f32.mrb[70].mxu0 }
 0x384   :  { %v16501_v39 = vpop.f32.mrb[71].mxu0 }
 0x386   :  { %3972 = vmatmul.mubr.bf16.gmra.mrb[176].mxu0 %v14076_v38  ;;  %v14093_v38 = vld [vmem:[%s20495_s0 + $0x714] ss:$8 sps:$4 sm:$0xff]  }
 0x387   :  { %12281 = vmatprep.mubr.msk.bf16.mxu0 %vm2275_vm0, %v14081_v28 }
 0x389   :  { %v16504_v43 = vpop.f32.mrb[72].mxu0 }
 0x38a   :  { %v16506_v32 = vpop.f32.mrb[73].mxu0 }
 0x38b   :  { %v16511_v48 = vpop.f32.mrb[74].mxu0 }
 0x38c   :  { %v16516_v20 = vpop.f32.mrb[75].mxu0 }
 0x38e   :  { %3982 = vmatmul.mubr.bf16.gmra.mrb[180].mxu0 %v14079_v58 }
 0x38f   :  { %12282 = vmatprep.mubr.msk.bf16.mxu0 %vm2275_vm0, %v14084_v44 }
 0x391   :  { %v16519_v42 = vpop.f32.mrb[76].mxu0 }
 0x392   :  { %v16521_v35 = vpop.f32.mrb[77].mxu0 }
 0x393   :  { %v16526_v45 = vpop.f32.mrb[78].mxu0 }
 0x394   :  { %v16531_v10 = vpop.f32.mrb[79].mxu0 }
 0x396   :  { %3992 = vmatmul.mubr.bf16.gmra.mrb[184].mxu0 %v14082_v41 }
 0x397   :  { %v6131_v56 = vpop.f32.mrb[12].mxu1  ;;  %12283 = vmatprep.mubr.msk.bf16.mxu0 %vm2275_vm0, %v14087_v26 }
 0x398   :  { %v6133_v54 = vpop.f32.mrb[13].mxu1 }
 0x399   :  { %v6898_v47 = vmax.f32 %v6131_v56, %v6133_v54  ;;  %v16534_v49 = vpop.f32.mrb[80].mxu0  ;;  %v6135_v13 = vpop.f32.mrb[14].mxu1 }
 0x39a   :  { %v16536_v5 = vpop.f32.mrb[81].mxu0  ;;  %v6137_v3 = vpop.f32.mrb[15].mxu1 }
 0x39b   :  { %v6899_v15 = vmax.f32 %v6135_v13, %v6137_v3  ;;  %v16541_v36 = vpop.f32.mrb[82].mxu0  ;;  %v7090_v30 = vmax.f32 %v6898_v47, 0.0 }
 0x39c   :  { %v16546_v63 = vpop.f32.mrb[83].mxu0 }
 0x39d   :  { %v7091_v60 = vmax.f32 %v6899_v15, 0.0  ;;  %v14091_v15 = vld [vmem:[%s20495_s0 + $0x710] ss:$8 sps:$4 sm:$0xff]  }
 0x39e   :  { %4002 = vmatmul.mubr.bf16.gmra.mrb[188].mxu0 %v14085_v6 }
 0x39f   :  { %v16548_v51 = vpack.c.bf16 %v7091_v60, %v7090_v30  ;;  %v6141_v53 = vpop.f32.mrb[16].mxu1  ;;  %12284 = vmatprep.mubr.msk.bf16.mxu0 %vm2275_vm0, %v14090_v21  ;;  %v14096_v60 = vld [vmem:[%s20495_s0 + $0x724] ss:$8 sps:$4 sm:$0xff]  }
 0x3a0   :  { %v6143_v19 = vpop.f32.mrb[17].mxu1 }
 0x3a1   :  { %20634 = vst [vmem:[#allocation39_spill] sm:$0xff] %v16548_v51  ;;  %v6900_v0 = vmax.f32 %v6141_v53, %v6143_v19  ;;  %v16551_v61 = vpop.f32.mrb[84].mxu0  ;;  %v6145_v31 = vpop.f32.mrb[18].mxu1 }
 0x3a2   :  { %v16553_v50 = vpop.f32.mrb[85].mxu0  ;;  %v6147_v57 = vpop.f32.mrb[19].mxu1 }
 0x3a3   :  { %v6901_v46 = vmax.f32 %v6145_v31, %v6147_v57  ;;  %v16558_v9 = vpop.f32.mrb[86].mxu0  ;;  %v7092_v58 = vmax.f32 %v6900_v0, 0.0 }
 0x3a4   :  { %v16563_v28 = vpop.f32.mrb[87].mxu0 }
 0x3a5   :  { %v7093_v44 = vmax.f32 %v6901_v46, 0.0 }
 0x3a6   :  { %4012 = vmatmul.mubr.bf16.gmra.mrb[192].mxu0 %v14088_v29 }
 0x3a7   :  { %v16565_v41 = vpack.c.bf16 %v7093_v44, %v7092_v58  ;;  %v6151_v26 = vpop.f32.mrb[20].mxu1  ;;  %12285 = vmatprep.mubr.msk.bf16.mxu0 %vm2275_vm0, %v14093_v38 }
 0x3a8   :  { %v6153_v56 = vpop.f32.mrb[21].mxu1 }
 0x3a9   :  { %20635 = vst [vmem:[#allocation40_spill] sm:$0xff] %v16565_v41  ;;  %v6902_v54 = vmax.f32 %v6151_v26, %v6153_v56  ;;  %v16568_v47 = vpop.f32.mrb[88].mxu0  ;;  %v6155_v13 = vpop.f32.mrb[22].mxu1  ;;  %v14094_v56 = vld [vmem:[%s20495_s0 + $0x720] ss:$8 sps:$4 sm:$0xff]  }
 0x3aa   :  { %v16570_v3 = vpop.f32.mrb[89].mxu0  ;;  %v6157_v6 = vpop.f32.mrb[23].mxu1 }
 0x3ab   :  { %v6903_v21 = vmax.f32 %v6155_v13, %v6157_v6  ;;  %v16575_v30 = vpop.f32.mrb[90].mxu0  ;;  %v7094_v19 = vmax.f32 %v6902_v54, 0.0  ;;  %v14099_v6 = vld [vmem:[%s20495_s0 + $0x734] ss:$8 sps:$4 sm:$0xff]  }
 0x3ac   :  { %v16580_v53 = vpop.f32.mrb[91].mxu0 }
 0x3ad   :  { %v7095_v0 = vmax.f32 %v6903_v21, 0.0 }
 0x3ae   :  { %4022 = vmatmul.mubr.bf16.gmra.mrb[196].mxu0 %v14091_v15 }
 0x3af   :  { %v16582_v31 = vpack.c.bf16 %v7095_v0, %v7094_v19  ;;  %v6161_v57 = vpop.f32.mrb[24].mxu1  ;;  %12286 = vmatprep.mubr.msk.bf16.mxu0 %vm2275_vm0, %v14096_v60 }
 0x3b0   :  { %v6163_v29 = vpop.f32.mrb[25].mxu1 }
 0x3b1   :  { %20636 = vst [vmem:[#allocation41_spill] sm:$0xff] %v16582_v31  ;;  %v6904_v46 = vmax.f32 %v6161_v57, %v6163_v29  ;;  %v16585_v38 = vpop.f32.mrb[92].mxu0  ;;  %v6165_v58 = vpop.f32.mrb[26].mxu1 }
 0x3b2   :  { %v16587_v44 = vpop.f32.mrb[93].mxu0  ;;  %v6167_v26 = vpop.f32.mrb[27].mxu1 }
 0x3b3   :  { %v6905_v54 = vmax.f32 %v6165_v58, %v6167_v26  ;;  %v16592_v13 = vpop.f32.mrb[94].mxu0  ;;  %v7096_v21 = vmax.f32 %v6904_v46, 0.0  ;;  %v3694_v26 = vadd.f32 %v16473_v14, %v15052_v7  ;;  %v14097_v46 = vld [vmem:[%s20495_s0 + $0x730] ss:$8 sps:$4 sm:$0xff]   ;;  %v3698_v14 = vadd.f32 %v16480_v34, %v15052_v7 }
 0x3b4   :  { %v16597_v15 = vpop.f32.mrb[95].mxu0 }
 0x3b5   :  { %v7097_v60 = vmax.f32 %v6905_v54, 0.0 }
 0x3b6   :  { %4032 = vmatmul.mubr.bf16.gmra.mrb[200].mxu0 %v14094_v56  ;;  %v3696_v56 = vadd.f32 %v16475_v12, %v15056_v8 }
 0x3b7   :  { %v16599_v19 = vpack.c.bf16 %v7097_v60, %v7096_v21  ;;  %v6171_v0 = vpop.f32.mrb[28].mxu1  ;;  %12287 = vmatprep.mubr.msk.bf16.mxu0 %vm2275_vm0, %v14099_v6  ;;  %v14102_v60 = vld [vmem:[%s20495_s0 + $0x744] ss:$8 sps:$4 sm:$0xff]  }
 0x3b8   :  { %v6173_v57 = vpop.f32.mrb[29].mxu1 }
 0x3b9   :  { %20637 = vst [vmem:[#allocation42_spill] sm:$0xff] %v16599_v19  ;;  %v6906_v29 = vmax.f32 %v6171_v0, %v6173_v57  ;;  %v3773_v31 = vpop.f32.mrb[96].mxu0  ;;  %v6175_v58 = vpop.f32.mrb[30].mxu1 }
 0x3ba   :  { %v3774_v41 = vadd.f32 %v3773_v31, %v15052_v7  ;;  %v3775_v51 = vpop.f32.mrb[97].mxu0  ;;  %v6177_v11 = vpop.f32.mrb[31].mxu1  ;;  %v3700_v31 = vadd.f32 %v16486_v2, %v15056_v8 }
 0x3bb   :  { %v3776_v54 = vadd.f32 %v3775_v51, %v15056_v8  ;;  %v6907_v6 = vmax.f32 %v6175_v58, %v6177_v11  ;;  %v3777_v21 = vpop.f32.mrb[98].mxu0  ;;  %v7098_v24 = vmax.f32 %v6906_v29, 0.0  ;;  %v3704_v29 = vadd.f32 %v16489_v25, %v15052_v7 }
 0x3bc   :  { %v4972_v0 = vmax.f32 %v3694_v26, %v3774_v41  ;;  %v3778_v57 = vadd.f32 %v3777_v21, %v15052_v7  ;;  %v3779_v19 = vpop.f32.mrb[99].mxu0  ;;  %v3708_v25 = vadd.f32 %v16496_v62, %v15052_v7 }
 0x3bd   :  { %v4973_v12 = vmax.f32 %v3696_v56, %v3776_v54  ;;  %v7099_v4 = vmax.f32 %v6907_v6, 0.0  ;;  %v3780_v11 = vadd.f32 %v3779_v19, %v15056_v8 }
 0x3be   :  { %v4974_v51 = vmax.f32 %v3698_v14, %v3778_v57  ;;  %4042 = vmatmul.mubr.bf16.gmra.mrb[204].mxu0 %v14097_v46 }
 0x3bf   :  { %v16620_v58 = vpack.c.bf16 %v7099_v4, %v7098_v24  ;;  %v4975_v37 = vmax.f32 %v3700_v31, %v3780_v11  ;;  %v6181_v17 = vpop.f32.mrb[32].mxu1  ;;  %12288 = vmatprep.mubr.msk.bf16.mxu0 %vm2275_vm0, %v14102_v60  ;;  %v14100_v4 = vld [vmem:[%s20495_s0 + $0x740] ss:$8 sps:$4 sm:$0xff]   ;;  %v3706_v24 = vadd.f32 %v16491_v1, %v15056_v8  ;;  %v3710_v60 = vadd.f32 %v16501_v39, %v15056_v8 }
 0x3c0   :  { %v6183_v34 = vpop.f32.mrb[33].mxu1  ;;  %v5276_v52 = vpack.c.bf16 %v4974_v51, %v4972_v0 }
 0x3c1   :  { %20638 = vst [vmem:[#allocation43_spill] sm:$0xff] %v16620_v58  ;;  %v6908_v2 = vmax.f32 %v6181_v17, %v6183_v34  ;;  %v3783_v41 = vpop.f32.mrb[100].mxu0  ;;  %v6185_v26 = vpop.f32.mrb[34].mxu1  ;;  %v5277_v21 = vpack.c.bf16 %v4975_v37, %v4973_v12  ;;  %v14105_v37 = vld [vmem:[%s20495_s0 + $0x754] ss:$8 sps:$4 sm:$0xff]  }
 0x3c2   :  { %v3784_v56 = vadd.f32 %v3783_v41, %v15052_v7  ;;  %v3785_v19 = vpop.f32.mrb[101].mxu0  ;;  %v6187_v54 = vpop.f32.mrb[35].mxu1 }
 0x3c3   :  { %v3786_v46 = vadd.f32 %v3785_v19, %v15056_v8  ;;  %v6909_v17 = vmax.f32 %v6185_v26, %v6187_v54  ;;  %v3787_v6 = vpop.f32.mrb[102].mxu0  ;;  %12434 = vmatprep.mubr.msk.bf16.mxu1 %vm5568_vm2, %v5277_v21  ;;  %v7100_v0 = vmax.f32 %v6908_v2, 0.0 }
 0x3c4   :  { %v4976_v14 = vmax.f32 %v3704_v29, %v3784_v56  ;;  %v3788_v31 = vadd.f32 %v3787_v6, %v15052_v7  ;;  %v3789_v1 = vpop.f32.mrb[103].mxu0  ;;  %6290 = vmatmul.mubr.bf16.gmra.mrb[76].mxu1 %v5276_v52  ;;  %v3714_v52 = vadd.f32 %v16504_v43, %v15052_v7  ;;  %v14108_v43 = vld [vmem:[%s20495_s0 + $0x764] ss:$8 sps:$4 sm:$0xff]  }
 0x3c5   :  { %v4977_v57 = vmax.f32 %v3706_v24, %v3786_v46  ;;  %v7101_v12 = vmax.f32 %v6909_v17, 0.0  ;;  %v3790_v11 = vadd.f32 %v3789_v1, %v15056_v8  ;;  %v3716_v46 = vadd.f32 %v16506_v32, %v15056_v8 }
 0x3c6   :  { %v4978_v51 = vmax.f32 %v3708_v25, %v3788_v31  ;;  %4052 = vmatmul.mubr.bf16.gmra.mrb[208].mxu0 %v14100_v4  ;;  %v14103_v4 = vld [vmem:[%s20495_s0 + $0x750] ss:$8 sps:$4 sm:$0xff]   ;;  %v3718_v25 = vadd.f32 %v16511_v48, %v15052_v7 }
 0x3c7   :  { %v16642_v34 = vpack.c.bf16 %v7101_v12, %v7100_v0  ;;  %v4979_v41 = vmax.f32 %v3710_v60, %v3790_v11  ;;  %v6191_v26 = vpop.f32.mrb[36].mxu1  ;;  %12289 = vmatprep.mubr.msk.bf16.mxu0 %vm2275_vm0, %v14105_v37  ;;  %v3720_v60 = vadd.f32 %v16516_v20, %v15056_v8 }
 0x3c8   :  { %v6193_v62 = vpop.f32.mrb[37].mxu1  ;;  %v5278_v39 = vpack.c.bf16 %v4978_v51, %v4976_v14 }
 0x3c9   :  { %20639 = vst [vmem:[#allocation44_spill] sm:$0xff] %v16642_v34  ;;  %v6910_v21 = vmax.f32 %v6191_v26, %v6193_v62  ;;  %v3793_v29 = vpop.f32.mrb[104].mxu0  ;;  %v6195_v56 = vpop.f32.mrb[38].mxu1  ;;  %v5279_v19 = vpack.c.bf16 %v4979_v41, %v4977_v57 }
 0x3ca   :  { %v3794_v2 = vadd.f32 %v3793_v29, %v15052_v7  ;;  %v3795_v54 = vpop.f32.mrb[105].mxu0  ;;  %v6197_v24 = vpop.f32.mrb[39].mxu1 }
 0x3cb   :  { %v3796_v17 = vadd.f32 %v3795_v54, %v15056_v8  ;;  %v6911_v6 = vmax.f32 %v6195_v56, %v6197_v24  ;;  %v3797_v37 = vpop.f32.mrb[106].mxu0  ;;  %12435 = vmatprep.mubr.msk.bf16.mxu1 %vm5568_vm2, %v5279_v19  ;;  %v7102_v1 = vmax.f32 %v6910_v21, 0.0  ;;  %v14106_v54 = vld [vmem:[%s20495_s0 + $0x760] ss:$8 sps:$4 sm:$0xff]   ;;  %v3726_v24 = vadd.f32 %v16521_v35, %v15056_v8 }
 0x3cc   :  { %v4980_v14 = vmax.f32 %v3714_v52, %v3794_v2  ;;  %v3798_v31 = vadd.f32 %v3797_v37, %v15052_v7  ;;  %v3799_v32 = vpop.f32.mrb[107].mxu0  ;;  %6300 = vmatmul.mubr.bf16.gmra.mrb[80].mxu1 %v5278_v39  ;;  %v3724_v39 = vadd.f32 %v16519_v42, %v15052_v7  ;;  %v14111_v42 = vld [vmem:[%s20495_s0 + $0x774] ss:$8 sps:$4 sm:$0xff]   ;;  %v3730_v37 = vadd.f32 %v16531_v10, %v15056_v8 }
 0x3cd   :  { %v4981_v0 = vmax.f32 %v3716_v46, %v3796_v17  ;;  %v7103_v57 = vmax.f32 %v6911_v6, 0.0  ;;  %v3800_v12 = vadd.f32 %v3799_v32, %v15056_v8  ;;  %v3728_v6 = vadd.f32 %v16526_v45, %v15052_v7 }
 0x3ce   :  { %v4982_v11 = vmax.f32 %v3718_v25, %v3798_v31  ;;  %4062 = vmatmul.mubr.bf16.gmra.mrb[212].mxu0 %v14103_v4 }
 0x3cf   :  { %v16664_v51 = vpack.c.bf16 %v7103_v57, %v7102_v1  ;;  %v4983_v41 = vmax.f32 %v3720_v60, %v3800_v12  ;;  %v6201_v26 = vpop.f32.mrb[40].mxu1  ;;  %12290 = vmatprep.mubr.msk.bf16.mxu0 %vm2275_vm0, %v14108_v43 }
 0x3d0   :  { %v6203_v48 = vpop.f32.mrb[41].mxu1  ;;  %v5280_v20 = vpack.c.bf16 %v4982_v11, %v4980_v14  ;;  %v3734_v11 = vadd.f32 %v16534_v49, %v15052_v7  ;;  %v3738_v49 = vadd.f32 %v16541_v36, %v15052_v7  ;;  %v3744_v36 = vadd.f32 %v16551_v61, %v15052_v7 }
 0x3d1   :  { %20640 = vst [vmem:[#allocation45_spill] sm:$0xff] %v16664_v51  ;;  %v6912_v62 = vmax.f32 %v6201_v26, %v6203_v48  ;;  %v3803_v29 = vpop.f32.mrb[108].mxu0  ;;  %v6205_v56 = vpop.f32.mrb[42].mxu1  ;;  %v5281_v19 = vpack.c.bf16 %v4983_v41, %v4981_v0  ;;  %v14109_v48 = vld [vmem:[%s20495_s0 + $0x770] ss:$8 sps:$4 sm:$0xff]   ;;  %v3748_v61 = vadd.f32 %v16558_v9, %v15052_v7  ;;  %v3754_v9 = vadd.f32 %v16568_v47, %v15052_v7 }
 0x3d2   :  { %v3804_v21 = vadd.f32 %v3803_v29, %v15052_v7  ;;  %v3805_v52 = vpop.f32.mrb[109].mxu0  ;;  %v6207_v2 = vpop.f32.mrb[43].mxu1  ;;  %v3758_v47 = vadd.f32 %v16575_v30, %v15052_v7  ;;  %v3764_v30 = vadd.f32 %v16585_v38, %v15052_v7  ;;  %v3768_v38 = vadd.f32 %v16592_v13, %v15052_v7 }
 0x3d3   :  { %v3806_v4 = vadd.f32 %v3805_v52, %v15056_v8  ;;  %v6913_v46 = vmax.f32 %v6205_v56, %v6207_v2  ;;  %v3807_v17 = vpop.f32.mrb[110].mxu0  ;;  %12436 = vmatprep.mubr.msk.bf16.mxu1 %vm5568_vm2, %v5281_v19  ;;  %v7104_v60 = vmax.f32 %v6912_v62, 0.0  ;;  %v14114_v56 = vld [vmem:[%s20495_s0 + $0x784] ss:$8 sps:$4 sm:$0xff]  }
 0x3d4   :  { %v4984_v43 = vmax.f32 %v3724_v39, %v3804_v21  ;;  %v3808_v25 = vadd.f32 %v3807_v17, %v15052_v7  ;;  %v3809_v35 = vpop.f32.mrb[111].mxu0  ;;  %6310 = vmatmul.mubr.bf16.gmra.mrb[84].mxu1 %v5280_v20  ;;  %v3736_v20 = vadd.f32 %v16536_v5, %v15056_v8  ;;  %v3740_v5 = vadd.f32 %v16546_v63, %v15056_v8  ;;  %v14112_v63 = vld [vmem:[%s20495_s0 + $0x780] ss:$8 sps:$4 sm:$0xff]  }
 0x3d5   :  { %v4985_v14 = vmax.f32 %v3726_v24, %v3806_v4  ;;  %v7105_v31 = vmax.f32 %v6913_v46, 0.0  ;;  %v3810_v32 = vadd.f32 %v3809_v35, %v15056_v8  ;;  %v14117_v35 = vld [vmem:[%s20495_s0 + $0x794] ss:$8 sps:$4 sm:$0xff]  }
 0x3d6   :  { %v4986_v1 = vmax.f32 %v3728_v6, %v3808_v25  ;;  %4072 = vmatmul.mubr.bf16.gmra.mrb[216].mxu0 %v14106_v54 }
 0x3d7   :  { %v16686_v0 = vpack.c.bf16 %v7105_v31, %v7104_v60  ;;  %v4987_v57 = vmax.f32 %v3730_v37, %v3810_v32  ;;  %12291 = vmatprep.mubr.msk.bf16.mxu0 %vm2275_vm0, %v14111_v42  ;;  %v3746_v37 = vadd.f32 %v16553_v50, %v15056_v8  ;;  %v3750_v50 = vadd.f32 %v16563_v28, %v15056_v8  ;;  %v14115_v28 = vld [vmem:[%s20495_s0 + $0x790] ss:$8 sps:$4 sm:$0xff]  }
 0x3d8   :  { %v5282_v45 = vpack.c.bf16 %v4986_v1, %v4984_v43 }
 0x3d9   :  { %20641 = vst [vmem:[#allocation46_spill] sm:$0xff] %v16686_v0  ;;  %v3813_v12 = vpop.f32.mrb[112].mxu0  ;;  %v5283_v10 = vpack.c.bf16 %v4987_v57, %v4985_v14 }
 0x3da   :  { %v3814_v41 = vadd.f32 %v3813_v12, %v15052_v7  ;;  %v3815_v26 = vpop.f32.mrb[113].mxu0 }
 0x3db   :  { %v3816_v62 = vadd.f32 %v3815_v26, %v15056_v8  ;;  %v3817_v29 = vpop.f32.mrb[114].mxu0  ;;  %12437 = vmatprep.mubr.msk.bf16.mxu1 %vm5568_vm2, %v5283_v10 }
 0x3dc   :  { %v4988_v19 = vmax.f32 %v3734_v11, %v3814_v41  ;;  %v3818_v39 = vadd.f32 %v3817_v29, %v15052_v7  ;;  %v3819_v21 = vpop.f32.mrb[115].mxu0  ;;  %6320 = vmatmul.mubr.bf16.gmra.mrb[88].mxu1 %v5282_v45  ;;  %v14120_v29 = vld [vmem:[%s20495_s0 + $0x7a4] ss:$8 sps:$4 sm:$0xff]  }
 0x3dd   :  { %v4989_v52 = vmax.f32 %v3736_v20, %v3816_v62  ;;  %v3820_v2 = vadd.f32 %v3819_v21, %v15056_v8 }
 0x3de   :  { %v4990_v54 = vmax.f32 %v3738_v49, %v3818_v39  ;;  %4082 = vmatmul.mubr.bf16.gmra.mrb[220].mxu0 %v14109_v48  ;;  %v3756_v48 = vadd.f32 %v16570_v3, %v15056_v8  ;;  %v3760_v3 = vadd.f32 %v16580_v53, %v15056_v8  ;;  %v14118_v53 = vld [vmem:[%s20495_s0 + $0x7a0] ss:$8 sps:$4 sm:$0xff]  }
 0x3df   :  { %v4991_v24 = vmax.f32 %v3740_v5, %v3820_v2  ;;  %12292 = vmatprep.mubr.msk.bf16.mxu0 %vm2275_vm0, %v14114_v56 }
 0x3e0   :  { %v5284_v4 = vpack.c.bf16 %v4990_v54, %v4988_v19 }
 0x3e1   :  { %v3823_v46 = vpop.f32.mrb[116].mxu0  ;;  %v5285_v17 = vpack.c.bf16 %v4991_v24, %v4989_v52 }
 0x3e2   :  { %v3824_v42 = vadd.f32 %v3823_v46, %v15052_v7  ;;  %v3825_v6 = vpop.f32.mrb[117].mxu0 }
 0x3e3   :  { %v3826_v43 = vadd.f32 %v3825_v6, %v15056_v8  ;;  %v3827_v25 = vpop.f32.mrb[118].mxu0  ;;  %12438 = vmatprep.mubr.msk.bf16.mxu1 %vm5568_vm2, %v5285_v17  ;;  %v3766_v17 = vadd.f32 %v16587_v44, %v15056_v8  ;;  %v14123_v6 = vld [vmem:[%s20495_s0 + $0x7b4] ss:$8 sps:$4 sm:$0xff]   ;;  %v3770_v44 = vadd.f32 %v16597_v15, %v15056_v8  ;;  %v14126_v15 = vld [vmem:[%s20495_s0 + $0x7c4] ss:$8 sps:$4 sm:$0xff]  }
 0x3e4   :  { %v4992_v60 = vmax.f32 %v3744_v36, %v3824_v42  ;;  %v3828_v14 = vadd.f32 %v3827_v25, %v15052_v7  ;;  %v3829_v31 = vpop.f32.mrb[119].mxu0  ;;  %6330 = vmatmul.mubr.bf16.gmra.mrb[92].mxu1 %v5284_v4 }
 0x3e5   :  { %v4993_v32 = vmax.f32 %v3746_v37, %v3826_v43  ;;  %v3830_v1 = vadd.f32 %v3829_v31, %v15056_v8 }
 0x3e6   :  { %v4994_v57 = vmax.f32 %v3748_v61, %v3828_v14  ;;  %4092 = vmatmul.mubr.bf16.gmra.mrb[224].mxu0 %v14112_v63 }
 0x3e7   :  { %v4995_v45 = vmax.f32 %v3750_v50, %v3830_v1  ;;  %12293 = vmatprep.mubr.msk.bf16.mxu0 %vm2275_vm0, %v14117_v35 }
 0x3e8   :  { %v5286_v12 = vpack.c.bf16 %v4994_v57, %v4992_v60 }
 0x3e9   :  { %v3833_v10 = vpop.f32.mrb[120].mxu0  ;;  %v5287_v11 = vpack.c.bf16 %v4995_v45, %v4993_v32  ;;  %v14121_v32 = vld [vmem:[%s20495_s0 + $0x7b0] ss:$8 sps:$4 sm:$0xff]  }
 0x3ea   :  { %v3834_v41 = vadd.f32 %v3833_v10, %v15052_v7  ;;  %v3835_v26 = vpop.f32.mrb[121].mxu0  ;;  %v14124_v10 = vld [vmem:[%s20495_s0 + $0x7c0] ss:$8 sps:$4 sm:$0xff]  }
 0x3eb   :  { %v3836_v20 = vadd.f32 %v3835_v26, %v15056_v8  ;;  %v3837_v62 = vpop.f32.mrb[122].mxu0  ;;  %12439 = vmatprep.mubr.msk.bf16.mxu1 %vm5568_vm2, %v5287_v11 }
 0x3ec   :  { %v4996_v56 = vmax.f32 %v3754_v9, %v3834_v41  ;;  %v3838_v49 = vadd.f32 %v3837_v62, %v15052_v7  ;;  %v3839_v19 = vpop.f32.mrb[123].mxu0  ;;  %6340 = vmatmul.mubr.bf16.gmra.mrb[96].mxu1 %v5286_v12  ;;  %v14129_v9 = vld [vmem:[%s20495_s0 + $0x7d4] ss:$8 sps:$4 sm:$0xff]   ;;  %v14132_v62 = vld [vmem:[%s20495_s0 + $0x7e4] ss:$8 sps:$4 sm:$0xff]  }
 0x3ed   :  { %v4997_v39 = vmax.f32 %v3756_v48, %v3836_v20  ;;  %v3840_v21 = vadd.f32 %v3839_v19, %v15056_v8  ;;  %v14127_v48 = vld [vmem:[%s20495_s0 + $0x7d0] ss:$8 sps:$4 sm:$0xff]  }
 0x3ee   :  { %v4998_v5 = vmax.f32 %v3758_v47, %v3838_v49  ;;  %4102 = vmatmul.mubr.bf16.gmra.mrb[228].mxu0 %v14115_v28  ;;  %v14130_v49 = vld [vmem:[%s20495_s0 + $0x7e0] ss:$8 sps:$4 sm:$0xff]  }
 0x3ef   :  { %v4999_v52 = vmax.f32 %v3760_v3, %v3840_v21  ;;  %12294 = vmatprep.mubr.msk.bf16.mxu0 %vm2275_vm0, %v14120_v29  ;;  %v14135_v3 = vld [vmem:[%s20495_s0 + $0x7f4] ss:$8 sps:$4 sm:$0xff]  }
 0x3f0   :  { %v5288_v2 = vpack.c.bf16 %v4998_v5, %v4996_v56 }
 0x3f1   :  { %v3843_v54 = vpop.f32.mrb[124].mxu0  ;;  %v5289_v24 = vpack.c.bf16 %v4999_v52, %v4997_v39 }
 0x3f2   :  { %v3844_v4 = vadd.f32 %v3843_v54, %v15052_v7  ;;  %v3845_v46 = vpop.f32.mrb[125].mxu0 }
 0x3f3   :  { %v3846_v36 = vadd.f32 %v3845_v46, %v15056_v8  ;;  %v3847_v42 = vpop.f32.mrb[126].mxu0  ;;  %12440 = vmatprep.mubr.msk.bf16.mxu1 %vm5568_vm2, %v5289_v24 }
 0x3f4   :  { %v5000_v63 = vmax.f32 %v3764_v30, %v3844_v4  ;;  %v3848_v37 = vadd.f32 %v3847_v42, %v15052_v7  ;;  %v3849_v43 = vpop.f32.mrb[127].mxu0  ;;  %6350 = vmatmul.mubr.bf16.gmra.mrb[100].mxu1 %v5288_v2  ;;  %v14133_v4 = vld [vmem:[%s20495_s0 + $0x7f0] ss:$8 sps:$4 sm:$0xff]  }
 0x3f5   :  { %v5001_v25 = vmax.f32 %v3766_v17, %v3846_v36  ;;  %v3850_v35 = vadd.f32 %v3849_v43, %v15056_v8  ;;  %v14138_v17 = vld [vmem:[%s20495_s0 + $0x804] ss:$8 sps:$4 sm:$0xff]  }
 0x3f6   :  { %v5002_v61 = vmax.f32 %v3768_v38, %v3848_v37  ;;  %4112 = vmatmul.mubr.bf16.gmra.mrb[232].mxu0 %v14118_v53 }
 0x3f7   :  { %v5003_v60 = vmax.f32 %v3770_v44, %v3850_v35  ;;  %12295 = vmatprep.mubr.msk.bf16.mxu0 %vm2275_vm0, %v14123_v6 }
 0x3f8   :  { %v5290_v14 = vpack.c.bf16 %v5002_v61, %v5000_v63 }
 0x3f9   :  { %v16769_v31 = vpop.f32.mrb[128].mxu0  ;;  %v5291_v13 = vpack.c.bf16 %v5003_v60, %v5001_v25  ;;  %v14136_v60 = vld [vmem:[%s20495_s0 + $0x800] ss:$8 sps:$4 sm:$0xff]  }
 0x3fa   :  { %v16771_v50 = vpop.f32.mrb[129].mxu0 }
 0x3fb   :  { %v16776_v1 = vpop.f32.mrb[130].mxu0  ;;  %12441 = vmatprep.mubr.msk.bf16.mxu1 %vm5568_vm2, %v5291_v13 }
 0x3fc   :  { %v16782_v57 = vpop.f32.mrb[131].mxu0  ;;  %6360 = vmatmul.mubr.bf16.gmra.mrb[104].mxu1 %v5290_v14 }
 0x3fe   :  { %4122 = vmatmul.mubr.bf16.gmra.mrb[236].mxu0 %v14121_v32  ;;  %v14141_v32 = vld [vmem:[%s20495_s0 + $0x814] ss:$8 sps:$4 sm:$0xff]  }
 0x3ff   :  { %12296 = vmatprep.mubr.msk.bf16.mxu0 %vm2275_vm0, %v14126_v15 }
 0x401   :  { %v16785_v45 = vpop.f32.mrb[132].mxu0 }
 0x402   :  { %v16787_v12 = vpop.f32.mrb[133].mxu0 }
 0x403   :  { %v16792_v11 = vpop.f32.mrb[134].mxu0 }
 0x404   :  { %v16797_v41 = vpop.f32.mrb[135].mxu0 }
 0x406   :  { %4132 = vmatmul.mubr.bf16.gmra.mrb[240].mxu0 %v14124_v10 }
 0x407   :  { %12297 = vmatprep.mubr.msk.bf16.mxu0 %vm2275_vm0, %v14129_v9 }
 0x409   :  { %v16800_v26 = vpop.f32.mrb[136].mxu0 }
 0x40a   :  { %v16802_v28 = vpop.f32.mrb[137].mxu0 }
 0x40b   :  { %v16807_v20 = vpop.f32.mrb[138].mxu0 }
 0x40c   :  { %v16812_v29 = vpop.f32.mrb[139].mxu0 }
 0x40e   :  { %4142 = vmatmul.mubr.bf16.gmra.mrb[244].mxu0 %v14127_v48 }
 0x40f   :  { %12298 = vmatprep.mubr.msk.bf16.mxu0 %vm2275_vm0, %v14132_v62 }
 0x411   :  { %v16815_v47 = vpop.f32.mrb[140].mxu0 }
 0x412   :  { %v16817_v56 = vpop.f32.mrb[141].mxu0 }
 0x413   :  { %v16822_v19 = vpop.f32.mrb[142].mxu0 }
 0x414   :  { %v16827_v39 = vpop.f32.mrb[143].mxu0 }
 0x416   :  { %4152 = vmatmul.mubr.bf16.gmra.mrb[248].mxu0 %v14130_v49 }
 0x417   :  { %v6211_v21 = vpop.f32.mrb[44].mxu1  ;;  %12299 = vmatprep.mubr.msk.bf16.mxu0 %vm2275_vm0, %v14135_v3 }
 0x418   :  { %v6213_v5 = vpop.f32.mrb[45].mxu1 }
 0x419   :  { %v6914_v52 = vmax.f32 %v6211_v21, %v6213_v5  ;;  %v16830_v2 = vpop.f32.mrb[144].mxu0  ;;  %v6215_v54 = vpop.f32.mrb[46].mxu1 }
 0x41a   :  { %v16832_v24 = vpop.f32.mrb[145].mxu0  ;;  %v6217_v30 = vpop.f32.mrb[47].mxu1 }
 0x41b   :  { %v6915_v46 = vmax.f32 %v6215_v54, %v6217_v30  ;;  %v16837_v53 = vpop.f32.mrb[146].mxu0  ;;  %v7106_v42 = vmax.f32 %v6914_v52, 0.0  ;;  %v14139_v30 = vld [vmem:[%s20495_s0 + $0x810] ss:$8 sps:$4 sm:$0xff]  }
 0x41c   :  { %v16842_v36 = vpop.f32.mrb[147].mxu0 }
 0x41d   :  { %v7107_v6 = vmax.f32 %v6915_v46, 0.0 }
 0x41e   :  { %4162 = vmatmul.mubr.bf16.gmra.mrb[252].mxu0 %v14133_v4 }
 0x41f   :  { %v16844_v38 = vpack.c.bf16 %v7107_v6, %v7106_v42  ;;  %v6221_v63 = vpop.f32.mrb[48].mxu1  ;;  %12300 = vmatprep.mubr.msk.bf16.mxu0 %vm2275_vm0, %v14138_v17  ;;  %v14144_v17 = vld [vmem:[%s20495_s0 + $0x824] ss:$8 sps:$4 sm:$0xff]  }
 0x420   :  { %v6223_v37 = vpop.f32.mrb[49].mxu1 }
 0x421   :  { %20642 = vst [vmem:[#allocation47_spill] sm:$0xff] %v16844_v38  ;;  %v6916_v43 = vmax.f32 %v6221_v63, %v6223_v37  ;;  %v16847_v44 = vpop.f32.mrb[148].mxu0  ;;  %v6225_v25 = vpop.f32.mrb[50].mxu1 }
 0x422   :  { %v16849_v35 = vpop.f32.mrb[149].mxu0  ;;  %v6227_v61 = vpop.f32.mrb[51].mxu1 }
 0x423   :  { %v6917_v14 = vmax.f32 %v6225_v25, %v6227_v61  ;;  %v16854_v13 = vpop.f32.mrb[150].mxu0  ;;  %v7108_v10 = vmax.f32 %v6916_v43, 0.0 }
 0x424   :  { %v16859_v15 = vpop.f32.mrb[151].mxu0 }
 0x425   :  { %v7109_v9 = vmax.f32 %v6917_v14, 0.0 }
 0x426   :  { %4172 = vmatmul.mubr.bf16.gmra.mrb[0].mxu0 %v14136_v60 }
 0x427   :  { %v16861_v48 = vpack.c.bf16 %v7109_v9, %v7108_v10  ;;  %v6231_v62 = vpop.f32.mrb[52].mxu1  ;;  %12301 = vmatprep.mubr.msk.bf16.mxu0 %vm2275_vm0, %v14141_v32  ;;  %v14142_v9 = vld [vmem:[%s20495_s0 + $0x820] ss:$8 sps:$4 sm:$0xff]  }
 0x428   :  { %v6233_v49 = vpop.f32.mrb[53].mxu1 }
 0x429   :  { %20643 = vst [vmem:[#allocation48_spill] sm:$0xff] %v16861_v48  ;;  %v6918_v3 = vmax.f32 %v6231_v62, %v6233_v49  ;;  %v16864_v21 = vpop.f32.mrb[152].mxu0  ;;  %v6235_v5 = vpop.f32.mrb[54].mxu1 }
 0x42a   :  { %v16866_v52 = vpop.f32.mrb[153].mxu0  ;;  %v6237_v54 = vpop.f32.mrb[55].mxu1 }
 0x42b   :  { %v6919_v4 = vmax.f32 %v6235_v5, %v6237_v54  ;;  %v16871_v46 = vpop.f32.mrb[154].mxu0  ;;  %v7110_v6 = vmax.f32 %v6918_v3, 0.0  ;;  %v14147_v3 = vld [vmem:[%s20495_s0 + $0x834] ss:$8 sps:$4 sm:$0xff]  }
 0x42c   :  { %v16876_v42 = vpop.f32.mrb[155].mxu0 }
 0x42d   :  { %v7111_v63 = vmax.f32 %v6919_v4, 0.0 }
 0x42e   :  { %4182 = vmatmul.mubr.bf16.gmra.mrb[4].mxu0 %v14139_v30 }
 0x42f   :  { %v16878_v37 = vpack.c.bf16 %v7111_v63, %v7110_v6  ;;  %v6241_v43 = vpop.f32.mrb[56].mxu1  ;;  %12302 = vmatprep.mubr.msk.bf16.mxu0 %vm2275_vm0, %v14144_v17 }
 0x430   :  { %v6243_v25 = vpop.f32.mrb[57].mxu1 }
 0x431   :  { %20644 = vst [vmem:[#allocation49_spill] sm:$0xff] %v16878_v37  ;;  %v6920_v61 = vmax.f32 %v6241_v43, %v6243_v25  ;;  %v16881_v60 = vpop.f32.mrb[156].mxu0  ;;  %v6245_v14 = vpop.f32.mrb[58].mxu1 }
 0x432   :  { %v16883_v32 = vpop.f32.mrb[157].mxu0  ;;  %v6247_v10 = vpop.f32.mrb[59].mxu1 }
 0x433   :  { %v6921_v62 = vmax.f32 %v6245_v14, %v6247_v10  ;;  %v16888_v49 = vpop.f32.mrb[158].mxu0  ;;  %v7112_v54 = vmax.f32 %v6920_v61, 0.0  ;;  %v3854_v14 = vadd.f32 %v16769_v31, %v15052_v7  ;;  %v14145_v61 = vld [vmem:[%s20495_s0 + $0x830] ss:$8 sps:$4 sm:$0xff]   ;;  %v3858_v31 = vadd.f32 %v16776_v1, %v15052_v7 }
 0x434   :  { %v16893_v5 = vpop.f32.mrb[159].mxu0 }
 0x435   :  { %v7113_v30 = vmax.f32 %v6921_v62, 0.0 }
 0x436   :  { %4192 = vmatmul.mubr.bf16.gmra.mrb[8].mxu0 %v14142_v9  ;;  %v3856_v9 = vadd.f32 %v16771_v50, %v15056_v8 }
 0x437   :  { %v16895_v4 = vpack.c.bf16 %v7113_v30, %v7112_v54  ;;  %v6251_v17 = vpop.f32.mrb[60].mxu1  ;;  %12303 = vmatprep.mubr.msk.bf16.mxu0 %vm2275_vm0, %v14147_v3  ;;  %v14150_v30 = vld [vmem:[%s20495_s0 + $0x844] ss:$8 sps:$4 sm:$0xff]  }
 0x438   :  { %v6253_v6 = vpop.f32.mrb[61].mxu1 }
 0x439   :  { %20645 = vst [vmem:[#allocation50_spill] sm:$0xff] %v16895_v4  ;;  %v6922_v63 = vmax.f32 %v6251_v17, %v6253_v6  ;;  %v3933_v43 = vpop.f32.mrb[160].mxu0  ;;  %v6255_v25 = vpop.f32.mrb[62].mxu1  ;;  %v3860_v17 = vadd.f32 %v16782_v57, %v15056_v8 }
 0x43a   :  { %v3934_v10 = vadd.f32 %v3933_v43, %v15052_v7  ;;  %v3935_v37 = vpop.f32.mrb[161].mxu0  ;;  %v6257_v48 = vpop.f32.mrb[63].mxu1 }
 0x43b   :  { %v3936_v62 = vadd.f32 %v3935_v37, %v15056_v8  ;;  %v6923_v3 = vmax.f32 %v6255_v25, %v6257_v48  ;;  %v3937_v54 = vpop.f32.mrb[162].mxu0  ;;  %v7114_v38 = vmax.f32 %v6922_v63, 0.0  ;;  %v3864_v63 = vadd.f32 %v16785_v45, %v15052_v7 }
 0x43c   :  { %v5004_v6 = vmax.f32 %v3854_v14, %v3934_v10  ;;  %v3938_v43 = vadd.f32 %v3937_v54, %v15052_v7  ;;  %v3939_v4 = vpop.f32.mrb[163].mxu0  ;;  %v3868_v45 = vadd.f32 %v16792_v11, %v15052_v7 }
 0x43d   :  { %v5005_v50 = vmax.f32 %v3856_v9, %v3936_v62  ;;  %v7115_v0 = vmax.f32 %v6923_v3, 0.0  ;;  %v3940_v48 = vadd.f32 %v3939_v4, %v15056_v8 }
 0x43e   :  { %v5006_v37 = vmax.f32 %v3858_v31, %v3938_v43  ;;  %4202 = vmatmul.mubr.bf16.gmra.mrb[12].mxu0 %v14145_v61 }
 0x43f   :  { %v16916_v25 = vpack.c.bf16 %v7115_v0, %v7114_v38  ;;  %v5007_v51 = vmax.f32 %v3860_v17, %v3940_v48  ;;  %v6261_v34 = vpop.f32.mrb[64].mxu1  ;;  %12304 = vmatprep.mubr.msk.bf16.mxu0 %vm2275_vm0, %v14150_v30  ;;  %v14148_v0 = vld [vmem:[%s20495_s0 + $0x840] ss:$8 sps:$4 sm:$0xff]   ;;  %v3866_v38 = vadd.f32 %v16787_v12, %v15056_v8  ;;  %v3870_v30 = vadd.f32 %v16797_v41, %v15056_v8 }
 0x440   :  { %v6263_v1 = vpop.f32.mrb[65].mxu1  ;;  %v5292_v58 = vpack.c.bf16 %v5006_v37, %v5004_v6 }
 0x441   :  { %20646 = vst [vmem:[#allocation51_spill] sm:$0xff] %v16916_v25  ;;  %v6924_v57 = vmax.f32 %v6261_v34, %v6263_v1  ;;  %v3943_v14 = vpop.f32.mrb[164].mxu0  ;;  %v6265_v10 = vpop.f32.mrb[66].mxu1  ;;  %v5293_v54 = vpack.c.bf16 %v5007_v51, %v5005_v50  ;;  %v14153_v51 = vld [vmem:[%s20495_s0 + $0x854] ss:$8 sps:$4 sm:$0xff]  }
 0x442   :  { %v3944_v9 = vadd.f32 %v3943_v14, %v15052_v7  ;;  %v3945_v4 = vpop.f32.mrb[165].mxu0  ;;  %v6267_v62 = vpop.f32.mrb[67].mxu1 }
 0x443   :  { %v3946_v61 = vadd.f32 %v3945_v4, %v15056_v8  ;;  %v6925_v34 = vmax.f32 %v6265_v10, %v6267_v62  ;;  %v3947_v3 = vpop.f32.mrb[166].mxu0  ;;  %12442 = vmatprep.mubr.msk.bf16.mxu1 %vm5568_vm2, %v5293_v54  ;;  %v7116_v6 = vmax.f32 %v6924_v57, 0.0 }
 0x444   :  { %v5008_v31 = vmax.f32 %v3864_v63, %v3944_v9  ;;  %v3948_v17 = vadd.f32 %v3947_v3, %v15052_v7  ;;  %v3949_v12 = vpop.f32.mrb[167].mxu0  ;;  %6370 = vmatmul.mubr.bf16.gmra.mrb[108].mxu1 %v5292_v58  ;;  %v3874_v58 = vadd.f32 %v16800_v26, %v15052_v7  ;;  %v14156_v26 = vld [vmem:[%s20495_s0 + $0x864] ss:$8 sps:$4 sm:$0xff]  }
 0x445   :  { %v5009_v43 = vmax.f32 %v3866_v38, %v3946_v61  ;;  %v7117_v50 = vmax.f32 %v6925_v34, 0.0  ;;  %v3950_v48 = vadd.f32 %v3949_v12, %v15056_v8  ;;  %v3876_v61 = vadd.f32 %v16802_v28, %v15056_v8 }
 0x446   :  { %v5010_v37 = vmax.f32 %v3868_v45, %v3948_v17  ;;  %4212 = vmatmul.mubr.bf16.gmra.mrb[16].mxu0 %v14148_v0  ;;  %v14151_v0 = vld [vmem:[%s20495_s0 + $0x850] ss:$8 sps:$4 sm:$0xff]   ;;  %v3878_v45 = vadd.f32 %v16807_v20, %v15052_v7 }
 0x447   :  { %v16938_v1 = vpack.c.bf16 %v7117_v50, %v7116_v6  ;;  %v5011_v14 = vmax.f32 %v3870_v30, %v3950_v48  ;;  %v6271_v10 = vpop.f32.mrb[68].mxu1  ;;  %12305 = vmatprep.mubr.msk.bf16.mxu0 %vm2275_vm0, %v14153_v51  ;;  %v3880_v30 = vadd.f32 %v16812_v29, %v15056_v8 }
 0x448   :  { %v6273_v11 = vpop.f32.mrb[69].mxu1  ;;  %v5294_v41 = vpack.c.bf16 %v5010_v37, %v5008_v31 }
 0x449   :  { %20647 = vst [vmem:[#allocation52_spill] sm:$0xff] %v16938_v1  ;;  %v6926_v54 = vmax.f32 %v6271_v10, %v6273_v11  ;;  %v3953_v63 = vpop.f32.mrb[168].mxu0  ;;  %v6275_v9 = vpop.f32.mrb[70].mxu1  ;;  %v5295_v4 = vpack.c.bf16 %v5011_v14, %v5009_v43 }
 0x44a   :  { %v3954_v57 = vadd.f32 %v3953_v63, %v15052_v7  ;;  %v3955_v62 = vpop.f32.mrb[169].mxu0  ;;  %v6277_v38 = vpop.f32.mrb[71].mxu1 }
 0x44b   :  { %v3956_v34 = vadd.f32 %v3955_v62, %v15056_v8  ;;  %v6927_v3 = vmax.f32 %v6275_v9, %v6277_v38  ;;  %v3957_v51 = vpop.f32.mrb[170].mxu0  ;;  %12443 = vmatprep.mubr.msk.bf16.mxu1 %vm5568_vm2, %v5295_v4  ;;  %v7118_v12 = vmax.f32 %v6926_v54, 0.0  ;;  %v14154_v62 = vld [vmem:[%s20495_s0 + $0x860] ss:$8 sps:$4 sm:$0xff]   ;;  %v3886_v38 = vadd.f32 %v16817_v56, %v15056_v8 }
 0x44c   :  { %v5012_v31 = vmax.f32 %v3874_v58, %v3954_v57  ;;  %v3958_v17 = vadd.f32 %v3957_v51, %v15052_v7  ;;  %v3959_v28 = vpop.f32.mrb[171].mxu0  ;;  %6380 = vmatmul.mubr.bf16.gmra.mrb[112].mxu1 %v5294_v41  ;;  %v3884_v41 = vadd.f32 %v16815_v47, %v15052_v7  ;;  %v14159_v47 = vld [vmem:[%s20495_s0 + $0x874] ss:$8 sps:$4 sm:$0xff]   ;;  %v3890_v51 = vadd.f32 %v16827_v39, %v15056_v8 }
 0x44d   :  { %v5013_v6 = vmax.f32 %v3876_v61, %v3956_v34  ;;  %v7119_v43 = vmax.f32 %v6927_v3, 0.0  ;;  %v3960_v50 = vadd.f32 %v3959_v28, %v15056_v8  ;;  %v3888_v3 = vadd.f32 %v16822_v19, %v15052_v7 }
 0x44e   :  { %v5014_v48 = vmax.f32 %v3878_v45, %v3958_v17  ;;  %4222 = vmatmul.mubr.bf16.gmra.mrb[20].mxu0 %v14151_v0 }
 0x44f   :  { %v16960_v37 = vpack.c.bf16 %v7119_v43, %v7118_v12  ;;  %v5015_v14 = vmax.f32 %v3880_v30, %v3960_v50  ;;  %v6281_v10 = vpop.f32.mrb[72].mxu1  ;;  %12306 = vmatprep.mubr.msk.bf16.mxu0 %vm2275_vm0, %v14156_v26 }
 0x450   :  { %v6283_v20 = vpop.f32.mrb[73].mxu1  ;;  %v5296_v29 = vpack.c.bf16 %v5014_v48, %v5012_v31  ;;  %v3894_v48 = vadd.f32 %v16830_v2, %v15052_v7  ;;  %v3898_v2 = vadd.f32 %v16837_v53, %v15052_v7  ;;  %v3904_v53 = vadd.f32 %v16847_v44, %v15052_v7 }
 0x451   :  { %20648 = vst [vmem:[#allocation53_spill] sm:$0xff] %v16960_v37  ;;  %v6928_v11 = vmax.f32 %v6281_v10, %v6283_v20  ;;  %v3963_v63 = vpop.f32.mrb[172].mxu0  ;;  %v6285_v9 = vpop.f32.mrb[74].mxu1  ;;  %v5297_v4 = vpack.c.bf16 %v5015_v14, %v5013_v6  ;;  %v14157_v20 = vld [vmem:[%s20495_s0 + $0x870] ss:$8 sps:$4 sm:$0xff]   ;;  %v3908_v44 = vadd.f32 %v16854_v13, %v15052_v7  ;;  %v3914_v13 = vadd.f32 %v16864_v21, %v15052_v7 }
 0x452   :  { %v3964_v54 = vadd.f32 %v3963_v63, %v15052_v7  ;;  %v3965_v58 = vpop.f32.mrb[173].mxu0  ;;  %v6287_v57 = vpop.f32.mrb[75].mxu1  ;;  %v3918_v21 = vadd.f32 %v16871_v46, %v15052_v7  ;;  %v14166_v46 = vld [vmem:[%s20495_s0 + $0x8a0] ss:$8 sps:$4 sm:$0xff]  }
 0x453   :  { %v3966_v0 = vadd.f32 %v3965_v58, %v15056_v8  ;;  %v6929_v61 = vmax.f32 %v6285_v9, %v6287_v57  ;;  %v3967_v34 = vpop.f32.mrb[174].mxu0  ;;  %12444 = vmatprep.mubr.msk.bf16.mxu1 %vm5568_vm2, %v5297_v4  ;;  %v7120_v30 = vmax.f32 %v6928_v11, 0.0  ;;  %v14162_v9 = vld [vmem:[%s20495_s0 + $0x884] ss:$8 sps:$4 sm:$0xff]  }
 0x454   :  { %v5016_v26 = vmax.f32 %v3884_v41, %v3964_v54  ;;  %v3968_v45 = vadd.f32 %v3967_v34, %v15052_v7  ;;  %v3969_v56 = vpop.f32.mrb[175].mxu0  ;;  %6390 = vmatmul.mubr.bf16.gmra.mrb[116].mxu1 %v5296_v29  ;;  %v3896_v29 = vadd.f32 %v16832_v24, %v15056_v8  ;;  %v3900_v24 = vadd.f32 %v16842_v36, %v15056_v8  ;;  %v14160_v36 = vld [vmem:[%s20495_s0 + $0x880] ss:$8 sps:$4 sm:$0xff]  }
 0x455   :  { %v5017_v31 = vmax.f32 %v3886_v38, %v3966_v0  ;;  %v7121_v17 = vmax.f32 %v6929_v61, 0.0  ;;  %v3970_v28 = vadd.f32 %v3969_v56, %v15056_v8  ;;  %v14165_v56 = vld [vmem:[%s20495_s0 + $0x894] ss:$8 sps:$4 sm:$0xff]  }
 0x456   :  { %v5018_v12 = vmax.f32 %v3888_v3, %v3968_v45  ;;  %4232 = vmatmul.mubr.bf16.gmra.mrb[24].mxu0 %v14154_v62 }
 0x457   :  { %v16982_v6 = vpack.c.bf16 %v7121_v17, %v7120_v30  ;;  %v5019_v43 = vmax.f32 %v3890_v51, %v3970_v28  ;;  %12307 = vmatprep.mubr.msk.bf16.mxu0 %vm2275_vm0, %v14159_v47  ;;  %v3906_v51 = vadd.f32 %v16849_v35, %v15056_v8  ;;  %v3910_v35 = vadd.f32 %v16859_v15, %v15056_v8  ;;  %v14163_v15 = vld [vmem:[%s20495_s0 + $0x890] ss:$8 sps:$4 sm:$0xff]  }
 0x458   :  { %v5298_v19 = vpack.c.bf16 %v5018_v12, %v5016_v26 }
 0x459   :  { %20649 = vst [vmem:[#allocation54_spill] sm:$0xff] %v16982_v6  ;;  %v3973_v50 = vpop.f32.mrb[176].mxu0  ;;  %v5299_v39 = vpack.c.bf16 %v5019_v43, %v5017_v31 }
 0x45a   :  { %v3974_v14 = vadd.f32 %v3973_v50, %v15052_v7  ;;  %v3975_v10 = vpop.f32.mrb[177].mxu0 }
 0x45b   :  { %v3976_v11 = vadd.f32 %v3975_v10, %v15056_v8  ;;  %v3977_v63 = vpop.f32.mrb[178].mxu0  ;;  %12445 = vmatprep.mubr.msk.bf16.mxu1 %vm5568_vm2, %v5299_v39 }
 0x45c   :  { %v5020_v4 = vmax.f32 %v3894_v48, %v3974_v14  ;;  %v3978_v41 = vadd.f32 %v3977_v63, %v15052_v7  ;;  %v3979_v54 = vpop.f32.mrb[179].mxu0  ;;  %6400 = vmatmul.mubr.bf16.gmra.mrb[120].mxu1 %v5298_v19  ;;  %v14168_v63 = vld [vmem:[%s20495_s0 + $0x8a4] ss:$8 sps:$4 sm:$0xff]  }
 0x45d   :  { %v5021_v58 = vmax.f32 %v3896_v29, %v3976_v11  ;;  %v3980_v57 = vadd.f32 %v3979_v54, %v15056_v8 }
 0x45e   :  { %v5022_v62 = vmax.f32 %v3898_v2, %v3978_v41  ;;  %4242 = vmatmul.mubr.bf16.gmra.mrb[28].mxu0 %v14157_v20  ;;  %v3916_v20 = vadd.f32 %v16866_v52, %v15056_v8  ;;  %v3920_v52 = vadd.f32 %v16876_v42, %v15056_v8  ;;  %v14213_v42 = vld [vmem:[%s20498_s4 + $0x4] ss:$8 sps:$4 sm:$0xff]  }
 0x45f   :  { %v5023_v38 = vmax.f32 %v3900_v24, %v3980_v57  ;;  %12308 = vmatprep.mubr.msk.bf16.mxu0 %vm2275_vm0, %v14162_v9  ;;  %7822 = vmatprep.subr.bf16.mxu1 %v14213_v42 }
 0x460   :  { %v5300_v0 = vpack.c.bf16 %v5022_v62, %v5020_v4  ;;  %v14211_v62 = vld [vmem:[%s20498_s4] ss:$8 sps:$4 sm:$0xff]  }
 0x461   :  { %v3983_v61 = vpop.f32.mrb[180].mxu0  ;;  %v5301_v34 = vpack.c.bf16 %v5023_v38, %v5021_v58  ;;  %7823 = vmatpush1.bf16.msra.mxu1 %v14211_v62 }
 0x462   :  { %v3984_v47 = vadd.f32 %v3983_v61, %v15052_v7  ;;  %v3985_v3 = vpop.f32.mrb[181].mxu0  ;;  %v3924_v61 = vadd.f32 %v16881_v60, %v15052_v7 }
 0x463   :  { %v3986_v26 = vadd.f32 %v3985_v3, %v15056_v8  ;;  %v3987_v45 = vpop.f32.mrb[182].mxu0  ;;  %12446 = vmatprep.mubr.msk.bf16.mxu1 %vm5568_vm2, %v5301_v34 }
 0x464   :  { %v5024_v30 = vmax.f32 %v3904_v53, %v3984_v47  ;;  %v3988_v31 = vadd.f32 %v3987_v45, %v15052_v7  ;;  %v3989_v17 = vpop.f32.mrb[183].mxu0  ;;  %6410 = vmatmul.mubr.bf16.gmra.mrb[124].mxu1 %v5300_v0  ;;  %v3926_v47 = vadd.f32 %v16883_v32, %v15056_v8  ;;  %v3930_v32 = vadd.f32 %v16893_v5, %v15056_v8 }
 0x465   :  { %v5025_v28 = vmax.f32 %v3906_v51, %v3986_v26  ;;  %v3990_v12 = vadd.f32 %v3989_v17, %v15056_v8  ;;  %v14171_v51 = vld [vmem:[%s20495_s0 + $0x8b4] ss:$8 sps:$4 sm:$0xff]   ;;  %v3928_v26 = vadd.f32 %v16888_v49, %v15052_v7  ;;  %v14169_v49 = vld [vmem:[%s20495_s0 + $0x8b0] ss:$8 sps:$4 sm:$0xff]  }
 0x466   :  { %v5026_v43 = vmax.f32 %v3908_v44, %v3988_v31  ;;  %4252 = vmatmul.mubr.bf16.gmra.mrb[32].mxu0 %v14160_v36 }
 0x467   :  { %v5027_v19 = vmax.f32 %v3910_v35, %v3990_v12  ;;  %12309 = vmatprep.mubr.msk.bf16.mxu0 %vm2275_vm0, %v14165_v56 }
 0x468   :  { %v5302_v50 = vpack.c.bf16 %v5026_v43, %v5024_v30 }
 0x469   :  { %v3993_v39 = vpop.f32.mrb[184].mxu0  ;;  %v5303_v48 = vpack.c.bf16 %v5027_v19, %v5025_v28  ;;  %v14174_v19 = vld [vmem:[%s20495_s0 + $0x8c4] ss:$8 sps:$4 sm:$0xff]  }
 0x46a   :  { %v3994_v14 = vadd.f32 %v3993_v39, %v15052_v7  ;;  %v3995_v10 = vpop.f32.mrb[185].mxu0  ;;  %v14172_v39 = vld [vmem:[%s20495_s0 + $0x8c0] ss:$8 sps:$4 sm:$0xff]  }
 0x46b   :  { %v3996_v29 = vadd.f32 %v3995_v10, %v15056_v8  ;;  %v3997_v11 = vpop.f32.mrb[186].mxu0  ;;  %12447 = vmatprep.mubr.msk.bf16.mxu1 %vm5568_vm2, %v5303_v48  ;;  %v14177_v10 = vld [vmem:[%s20495_s0 + $0x8d4] ss:$8 sps:$4 sm:$0xff]  }
 0x46c   :  { %v5028_v9 = vmax.f32 %v3914_v13, %v3994_v14  ;;  %v3998_v2 = vadd.f32 %v3997_v11, %v15052_v7  ;;  %v3999_v4 = vpop.f32.mrb[187].mxu0  ;;  %6420 = vmatmul.mubr.bf16.gmra.mrb[128].mxu1 %v5302_v50 }
 0x46d   :  { %v5029_v41 = vmax.f32 %v3916_v20, %v3996_v29  ;;  %v4000_v54 = vadd.f32 %v3999_v4, %v15056_v8  ;;  %v14175_v20 = vld [vmem:[%s20495_s0 + $0x8d0] ss:$8 sps:$4 sm:$0xff]  }
 0x46e   :  { %v5030_v24 = vmax.f32 %v3918_v21, %v3998_v2  ;;  %4262 = vmatmul.mubr.bf16.gmra.mrb[36].mxu0 %v14163_v15  ;;  %v14180_v21 = vld [vmem:[%s20495_s0 + $0x8e4] ss:$8 sps:$4 sm:$0xff]  }
 0x46f   :  { %v5031_v58 = vmax.f32 %v3920_v52, %v4000_v54  ;;  %12310 = vmatprep.mubr.msk.bf16.mxu0 %vm2275_vm0, %v14168_v63  ;;  %v14178_v52 = vld [vmem:[%s20495_s0 + $0x8e0] ss:$8 sps:$4 sm:$0xff]  }
 0x470   :  { %v5304_v57 = vpack.c.bf16 %v5030_v24, %v5028_v9  ;;  %v14229_v24 = vld [vmem:[%s20498_s4 + $0x10] ss:$8 sps:$4 sm:$0xff]  }
 0x471   :  { %v4003_v38 = vpop.f32.mrb[188].mxu0  ;;  %v5305_v0 = vpack.c.bf16 %v5031_v58, %v5029_v41  ;;  %v14183_v41 = vld [vmem:[%s20495_s0 + $0x8f4] ss:$8 sps:$4 sm:$0xff]  }
 0x472   :  { %v4004_v34 = vadd.f32 %v4003_v38, %v15052_v7  ;;  %v4005_v53 = vpop.f32.mrb[189].mxu0  ;;  %v14231_v58 = vld [vmem:[%s20498_s4 + $0x14] ss:$8 sps:$4 sm:$0xff]  }
 0x473   :  { %v4006_v3 = vadd.f32 %v4005_v53, %v15056_v8  ;;  %v4007_v36 = vpop.f32.mrb[190].mxu0  ;;  %12448 = vmatprep.mubr.msk.bf16.mxu1 %vm5568_vm2, %v5305_v0  ;;  %7824 = vmatprep.subr.bf16.mxu1 %v14231_v58  ;;  %v14181_v53 = vld [vmem:[%s20495_s0 + $0x8f0] ss:$8 sps:$4 sm:$0xff]  }
 0x474   :  { %v5032_v60 = vmax.f32 %v3924_v61, %v4004_v34  ;;  %v4008_v45 = vadd.f32 %v4007_v36, %v15052_v7  ;;  %v4009_v56 = vpop.f32.mrb[191].mxu0  ;;  %6430 = vmatmul.mubr.bf16.gmra.mrb[132].mxu1 %v5304_v57  ;;  %v14186_v36 = vld [vmem:[%s20495_s0 + $0x904] ss:$8 sps:$4 sm:$0xff]  }
 0x475   :  { %v5033_v44 = vmax.f32 %v3926_v47, %v4006_v3  ;;  %v4010_v30 = vadd.f32 %v4009_v56, %v15056_v8  ;;  %7825 = vmatpush1.bf16.msra.mxu1 %v14229_v24 }
 0x476   :  { %v5034_v31 = vmax.f32 %v3928_v26, %v4008_v45  ;;  %4272 = vmatmul.mubr.bf16.gmra.mrb[40].mxu0 %v14166_v46 }
 0x477   :  { %v5035_v17 = vmax.f32 %v3930_v32, %v4010_v30  ;;  %12311 = vmatprep.mubr.msk.bf16.mxu0 %vm2275_vm0, %v14171_v51 }
 0x478   :  { %v5306_v35 = vpack.c.bf16 %v5034_v31, %v5032_v60 }
 0x479   :  { %v17074_v28 = vpop.f32.mrb[192].mxu0  ;;  %v5307_v12 = vpack.c.bf16 %v5035_v17, %v5033_v44 }
 0x47a   :  { %v17076_v43 = vpop.f32.mrb[193].mxu0 }
 0x47b   :  { %v17078_v5 = vpop.f32.mrb[194].mxu0  ;;  %12449 = vmatprep.mubr.msk.bf16.mxu1 %vm5568_vm2, %v5307_v12 }
 0x47c   :  { %v17084_v50 = vpop.f32.mrb[195].mxu0  ;;  %6440 = vmatmul.mubr.bf16.gmra.mrb[136].mxu1 %v5306_v35 }
 0x47e   :  { %4282 = vmatmul.mubr.bf16.gmra.mrb[44].mxu0 %v14169_v49  ;;  %v14184_v49 = vld [vmem:[%s20495_s0 + $0x900] ss:$8 sps:$4 sm:$0xff]  }
 0x47f   :  { %12312 = vmatprep.mubr.msk.bf16.mxu0 %vm2275_vm0, %v14174_v19 }
 0x481   :  { %v17090_v48 = vpop.f32.mrb[196].mxu0 }
 0x482   :  { %v17092_v13 = vpop.f32.mrb[197].mxu0 }
 0x483   :  { %v17094_v14 = vpop.f32.mrb[198].mxu0 }
 0x484   :  { %v17099_v15 = vpop.f32.mrb[199].mxu0 }
 0x486   :  { %4292 = vmatmul.mubr.bf16.gmra.mrb[48].mxu0 %v14172_v39  ;;  %v14189_v39 = vld [vmem:[%s20495_s0 + $0x914] ss:$8 sps:$4 sm:$0xff]  }
 0x487   :  { %12313 = vmatprep.mubr.msk.bf16.mxu0 %vm2275_vm0, %v14177_v10 }
 0x489   :  { %v17105_v29 = vpop.f32.mrb[200].mxu0 }
 0x48a   :  { %v17107_v11 = vpop.f32.mrb[201].mxu0 }
 0x48b   :  { %v17109_v63 = vpop.f32.mrb[202].mxu0 }
 0x48c   :  { %v17114_v9 = vpop.f32.mrb[203].mxu0 }
 0x48e   :  { %4302 = vmatmul.mubr.bf16.gmra.mrb[52].mxu0 %v14175_v20 }
 0x48f   :  { %12314 = vmatprep.mubr.msk.bf16.mxu0 %vm2275_vm0, %v14180_v21 }
 0x491   :  { %v17117_v2 = vpop.f32.mrb[204].mxu0 }
 0x492   :  { %v17119_v4 = vpop.f32.mrb[205].mxu0 }
 0x493   :  { %v17127_v54 = vpop.f32.mrb[206].mxu0 }
 0x494   :  { %v17135_v57 = vpop.f32.mrb[207].mxu0 }
 0x496   :  { %4312 = vmatmul.mubr.bf16.gmra.mrb[56].mxu0 %v14178_v52 }
 0x497   :  { %v6291_v46 = vpop.f32.mrb[76].mxu1  ;;  %12315 = vmatprep.mubr.msk.bf16.mxu0 %vm2275_vm0, %v14183_v41 }
 0x498   :  { %v6293_v62 = vpop.f32.mrb[77].mxu1 }
 0x499   :  { %v6930_v38 = vmax.f32 %v6291_v46, %v6293_v62  ;;  %v17138_v0 = vpop.f32.mrb[208].mxu0  ;;  %v6295_v42 = vpop.f32.mrb[78].mxu1 }
 0x49a   :  { %v17140_v61 = vpop.f32.mrb[209].mxu0  ;;  %v6297_v34 = vpop.f32.mrb[79].mxu1 }
 0x49b   :  { %v6931_v47 = vmax.f32 %v6295_v42, %v6297_v34  ;;  %v17145_v3 = vpop.f32.mrb[210].mxu0  ;;  %v7122_v26 = vmax.f32 %v6930_v38, 0.0  ;;  %v14187_v34 = vld [vmem:[%s20495_s0 + $0x910] ss:$8 sps:$4 sm:$0xff]  }
 0x49c   :  { %v17150_v51 = vpop.f32.mrb[211].mxu0 }
 0x49d   :  { %v7123_v60 = vmax.f32 %v6931_v47, 0.0 }
 0x49e   :  { %4322 = vmatmul.mubr.bf16.gmra.mrb[60].mxu0 %v14181_v53 }
 0x49f   :  { %v17152_v45 = vpack.c.bf16 %v7123_v60, %v7122_v26  ;;  %v6301_v56 = vpop.f32.mrb[80].mxu1  ;;  %12316 = vmatprep.mubr.msk.bf16.mxu0 %vm2275_vm0, %v14186_v36  ;;  %v14192_v36 = vld [vmem:[%s20495_s0 + $0x924] ss:$8 sps:$4 sm:$0xff]  }
 0x4a0   :  { %v6303_v32 = vpop.f32.mrb[81].mxu1 }
 0x4a1   :  { %20650 = vst [vmem:[#allocation55_spill] sm:$0xff] %v17152_v45  ;;  %v6932_v44 = vmax.f32 %v6301_v56, %v6303_v32  ;;  %v17155_v30 = vpop.f32.mrb[212].mxu0  ;;  %v6305_v31 = vpop.f32.mrb[82].mxu1 }
 0x4a2   :  { %v17157_v17 = vpop.f32.mrb[213].mxu0  ;;  %v6307_v35 = vpop.f32.mrb[83].mxu1 }
 0x4a3   :  { %v6933_v12 = vmax.f32 %v6305_v31, %v6307_v35  ;;  %v17162_v19 = vpop.f32.mrb[214].mxu0  ;;  %v7124_v20 = vmax.f32 %v6932_v44, 0.0 }
 0x4a4   :  { %v17167_v10 = vpop.f32.mrb[215].mxu0 }
 0x4a5   :  { %v7125_v21 = vmax.f32 %v6933_v12, 0.0 }
 0x4a6   :  { %4332 = vmatmul.mubr.bf16.gmra.mrb[64].mxu0 %v14184_v49 }
 0x4a7   :  { %v17169_v52 = vpack.c.bf16 %v7125_v21, %v7124_v20  ;;  %v6311_v41 = vpop.f32.mrb[84].mxu1  ;;  %12317 = vmatprep.mubr.msk.bf16.mxu0 %vm2275_vm0, %v14189_v39  ;;  %v14190_v21 = vld [vmem:[%s20495_s0 + $0x920] ss:$8 sps:$4 sm:$0xff]  }
 0x4a8   :  { %v6313_v24 = vpop.f32.mrb[85].mxu1 }
 0x4a9   :  { %20651 = vst [vmem:[#allocation56_spill] sm:$0xff] %v17169_v52  ;;  %v6934_v58 = vmax.f32 %v6311_v41, %v6313_v24  ;;  %v17172_v46 = vpop.f32.mrb[216].mxu0  ;;  %v6315_v62 = vpop.f32.mrb[86].mxu1 }
 0x4aa   :  { %v17174_v38 = vpop.f32.mrb[217].mxu0  ;;  %v6317_v42 = vpop.f32.mrb[87].mxu1 }
 0x4ab   :  { %v6935_v53 = vmax.f32 %v6315_v62, %v6317_v42  ;;  %v17179_v47 = vpop.f32.mrb[218].mxu0  ;;  %v7126_v60 = vmax.f32 %v6934_v58, 0.0  ;;  %v14195_v58 = vld [vmem:[%s20495_s0 + $0x934] ss:$8 sps:$4 sm:$0xff]  }
 0x4ac   :  { %v17184_v26 = vpop.f32.mrb[219].mxu0 }
 0x4ad   :  { %v7127_v56 = vmax.f32 %v6935_v53, 0.0 }
 0x4ae   :  { %4342 = vmatmul.mubr.bf16.gmra.mrb[68].mxu0 %v14187_v34 }
 0x4af   :  { %v17186_v32 = vpack.c.bf16 %v7127_v56, %v7126_v60  ;;  %v6321_v44 = vpop.f32.mrb[88].mxu1  ;;  %12318 = vmatprep.mubr.msk.bf16.mxu0 %vm2275_vm0, %v14192_v36  ;;  %v14247_v60 = vld [vmem:[%s20498_s4 + $0x20] ss:$8 sps:$4 sm:$0xff]   ;;  %v14249_v56 = vld [vmem:[%s20498_s4 + $0x24] ss:$8 sps:$4 sm:$0xff]  }
 0x4b0   :  { %v6323_v31 = vpop.f32.mrb[89].mxu1  ;;  %7826 = vmatprep.subr.bf16.mxu1 %v14249_v56  ;;  %v4018_v56 = vadd.f32 %v17078_v5, %v15052_v7 }
 0x4b1   :  { %20652 = vst [vmem:[#allocation57_spill] sm:$0xff] %v17186_v32  ;;  %v6936_v35 = vmax.f32 %v6321_v44, %v6323_v31  ;;  %v17189_v49 = vpop.f32.mrb[220].mxu0  ;;  %v6325_v12 = vpop.f32.mrb[90].mxu1  ;;  %7827 = vmatpush1.bf16.msra.mxu1 %v14247_v60 }
 0x4b2   :  { %v17191_v39 = vpop.f32.mrb[221].mxu0  ;;  %v6327_v20 = vpop.f32.mrb[91].mxu1 }
 0x4b3   :  { %v6937_v41 = vmax.f32 %v6325_v12, %v6327_v20  ;;  %v17196_v24 = vpop.f32.mrb[222].mxu0  ;;  %v7128_v42 = vmax.f32 %v6936_v35, 0.0  ;;  %v4014_v35 = vadd.f32 %v17074_v28, %v15052_v7  ;;  %v14198_v28 = vld [vmem:[%s20495_s0 + $0x944] ss:$8 sps:$4 sm:$0xff]  }
 0x4b4   :  { %v17201_v62 = vpop.f32.mrb[223].mxu0 }
 0x4b5   :  { %v7129_v34 = vmax.f32 %v6937_v41, 0.0 }
 0x4b6   :  { %4352 = vmatmul.mubr.bf16.gmra.mrb[72].mxu0 %v14190_v21 }
 0x4b7   :  { %v17203_v53 = vpack.c.bf16 %v7129_v34, %v7128_v42  ;;  %v6331_v36 = vpop.f32.mrb[92].mxu1  ;;  %12319 = vmatprep.mubr.msk.bf16.mxu0 %vm2275_vm0, %v14195_v58  ;;  %v14193_v42 = vld [vmem:[%s20495_s0 + $0x930] ss:$8 sps:$4 sm:$0xff]   ;;  %v4016_v34 = vadd.f32 %v17076_v43, %v15056_v8 }
 0x4b8   :  { %v6333_v44 = vpop.f32.mrb[93].mxu1 }
 0x4b9   :  { %20653 = vst [vmem:[#allocation58_spill] sm:$0xff] %v17203_v53  ;;  %v6938_v31 = vmax.f32 %v6331_v36, %v6333_v44  ;;  %v4093_v12 = vpop.f32.mrb[224].mxu0  ;;  %v6335_v20 = vpop.f32.mrb[94].mxu1 }
 0x4ba   :  { %v4094_v21 = vadd.f32 %v4093_v12, %v15052_v7  ;;  %v4095_v41 = vpop.f32.mrb[225].mxu0  ;;  %v6337_v58 = vpop.f32.mrb[95].mxu1  ;;  %v4020_v12 = vadd.f32 %v17084_v50, %v15056_v8 }
 0x4bb   :  { %v4096_v36 = vadd.f32 %v4095_v41, %v15056_v8  ;;  %v6939_v44 = vmax.f32 %v6335_v20, %v6337_v58  ;;  %v4097_v53 = vpop.f32.mrb[226].mxu0  ;;  %v7130_v45 = vmax.f32 %v6938_v31, 0.0  ;;  %v4024_v31 = vadd.f32 %v17090_v48, %v15052_v7 }
 0x4bc   :  { %v5036_v32 = vmax.f32 %v4014_v35, %v4094_v21  ;;  %v4098_v60 = vadd.f32 %v4097_v53, %v15052_v7  ;;  %v4099_v52 = vpop.f32.mrb[227].mxu0  ;;  %v4028_v48 = vadd.f32 %v17094_v14, %v15052_v7 }
 0x4bd   :  { %v5037_v43 = vmax.f32 %v4016_v34, %v4096_v36  ;;  %v7131_v6 = vmax.f32 %v6939_v44, 0.0  ;;  %v4100_v20 = vadd.f32 %v4099_v52, %v15056_v8  ;;  %v4030_v44 = vadd.f32 %v17099_v15, %v15056_v8 }
 0x4be   :  { %v5038_v41 = vmax.f32 %v4018_v56, %v4098_v60  ;;  %4362 = vmatmul.mubr.bf16.gmra.mrb[76].mxu0 %v14193_v42 }
 0x4bf   :  { %v17230_v58 = vpack.c.bf16 %v7131_v6, %v7130_v45  ;;  %v5039_v37 = vmax.f32 %v4020_v12, %v4100_v20  ;;  %v6341_v1 = vpop.f32.mrb[96].mxu1  ;;  %12320 = vmatprep.mubr.msk.bf16.mxu0 %vm2275_vm0, %v14198_v28  ;;  %v14196_v6 = vld [vmem:[%s20495_s0 + $0x940] ss:$8 sps:$4 sm:$0xff]   ;;  %v4026_v45 = vadd.f32 %v17092_v13, %v15056_v8 }
 0x4c0   :  { %v6343_v5 = vpop.f32.mrb[97].mxu1  ;;  %v5308_v25 = vpack.c.bf16 %v5038_v41, %v5036_v32 }
 0x4c1   :  { %20654 = vst [vmem:[#allocation59_spill] sm:$0xff] %v17230_v58  ;;  %v6940_v50 = vmax.f32 %v6341_v1, %v6343_v5  ;;  %v4103_v35 = vpop.f32.mrb[228].mxu0  ;;  %v6345_v21 = vpop.f32.mrb[98].mxu1  ;;  %v5309_v53 = vpack.c.bf16 %v5039_v37, %v5037_v43  ;;  %v14201_v37 = vld [vmem:[%s20495_s0 + $0x954] ss:$8 sps:$4 sm:$0xff]  }
 0x4c2   :  { %v4104_v34 = vadd.f32 %v4103_v35, %v15052_v7  ;;  %v4105_v52 = vpop.f32.mrb[229].mxu0  ;;  %v6347_v36 = vpop.f32.mrb[99].mxu1 }
 0x4c3   :  { %v4106_v32 = vadd.f32 %v4105_v52, %v15056_v8  ;;  %v6941_v1 = vmax.f32 %v6345_v21, %v6347_v36  ;;  %v4107_v42 = vpop.f32.mrb[230].mxu0  ;;  %12450 = vmatprep.mubr.msk.bf16.mxu1 %vm5568_vm2, %v5309_v53  ;;  %v7132_v12 = vmax.f32 %v6940_v50, 0.0 }
 0x4c4   :  { %v5040_v28 = vmax.f32 %v4024_v31, %v4104_v34  ;;  %v4108_v56 = vadd.f32 %v4107_v42, %v15052_v7  ;;  %v4109_v13 = vpop.f32.mrb[231].mxu0  ;;  %6450 = vmatmul.mubr.bf16.gmra.mrb[140].mxu1 %v5308_v25  ;;  %v4034_v25 = vadd.f32 %v17105_v29, %v15052_v7  ;;  %v14204_v29 = vld [vmem:[%s20495_s0 + $0x964] ss:$8 sps:$4 sm:$0xff]  }
 0x4c5   :  { %v5041_v60 = vmax.f32 %v4026_v45, %v4106_v32  ;;  %v7133_v43 = vmax.f32 %v6941_v1, 0.0  ;;  %v4110_v20 = vadd.f32 %v4109_v13, %v15056_v8  ;;  %v4036_v32 = vadd.f32 %v17107_v11, %v15056_v8 }
 0x4c6   :  { %v5042_v41 = vmax.f32 %v4028_v48, %v4108_v56  ;;  %4372 = vmatmul.mubr.bf16.gmra.mrb[80].mxu0 %v14196_v6  ;;  %v14199_v6 = vld [vmem:[%s20495_s0 + $0x950] ss:$8 sps:$4 sm:$0xff]   ;;  %v4038_v48 = vadd.f32 %v17109_v63, %v15052_v7 }
 0x4c7   :  { %v17252_v5 = vpack.c.bf16 %v7133_v43, %v7132_v12  ;;  %v5043_v35 = vmax.f32 %v4030_v44, %v4110_v20  ;;  %v6351_v21 = vpop.f32.mrb[100].mxu1  ;;  %12321 = vmatprep.mubr.msk.bf16.mxu0 %vm2275_vm0, %v14201_v37  ;;  %v4040_v44 = vadd.f32 %v17114_v9, %v15056_v8 }
 0x4c8   :  { %v6353_v14 = vpop.f32.mrb[101].mxu1  ;;  %v5310_v15 = vpack.c.bf16 %v5042_v41, %v5040_v28 }
 0x4c9   :  { %20655 = vst [vmem:[#allocation60_spill] sm:$0xff] %v17252_v5  ;;  %v6942_v53 = vmax.f32 %v6351_v21, %v6353_v14  ;;  %v4113_v31 = vpop.f32.mrb[232].mxu0  ;;  %v6355_v34 = vpop.f32.mrb[102].mxu1  ;;  %v5311_v52 = vpack.c.bf16 %v5043_v35, %v5041_v60 }
 0x4ca   :  { %v4114_v50 = vadd.f32 %v4113_v31, %v15052_v7  ;;  %v4115_v36 = vpop.f32.mrb[233].mxu0  ;;  %v6357_v45 = vpop.f32.mrb[103].mxu1 }
 0x4cb   :  { %v4116_v1 = vadd.f32 %v4115_v36, %v15056_v8  ;;  %v6943_v42 = vmax.f32 %v6355_v34, %v6357_v45  ;;  %v4117_v37 = vpop.f32.mrb[234].mxu0  ;;  %12451 = vmatprep.mubr.msk.bf16.mxu1 %vm5568_vm2, %v5311_v52  ;;  %v7134_v13 = vmax.f32 %v6942_v53, 0.0  ;;  %v14202_v36 = vld [vmem:[%s20495_s0 + $0x960] ss:$8 sps:$4 sm:$0xff]   ;;  %v4046_v45 = vadd.f32 %v17119_v4, %v15056_v8 }
 0x4cc   :  { %v5044_v28 = vmax.f32 %v4034_v25, %v4114_v50  ;;  %v4118_v56 = vadd.f32 %v4117_v37, %v15052_v7  ;;  %v4119_v11 = vpop.f32.mrb[235].mxu0  ;;  %6460 = vmatmul.mubr.bf16.gmra.mrb[144].mxu1 %v5310_v15  ;;  %v4044_v15 = vadd.f32 %v17117_v2, %v15052_v7  ;;  %v14207_v2 = vld [vmem:[%s20495_s0 + $0x974] ss:$8 sps:$4 sm:$0xff]   ;;  %v4050_v37 = vadd.f32 %v17135_v57, %v15056_v8 }
 0x4cd   :  { %v5045_v12 = vmax.f32 %v4036_v32, %v4116_v1  ;;  %v7135_v60 = vmax.f32 %v6943_v42, 0.0  ;;  %v4120_v43 = vadd.f32 %v4119_v11, %v15056_v8  ;;  %v4048_v42 = vadd.f32 %v17127_v54, %v15052_v7 }
 0x4ce   :  { %v5046_v20 = vmax.f32 %v4038_v48, %v4118_v56  ;;  %4382 = vmatmul.mubr.bf16.gmra.mrb[84].mxu0 %v14199_v6 }
 0x4cf   :  { %v17274_v41 = vpack.c.bf16 %v7135_v60, %v7134_v13  ;;  %v5047_v35 = vmax.f32 %v4040_v44, %v4120_v43  ;;  %v6361_v21 = vpop.f32.mrb[104].mxu1  ;;  %12322 = vmatprep.mubr.msk.bf16.mxu0 %vm2275_vm0, %v14204_v29 }
 0x4d0   :  { %v6363_v63 = vpop.f32.mrb[105].mxu1  ;;  %v5312_v9 = vpack.c.bf16 %v5046_v20, %v5044_v28  ;;  %v4054_v20 = vadd.f32 %v17138_v0, %v15052_v7  ;;  %v4058_v0 = vadd.f32 %v17145_v3, %v15052_v7  ;;  %v14265_v3 = vld [vmem:[%s20498_s4 + $0x30] ss:$8 sps:$4 sm:$0xff]  }
 0x4d1   :  { %20656 = vst [vmem:[#allocation61_spill] sm:$0xff] %v17274_v41  ;;  %v6944_v14 = vmax.f32 %v6361_v21, %v6363_v63  ;;  %v4123_v31 = vpop.f32.mrb[236].mxu0  ;;  %v6365_v34 = vpop.f32.mrb[106].mxu1  ;;  %v5313_v52 = vpack.c.bf16 %v5047_v35, %v5045_v12  ;;  %v14205_v63 = vld [vmem:[%s20495_s0 + $0x970] ss:$8 sps:$4 sm:$0xff]  }
 0x4d2   :  { %v4124_v53 = vadd.f32 %v4123_v31, %v15052_v7  ;;  %v4125_v25 = vpop.f32.mrb[237].mxu0  ;;  %v6367_v50 = vpop.f32.mrb[107].mxu1 }
 0x4d3   :  { %v4126_v6 = vadd.f32 %v4125_v25, %v15056_v8  ;;  %v6945_v32 = vmax.f32 %v6365_v34, %v6367_v50  ;;  %v4127_v1 = vpop.f32.mrb[238].mxu0  ;;  %12452 = vmatprep.mubr.msk.bf16.mxu1 %vm5568_vm2, %v5313_v52  ;;  %v7136_v44 = vmax.f32 %v6944_v14, 0.0  ;;  %v14210_v34 = vld [vmem:[%s20495_s0 + $0x984] ss:$8 sps:$4 sm:$0xff]  }
 0x4d4   :  { %v5048_v29 = vmax.f32 %v4044_v15, %v4124_v53  ;;  %v4128_v48 = vadd.f32 %v4127_v1, %v15052_v7  ;;  %v4129_v4 = vpop.f32.mrb[239].mxu0  ;;  %6470 = vmatmul.mubr.bf16.gmra.mrb[148].mxu1 %v5312_v9  ;;  %v4056_v9 = vadd.f32 %v17140_v61, %v15056_v8  ;;  %v4060_v61 = vadd.f32 %v17150_v51, %v15056_v8 }
 0x4d5   :  { %v5049_v28 = vmax.f32 %v4046_v45, %v4126_v6  ;;  %v7137_v56 = vmax.f32 %v6945_v32, 0.0  ;;  %v4130_v11 = vadd.f32 %v4129_v4, %v15056_v8  ;;  %v14267_v6 = vld [vmem:[%s20498_s4 + $0x34] ss:$8 sps:$4 sm:$0xff]   ;;  %v4064_v51 = vadd.f32 %v17155_v30, %v15052_v7 }
 0x4d6   :  { %v5050_v13 = vmax.f32 %v4048_v42, %v4128_v48  ;;  %4392 = vmatmul.mubr.bf16.gmra.mrb[88].mxu0 %v14202_v36  ;;  %7828 = vmatprep.subr.bf16.mxu1 %v14267_v6  ;;  %v4066_v48 = vadd.f32 %v17157_v17, %v15056_v8  ;;  %v14216_v30 = vld [vmem:[%s20495_s0 + $0x994] ss:$8 sps:$4 sm:$0xff]   ;;  %v4070_v17 = vadd.f32 %v17167_v10, %v15056_v8  ;;  %v14214_v10 = vld [vmem:[%s20495_s0 + $0x990] ss:$8 sps:$4 sm:$0xff]  }
 0x4d7   :  { %v17296_v12 = vpack.c.bf16 %v7137_v56, %v7136_v44  ;;  %v5051_v60 = vmax.f32 %v4050_v37, %v4130_v11  ;;  %12323 = vmatprep.mubr.msk.bf16.mxu0 %vm2275_vm0, %v14207_v2  ;;  %7829 = vmatpush1.bf16.msra.mxu1 %v14265_v3 }
 0x4d8   :  { %v5314_v54 = vpack.c.bf16 %v5050_v13, %v5048_v29  ;;  %v14208_v29 = vld [vmem:[%s20495_s0 + $0x980] ss:$8 sps:$4 sm:$0xff]  }
 0x4d9   :  { %20657 = vst [vmem:[#allocation62_spill] sm:$0xff] %v17296_v12  ;;  %v4133_v43 = vpop.f32.mrb[240].mxu0  ;;  %v5315_v57 = vpack.c.bf16 %v5051_v60, %v5049_v28  ;;  %v4068_v28 = vadd.f32 %v17162_v19, %v15052_v7  ;;  %v4074_v19 = vadd.f32 %v17172_v46, %v15052_v7  ;;  %v4078_v46 = vadd.f32 %v17179_v47, %v15052_v7 }
 0x4da   :  { %v4134_v35 = vadd.f32 %v4133_v43, %v15052_v7  ;;  %v4135_v21 = vpop.f32.mrb[241].mxu0  ;;  %v4084_v47 = vadd.f32 %v17189_v49, %v15052_v7  ;;  %v4088_v49 = vadd.f32 %v17196_v24, %v15052_v7 }
 0x4db   :  { %v4136_v14 = vadd.f32 %v4135_v21, %v15056_v8  ;;  %v4137_v31 = vpop.f32.mrb[242].mxu0  ;;  %12453 = vmatprep.mubr.msk.bf16.mxu1 %vm5568_vm2, %v5315_v57 }
 0x4dc   :  { %v5052_v52 = vmax.f32 %v4054_v20, %v4134_v35  ;;  %v4138_v15 = vadd.f32 %v4137_v31, %v15052_v7  ;;  %v4139_v53 = vpop.f32.mrb[243].mxu0  ;;  %6480 = vmatmul.mubr.bf16.gmra.mrb[152].mxu1 %v5314_v54 }
 0x4dd   :  { %v5053_v25 = vmax.f32 %v4056_v9, %v4136_v14  ;;  %v4140_v50 = vadd.f32 %v4139_v53, %v15056_v8  ;;  %v4076_v14 = vadd.f32 %v17174_v38, %v15056_v8  ;;  %v4080_v38 = vadd.f32 %v17184_v26, %v15056_v8  ;;  %v14217_v26 = vld [vmem:[%s20495_s0 + $0x9a0] ss:$8 sps:$4 sm:$0xff]  }
 0x4de   :  { %v5054_v36 = vmax.f32 %v4058_v0, %v4138_v15  ;;  %4402 = vmatmul.mubr.bf16.gmra.mrb[92].mxu0 %v14205_v63  ;;  %v14219_v0 = vld [vmem:[%s20495_s0 + $0x9a4] ss:$8 sps:$4 sm:$0xff]  }
 0x4df   :  { %v5055_v45 = vmax.f32 %v4060_v61, %v4140_v50  ;;  %12324 = vmatprep.mubr.msk.bf16.mxu0 %vm2275_vm0, %v14210_v34 }
 0x4e0   :  { %v5316_v32 = vpack.c.bf16 %v5054_v36, %v5052_v52 }
 0x4e1   :  { %v4143_v1 = vpop.f32.mrb[244].mxu0  ;;  %v5317_v2 = vpack.c.bf16 %v5055_v45, %v5053_v25 }
 0x4e2   :  { %v4144_v42 = vadd.f32 %v4143_v1, %v15052_v7  ;;  %v4145_v37 = vpop.f32.mrb[245].mxu0 }
 0x4e3   :  { %v4146_v4 = vadd.f32 %v4145_v37, %v15056_v8  ;;  %v4147_v44 = vpop.f32.mrb[246].mxu0  ;;  %12454 = vmatprep.mubr.msk.bf16.mxu1 %vm5568_vm2, %v5317_v2  ;;  %v4086_v2 = vadd.f32 %v17191_v39, %v15056_v8  ;;  %v14222_v37 = vld [vmem:[%s20495_s0 + $0x9b4] ss:$8 sps:$4 sm:$0xff]   ;;  %v4090_v39 = vadd.f32 %v17201_v62, %v15056_v8  ;;  %v14225_v62 = vld [vmem:[%s20495_s0 + $0x9c4] ss:$8 sps:$4 sm:$0xff]  }
 0x4e4   :  { %v5056_v56 = vmax.f32 %v4064_v51, %v4144_v42  ;;  %v4148_v11 = vadd.f32 %v4147_v44, %v15052_v7  ;;  %v4149_v13 = vpop.f32.mrb[247].mxu0  ;;  %6490 = vmatmul.mubr.bf16.gmra.mrb[156].mxu1 %v5316_v32 }
 0x4e5   :  { %v5057_v60 = vmax.f32 %v4066_v48, %v4146_v4  ;;  %v4150_v54 = vadd.f32 %v4149_v13, %v15056_v8 }
 0x4e6   :  { %v5058_v43 = vmax.f32 %v4068_v28, %v4148_v11  ;;  %4412 = vmatmul.mubr.bf16.gmra.mrb[96].mxu0 %v14208_v29 }
 0x4e7   :  { %v5059_v57 = vmax.f32 %v4070_v17, %v4150_v54  ;;  %12325 = vmatprep.mubr.msk.bf16.mxu0 %vm2275_vm0, %v14216_v30 }
 0x4e8   :  { %v5318_v20 = vpack.c.bf16 %v5058_v43, %v5056_v56 }
 0x4e9   :  { %v4153_v35 = vpop.f32.mrb[248].mxu0  ;;  %v5319_v21 = vpack.c.bf16 %v5059_v57, %v5057_v60  ;;  %v14220_v60 = vld [vmem:[%s20495_s0 + $0x9b0] ss:$8 sps:$4 sm:$0xff]  }
 0x4ea   :  { %v4154_v63 = vadd.f32 %v4153_v35, %v15052_v7  ;;  %v4155_v9 = vpop.f32.mrb[249].mxu0  ;;  %v14223_v35 = vld [vmem:[%s20495_s0 + $0x9c0] ss:$8 sps:$4 sm:$0xff]  }
 0x4eb   :  { %v4156_v31 = vadd.f32 %v4155_v9, %v15056_v8  ;;  %v4157_v34 = vpop.f32.mrb[250].mxu0  ;;  %12455 = vmatprep.mubr.msk.bf16.mxu1 %vm5568_vm2, %v5319_v21  ;;  %v14228_v21 = vld [vmem:[%s20495_s0 + $0x9d4] ss:$8 sps:$4 sm:$0xff]   ;;  %v14282_v9 = vld [vmem:[%s20498_s4 + $0x44] ss:$8 sps:$4 sm:$0xff]  }
 0x4ec   :  { %v5060_v52 = vmax.f32 %v4074_v19, %v4154_v63  ;;  %v4158_v15 = vadd.f32 %v4157_v34, %v15052_v7  ;;  %v4159_v53 = vpop.f32.mrb[251].mxu0  ;;  %6500 = vmatmul.mubr.bf16.gmra.mrb[160].mxu1 %v5318_v20  ;;  %v14280_v63 = vld [vmem:[%s20498_s4 + $0x40] ss:$8 sps:$4 sm:$0xff]   ;;  %7830 = vmatprep.subr.bf16.mxu1 %v14282_v9  ;;  %v14226_v34 = vld [vmem:[%s20495_s0 + $0x9d0] ss:$8 sps:$4 sm:$0xff]  }
 0x4ed   :  { %v5061_v61 = vmax.f32 %v4076_v14, %v4156_v31  ;;  %v4160_v25 = vadd.f32 %v4159_v53, %v15056_v8  ;;  %7831 = vmatpush1.bf16.msra.mxu1 %v14280_v63 }
 0x4ee   :  { %v5062_v50 = vmax.f32 %v4078_v46, %v4158_v15  ;;  %4422 = vmatmul.mubr.bf16.gmra.mrb[100].mxu0 %v14214_v10  ;;  %v14234_v46 = vld [vmem:[%s20495_s0 + $0x9e4] ss:$8 sps:$4 sm:$0xff]  }
 0x4ef   :  { %v5063_v36 = vmax.f32 %v4080_v38, %v4160_v25  ;;  %12326 = vmatprep.mubr.msk.bf16.mxu0 %vm2275_vm0, %v14219_v0  ;;  %v14232_v38 = vld [vmem:[%s20495_s0 + $0x9e0] ss:$8 sps:$4 sm:$0xff]   ;;  %v14237_v25 = vld [vmem:[%s20495_s0 + $0x9f4] ss:$8 sps:$4 sm:$0xff]  }
 0x4f0   :  { %v5320_v45 = vpack.c.bf16 %v5062_v50, %v5060_v52 }
 0x4f1   :  { %v4163_v3 = vpop.f32.mrb[252].mxu0  ;;  %v5321_v6 = vpack.c.bf16 %v5063_v36, %v5061_v61 }
 0x4f2   :  { %v4164_v32 = vadd.f32 %v4163_v3, %v15052_v7  ;;  %v4165_v1 = vpop.f32.mrb[253].mxu0 }
 0x4f3   :  { %v4166_v51 = vadd.f32 %v4165_v1, %v15056_v8  ;;  %v4167_v42 = vpop.f32.mrb[254].mxu0  ;;  %12456 = vmatprep.mubr.msk.bf16.mxu1 %vm5568_vm2, %v5321_v6 }
 0x4f4   :  { %v5064_v29 = vmax.f32 %v4084_v47, %v4164_v32  ;;  %v4168_v48 = vadd.f32 %v4167_v42, %v15052_v7  ;;  %v4169_v4 = vpop.f32.mrb[255].mxu0  ;;  %6510 = vmatmul.mubr.bf16.gmra.mrb[164].mxu1 %v5320_v45  ;;  %v14240_v42 = vld [vmem:[%s20495_s0 + $0xa04] ss:$8 sps:$4 sm:$0xff]  }
 0x4f5   :  { %v5065_v44 = vmax.f32 %v4086_v2, %v4166_v51  ;;  %v4170_v30 = vadd.f32 %v4169_v4, %v15056_v8 }
 0x4f6   :  { %v5066_v28 = vmax.f32 %v4088_v49, %v4168_v48  ;;  %4432 = vmatmul.mubr.bf16.gmra.mrb[104].mxu0 %v14217_v26  ;;  %v14235_v26 = vld [vmem:[%s20495_s0 + $0x9f0] ss:$8 sps:$4 sm:$0xff]  }
 0x4f7   :  { %v5067_v56 = vmax.f32 %v4090_v39, %v4170_v30  ;;  %12327 = vmatprep.mubr.msk.bf16.mxu0 %vm2275_vm0, %v14222_v37 }
 0x4f8   :  { %v5322_v11 = vpack.c.bf16 %v5066_v28, %v5064_v29 }
 0x4f9   :  { %v17385_v13 = vpop.f32.mrb[0].mxu0  ;;  %v5323_v24 = vpack.c.bf16 %v5067_v56, %v5065_v44 }
 0x4fa   :  { %v17387_v17 = vpop.f32.mrb[1].mxu0 }
 0x4fb   :  { %v17392_v54 = vpop.f32.mrb[2].mxu0  ;;  %12457 = vmatprep.mubr.msk.bf16.mxu1 %vm5568_vm2, %v5323_v24  ;;  %v14238_v24 = vld [vmem:[%s20495_s0 + $0xa00] ss:$8 sps:$4 sm:$0xff]  }
 0x4fc   :  { %v17398_v43 = vpop.f32.mrb[3].mxu0  ;;  %6520 = vmatmul.mubr.bf16.gmra.mrb[168].mxu1 %v5322_v11 }
 0x4fe   :  { %4442 = vmatmul.mubr.bf16.gmra.mrb[108].mxu0 %v14220_v60 }
 0x4ff   :  { %12328 = vmatprep.mubr.msk.bf16.mxu0 %vm2275_vm0, %v14225_v62 }
 0x501   :  { %v17401_v57 = vpop.f32.mrb[4].mxu0 }
 0x502   :  { %v17403_v20 = vpop.f32.mrb[5].mxu0 }
 0x503   :  { %v17411_v19 = vpop.f32.mrb[6].mxu0 }
 0x504   :  { %v17419_v10 = vpop.f32.mrb[7].mxu0 }
 0x506   :  { %4452 = vmatmul.mubr.bf16.gmra.mrb[112].mxu0 %v14223_v35  ;;  %v14243_v35 = vld [vmem:[%s20495_s0 + $0xa14] ss:$8 sps:$4 sm:$0xff]  }
 0x507   :  { %12329 = vmatprep.mubr.msk.bf16.mxu0 %vm2275_vm0, %v14228_v21 }
 0x509   :  { %v17422_v14 = vpop.f32.mrb[8].mxu0 }
 0x50a   :  { %v17424_v31 = vpop.f32.mrb[9].mxu0 }
 0x50b   :  { %v17429_v0 = vpop.f32.mrb[10].mxu0 }
 0x50c   :  { %v17434_v52 = vpop.f32.mrb[11].mxu0 }
 0x50e   :  { %4462 = vmatmul.mubr.bf16.gmra.mrb[116].mxu0 %v14226_v34 }
 0x50f   :  { %12330 = vmatprep.mubr.msk.bf16.mxu0 %vm2275_vm0, %v14234_v46 }
 0x511   :  { %v17437_v15 = vpop.f32.mrb[12].mxu0 }
 0x512   :  { %v17439_v53 = vpop.f32.mrb[13].mxu0 }
 0x513   :  { %v17444_v61 = vpop.f32.mrb[14].mxu0 }
 0x514   :  { %v17449_v50 = vpop.f32.mrb[15].mxu0 }
 0x516   :  { %4472 = vmatmul.mubr.bf16.gmra.mrb[120].mxu0 %v14232_v38 }
 0x517   :  { %v6371_v36 = vpop.f32.mrb[108].mxu1  ;;  %12331 = vmatprep.mubr.msk.bf16.mxu0 %vm2275_vm0, %v14237_v25 }
 0x518   :  { %v6373_v45 = vpop.f32.mrb[109].mxu1 }
 0x519   :  { %v6946_v3 = vmax.f32 %v6371_v36, %v6373_v45  ;;  %v17452_v6 = vpop.f32.mrb[16].mxu0  ;;  %v6375_v47 = vpop.f32.mrb[110].mxu1 }
 0x51a   :  { %v17454_v32 = vpop.f32.mrb[17].mxu0  ;;  %v6377_v1 = vpop.f32.mrb[111].mxu1 }
 0x51b   :  { %v6947_v2 = vmax.f32 %v6375_v47, %v6377_v1  ;;  %v17459_v51 = vpop.f32.mrb[18].mxu0  ;;  %v7138_v49 = vmax.f32 %v6946_v3, 0.0  ;;  %v14241_v1 = vld [vmem:[%s20495_s0 + $0xa10] ss:$8 sps:$4 sm:$0xff]  }
 0x51c   :  { %v17464_v37 = vpop.f32.mrb[19].mxu0 }
 0x51d   :  { %v7139_v29 = vmax.f32 %v6947_v2, 0.0 }
 0x51e   :  { %4482 = vmatmul.mubr.bf16.gmra.mrb[124].mxu0 %v14235_v26  ;;  %v14246_v26 = vld [vmem:[%s20495_s0 + $0xa24] ss:$8 sps:$4 sm:$0xff]  }
 0x51f   :  { %v17466_v48 = vpack.c.bf16 %v7139_v29, %v7138_v49  ;;  %v6381_v4 = vpop.f32.mrb[112].mxu1  ;;  %12332 = vmatprep.mubr.msk.bf16.mxu0 %vm2275_vm0, %v14240_v42  ;;  %v14298_v49 = vld [vmem:[%s20498_s4 + $0x50] ss:$8 sps:$4 sm:$0xff]   ;;  %v14300_v29 = vld [vmem:[%s20498_s4 + $0x54] ss:$8 sps:$4 sm:$0xff]  }
 0x520   :  { %v6383_v39 = vpop.f32.mrb[113].mxu1  ;;  %7832 = vmatprep.subr.bf16.mxu1 %v14300_v29 }
 0x521   :  { %20658 = vst [vmem:[#allocation63_spill] sm:$0xff] %v17466_v48  ;;  %v6948_v44 = vmax.f32 %v6381_v4, %v6383_v39  ;;  %v17469_v30 = vpop.f32.mrb[20].mxu0  ;;  %v6385_v28 = vpop.f32.mrb[114].mxu1  ;;  %7833 = vmatpush1.bf16.msra.mxu1 %v14298_v49 }
 0x522   :  { %v17471_v56 = vpop.f32.mrb[21].mxu0  ;;  %v6387_v11 = vpop.f32.mrb[115].mxu1 }
 0x523   :  { %v6949_v60 = vmax.f32 %v6385_v28, %v6387_v11  ;;  %v17476_v62 = vpop.f32.mrb[22].mxu0  ;;  %v7140_v63 = vmax.f32 %v6948_v44, 0.0 }
 0x524   :  { %v17481_v21 = vpop.f32.mrb[23].mxu0 }
 0x525   :  { %v7141_v9 = vmax.f32 %v6949_v60, 0.0 }
 0x526   :  { %4492 = vmatmul.mubr.bf16.gmra.mrb[128].mxu0 %v14238_v24 }
 0x527   :  { %v17483_v34 = vpack.c.bf16 %v7141_v9, %v7140_v63  ;;  %v6391_v46 = vpop.f32.mrb[116].mxu1  ;;  %12333 = vmatprep.mubr.msk.bf16.mxu0 %vm2275_vm0, %v14243_v35 }
 0x528   :  { %v6393_v38 = vpop.f32.mrb[117].mxu1 }
 0x529   :  { %20659 = vst [vmem:[#allocation64_spill] sm:$0xff] %v17483_v34  ;;  %v6950_v25 = vmax.f32 %v6391_v46, %v6393_v38  ;;  %v17486_v36 = vpop.f32.mrb[24].mxu0  ;;  %v6395_v45 = vpop.f32.mrb[118].mxu1  ;;  %v14244_v38 = vld [vmem:[%s20495_s0 + $0xa20] ss:$8 sps:$4 sm:$0xff]  }
 0x52a   :  { %v17488_v3 = vpop.f32.mrb[25].mxu0  ;;  %v6397_v47 = vpop.f32.mrb[119].mxu1 }
 0x52b   :  { %v6951_v2 = vmax.f32 %v6395_v45, %v6397_v47  ;;  %v17496_v42 = vpop.f32.mrb[26].mxu0  ;;  %v7142_v39 = vmax.f32 %v6950_v25, 0.0  ;;  %v14252_v47 = vld [vmem:[%s20495_s0 + $0xa34] ss:$8 sps:$4 sm:$0xff]  }
 0x52c   :  { %v17504_v4 = vpop.f32.mrb[27].mxu0 }
 0x52d   :  { %v7143_v44 = vmax.f32 %v6951_v2, 0.0 }
 0x52e   :  { %4502 = vmatmul.mubr.bf16.gmra.mrb[132].mxu0 %v14241_v1 }
 0x52f   :  { %v17506_v28 = vpack.c.bf16 %v7143_v44, %v7142_v39  ;;  %v6401_v11 = vpop.f32.mrb[120].mxu1  ;;  %12334 = vmatprep.mubr.msk.bf16.mxu0 %vm2275_vm0, %v14246_v26 }
 0x530   :  { %v6403_v24 = vpop.f32.mrb[121].mxu1 }
 0x531   :  { %20660 = vst [vmem:[#allocation65_spill] sm:$0xff] %v17506_v28  ;;  %v6952_v60 = vmax.f32 %v6401_v11, %v6403_v24  ;;  %v17509_v35 = vpop.f32.mrb[28].mxu0  ;;  %v6405_v63 = vpop.f32.mrb[122].mxu1 }
 0x532   :  { %v17511_v9 = vpop.f32.mrb[29].mxu0  ;;  %v6407_v46 = vpop.f32.mrb[123].mxu1 }
 0x533   :  { %v6953_v25 = vmax.f32 %v6405_v63, %v6407_v46  ;;  %v17516_v45 = vpop.f32.mrb[30].mxu0  ;;  %v7144_v26 = vmax.f32 %v6952_v60, 0.0  ;;  %v4174_v63 = vadd.f32 %v17385_v13, %v15052_v7  ;;  %v14250_v60 = vld [vmem:[%s20495_s0 + $0xa30] ss:$8 sps:$4 sm:$0xff]   ;;  %v4178_v13 = vadd.f32 %v17392_v54, %v15052_v7 }
 0x534   :  { %v17521_v1 = vpop.f32.mrb[31].mxu0 }
 0x535   :  { %v7145_v2 = vmax.f32 %v6953_v25, 0.0 }
 0x536   :  { %4512 = vmatmul.mubr.bf16.gmra.mrb[136].mxu0 %v14244_v38  ;;  %v4176_v38 = vadd.f32 %v17387_v17, %v15056_v8 }
 0x537   :  { %v17523_v49 = vpack.c.bf16 %v7145_v2, %v7144_v26  ;;  %v6411_v29 = vpop.f32.mrb[124].mxu1  ;;  %12335 = vmatprep.mubr.msk.bf16.mxu0 %vm2275_vm0, %v14252_v47  ;;  %v14255_v2 = vld [vmem:[%s20495_s0 + $0xa44] ss:$8 sps:$4 sm:$0xff]  }
 0x538   :  { %v6413_v39 = vpop.f32.mrb[125].mxu1 }
 0x539   :  { %20661 = vst [vmem:[#allocation66_spill] sm:$0xff] %v17523_v49  ;;  %v6954_v44 = vmax.f32 %v6411_v29, %v6413_v39  ;;  %v4253_v11 = vpop.f32.mrb[32].mxu0  ;;  %v6415_v24 = vpop.f32.mrb[126].mxu1  ;;  %v4180_v29 = vadd.f32 %v17398_v43, %v15056_v8 }
 0x53a   :  { %v4254_v46 = vadd.f32 %v4253_v11, %v15052_v7  ;;  %v4255_v28 = vpop.f32.mrb[33].mxu0  ;;  %v6417_v34 = vpop.f32.mrb[127].mxu1 }
 0x53b   :  { %v4256_v25 = vadd.f32 %v4255_v28, %v15056_v8  ;;  %v6955_v47 = vmax.f32 %v6415_v24, %v6417_v34  ;;  %v4257_v26 = vpop.f32.mrb[34].mxu0  ;;  %v7146_v48 = vmax.f32 %v6954_v44, 0.0  ;;  %v4184_v44 = vadd.f32 %v17401_v57, %v15052_v7 }
 0x53c   :  { %v5068_v39 = vmax.f32 %v4174_v63, %v4254_v46  ;;  %v4258_v11 = vadd.f32 %v4257_v26, %v15052_v7  ;;  %v4259_v49 = vpop.f32.mrb[35].mxu0  ;;  %v4188_v57 = vadd.f32 %v17411_v19, %v15052_v7 }
 0x53d   :  { %v5069_v17 = vmax.f32 %v4176_v38, %v4256_v25  ;;  %v7147_v12 = vmax.f32 %v6955_v47, 0.0  ;;  %v4260_v34 = vadd.f32 %v4259_v49, %v15056_v8 }
 0x53e   :  { %v5070_v28 = vmax.f32 %v4178_v13, %v4258_v11  ;;  %4522 = vmatmul.mubr.bf16.gmra.mrb[140].mxu0 %v14250_v60 }
 0x53f   :  { %v17544_v24 = vpack.c.bf16 %v7147_v12, %v7146_v48  ;;  %v5071_v41 = vmax.f32 %v4180_v29, %v4260_v34  ;;  %v6421_v5 = vpop.f32.mrb[128].mxu1  ;;  %12336 = vmatprep.mubr.msk.bf16.mxu0 %vm2275_vm0, %v14255_v2  ;;  %v14253_v12 = vld [vmem:[%s20495_s0 + $0xa40] ss:$8 sps:$4 sm:$0xff]   ;;  %v4186_v48 = vadd.f32 %v17403_v20, %v15056_v8  ;;  %v4190_v2 = vadd.f32 %v17419_v10, %v15056_v8 }
 0x540   :  { %v6423_v54 = vpop.f32.mrb[129].mxu1  ;;  %v5324_v58 = vpack.c.bf16 %v5070_v28, %v5068_v39 }
 0x541   :  { %v6956_v43 = vmax.f32 %v6421_v5, %v6423_v54  ;;  %v4263_v63 = vpop.f32.mrb[36].mxu0  ;;  %v6425_v46 = vpop.f32.mrb[130].mxu1  ;;  %v5325_v26 = vpack.c.bf16 %v5071_v41, %v5069_v17  ;;  %v14258_v41 = vld [vmem:[%s20495_s0 + $0xa54] ss:$8 sps:$4 sm:$0xff]  }
 0x542   :  { %v4264_v38 = vadd.f32 %v4263_v63, %v15052_v7  ;;  %v4265_v49 = vpop.f32.mrb[37].mxu0  ;;  %v6427_v25 = vpop.f32.mrb[131].mxu1 }
 0x543   :  { %v4266_v60 = vadd.f32 %v4265_v49, %v15056_v8  ;;  %v6957_v5 = vmax.f32 %v6425_v46, %v6427_v25  ;;  %v4267_v47 = vpop.f32.mrb[38].mxu0  ;;  %12458 = vmatprep.mubr.msk.bf16.mxu1 %vm5568_vm2, %v5325_v26  ;;  %v7148_v39 = vmax.f32 %v6956_v43, 0.0 }
 0x544   :  { %v5072_v13 = vmax.f32 %v4184_v44, %v4264_v38  ;;  %v4268_v29 = vadd.f32 %v4267_v47, %v15052_v7  ;;  %v4269_v20 = vpop.f32.mrb[39].mxu0  ;;  %6530 = vmatmul.mubr.bf16.gmra.mrb[172].mxu1 %v5324_v58  ;;  %v4194_v58 = vadd.f32 %v17422_v14, %v15052_v7  ;;  %v14261_v14 = vld [vmem:[%s20495_s0 + $0xa64] ss:$8 sps:$4 sm:$0xff]  }
 0x545   :  { %v5073_v11 = vmax.f32 %v4186_v48, %v4266_v60  ;;  %v7149_v17 = vmax.f32 %v6957_v5, 0.0  ;;  %v4270_v34 = vadd.f32 %v4269_v20, %v15056_v8  ;;  %v4196_v60 = vadd.f32 %v17424_v31, %v15056_v8 }
 0x546   :  { %v5074_v28 = vmax.f32 %v4188_v57, %v4268_v29  ;;  %4532 = vmatmul.mubr.bf16.gmra.mrb[144].mxu0 %v14253_v12  ;;  %v14256_v12 = vld [vmem:[%s20495_s0 + $0xa50] ss:$8 sps:$4 sm:$0xff]   ;;  %v4198_v57 = vadd.f32 %v17429_v0, %v15052_v7  ;;  %v14316_v0 = vld [vmem:[%s20498_s4 + $0x60] ss:$8 sps:$4 sm:$0xff]  }
 0x547   :  { %v17566_v54 = vpack.c.bf16 %v7149_v17, %v7148_v39  ;;  %v5075_v63 = vmax.f32 %v4190_v2, %v4270_v34  ;;  %v6431_v46 = vpop.f32.mrb[132].mxu1  ;;  %12337 = vmatprep.mubr.msk.bf16.mxu0 %vm2275_vm0, %v14258_v41  ;;  %v4200_v2 = vadd.f32 %v17434_v52, %v15056_v8  ;;  %v14318_v52 = vld [vmem:[%s20498_s4 + $0x64] ss:$8 sps:$4 sm:$0xff]  }
 0x548   :  { %v6433_v19 = vpop.f32.mrb[133].mxu1  ;;  %v5326_v10 = vpack.c.bf16 %v5074_v28, %v5072_v13  ;;  %7834 = vmatprep.subr.bf16.mxu1 %v14318_v52 }
 0x549   :  { %20662 = vst [vmem:[#allocation67_spill] sm:$0xff] %v17566_v54  ;;  %v6958_v26 = vmax.f32 %v6431_v46, %v6433_v19  ;;  %v4273_v44 = vpop.f32.mrb[40].mxu0  ;;  %v6435_v38 = vpop.f32.mrb[134].mxu1  ;;  %v5327_v49 = vpack.c.bf16 %v5075_v63, %v5073_v11  ;;  %7835 = vmatpush1.bf16.msra.mxu1 %v14316_v0 }
 0x54a   :  { %v4274_v43 = vadd.f32 %v4273_v44, %v15052_v7  ;;  %v4275_v25 = vpop.f32.mrb[41].mxu0  ;;  %v6437_v48 = vpop.f32.mrb[135].mxu1 }
 0x54b   :  { %v4276_v5 = vadd.f32 %v4275_v25, %v15056_v8  ;;  %v6959_v47 = vmax.f32 %v6435_v38, %v6437_v48  ;;  %v4277_v41 = vpop.f32.mrb[42].mxu0  ;;  %12459 = vmatprep.mubr.msk.bf16.mxu1 %vm5568_vm2, %v5327_v49  ;;  %v7150_v20 = vmax.f32 %v6958_v26, 0.0 }
 0x54c   :  { %v5076_v13 = vmax.f32 %v4194_v58, %v4274_v43  ;;  %v4278_v29 = vadd.f32 %v4277_v41, %v15052_v7  ;;  %v4279_v31 = vpop.f32.mrb[43].mxu0  ;;  %6540 = vmatmul.mubr.bf16.gmra.mrb[176].mxu1 %v5326_v10  ;;  %v4204_v58 = vadd.f32 %v17437_v15, %v15052_v7  ;;  %v14264_v15 = vld [vmem:[%s20495_s0 + $0xa74] ss:$8 sps:$4 sm:$0xff]  }
 0x54d   :  { %v5077_v39 = vmax.f32 %v4196_v60, %v4276_v5  ;;  %v7151_v11 = vmax.f32 %v6959_v47, 0.0  ;;  %v4280_v17 = vadd.f32 %v4279_v31, %v15056_v8  ;;  %v4206_v60 = vadd.f32 %v17439_v53, %v15056_v8 }
 0x54e   :  { %v5078_v34 = vmax.f32 %v4198_v57, %v4278_v29  ;;  %4542 = vmatmul.mubr.bf16.gmra.mrb[148].mxu0 %v14256_v12  ;;  %v14259_v12 = vld [vmem:[%s20495_s0 + $0xa60] ss:$8 sps:$4 sm:$0xff]   ;;  %v4210_v57 = vadd.f32 %v17449_v50, %v15056_v8 }
 0x54f   :  { %v17588_v28 = vpack.c.bf16 %v7151_v11, %v7150_v20  ;;  %v5079_v63 = vmax.f32 %v4200_v2, %v4280_v17  ;;  %v6441_v46 = vpop.f32.mrb[136].mxu1  ;;  %12338 = vmatprep.mubr.msk.bf16.mxu0 %vm2275_vm0, %v14261_v14  ;;  %v4208_v14 = vadd.f32 %v17444_v61, %v15052_v7 }
 0x550   :  { %v6443_v19 = vpop.f32.mrb[137].mxu1  ;;  %v5328_v10 = vpack.c.bf16 %v5078_v34, %v5076_v13 }
 0x551   :  { %20663 = vst [vmem:[#allocation68_spill] sm:$0xff] %v17588_v28  ;;  %v6960_v26 = vmax.f32 %v6441_v46, %v6443_v19  ;;  %v4283_v44 = vpop.f32.mrb[44].mxu0  ;;  %v6445_v38 = vpop.f32.mrb[138].mxu1  ;;  %v5329_v49 = vpack.c.bf16 %v5079_v63, %v5077_v39  ;;  %v4214_v46 = vadd.f32 %v17452_v6, %v15052_v7  ;;  %v14262_v19 = vld [vmem:[%s20495_s0 + $0xa70] ss:$8 sps:$4 sm:$0xff]   ;;  %v4218_v6 = vadd.f32 %v17459_v51, %v15052_v7 }
 0x552   :  { %v4284_v43 = vadd.f32 %v4283_v44, %v15052_v7  ;;  %v4285_v25 = vpop.f32.mrb[45].mxu0  ;;  %v6447_v48 = vpop.f32.mrb[139].mxu1  ;;  %v4224_v51 = vadd.f32 %v17469_v30, %v15052_v7  ;;  %v4228_v30 = vadd.f32 %v17476_v62, %v15052_v7  ;;  %v4234_v62 = vadd.f32 %v17486_v36, %v15052_v7 }
 0x553   :  { %v4286_v5 = vadd.f32 %v4285_v25, %v15056_v8  ;;  %v6961_v47 = vmax.f32 %v6445_v38, %v6447_v48  ;;  %v4287_v41 = vpop.f32.mrb[46].mxu0  ;;  %12460 = vmatprep.mubr.msk.bf16.mxu1 %vm5568_vm2, %v5329_v49  ;;  %v7152_v29 = vmax.f32 %v6960_v26, 0.0  ;;  %v14270_v38 = vld [vmem:[%s20495_s0 + $0xa84] ss:$8 sps:$4 sm:$0xff]   ;;  %v4238_v36 = vadd.f32 %v17496_v42, %v15052_v7 }
 0x554   :  { %v5080_v2 = vmax.f32 %v4204_v58, %v4284_v43  ;;  %v4288_v13 = vadd.f32 %v4287_v41, %v15052_v7  ;;  %v4289_v53 = vpop.f32.mrb[47].mxu0  ;;  %6550 = vmatmul.mubr.bf16.gmra.mrb[180].mxu1 %v5328_v10  ;;  %v4216_v10 = vadd.f32 %v17454_v32, %v15056_v8  ;;  %v4220_v32 = vadd.f32 %v17464_v37, %v15056_v8  ;;  %v14268_v37 = vld [vmem:[%s20495_s0 + $0xa80] ss:$8 sps:$4 sm:$0xff]  }
 0x555   :  { %v5081_v31 = vmax.f32 %v4206_v60, %v4286_v5  ;;  %v7153_v20 = vmax.f32 %v6961_v47, 0.0  ;;  %v4290_v39 = vadd.f32 %v4289_v53, %v15056_v8  ;;  %v14273_v53 = vld [vmem:[%s20495_s0 + $0xa94] ss:$8 sps:$4 sm:$0xff]   ;;  %v4244_v42 = vadd.f32 %v17509_v35, %v15052_v7 }
 0x556   :  { %v5082_v11 = vmax.f32 %v4208_v14, %v4288_v13  ;;  %4552 = vmatmul.mubr.bf16.gmra.mrb[152].mxu0 %v14259_v12  ;;  %v4248_v35 = vadd.f32 %v17516_v45, %v15052_v7  ;;  %v14333_v45 = vld [vmem:[%s20498_s4 + $0x74] ss:$8 sps:$4 sm:$0xff]  }
 0x557   :  { %v17616_v17 = vpack.c.bf16 %v7153_v20, %v7152_v29  ;;  %v5083_v34 = vmax.f32 %v4210_v57, %v4290_v39  ;;  %12339 = vmatprep.mubr.msk.bf16.mxu0 %vm2275_vm0, %v14264_v15  ;;  %v4226_v57 = vadd.f32 %v17471_v56, %v15056_v8  ;;  %v4230_v56 = vadd.f32 %v17481_v21, %v15056_v8  ;;  %v14271_v21 = vld [vmem:[%s20495_s0 + $0xa90] ss:$8 sps:$4 sm:$0xff]  }
 0x558   :  { %v5330_v61 = vpack.c.bf16 %v5082_v11, %v5080_v2  ;;  %7836 = vmatprep.subr.bf16.mxu1 %v14333_v45 }
 0x559   :  { %20664 = vst [vmem:[#allocation69_spill] sm:$0xff] %v17616_v17  ;;  %v4293_v63 = vpop.f32.mrb[48].mxu0  ;;  %v5331_v50 = vpack.c.bf16 %v5083_v34, %v5081_v31 }
 0x55a   :  { %v4294_v0 = vadd.f32 %v4293_v63, %v15052_v7  ;;  %v4295_v52 = vpop.f32.mrb[49].mxu0 }
 0x55b   :  { %v4296_v26 = vadd.f32 %v4295_v52, %v15056_v8  ;;  %v4297_v44 = vpop.f32.mrb[50].mxu0  ;;  %12461 = vmatprep.mubr.msk.bf16.mxu1 %vm5568_vm2, %v5331_v50 }
 0x55c   :  { %v5084_v49 = vmax.f32 %v4214_v46, %v4294_v0  ;;  %v4298_v58 = vadd.f32 %v4297_v44, %v15052_v7  ;;  %v4299_v43 = vpop.f32.mrb[51].mxu0  ;;  %6560 = vmatmul.mubr.bf16.gmra.mrb[184].mxu1 %v5330_v61  ;;  %v14276_v44 = vld [vmem:[%s20495_s0 + $0xaa4] ss:$8 sps:$4 sm:$0xff]  }
 0x55d   :  { %v5085_v25 = vmax.f32 %v4216_v10, %v4296_v26  ;;  %v4300_v48 = vadd.f32 %v4299_v43, %v15056_v8 }
 0x55e   :  { %v5086_v12 = vmax.f32 %v4218_v6, %v4298_v58  ;;  %4562 = vmatmul.mubr.bf16.gmra.mrb[156].mxu0 %v14262_v19  ;;  %v4236_v19 = vadd.f32 %v17488_v3, %v15056_v8  ;;  %v4240_v3 = vadd.f32 %v17504_v4, %v15056_v8  ;;  %v14274_v4 = vld [vmem:[%s20495_s0 + $0xaa0] ss:$8 sps:$4 sm:$0xff]  }
 0x55f   :  { %v5087_v60 = vmax.f32 %v4220_v32, %v4300_v48  ;;  %12340 = vmatprep.mubr.msk.bf16.mxu0 %vm2275_vm0, %v14270_v38 }
 0x560   :  { %v5332_v5 = vpack.c.bf16 %v5086_v12, %v5084_v49 }
 0x561   :  { %v4303_v47 = vpop.f32.mrb[52].mxu0  ;;  %v5333_v41 = vpack.c.bf16 %v5087_v60, %v5085_v25 }
 0x562   :  { %v4304_v15 = vadd.f32 %v4303_v47, %v15052_v7  ;;  %v4305_v14 = vpop.f32.mrb[53].mxu0 }
 0x563   :  { %v4306_v2 = vadd.f32 %v4305_v14, %v15056_v8  ;;  %v4307_v13 = vpop.f32.mrb[54].mxu0  ;;  %12462 = vmatprep.mubr.msk.bf16.mxu1 %vm5568_vm2, %v5333_v41  ;;  %v4246_v41 = vadd.f32 %v17511_v9, %v15056_v8  ;;  %v14279_v14 = vld [vmem:[%s20495_s0 + $0xab4] ss:$8 sps:$4 sm:$0xff]   ;;  %v4250_v9 = vadd.f32 %v17521_v1, %v15056_v8 }
 0x564   :  { %v5088_v29 = vmax.f32 %v4224_v51, %v4304_v15  ;;  %v4308_v31 = vadd.f32 %v4307_v13, %v15052_v7  ;;  %v4309_v20 = vpop.f32.mrb[55].mxu0  ;;  %6570 = vmatmul.mubr.bf16.gmra.mrb[188].mxu1 %v5332_v5 }
 0x565   :  { %v5089_v39 = vmax.f32 %v4226_v57, %v4306_v2  ;;  %v4310_v11 = vadd.f32 %v4309_v20, %v15056_v8 }
 0x566   :  { %v5090_v34 = vmax.f32 %v4228_v30, %v4308_v31  ;;  %4572 = vmatmul.mubr.bf16.gmra.mrb[160].mxu0 %v14268_v37 }
 0x567   :  { %v5091_v61 = vmax.f32 %v4230_v56, %v4310_v11  ;;  %12341 = vmatprep.mubr.msk.bf16.mxu0 %vm2275_vm0, %v14273_v53  ;;  %v14277_v11 = vld [vmem:[%s20495_s0 + $0xab0] ss:$8 sps:$4 sm:$0xff]  }
 0x568   :  { %v5334_v63 = vpack.c.bf16 %v5090_v34, %v5088_v29  ;;  %v14331_v29 = vld [vmem:[%s20498_s4 + $0x70] ss:$8 sps:$4 sm:$0xff]  }
 0x569   :  { %v4313_v50 = vpop.f32.mrb[56].mxu0  ;;  %v5335_v46 = vpack.c.bf16 %v5091_v61, %v5089_v39  ;;  %7837 = vmatpush1.bf16.msra.mxu1 %v14331_v29  ;;  %v14285_v61 = vld [vmem:[%s20495_s0 + $0xac4] ss:$8 sps:$4 sm:$0xff]  }
 0x56a   :  { %v4314_v0 = vadd.f32 %v4313_v50, %v15052_v7  ;;  %v4315_v52 = vpop.f32.mrb[57].mxu0 }
 0x56b   :  { %v4316_v10 = vadd.f32 %v4315_v52, %v15056_v8  ;;  %v4317_v26 = vpop.f32.mrb[58].mxu0  ;;  %12463 = vmatprep.mubr.msk.bf16.mxu1 %vm5568_vm2, %v5335_v46  ;;  %v14288_v52 = vld [vmem:[%s20495_s0 + $0xad4] ss:$8 sps:$4 sm:$0xff]  }
 0x56c   :  { %v5092_v38 = vmax.f32 %v4234_v62, %v4314_v0  ;;  %v4318_v6 = vadd.f32 %v4317_v26, %v15052_v7  ;;  %v4319_v49 = vpop.f32.mrb[59].mxu0  ;;  %6580 = vmatmul.mubr.bf16.gmra.mrb[192].mxu1 %v5334_v63  ;;  %v14283_v62 = vld [vmem:[%s20495_s0 + $0xac0] ss:$8 sps:$4 sm:$0xff]   ;;  %v14286_v26 = vld [vmem:[%s20495_s0 + $0xad0] ss:$8 sps:$4 sm:$0xff]  }
 0x56d   :  { %v5093_v58 = vmax.f32 %v4236_v19, %v4316_v10  ;;  %v4320_v43 = vadd.f32 %v4319_v49, %v15056_v8 }
 0x56e   :  { %v5094_v32 = vmax.f32 %v4238_v36, %v4318_v6  ;;  %4582 = vmatmul.mubr.bf16.gmra.mrb[164].mxu0 %v14271_v21  ;;  %v14291_v36 = vld [vmem:[%s20495_s0 + $0xae4] ss:$8 sps:$4 sm:$0xff]  }
 0x56f   :  { %v5095_v25 = vmax.f32 %v4240_v3, %v4320_v43  ;;  %12342 = vmatprep.mubr.msk.bf16.mxu0 %vm2275_vm0, %v14276_v44  ;;  %v14289_v3 = vld [vmem:[%s20495_s0 + $0xae0] ss:$8 sps:$4 sm:$0xff]   ;;  %v14294_v43 = vld [vmem:[%s20495_s0 + $0xaf4] ss:$8 sps:$4 sm:$0xff]  }
 0x570   :  { %v5336_v48 = vpack.c.bf16 %v5094_v32, %v5092_v38 }
 0x571   :  { %v4323_v12 = vpop.f32.mrb[60].mxu0  ;;  %v5337_v60 = vpack.c.bf16 %v5095_v25, %v5093_v58 }
 0x572   :  { %v4324_v5 = vadd.f32 %v4323_v12, %v15052_v7  ;;  %v4325_v47 = vpop.f32.mrb[61].mxu0 }
 0x573   :  { %v4326_v51 = vadd.f32 %v4325_v47, %v15056_v8  ;;  %v4327_v15 = vpop.f32.mrb[62].mxu0  ;;  %12464 = vmatprep.mubr.msk.bf16.mxu1 %vm5568_vm2, %v5337_v60 }
 0x574   :  { %v5096_v37 = vmax.f32 %v4244_v42, %v4324_v5  ;;  %v4328_v57 = vadd.f32 %v4327_v15, %v15052_v7  ;;  %v4329_v2 = vpop.f32.mrb[63].mxu0  ;;  %6590 = vmatmul.mubr.bf16.gmra.mrb[196].mxu1 %v5336_v48 }
 0x575   :  { %v5097_v13 = vmax.f32 %v4246_v41, %v4326_v51  ;;  %v4330_v53 = vadd.f32 %v4329_v2, %v15056_v8  ;;  %v14297_v41 = vld [vmem:[%s20495_s0 + $0xb04] ss:$8 sps:$4 sm:$0xff]  }
 0x576   :  { %v5098_v30 = vmax.f32 %v4248_v35, %v4328_v57  ;;  %4592 = vmatmul.mubr.bf16.gmra.mrb[168].mxu0 %v14274_v4  ;;  %v14292_v4 = vld [vmem:[%s20495_s0 + $0xaf0] ss:$8 sps:$4 sm:$0xff]   ;;  %v14351_v35 = vld [vmem:[%s20498_s4 + $0x84] ss:$8 sps:$4 sm:$0xff]  }
 0x577   :  { %v5099_v31 = vmax.f32 %v4250_v9, %v4330_v53  ;;  %12343 = vmatprep.mubr.msk.bf16.mxu0 %vm2275_vm0, %v14279_v14  ;;  %v14349_v14 = vld [vmem:[%s20498_s4 + $0x80] ss:$8 sps:$4 sm:$0xff]   ;;  %7838 = vmatprep.subr.bf16.mxu1 %v14351_v35  ;;  %v14306_v35 = vld [vmem:[%s20495_s0 + $0xb24] ss:$8 sps:$4 sm:$0xff]  }
 0x578   :  { %v5338_v20 = vpack.c.bf16 %v5098_v30, %v5096_v37  ;;  %7839 = vmatpush1.bf16.msra.mxu1 %v14349_v14 }
 0x579   :  { %v17705_v56 = vpop.f32.mrb[64].mxu0  ;;  %v5339_v1 = vpack.c.bf16 %v5099_v31, %v5097_v13 }
 0x57a   :  { %v17707_v39 = vpop.f32.mrb[65].mxu0 }
 0x57b   :  { %v17712_v34 = vpop.f32.mrb[66].mxu0  ;;  %12465 = vmatprep.mubr.msk.bf16.mxu1 %vm5568_vm2, %v5339_v1  ;;  %v14295_v1 = vld [vmem:[%s20495_s0 + $0xb00] ss:$8 sps:$4 sm:$0xff]  }
 0x57c   :  { %v17718_v63 = vpop.f32.mrb[67].mxu0  ;;  %6600 = vmatmul.mubr.bf16.gmra.mrb[200].mxu1 %v5338_v20 }
 0x57e   :  { %4602 = vmatmul.mubr.bf16.gmra.mrb[172].mxu0 %v14277_v11 }
 0x57f   :  { %12344 = vmatprep.mubr.msk.bf16.mxu0 %vm2275_vm0, %v14285_v61 }
 0x581   :  { %v17721_v50 = vpop.f32.mrb[68].mxu0 }
 0x582   :  { %v17723_v46 = vpop.f32.mrb[69].mxu0 }
 0x583   :  { %v17728_v0 = vpop.f32.mrb[70].mxu0 }
 0x584   :  { %v17733_v21 = vpop.f32.mrb[71].mxu0 }
 0x586   :  { %4612 = vmatmul.mubr.bf16.gmra.mrb[176].mxu0 %v14283_v62  ;;  %v14303_v62 = vld [vmem:[%s20495_s0 + $0xb14] ss:$8 sps:$4 sm:$0xff]  }
 0x587   :  { %12345 = vmatprep.mubr.msk.bf16.mxu0 %vm2275_vm0, %v14288_v52 }
 0x589   :  { %v17736_v19 = vpop.f32.mrb[72].mxu0 }
 0x58a   :  { %v17738_v10 = vpop.f32.mrb[73].mxu0 }
 0x58b   :  { %v17743_v44 = vpop.f32.mrb[74].mxu0 }
 0x58c   :  { %v17748_v38 = vpop.f32.mrb[75].mxu0 }
 0x58e   :  { %4622 = vmatmul.mubr.bf16.gmra.mrb[180].mxu0 %v14286_v26 }
 0x58f   :  { %12346 = vmatprep.mubr.msk.bf16.mxu0 %vm2275_vm0, %v14291_v36 }
 0x591   :  { %v17751_v6 = vpop.f32.mrb[76].mxu0 }
 0x592   :  { %v17753_v49 = vpop.f32.mrb[77].mxu0 }
 0x593   :  { %v17758_v58 = vpop.f32.mrb[78].mxu0 }
 0x594   :  { %v17763_v32 = vpop.f32.mrb[79].mxu0 }
 0x596   :  { %4632 = vmatmul.mubr.bf16.gmra.mrb[184].mxu0 %v14289_v3 }
 0x597   :  { %v6451_v25 = vpop.f32.mrb[140].mxu1  ;;  %12347 = vmatprep.mubr.msk.bf16.mxu0 %vm2275_vm0, %v14294_v43 }
 0x598   :  { %v6453_v48 = vpop.f32.mrb[141].mxu1 }
 0x599   :  { %v6962_v12 = vmax.f32 %v6451_v25, %v6453_v48  ;;  %v17766_v60 = vpop.f32.mrb[80].mxu0  ;;  %v6455_v42 = vpop.f32.mrb[142].mxu1 }
 0x59a   :  { %v17768_v5 = vpop.f32.mrb[81].mxu0  ;;  %v6457_v47 = vpop.f32.mrb[143].mxu1 }
 0x59b   :  { %v6963_v51 = vmax.f32 %v6455_v42, %v6457_v47  ;;  %v17776_v15 = vpop.f32.mrb[82].mxu0  ;;  %v7154_v57 = vmax.f32 %v6962_v12, 0.0 }
 0x59c   :  { %v17784_v37 = vpop.f32.mrb[83].mxu0 }
 0x59d   :  { %v7155_v2 = vmax.f32 %v6963_v51, 0.0 }
 0x59e   :  { %4642 = vmatmul.mubr.bf16.gmra.mrb[188].mxu0 %v14292_v4 }
 0x59f   :  { %v17786_v9 = vpack.c.bf16 %v7155_v2, %v7154_v57  ;;  %v6461_v13 = vpop.f32.mrb[144].mxu1  ;;  %12348 = vmatprep.mubr.msk.bf16.mxu0 %vm2275_vm0, %v14297_v41  ;;  %v14301_v41 = vld [vmem:[%s20495_s0 + $0xb10] ss:$8 sps:$4 sm:$0xff]  }
 0x5a0   :  { %v6463_v53 = vpop.f32.mrb[145].mxu1 }
 0x5a1   :  { %20665 = vst [vmem:[#allocation70_spill] sm:$0xff] %v17786_v9  ;;  %v6964_v30 = vmax.f32 %v6461_v13, %v6463_v53  ;;  %v17789_v29 = vpop.f32.mrb[84].mxu0  ;;  %v6465_v45 = vpop.f32.mrb[146].mxu1 }
 0x5a2   :  { %v17791_v31 = vpop.f32.mrb[85].mxu0  ;;  %v6467_v20 = vpop.f32.mrb[147].mxu1 }
 0x5a3   :  { %v6965_v11 = vmax.f32 %v6465_v45, %v6467_v20  ;;  %v17796_v61 = vpop.f32.mrb[86].mxu0  ;;  %v7156_v26 = vmax.f32 %v6964_v30, 0.0 }
 0x5a4   :  { %v17801_v52 = vpop.f32.mrb[87].mxu0 }
 0x5a5   :  { %v7157_v36 = vmax.f32 %v6965_v11, 0.0 }
 0x5a6   :  { %4652 = vmatmul.mubr.bf16.gmra.mrb[192].mxu0 %v14295_v1 }
 0x5a7   :  { %v17803_v3 = vpack.c.bf16 %v7157_v36, %v7156_v26  ;;  %v6471_v43 = vpop.f32.mrb[148].mxu1  ;;  %12349 = vmatprep.mubr.msk.bf16.mxu0 %vm2275_vm0, %v14303_v62  ;;  %v14304_v36 = vld [vmem:[%s20495_s0 + $0xb20] ss:$8 sps:$4 sm:$0xff]  }
 0x5a8   :  { %v6473_v25 = vpop.f32.mrb[149].mxu1 }
 0x5a9   :  { %20666 = vst [vmem:[#allocation71_spill] sm:$0xff] %v17803_v3  ;;  %v6966_v48 = vmax.f32 %v6471_v43, %v6473_v25  ;;  %v17806_v12 = vpop.f32.mrb[88].mxu0  ;;  %v6475_v42 = vpop.f32.mrb[150].mxu1 }
 0x5aa   :  { %v17808_v47 = vpop.f32.mrb[89].mxu0  ;;  %v6477_v4 = vpop.f32.mrb[151].mxu1 }
 0x5ab   :  { %v6967_v51 = vmax.f32 %v6475_v42, %v6477_v4  ;;  %v17813_v14 = vpop.f32.mrb[90].mxu0  ;;  %v7158_v2 = vmax.f32 %v6966_v48, 0.0  ;;  %v14309_v48 = vld [vmem:[%s20495_s0 + $0xb34] ss:$8 sps:$4 sm:$0xff]  }
 0x5ac   :  { %v17818_v57 = vpop.f32.mrb[91].mxu0 }
 0x5ad   :  { %v7159_v13 = vmax.f32 %v6967_v51, 0.0 }
 0x5ae   :  { %4662 = vmatmul.mubr.bf16.gmra.mrb[196].mxu0 %v14301_v41 }
 0x5af   :  { %v17820_v53 = vpack.c.bf16 %v7159_v13, %v7158_v2  ;;  %v6481_v30 = vpop.f32.mrb[152].mxu1  ;;  %12350 = vmatprep.mubr.msk.bf16.mxu0 %vm2275_vm0, %v14306_v35 }
 0x5b0   :  { %v6483_v45 = vpop.f32.mrb[153].mxu1 }
 0x5b1   :  { %20667 = vst [vmem:[#allocation72_spill] sm:$0xff] %v17820_v53  ;;  %v6968_v20 = vmax.f32 %v6481_v30, %v6483_v45  ;;  %v17823_v1 = vpop.f32.mrb[92].mxu0  ;;  %v6485_v11 = vpop.f32.mrb[154].mxu1 }
 0x5b2   :  { %v17825_v62 = vpop.f32.mrb[93].mxu0  ;;  %v6487_v26 = vpop.f32.mrb[155].mxu1 }
 0x5b3   :  { %v6969_v43 = vmax.f32 %v6485_v11, %v6487_v26  ;;  %v17830_v25 = vpop.f32.mrb[94].mxu0  ;;  %v7160_v4 = vmax.f32 %v6968_v20, 0.0  ;;  %v4334_v11 = vadd.f32 %v17705_v56, %v15052_v7  ;;  %v14307_v20 = vld [vmem:[%s20495_s0 + $0xb30] ss:$8 sps:$4 sm:$0xff]   ;;  %v4338_v56 = vadd.f32 %v17712_v34, %v15052_v7 }
 0x5b4   :  { %v17835_v42 = vpop.f32.mrb[95].mxu0  ;;  %v14355_v34 = vld [vmem:[%s20498_s4 + $0x90] ss:$8 sps:$4 sm:$0xff]  }
 0x5b5   :  { %v7161_v41 = vmax.f32 %v6969_v43, 0.0 }
 0x5b6   :  { %4672 = vmatmul.mubr.bf16.gmra.mrb[200].mxu0 %v14304_v36  ;;  %v4336_v36 = vadd.f32 %v17707_v39, %v15056_v8 }
 0x5b7   :  { %v17837_v51 = vpack.c.bf16 %v7161_v41, %v7160_v4  ;;  %v6491_v35 = vpop.f32.mrb[156].mxu1  ;;  %12351 = vmatprep.mubr.msk.bf16.mxu0 %vm2275_vm0, %v14309_v48  ;;  %v14312_v41 = vld [vmem:[%s20495_s0 + $0xb44] ss:$8 sps:$4 sm:$0xff]  }
 0x5b8   :  { %v6493_v2 = vpop.f32.mrb[157].mxu1 }
 0x5b9   :  { %20668 = vst [vmem:[#allocation73_spill] sm:$0xff] %v17837_v51  ;;  %v6970_v13 = vmax.f32 %v6491_v35, %v6493_v2  ;;  %v4413_v30 = vpop.f32.mrb[96].mxu0  ;;  %v6495_v45 = vpop.f32.mrb[158].mxu1  ;;  %v4340_v35 = vadd.f32 %v17718_v63, %v15056_v8  ;;  %v14357_v63 = vld [vmem:[%s20498_s4 + $0x94] ss:$8 sps:$4 sm:$0xff]  }
 0x5ba   :  { %v4414_v26 = vadd.f32 %v4413_v30, %v15052_v7  ;;  %v4415_v53 = vpop.f32.mrb[97].mxu0  ;;  %v6497_v3 = vpop.f32.mrb[159].mxu1  ;;  %7840 = vmatprep.subr.bf16.mxu1 %v14357_v63 }
 0x5bb   :  { %v4416_v43 = vadd.f32 %v4415_v53, %v15056_v8  ;;  %v6971_v48 = vmax.f32 %v6495_v45, %v6497_v3  ;;  %v4417_v4 = vpop.f32.mrb[98].mxu0  ;;  %v7162_v9 = vmax.f32 %v6970_v13, 0.0  ;;  %7841 = vmatpush1.bf16.msra.mxu1 %v14355_v34 }
 0x5bc   :  { %v5100_v2 = vmax.f32 %v4334_v11, %v4414_v26  ;;  %v4418_v30 = vadd.f32 %v4417_v4, %v15052_v7  ;;  %v4419_v51 = vpop.f32.mrb[99].mxu0  ;;  %v14310_v4 = vld [vmem:[%s20495_s0 + $0xb40] ss:$8 sps:$4 sm:$0xff]  }
 0x5bd   :  { %v5101_v39 = vmax.f32 %v4336_v36, %v4416_v43  ;;  %v7163_v17 = vmax.f32 %v6971_v48, 0.0  ;;  %v4420_v3 = vadd.f32 %v4419_v51, %v15056_v8 }
 0x5be   :  { %v5102_v53 = vmax.f32 %v4338_v56, %v4418_v30  ;;  %4682 = vmatmul.mubr.bf16.gmra.mrb[204].mxu0 %v14307_v20 }
 0x5bf   :  { %v17858_v45 = vpack.c.bf16 %v7163_v17, %v7162_v9  ;;  %v5103_v28 = vmax.f32 %v4340_v35, %v4420_v3  ;;  %v6501_v54 = vpop.f32.mrb[160].mxu1  ;;  %12352 = vmatprep.mubr.msk.bf16.mxu0 %vm2275_vm0, %v14312_v41  ;;  %v4344_v17 = vadd.f32 %v17721_v50, %v15052_v7  ;;  %v4346_v41 = vadd.f32 %v17723_v46, %v15056_v8  ;;  %v14315_v50 = vld [vmem:[%s20495_s0 + $0xb54] ss:$8 sps:$4 sm:$0xff]  }
 0x5c0   :  { %v6503_v13 = vpop.f32.mrb[161].mxu1  ;;  %v5340_v11 = vpack.c.bf16 %v5102_v53, %v5100_v2  ;;  %v4348_v35 = vadd.f32 %v17728_v0, %v15052_v7  ;;  %v4350_v2 = vadd.f32 %v17733_v21, %v15056_v8 }
 0x5c1   :  { %v6972_v26 = vmax.f32 %v6501_v54, %v6503_v13  ;;  %v4423_v51 = vpop.f32.mrb[100].mxu0  ;;  %v6505_v36 = vpop.f32.mrb[162].mxu1  ;;  %v5341_v20 = vpack.c.bf16 %v5103_v28, %v5101_v39 }
 0x5c2   :  { %v4424_v9 = vadd.f32 %v4423_v51, %v15052_v7  ;;  %v4425_v43 = vpop.f32.mrb[101].mxu0  ;;  %v6507_v48 = vpop.f32.mrb[163].mxu1 }
 0x5c3   :  { %v4426_v54 = vadd.f32 %v4425_v43, %v15056_v8  ;;  %v6973_v56 = vmax.f32 %v6505_v36, %v6507_v48  ;;  %v4427_v28 = vpop.f32.mrb[102].mxu0  ;;  %12466 = vmatprep.mubr.msk.bf16.mxu1 %vm5568_vm2, %v5341_v20  ;;  %v7164_v3 = vmax.f32 %v6972_v26, 0.0 }
 0x5c4   :  { %v5104_v30 = vmax.f32 %v4344_v17, %v4424_v9  ;;  %v4428_v39 = vadd.f32 %v4427_v28, %v15052_v7  ;;  %v4429_v46 = vpop.f32.mrb[103].mxu0  ;;  %6610 = vmatmul.mubr.bf16.gmra.mrb[204].mxu1 %v5340_v11  ;;  %v4354_v11 = vadd.f32 %v17736_v19, %v15052_v7  ;;  %v14321_v19 = vld [vmem:[%s20495_s0 + $0xb64] ss:$8 sps:$4 sm:$0xff]  }
 0x5c5   :  { %v5105_v53 = vmax.f32 %v4346_v41, %v4426_v54  ;;  %v7165_v34 = vmax.f32 %v6973_v56, 0.0  ;;  %v4430_v63 = vadd.f32 %v4429_v46, %v15056_v8  ;;  %v4356_v56 = vadd.f32 %v17738_v10, %v15056_v8 }
 0x5c6   :  { %v5106_v13 = vmax.f32 %v4348_v35, %v4428_v39  ;;  %4692 = vmatmul.mubr.bf16.gmra.mrb[208].mxu0 %v14310_v4  ;;  %v14313_v4 = vld [vmem:[%s20495_s0 + $0xb50] ss:$8 sps:$4 sm:$0xff]  }
 0x5c7   :  { %v17886_v51 = vpack.c.bf16 %v7165_v34, %v7164_v3  ;;  %v5107_v36 = vmax.f32 %v4350_v2, %v4430_v63  ;;  %v6511_v20 = vpop.f32.mrb[164].mxu1  ;;  %12353 = vmatprep.mubr.msk.bf16.mxu0 %vm2275_vm0, %v14315_v50  ;;  %v4358_v2 = vadd.f32 %v17743_v44, %v15052_v7 }
 0x5c8   :  { %v6513_v0 = vpop.f32.mrb[165].mxu1  ;;  %v5342_v21 = vpack.c.bf16 %v5106_v13, %v5104_v30  ;;  %v4360_v30 = vadd.f32 %v17748_v38, %v15056_v8 }
 0x5c9   :  { %v6974_v17 = vmax.f32 %v6511_v20, %v6513_v0  ;;  %v4433_v9 = vpop.f32.mrb[104].mxu0  ;;  %v6515_v43 = vpop.f32.mrb[166].mxu1  ;;  %v5343_v48 = vpack.c.bf16 %v5107_v36, %v5105_v53 }
 0x5ca   :  { %v4434_v26 = vadd.f32 %v4433_v9, %v15052_v7  ;;  %v4435_v41 = vpop.f32.mrb[105].mxu0  ;;  %v6517_v54 = vpop.f32.mrb[167].mxu1 }
 0x5cb   :  { %v4436_v28 = vadd.f32 %v4435_v41, %v15056_v8  ;;  %v6975_v50 = vmax.f32 %v6515_v43, %v6517_v54  ;;  %v4437_v35 = vpop.f32.mrb[106].mxu0  ;;  %12467 = vmatprep.mubr.msk.bf16.mxu1 %vm5568_vm2, %v5343_v48  ;;  %v7166_v3 = vmax.f32 %v6974_v17, 0.0  ;;  %v14319_v54 = vld [vmem:[%s20495_s0 + $0xb60] ss:$8 sps:$4 sm:$0xff]  }
 0x5cc   :  { %v5108_v39 = vmax.f32 %v4354_v11, %v4434_v26  ;;  %v4438_v46 = vadd.f32 %v4437_v35, %v15052_v7  ;;  %v4439_v10 = vpop.f32.mrb[107].mxu0  ;;  %6620 = vmatmul.mubr.bf16.gmra.mrb[208].mxu1 %v5342_v21  ;;  %v4364_v21 = vadd.f32 %v17751_v6, %v15052_v7  ;;  %v14324_v6 = vld [vmem:[%s20495_s0 + $0xb74] ss:$8 sps:$4 sm:$0xff]   ;;  %v4368_v35 = vadd.f32 %v17758_v58, %v15052_v7 }
 0x5cd   :  { %v5109_v53 = vmax.f32 %v4356_v56, %v4436_v28  ;;  %v7167_v34 = vmax.f32 %v6975_v50, 0.0  ;;  %v4440_v63 = vadd.f32 %v4439_v10, %v15056_v8 }
 0x5ce   :  { %v5110_v13 = vmax.f32 %v4358_v2, %v4438_v46  ;;  %4702 = vmatmul.mubr.bf16.gmra.mrb[212].mxu0 %v14313_v4  ;;  %v4366_v4 = vadd.f32 %v17753_v49, %v15056_v8 }
 0x5cf   :  { %v17908_v36 = vpack.c.bf16 %v7167_v34, %v7166_v3  ;;  %v5111_v20 = vmax.f32 %v4360_v30, %v4440_v63  ;;  %v6521_v0 = vpop.f32.mrb[168].mxu1  ;;  %12354 = vmatprep.mubr.msk.bf16.mxu0 %vm2275_vm0, %v14321_v19  ;;  %v4370_v19 = vadd.f32 %v17763_v32, %v15056_v8 }
 0x5d0   :  { %v6523_v44 = vpop.f32.mrb[169].mxu1  ;;  %v5344_v38 = vpack.c.bf16 %v5110_v13, %v5108_v39 }
 0x5d1   :  { %v6976_v9 = vmax.f32 %v6521_v0, %v6523_v44  ;;  %v4443_v43 = vpop.f32.mrb[108].mxu0  ;;  %v6525_v48 = vpop.f32.mrb[170].mxu1  ;;  %v5345_v11 = vpack.c.bf16 %v5111_v20, %v5109_v53  ;;  %v4374_v20 = vadd.f32 %v17766_v60, %v15052_v7  ;;  %v4378_v60 = vadd.f32 %v17776_v15, %v15052_v7 }
 0x5d2   :  { %v4444_v17 = vadd.f32 %v4443_v43, %v15052_v7  ;;  %v4445_v26 = vpop.f32.mrb[109].mxu0  ;;  %v6527_v41 = vpop.f32.mrb[171].mxu1  ;;  %v4384_v15 = vadd.f32 %v17789_v29, %v15052_v7  ;;  %v4388_v29 = vadd.f32 %v17796_v61, %v15052_v7  ;;  %v14358_v61 = vld [vmem:[%s20498_s4 + $0xa0] ss:$8 sps:$4 sm:$0xff]  }
 0x5d3   :  { %v4446_v56 = vadd.f32 %v4445_v26, %v15056_v8  ;;  %v6977_v28 = vmax.f32 %v6525_v48, %v6527_v41  ;;  %v4447_v50 = vpop.f32.mrb[110].mxu0  ;;  %12468 = vmatprep.mubr.msk.bf16.mxu1 %vm5568_vm2, %v5345_v11  ;;  %v7168_v39 = vmax.f32 %v6976_v9, 0.0  ;;  %v4376_v9 = vadd.f32 %v17768_v5, %v15056_v8  ;;  %v14327_v11 = vld [vmem:[%s20495_s0 + $0xb84] ss:$8 sps:$4 sm:$0xff]  }
 0x5d4   :  { %v5112_v2 = vmax.f32 %v4364_v21, %v4444_v17  ;;  %v4448_v30 = vadd.f32 %v4447_v50, %v15052_v7  ;;  %v4449_v49 = vpop.f32.mrb[111].mxu0  ;;  %6630 = vmatmul.mubr.bf16.gmra.mrb[212].mxu1 %v5344_v38  ;;  %v14322_v38 = vld [vmem:[%s20495_s0 + $0xb70] ss:$8 sps:$4 sm:$0xff]   ;;  %v4380_v5 = vadd.f32 %v17784_v37, %v15056_v8  ;;  %v14325_v37 = vld [vmem:[%s20495_s0 + $0xb80] ss:$8 sps:$4 sm:$0xff]  }
 0x5d5   :  { %v5113_v46 = vmax.f32 %v4366_v4, %v4446_v56  ;;  %v7169_v10 = vmax.f32 %v6977_v28, 0.0  ;;  %v4450_v3 = vadd.f32 %v4449_v49, %v15056_v8 }
 0x5d6   :  { %v5114_v53 = vmax.f32 %v4368_v35, %v4448_v30  ;;  %4712 = vmatmul.mubr.bf16.gmra.mrb[216].mxu0 %v14319_v54 }
 0x5d7   :  { %v17930_v34 = vpack.c.bf16 %v7169_v10, %v7168_v39  ;;  %v5115_v63 = vmax.f32 %v4370_v19, %v4450_v3  ;;  %12355 = vmatprep.mubr.msk.bf16.mxu0 %vm2275_vm0, %v14324_v6  ;;  %v14330_v39 = vld [vmem:[%s20495_s0 + $0xb94] ss:$8 sps:$4 sm:$0xff]  }
 0x5d8   :  { %v5346_v58 = vpack.c.bf16 %v5114_v53, %v5112_v2  ;;  %v4386_v2 = vadd.f32 %v17791_v31, %v15056_v8  ;;  %v4390_v31 = vadd.f32 %v17801_v52, %v15056_v8  ;;  %v4394_v52 = vadd.f32 %v17806_v12, %v15052_v7  ;;  %v14336_v12 = vld [vmem:[%s20495_s0 + $0xba4] ss:$8 sps:$4 sm:$0xff]  }
 0x5d9   :  { %v4453_v13 = vpop.f32.mrb[112].mxu0  ;;  %v5347_v32 = vpack.c.bf16 %v5115_v63, %v5113_v46 }
 0x5da   :  { %v4454_v0 = vadd.f32 %v4453_v13, %v15052_v7  ;;  %v4455_v44 = vpop.f32.mrb[113].mxu0 }
 0x5db   :  { %v4456_v43 = vadd.f32 %v4455_v44, %v15056_v8  ;;  %v4457_v48 = vpop.f32.mrb[114].mxu0  ;;  %12469 = vmatprep.mubr.msk.bf16.mxu1 %vm5568_vm2, %v5347_v32 }
 0x5dc   :  { %v5116_v21 = vmax.f32 %v4374_v20, %v4454_v0  ;;  %v4458_v17 = vadd.f32 %v4457_v48, %v15052_v7  ;;  %v4459_v26 = vpop.f32.mrb[115].mxu0  ;;  %6640 = vmatmul.mubr.bf16.gmra.mrb[216].mxu1 %v5346_v58  ;;  %v14360_v20 = vld [vmem:[%s20498_s4 + $0xa4] ss:$8 sps:$4 sm:$0xff]   ;;  %v4396_v48 = vadd.f32 %v17808_v47, %v15056_v8  ;;  %v4400_v47 = vadd.f32 %v17818_v57, %v15056_v8  ;;  %v14334_v57 = vld [vmem:[%s20495_s0 + $0xba0] ss:$8 sps:$4 sm:$0xff]  }
 0x5dd   :  { %v5117_v41 = vmax.f32 %v4376_v9, %v4456_v43  ;;  %v4460_v54 = vadd.f32 %v4459_v26, %v15056_v8  ;;  %v14328_v43 = vld [vmem:[%s20495_s0 + $0xb90] ss:$8 sps:$4 sm:$0xff]   ;;  %7842 = vmatprep.subr.bf16.mxu1 %v14360_v20 }
 0x5de   :  { %v5118_v4 = vmax.f32 %v4378_v60, %v4458_v17  ;;  %4722 = vmatmul.mubr.bf16.gmra.mrb[220].mxu0 %v14322_v38  ;;  %7843 = vmatpush1.bf16.msra.mxu1 %v14358_v61 }
 0x5df   :  { %v5119_v56 = vmax.f32 %v4380_v5, %v4460_v54  ;;  %12356 = vmatprep.mubr.msk.bf16.mxu0 %vm2275_vm0, %v14327_v11 }
 0x5e0   :  { %v5348_v28 = vpack.c.bf16 %v5118_v4, %v5116_v21  ;;  %v4398_v21 = vadd.f32 %v17813_v14, %v15052_v7  ;;  %v4404_v14 = vadd.f32 %v17823_v1, %v15052_v7  ;;  %v4408_v1 = vadd.f32 %v17830_v25, %v15052_v7 }
 0x5e1   :  { %v4463_v50 = vpop.f32.mrb[116].mxu0  ;;  %v5349_v6 = vpack.c.bf16 %v5119_v56, %v5117_v41 }
 0x5e2   :  { %v4464_v35 = vadd.f32 %v4463_v50, %v15052_v7  ;;  %v4465_v19 = vpop.f32.mrb[117].mxu0 }
 0x5e3   :  { %v4466_v30 = vadd.f32 %v4465_v19, %v15056_v8  ;;  %v4467_v49 = vpop.f32.mrb[118].mxu0  ;;  %12470 = vmatprep.mubr.msk.bf16.mxu1 %vm5568_vm2, %v5349_v6  ;;  %v4406_v19 = vadd.f32 %v17825_v62, %v15056_v8  ;;  %v4410_v62 = vadd.f32 %v17835_v42, %v15056_v8  ;;  %v14342_v42 = vld [vmem:[%s20495_s0 + $0xbc4] ss:$8 sps:$4 sm:$0xff]  }
 0x5e4   :  { %v5120_v46 = vmax.f32 %v4384_v15, %v4464_v35  ;;  %v4468_v10 = vadd.f32 %v4467_v49, %v15052_v7  ;;  %v4469_v3 = vpop.f32.mrb[119].mxu0  ;;  %6650 = vmatmul.mubr.bf16.gmra.mrb[220].mxu1 %v5348_v28 }
 0x5e5   :  { %v5121_v53 = vmax.f32 %v4386_v2, %v4466_v30  ;;  %v4470_v63 = vadd.f32 %v4469_v3, %v15056_v8  ;;  %v14339_v30 = vld [vmem:[%s20495_s0 + $0xbb4] ss:$8 sps:$4 sm:$0xff]  }
 0x5e6   :  { %v5122_v58 = vmax.f32 %v4388_v29, %v4468_v10  ;;  %4732 = vmatmul.mubr.bf16.gmra.mrb[224].mxu0 %v14325_v37 }
 0x5e7   :  { %v5123_v13 = vmax.f32 %v4390_v31, %v4470_v63  ;;  %12357 = vmatprep.mubr.msk.bf16.mxu0 %vm2275_vm0, %v14330_v39 }
 0x5e8   :  { %v5350_v32 = vpack.c.bf16 %v5122_v58, %v5120_v46 }
 0x5e9   :  { %v4473_v0 = vpop.f32.mrb[120].mxu0  ;;  %v5351_v44 = vpack.c.bf16 %v5123_v13, %v5121_v53  ;;  %v14337_v13 = vld [vmem:[%s20495_s0 + $0xbb0] ss:$8 sps:$4 sm:$0xff]  }
 0x5ea   :  { %v4474_v38 = vadd.f32 %v4473_v0, %v15052_v7  ;;  %v4475_v9 = vpop.f32.mrb[121].mxu0 }
 0x5eb   :  { %v4476_v11 = vadd.f32 %v4475_v9, %v15056_v8  ;;  %v4477_v60 = vpop.f32.mrb[122].mxu0  ;;  %12471 = vmatprep.mubr.msk.bf16.mxu1 %vm5568_vm2, %v5351_v44  ;;  %v14340_v44 = vld [vmem:[%s20495_s0 + $0xbc0] ss:$8 sps:$4 sm:$0xff]  }
 0x5ec   :  { %v5124_v17 = vmax.f32 %v4394_v52, %v4474_v38  ;;  %v4478_v26 = vadd.f32 %v4477_v60, %v15052_v7  ;;  %v4479_v5 = vpop.f32.mrb[123].mxu0  ;;  %6660 = vmatmul.mubr.bf16.gmra.mrb[224].mxu1 %v5350_v32  ;;  %v14345_v38 = vld [vmem:[%s20495_s0 + $0xbd4] ss:$8 sps:$4 sm:$0xff]   ;;  %v14361_v60 = vld [vmem:[%s20498_s4 + $0xb0] ss:$8 sps:$4 sm:$0xff]  }
 0x5ed   :  { %v5125_v41 = vmax.f32 %v4396_v48, %v4476_v11  ;;  %v4480_v54 = vadd.f32 %v4479_v5, %v15056_v8  ;;  %v14343_v48 = vld [vmem:[%s20495_s0 + $0xbd0] ss:$8 sps:$4 sm:$0xff]  }
 0x5ee   :  { %v5126_v4 = vmax.f32 %v4398_v21, %v4478_v26  ;;  %4742 = vmatmul.mubr.bf16.gmra.mrb[228].mxu0 %v14328_v43 }
 0x5ef   :  { %v5127_v56 = vmax.f32 %v4400_v47, %v4480_v54  ;;  %12358 = vmatprep.mubr.msk.bf16.mxu0 %vm2275_vm0, %v14336_v12  ;;  %v14363_v12 = vld [vmem:[%s20498_s4 + $0xb4] ss:$8 sps:$4 sm:$0xff]  }
 0x5f0   :  { %v5352_v28 = vpack.c.bf16 %v5126_v4, %v5124_v17  ;;  %v14348_v17 = vld [vmem:[%s20495_s0 + $0xbe4] ss:$8 sps:$4 sm:$0xff]   ;;  %7844 = vmatprep.subr.bf16.mxu1 %v14363_v12  ;;  %v14354_v4 = vld [vmem:[%s20495_s0 + $0xbf4] ss:$8 sps:$4 sm:$0xff]  }
 0x5f1   :  { %v4483_v50 = vpop.f32.mrb[124].mxu0  ;;  %v5353_v6 = vpack.c.bf16 %v5127_v56, %v5125_v41  ;;  %7845 = vmatpush1.bf16.msra.mxu1 %v14361_v60  ;;  %v14346_v41 = vld [vmem:[%s20495_s0 + $0xbe0] ss:$8 sps:$4 sm:$0xff]  }
 0x5f2   :  { %v4484_v15 = vadd.f32 %v4483_v50, %v15052_v7  ;;  %v4485_v35 = vpop.f32.mrb[125].mxu0 }
 0x5f3   :  { %v4486_v37 = vadd.f32 %v4485_v35, %v15056_v8  ;;  %v4487_v2 = vpop.f32.mrb[126].mxu0  ;;  %12472 = vmatprep.mubr.msk.bf16.mxu1 %vm5568_vm2, %v5353_v6 }
 0x5f4   :  { %v5128_v49 = vmax.f32 %v4404_v14, %v4484_v15  ;;  %v4488_v39 = vadd.f32 %v4487_v2, %v15052_v7  ;;  %v4489_v29 = vpop.f32.mrb[127].mxu0  ;;  %6670 = vmatmul.mubr.bf16.gmra.mrb[228].mxu1 %v5352_v28 }
 0x5f5   :  { %v5129_v46 = vmax.f32 %v4406_v19, %v4486_v37  ;;  %v4490_v10 = vadd.f32 %v4489_v29, %v15056_v8  ;;  %v14352_v19 = vld [vmem:[%s20495_s0 + $0xbf0] ss:$8 sps:$4 sm:$0xff]  }
 0x5f6   :  { %v5130_v3 = vmax.f32 %v4408_v1, %v4488_v39  ;;  %4752 = vmatmul.mubr.bf16.gmra.mrb[232].mxu0 %v14334_v57 }
 0x5f7   :  { %v5131_v31 = vmax.f32 %v4410_v62, %v4490_v10  ;;  %12359 = vmatprep.mubr.msk.bf16.mxu0 %vm2275_vm0, %v14339_v30 }
 0x5f8   :  { %v5354_v53 = vpack.c.bf16 %v5130_v3, %v5128_v49 }
 0x5f9   :  { %v18019_v63 = vpop.f32.mrb[128].mxu0  ;;  %v5355_v25 = vpack.c.bf16 %v5131_v31, %v5129_v46 }
 0x5fa   :  { %v18021_v58 = vpop.f32.mrb[129].mxu0 }
 0x5fb   :  { %v18026_v32 = vpop.f32.mrb[130].mxu0  ;;  %12473 = vmatprep.mubr.msk.bf16.mxu1 %vm5568_vm2, %v5355_v25 }
 0x5fc   :  { %v18032_v61 = vpop.f32.mrb[131].mxu0  ;;  %6680 = vmatmul.mubr.bf16.gmra.mrb[232].mxu1 %v5354_v53 }
 0x5fe   :  { %4762 = vmatmul.mubr.bf16.gmra.mrb[236].mxu0 %v14337_v13 }
 0x5ff   :  { %12360 = vmatprep.mubr.msk.bf16.mxu0 %vm2275_vm0, %v14342_v42 }
 0x601   :  { %v18035_v20 = vpop.f32.mrb[132].mxu0 }
 0x602   :  { %v18037_v0 = vpop.f32.mrb[133].mxu0 }
 0x603   :  { %v18042_v52 = vpop.f32.mrb[134].mxu0 }
 0x604   :  { %v18047_v9 = vpop.f32.mrb[135].mxu0 }
 0x606   :  { %4772 = vmatmul.mubr.bf16.gmra.mrb[240].mxu0 %v14340_v44 }
 0x607   :  { %12361 = vmatprep.mubr.msk.bf16.mxu0 %vm2275_vm0, %v14345_v38 }
 0x609   :  { %v18050_v43 = vpop.f32.mrb[136].mxu0 }
 0x60a   :  { %v18055_v11 = vpop.f32.mrb[137].mxu0 }
 0x60b   :  { %v18063_v21 = vpop.f32.mrb[138].mxu0 }
 0x60c   :  { %v18068_v26 = vpop.f32.mrb[139].mxu0 }
 0x60e   :  { %4782 = vmatmul.mubr.bf16.gmra.mrb[244].mxu0 %v14343_v48 }
 0x60f   :  { %12362 = vmatprep.mubr.msk.bf16.mxu0 %vm2275_vm0, %v14348_v17 }
 0x611   :  { %v18071_v5 = vpop.f32.mrb[140].mxu0 }
 0x612   :  { %v18073_v47 = vpop.f32.mrb[141].mxu0 }
 0x613   :  { %v18078_v54 = vpop.f32.mrb[142].mxu0 }
 0x614   :  { %v18083_v56 = vpop.f32.mrb[143].mxu0 }
 0x616   :  { %4792 = vmatmul.mubr.bf16.gmra.mrb[248].mxu0 %v14346_v41 }
 0x617   :  { %v6531_v28 = vpop.f32.mrb[172].mxu1  ;;  %12363 = vmatprep.mubr.msk.bf16.mxu0 %vm2275_vm0, %v14354_v4 }
 0x618   :  { %v6533_v50 = vpop.f32.mrb[173].mxu1 }
 0x619   :  { %v6978_v6 = vmax.f32 %v6531_v28, %v6533_v50  ;;  %v18086_v14 = vpop.f32.mrb[144].mxu0  ;;  %v6535_v15 = vpop.f32.mrb[174].mxu1 }
 0x61a   :  { %v18088_v35 = vpop.f32.mrb[145].mxu0  ;;  %v6537_v57 = vpop.f32.mrb[175].mxu1 }
 0x61b   :  { %v6979_v37 = vmax.f32 %v6535_v15, %v6537_v57  ;;  %v18093_v2 = vpop.f32.mrb[146].mxu0  ;;  %v7170_v1 = vmax.f32 %v6978_v6, 0.0 }
 0x61c   :  { %v18095_v30 = vpop.f32.mrb[147].mxu0 }
 0x61d   :  { %v7171_v49 = vmax.f32 %v6979_v37, 0.0 }
 0x61e   :  { %4802 = vmatmul.mubr.bf16.gmra.mrb[252].mxu0 %v14352_v19  ;;  %v14366_v19 = vld [vmem:[%s20498_s4 + $0xc4] ss:$8 sps:$4 sm:$0xff]  }
 0x61f   :  { %12394 = vmatprep.mubr.msk.bf16.mxu0 %vm5568_vm2, %v15086_v23  ;;  %v6541_v39 = vpop.f32.mrb[176].mxu1  ;;  %v18099_v29 = vpack.c.bf16 %v7171_v49, %v7170_v1  ;;  %7846 = vmatprep.subr.bf16.mxu1 %v14366_v19 }
 0x620   :  { %v6543_v62 = vpop.f32.mrb[177].mxu1 }
 0x621   :  { %v6980_v46 = vmax.f32 %v6541_v39, %v6543_v62  ;;  %v18101_v10 = vpop.f32.mrb[148].mxu0  ;;  %v6545_v3 = vpop.f32.mrb[178].mxu1 }
 0x622   :  { %v18103_v31 = vpop.f32.mrb[149].mxu0  ;;  %v6547_v53 = vpop.f32.mrb[179].mxu1 }
 0x623   :  { %v6981_v25 = vmax.f32 %v6545_v3, %v6547_v53  ;;  %v18105_v13 = vpop.f32.mrb[150].mxu0  ;;  %v7172_v44 = vmax.f32 %v6980_v46, 0.0 }
 0x624   :  { %v18107_v42 = vpop.f32.mrb[151].mxu0 }
 0x625   :  { %v7173_v38 = vmax.f32 %v6981_v25, 0.0 }
 0x626   :  { %5890 = vmatmul.mubr.bf16.vlgmr.msra.gmra.mrb[0].mxu0 %v15078_v40 }
 0x627   :  { %12395 = vmatprep.mubr.msk.bf16.mxu0 %vm5568_vm2, %v15109_v18  ;;  %v6551_v23 = vpop.f32.mrb[180].mxu1  ;;  %v18112_v48 = vpack.c.bf16 %v7173_v38, %v7172_v44  ;;  %v14364_v18 = vld [vmem:[%s20498_s4 + $0xc0] ss:$8 sps:$4 sm:$0xff]  }
 0x628   :  { %v6553_v60 = vpop.f32.mrb[181].mxu1  ;;  %7847 = vmatpush1.bf16.msra.mxu1 %v14364_v18 }
 0x629   :  { %v6982_v12 = vmax.f32 %v6551_v23, %v6553_v60  ;;  %v18114_v17 = vpop.f32.mrb[152].mxu0  ;;  %v6555_v41 = vpop.f32.mrb[182].mxu1 }
 0x62a   :  { %v18116_v4 = vpop.f32.mrb[153].mxu0  ;;  %v6557_v28 = vpop.f32.mrb[183].mxu1 }
 0x62b   :  { %v6983_v50 = vmax.f32 %v6555_v41, %v6557_v28  ;;  %v18118_v6 = vpop.f32.mrb[154].mxu0  ;;  %v7174_v40 = vmax.f32 %v6982_v12, 0.0 }
 0x62c   :  { %v18120_v15 = vpop.f32.mrb[155].mxu0 }
 0x62d   :  { %v7175_v57 = vmax.f32 %v6983_v50, 0.0 }
 0x62e   :  { %5900 = vmatmul.mubr.bf16.gmra.mrb[4].mxu0 %v15107_v16 }
 0x62f   :  { %12396 = vmatprep.mubr.msk.bf16.mxu0 %vm5568_vm2, %v15132_v59  ;;  %v6561_v37 = vpop.f32.mrb[184].mxu1  ;;  %v18131_v1 = vpack.c.bf16 %v7175_v57, %v7174_v40  ;;  %v4494_v40 = vadd.f32 %v18019_v63, %v15052_v7 }
 0x630   :  { %v6563_v49 = vpop.f32.mrb[185].mxu1 }
 0x631   :  { %v6984_v39 = vmax.f32 %v6561_v37, %v6563_v49  ;;  %v18133_v62 = vpop.f32.mrb[156].mxu0  ;;  %v6565_v16 = vpop.f32.mrb[186].mxu1 }
 0x632   :  { %v18135_v46 = vpop.f32.mrb[157].mxu0  ;;  %v6567_v3 = vpop.f32.mrb[187].mxu1 }
 0x633   :  { %v6985_v53 = vmax.f32 %v6565_v16, %v6567_v3  ;;  %v18137_v25 = vpop.f32.mrb[158].mxu0  ;;  %v7176_v38 = vmax.f32 %v6984_v39, 0.0  ;;  %v4498_v39 = vadd.f32 %v18026_v32, %v15052_v7  ;;  %v4500_v16 = vadd.f32 %v18032_v61, %v15056_v8 }
 0x634   :  { %v18139_v44 = vpop.f32.mrb[159].mxu0 }
 0x635   :  { %v7177_v59 = vmax.f32 %v6985_v53, 0.0 }
 0x636   :  { %5910 = vmatmul.mubr.bf16.gmra.mrb[8].mxu0 %v15130_v55  ;;  %v4496_v55 = vadd.f32 %v18021_v58, %v15056_v8 }
 0x637   :  { %12397 = vmatprep.mubr.msk.bf16.mxu0 %vm5568_vm2, %v15155_v22  ;;  %v6571_v23 = vpop.f32.mrb[188].mxu1  ;;  %v18144_v60 = vpack.c.bf16 %v7177_v59, %v7176_v38 }
 0x638   :  { %v6573_v12 = vpop.f32.mrb[189].mxu1 }
 0x639   :  { %v6986_v41 = vmax.f32 %v6571_v23, %v6573_v12  ;;  %v4573_v28 = vpop.f32.mrb[160].mxu0  ;;  %v6575_v50 = vpop.f32.mrb[190].mxu1 }
 0x63a   :  { %v4574_v57 = vadd.f32 %v4573_v28, %v15052_v7  ;;  %v4575_v18 = vpop.f32.mrb[161].mxu0  ;;  %v6577_v19 = vpop.f32.mrb[191].mxu1 }
 0x63b   :  { %v4576_v37 = vadd.f32 %v4575_v18, %v15056_v8  ;;  %v6987_v22 = vmax.f32 %v6575_v50, %v6577_v19  ;;  %v4577_v49 = vpop.f32.mrb[162].mxu0  ;;  %v7178_v38 = vmax.f32 %v6986_v41, 0.0 }
 0x63c   :  { %v5132_v3 = vmax.f32 %v4494_v40, %v4574_v57  ;;  %v4578_v63 = vadd.f32 %v4577_v49, %v15052_v7  ;;  %v4579_v53 = vpop.f32.mrb[163].mxu0  ;;  %v4506_v49 = vadd.f32 %v18037_v0, %v15056_v8 }
 0x63d   :  { %v5133_v59 = vmax.f32 %v4496_v55, %v4576_v37  ;;  %v7179_v23 = vmax.f32 %v6987_v22, 0.0  ;;  %v4580_v12 = vadd.f32 %v4579_v53, %v15056_v8  ;;  %v4504_v55 = vadd.f32 %v18035_v20, %v15052_v7 }
 0x63e   :  { %v5134_v58 = vmax.f32 %v4498_v39, %v4578_v63  ;;  %5920 = vmatmul.mubr.bf16.gmra.mrb[12].mxu0 %v15153_v27  ;;  %v4510_v63 = vadd.f32 %v18047_v9, %v15056_v8 }
 0x63f   :  { %v5135_v28 = vmax.f32 %v4500_v16, %v4580_v12  ;;  %12398 = vmatprep.mubr.msk.bf16.mxu0 %vm5568_vm2, %v15178_v33  ;;  %v6581_v32 = vpop.f32.mrb[192].mxu1  ;;  %v18161_v50 = vpack.c.bf16 %v7179_v23, %v7178_v38 }
 0x640   :  { %v6583_v61 = vpop.f32.mrb[193].mxu1  ;;  %v5356_v40 = vpack.c.bf16 %v5134_v58, %v5132_v3  ;;  %v4508_v3 = vadd.f32 %v18042_v52, %v15052_v7 }
 0x641   :  { %v6988_v57 = vmax.f32 %v6581_v32, %v6583_v61  ;;  %v4583_v18 = vpop.f32.mrb[164].mxu0  ;;  %v6585_v19 = vpop.f32.mrb[194].mxu1  ;;  %v5357_v41 = vpack.c.bf16 %v5135_v28, %v5133_v59  ;;  %v20669_v28 = vld [vmem:[#allocation3_spill] sm:$0xff]  ;;  %v20670_v61 = vld [vmem:[#allocation5_spill] sm:$0xff] }
 0x642   :  { %v4584_v37 = vadd.f32 %v4583_v18, %v15052_v7  ;;  %v4585_v22 = vpop.f32.mrb[165].mxu0  ;;  %v6587_v27 = vpop.f32.mrb[195].mxu1 }
 0x643   :  { %v4586_v33 = vadd.f32 %v4585_v22, %v15056_v8  ;;  %v6989_v39 = vmax.f32 %v6585_v19, %v6587_v27  ;;  %v4587_v16 = vpop.f32.mrb[166].mxu0  ;;  %12474 = vmatprep.mubr.msk.bf16.mxu1 %vm5568_vm2, %v5357_v41  ;;  %v7180_v59 = vmax.f32 %v6988_v57, 0.0 }
 0x644   :  { %v5136_v20 = vmax.f32 %v4504_v55, %v4584_v37  ;;  %v4588_v53 = vadd.f32 %v4587_v16, %v15052_v7  ;;  %v4589_v38 = vpop.f32.mrb[167].mxu0  ;;  %6690 = vmatmul.mubr.bf16.gmra.mrb[236].mxu1 %v5356_v40  ;;  %v4514_v37 = vadd.f32 %v18050_v43, %v15052_v7 }
 0x645   :  { %v5137_v23 = vmax.f32 %v4506_v49, %v4586_v33  ;;  %v7181_v0 = vmax.f32 %v6989_v39, 0.0  ;;  %v4590_v12 = vadd.f32 %v4589_v38, %v15056_v8  ;;  %v4516_v33 = vadd.f32 %v18055_v11, %v15056_v8 }
 0x646   :  { %v5138_v58 = vmax.f32 %v4508_v3, %v4588_v53  ;;  %5930 = vmatmul.mubr.bf16.gmra.mrb[16].mxu0 %v20669_v28 }
 0x647   :  { %v5139_v32 = vmax.f32 %v4510_v63, %v4590_v12  ;;  %12399 = vmatprep.mubr.msk.bf16.mxu0 %vm5568_vm2, %v20670_v61  ;;  %v6591_v52 = vpop.f32.mrb[196].mxu1  ;;  %v18179_v18 = vpack.c.bf16 %v7181_v0, %v7180_v59  ;;  %v4518_v63 = vadd.f32 %v18063_v21, %v15052_v7 }
 0x648   :  { %v6593_v9 = vpop.f32.mrb[197].mxu1  ;;  %v5358_v19 = vpack.c.bf16 %v5138_v58, %v5136_v20  ;;  %v4520_v20 = vadd.f32 %v18068_v26, %v15056_v8  ;;  %v20672_v58 = vld [vmem:[#allocation4_spill] sm:$0xff] }
 0x649   :  { %20671 = vst [vmem:[#allocation3_spill] sm:$0xff] %v18179_v18  ;;  %v6990_v41 = vmax.f32 %v6591_v52, %v6593_v9  ;;  %v4593_v55 = vpop.f32.mrb[168].mxu0  ;;  %v6595_v40 = vpop.f32.mrb[198].mxu1  ;;  %v5359_v57 = vpack.c.bf16 %v5139_v32, %v5137_v23  ;;  %v20673_v32 = vld [vmem:[#allocation7_spill] sm:$0xff] }
 0x64a   :  { %v4594_v22 = vadd.f32 %v4593_v55, %v15052_v7  ;;  %v4595_v27 = vpop.f32.mrb[169].mxu0  ;;  %v6597_v49 = vpop.f32.mrb[199].mxu1 }
 0x64b   :  { %v4596_v39 = vadd.f32 %v4595_v27, %v15056_v8  ;;  %v6991_v16 = vmax.f32 %v6595_v40, %v6597_v49  ;;  %v4597_v3 = vpop.f32.mrb[170].mxu0  ;;  %12475 = vmatprep.mubr.msk.bf16.mxu1 %vm5568_vm2, %v5359_v57  ;;  %v7182_v59 = vmax.f32 %v6990_v41, 0.0  ;;  %v4524_v40 = vadd.f32 %v18071_v5, %v15052_v7 }
 0x64c   :  { %v5140_v43 = vmax.f32 %v4514_v37, %v4594_v22  ;;  %v4598_v53 = vadd.f32 %v4597_v3, %v15052_v7  ;;  %v4599_v38 = vpop.f32.mrb[171].mxu0  ;;  %6700 = vmatmul.mubr.bf16.gmra.mrb[240].mxu1 %v5358_v19  ;;  %v4526_v27 = vadd.f32 %v18073_v47, %v15056_v8  ;;  %v4530_v3 = vadd.f32 %v18083_v56, %v15056_v8 }
 0x64d   :  { %v5141_v23 = vmax.f32 %v4516_v33, %v4596_v39  ;;  %v7183_v11 = vmax.f32 %v6991_v16, 0.0  ;;  %v4600_v0 = vadd.f32 %v4599_v38, %v15056_v8  ;;  %v4528_v16 = vadd.f32 %v18078_v54, %v15052_v7 }
 0x64e   :  { %v5142_v12 = vmax.f32 %v4518_v63, %v4598_v53  ;;  %5940 = vmatmul.mubr.bf16.gmra.mrb[20].mxu0 %v20672_v58  ;;  %v14369_v58 = vld [vmem:[%s20498_s4 + $0xd4] ss:$8 sps:$4 sm:$0xff]  }
 0x64f   :  { %v5143_v28 = vmax.f32 %v4520_v20, %v4600_v0  ;;  %12400 = vmatprep.mubr.msk.bf16.mxu0 %vm5568_vm2, %v20673_v32  ;;  %v6601_v21 = vpop.f32.mrb[200].mxu1  ;;  %v18197_v61 = vpack.c.bf16 %v7183_v11, %v7182_v59  ;;  %v20676_v0 = vld [vmem:[#allocation9_spill] sm:$0xff]  ;;  %7848 = vmatprep.subr.bf16.mxu1 %v14369_v58 }
 0x650   :  { %v6603_v26 = vpop.f32.mrb[201].mxu1  ;;  %v5360_v52 = vpack.c.bf16 %v5142_v12, %v5140_v43  ;;  %v14367_v12 = vld [vmem:[%s20498_s4 + $0xd0] ss:$8 sps:$4 sm:$0xff]  }
 0x651   :  { %20674 = vst [vmem:[#allocation5_spill] sm:$0xff] %v18197_v61  ;;  %v6992_v9 = vmax.f32 %v6601_v21, %v6603_v26  ;;  %v4603_v55 = vpop.f32.mrb[172].mxu0  ;;  %v6605_v19 = vpop.f32.mrb[202].mxu1  ;;  %v5361_v41 = vpack.c.bf16 %v5143_v28, %v5141_v23  ;;  %v20675_v23 = vld [vmem:[#allocation6_spill] sm:$0xff]  ;;  %v4534_v21 = vadd.f32 %v18086_v14, %v15052_v7  ;;  %7849 = vmatpush1.bf16.msra.mxu1 %v14367_v12  ;;  %v20681_v58 = vld [vmem:[#allocation13_spill] sm:$0xff]  ;;  %v20706_v61 = vld [vmem:[#allocation32_spill] sm:$0xff] }
 0x652   :  { %v4604_v57 = vadd.f32 %v4603_v55, %v15052_v7  ;;  %v4605_v37 = vpop.f32.mrb[173].mxu0  ;;  %v6607_v22 = vpop.f32.mrb[203].mxu1 }
 0x653   :  { %v4606_v49 = vadd.f32 %v4605_v37, %v15056_v8  ;;  %v6993_v33 = vmax.f32 %v6605_v19, %v6607_v22  ;;  %v4607_v39 = vpop.f32.mrb[174].mxu0  ;;  %12476 = vmatprep.mubr.msk.bf16.mxu1 %vm5568_vm2, %v5361_v41  ;;  %v7184_v43 = vmax.f32 %v6992_v9, 0.0  ;;  %v4536_v9 = vadd.f32 %v18088_v35, %v15056_v8 }
 0x654   :  { %v5144_v5 = vmax.f32 %v4524_v40, %v4604_v57  ;;  %v4608_v63 = vadd.f32 %v4607_v39, %v15052_v7  ;;  %v4609_v20 = vpop.f32.mrb[175].mxu0  ;;  %6710 = vmatmul.mubr.bf16.gmra.mrb[244].mxu1 %v5360_v52  ;;  %v4538_v41 = vadd.f32 %v18093_v2, %v15052_v7  ;;  %v4540_v37 = vadd.f32 %v18095_v30, %v15056_v8  ;;  %v20679_v39 = vld [vmem:[#allocation11_spill] sm:$0xff] }
 0x655   :  { %v5145_v53 = vmax.f32 %v4526_v27, %v4606_v49  ;;  %v7185_v47 = vmax.f32 %v6993_v33, 0.0  ;;  %v4610_v38 = vadd.f32 %v4609_v20, %v15056_v8  ;;  %v20678_v49 = vld [vmem:[#allocation8_spill] sm:$0xff]  ;;  %v4546_v30 = vadd.f32 %v18103_v31, %v15056_v8 }
 0x656   :  { %v5146_v59 = vmax.f32 %v4528_v16, %v4608_v63  ;;  %5950 = vmatmul.mubr.bf16.gmra.mrb[24].mxu0 %v20675_v23 }
 0x657   :  { %v5147_v11 = vmax.f32 %v4530_v3, %v4610_v38  ;;  %12401 = vmatprep.mubr.msk.bf16.mxu0 %vm5568_vm2, %v20676_v0  ;;  %v18215_v54 = vpack.c.bf16 %v7185_v47, %v7184_v43  ;;  %v4548_v47 = vadd.f32 %v18105_v13, %v15052_v7 }
 0x658   :  { %v5362_v56 = vpack.c.bf16 %v5146_v59, %v5144_v5  ;;  %v4544_v5 = vadd.f32 %v18101_v10, %v15052_v7  ;;  %v4550_v10 = vadd.f32 %v18107_v42, %v15056_v8  ;;  %v4556_v42 = vadd.f32 %v18116_v4, %v15056_v8 }
 0x659   :  { %20677 = vst [vmem:[#allocation4_spill] sm:$0xff] %v18215_v54  ;;  %v4613_v28 = vpop.f32.mrb[176].mxu0  ;;  %v5363_v32 = vpack.c.bf16 %v5147_v11, %v5145_v53 }
 0x65a   :  { %v4614_v26 = vadd.f32 %v4613_v28, %v15052_v7  ;;  %v4615_v52 = vpop.f32.mrb[177].mxu0 }
 0x65b   :  { %v4616_v55 = vadd.f32 %v4615_v52, %v15056_v8  ;;  %v4617_v19 = vpop.f32.mrb[178].mxu0  ;;  %12477 = vmatprep.mubr.msk.bf16.mxu1 %vm5568_vm2, %v5363_v32 }
 0x65c   :  { %v5148_v40 = vmax.f32 %v4534_v21, %v4614_v26  ;;  %v4618_v57 = vadd.f32 %v4617_v19, %v15052_v7  ;;  %v4619_v14 = vpop.f32.mrb[179].mxu0  ;;  %6720 = vmatmul.mubr.bf16.gmra.mrb[248].mxu1 %v5362_v56  ;;  %v20680_v56 = vld [vmem:[#allocation10_spill] sm:$0xff]  ;;  %v4554_v21 = vadd.f32 %v18114_v17, %v15052_v7  ;;  %v4558_v19 = vadd.f32 %v18118_v6, %v15052_v7 }
 0x65d   :  { %v5149_v22 = vmax.f32 %v4536_v9, %v4616_v55  ;;  %v4620_v35 = vadd.f32 %v4619_v14, %v15056_v8  ;;  %v4560_v17 = vadd.f32 %v18120_v15, %v15056_v8  ;;  %v4566_v15 = vadd.f32 %v18135_v46, %v15056_v8 }
 0x65e   :  { %v5150_v27 = vmax.f32 %v4538_v41, %v4618_v57  ;;  %5960 = vmatmul.mubr.bf16.gmra.mrb[28].mxu0 %v20678_v49 }
 0x65f   :  { %v5151_v33 = vmax.f32 %v4540_v37, %v4620_v35  ;;  %12402 = vmatprep.mubr.msk.bf16.mxu0 %vm5568_vm2, %v20679_v39  ;;  %v4564_v39 = vadd.f32 %v18133_v62, %v15052_v7  ;;  %v4570_v62 = vadd.f32 %v18139_v44, %v15056_v8  ;;  %v14372_v44 = vld [vmem:[%s20498_s4 + $0xe4] ss:$8 sps:$4 sm:$0xff]  }
 0x660   :  { %v5364_v16 = vpack.c.bf16 %v5150_v27, %v5148_v40  ;;  %v20683_v27 = vld [vmem:[#allocation15_spill] sm:$0xff]  ;;  %7850 = vmatprep.subr.bf16.mxu1 %v14372_v44 }
 0x661   :  { %v4623_v2 = vpop.f32.mrb[180].mxu0  ;;  %v5365_v3 = vpack.c.bf16 %v5151_v33, %v5149_v22  ;;  %v20682_v22 = vld [vmem:[#allocation12_spill] sm:$0xff] }
 0x662   :  { %v4624_v63 = vadd.f32 %v4623_v2, %v15052_v7  ;;  %v4625_v20 = vpop.f32.mrb[181].mxu0 }
 0x663   :  { %v4626_v43 = vadd.f32 %v4625_v20, %v15056_v8  ;;  %v4627_v53 = vpop.f32.mrb[182].mxu0  ;;  %12478 = vmatprep.mubr.msk.bf16.mxu1 %vm5568_vm2, %v5365_v3 }
 0x664   :  { %v5152_v38 = vmax.f32 %v4544_v5, %v4624_v63  ;;  %v4628_v59 = vadd.f32 %v4627_v53, %v15052_v7  ;;  %v4629_v23 = vpop.f32.mrb[183].mxu0  ;;  %6730 = vmatmul.mubr.bf16.gmra.mrb[252].mxu1 %v5364_v16  ;;  %v4568_v63 = vadd.f32 %v18137_v25, %v15052_v7 }
 0x665   :  { %v5153_v11 = vmax.f32 %v4546_v30, %v4626_v43  ;;  %v4630_v0 = vadd.f32 %v4629_v23, %v15056_v8  ;;  %v20685_v23 = vld [vmem:[#allocation17_spill] sm:$0xff] }
 0x666   :  { %v5154_v31 = vmax.f32 %v4548_v47, %v4628_v59  ;;  %5970 = vmatmul.mubr.bf16.gmra.mrb[32].mxu0 %v20680_v56 }
 0x667   :  { %v5155_v12 = vmax.f32 %v4550_v10, %v4630_v0  ;;  %12403 = vmatprep.mubr.msk.bf16.mxu0 %vm5568_vm2, %v20681_v58  ;;  %v14370_v0 = vld [vmem:[%s20498_s4 + $0xe0] ss:$8 sps:$4 sm:$0xff]   ;;  %v20686_v58 = vld [vmem:[#allocation16_spill] sm:$0xff] }
 0x668   :  { %v5366_v28 = vpack.c.bf16 %v5154_v31, %v5152_v38  ;;  %v20684_v38 = vld [vmem:[#allocation14_spill] sm:$0xff]  ;;  %7851 = vmatpush1.bf16.msra.mxu1 %v14370_v0 }
 0x669   :  { %v4633_v13 = vpop.f32.mrb[184].mxu0  ;;  %v5367_v32 = vpack.c.bf16 %v5155_v12, %v5153_v11 }
 0x66a   :  { %v4634_v26 = vadd.f32 %v4633_v13, %v15052_v7  ;;  %v4635_v52 = vpop.f32.mrb[185].mxu0 }
 0x66b   :  { %v4636_v9 = vadd.f32 %v4635_v52, %v15056_v8  ;;  %v4637_v55 = vpop.f32.mrb[186].mxu0  ;;  %12479 = vmatprep.mubr.msk.bf16.mxu1 %vm5568_vm2, %v5367_v32  ;;  %v20688_v52 = vld [vmem:[#allocation18_spill] sm:$0xff] }
 0x66c   :  { %v5156_v41 = vmax.f32 %v4554_v21, %v4634_v26  ;;  %v4638_v40 = vadd.f32 %v4637_v55, %v15052_v7  ;;  %v4639_v57 = vpop.f32.mrb[187].mxu0  ;;  %6740 = vmatmul.mubr.bf16.gmra.mrb[0].mxu1 %v5366_v28  ;;  %v20687_v28 = vld [vmem:[#allocation19_spill] sm:$0xff] }
 0x66d   :  { %v5157_v14 = vmax.f32 %v4556_v42, %v4636_v9  ;;  %v4640_v37 = vadd.f32 %v4639_v57, %v15056_v8  ;;  %v20689_v42 = vld [vmem:[#allocation21_spill] sm:$0xff]  ;;  %v20691_v57 = vld [vmem:[#allocation23_spill] sm:$0xff] }
 0x66e   :  { %v5158_v4 = vmax.f32 %v4558_v19, %v4638_v40  ;;  %5980 = vmatmul.mubr.bf16.gmra.mrb[36].mxu0 %v20682_v22  ;;  %v20690_v40 = vld [vmem:[#allocation20_spill] sm:$0xff]  ;;  %v20692_v22 = vld [vmem:[#allocation22_spill] sm:$0xff] }
 0x66f   :  { %v5159_v35 = vmax.f32 %v4560_v17, %v4640_v37  ;;  %12404 = vmatprep.mubr.msk.bf16.mxu0 %vm5568_vm2, %v20683_v27 }
 0x670   :  { %v5368_v49 = vpack.c.bf16 %v5158_v4, %v5156_v41 }
 0x671   :  { %v4643_v6 = vpop.f32.mrb[188].mxu0  ;;  %v5369_v33 = vpack.c.bf16 %v5159_v35, %v5157_v14  ;;  %v20693_v35 = vld [vmem:[#allocation25_spill] sm:$0xff] }
 0x672   :  { %v4644_v16 = vadd.f32 %v4643_v6, %v15052_v7  ;;  %v4645_v2 = vpop.f32.mrb[189].mxu0 }
 0x673   :  { %v4646_v3 = vadd.f32 %v4645_v2, %v15056_v8  ;;  %v4647_v5 = vpop.f32.mrb[190].mxu0  ;;  %12480 = vmatprep.mubr.msk.bf16.mxu1 %vm5568_vm2, %v5369_v33 }
 0x674   :  { %v5160_v20 = vmax.f32 %v4564_v39, %v4644_v16  ;;  %v4648_v30 = vadd.f32 %v4647_v5, %v15052_v7  ;;  %v4649_v43 = vpop.f32.mrb[191].mxu0  ;;  %6750 = vmatmul.mubr.bf16.gmra.mrb[4].mxu1 %v5368_v49 }
 0x675   :  { %v5161_v53 = vmax.f32 %v4566_v15, %v4646_v3  ;;  %v4650_v47 = vadd.f32 %v4649_v43, %v15056_v8  ;;  %v20695_v43 = vld [vmem:[#allocation27_spill] sm:$0xff] }
 0x676   :  { %v5162_v46 = vmax.f32 %v4568_v63, %v4648_v30  ;;  %5990 = vmatmul.mubr.bf16.gmra.mrb[40].mxu0 %v20684_v38  ;;  %v20694_v30 = vld [vmem:[#allocation24_spill] sm:$0xff] }
 0x677   :  { %v5163_v59 = vmax.f32 %v4570_v62, %v4650_v47  ;;  %12405 = vmatprep.mubr.msk.bf16.mxu0 %vm5568_vm2, %v20685_v23  ;;  %v14375_v23 = vld [vmem:[%s20498_s4 + $0xf4] ss:$8 sps:$4 sm:$0xff]  }
 0x678   :  { %v5370_v10 = vpack.c.bf16 %v5162_v46, %v5160_v20  ;;  %7852 = vmatprep.subr.bf16.mxu1 %v14375_v23 }
 0x679   :  { %v18287_v25 = vpop.f32.mrb[192].mxu0  ;;  %v5371_v11 = vpack.c.bf16 %v5163_v59, %v5161_v53  ;;  %v14373_v59 = vld [vmem:[%s20498_s4 + $0xf0] ss:$8 sps:$4 sm:$0xff]  }
 0x67a   :  { %v18295_v31 = vpop.f32.mrb[193].mxu0  ;;  %7853 = vmatpush1.bf16.msra.mxu1 %v14373_v59 }
 0x67b   :  { %v18297_v56 = vpop.f32.mrb[194].mxu0  ;;  %12481 = vmatprep.mubr.msk.bf16.mxu1 %vm5568_vm2, %v5371_v11 }
 0x67c   :  { %v18300_v12 = vpop.f32.mrb[195].mxu0  ;;  %6760 = vmatmul.mubr.bf16.gmra.mrb[8].mxu1 %v5370_v10 }
 0x67e   :  { %6000 = vmatmul.mubr.bf16.gmra.mrb[44].mxu0 %v20686_v58 }
 0x67f   :  { %12406 = vmatprep.mubr.msk.bf16.mxu0 %vm5568_vm2, %v20687_v28 }
 0x681   :  { %v18305_v13 = vpop.f32.mrb[196].mxu0 }
 0x682   :  { %v18307_v32 = vpop.f32.mrb[197].mxu0 }
 0x683   :  { %v18309_v21 = vpop.f32.mrb[198].mxu0 }
 0x684   :  { %v18311_v26 = vpop.f32.mrb[199].mxu0 }
 0x686   :  { %6010 = vmatmul.mubr.bf16.gmra.mrb[48].mxu0 %v20688_v52 }
 0x687   :  { %12407 = vmatprep.mubr.msk.bf16.mxu0 %vm5568_vm2, %v20689_v42 }
 0x689   :  { %v18316_v9 = vpop.f32.mrb[200].mxu0 }
 0x68a   :  { %v18318_v55 = vpop.f32.mrb[201].mxu0 }
 0x68b   :  { %v18320_v19 = vpop.f32.mrb[202].mxu0 }
 0x68c   :  { %v18322_v41 = vpop.f32.mrb[203].mxu0 }
 0x68e   :  { %6020 = vmatmul.mubr.bf16.gmra.mrb[52].mxu0 %v20690_v40  ;;  %v20697_v40 = vld [vmem:[#allocation26_spill] sm:$0xff] }
 0x68f   :  { %12408 = vmatprep.mubr.msk.bf16.mxu0 %vm5568_vm2, %v20691_v57  ;;  %v20698_v57 = vld [vmem:[#allocation29_spill] sm:$0xff] }
 0x691   :  { %v18327_v17 = vpop.f32.mrb[204].mxu0 }
 0x692   :  { %v18329_v14 = vpop.f32.mrb[205].mxu0 }
 0x693   :  { %v18331_v37 = vpop.f32.mrb[206].mxu0 }
 0x694   :  { %v18333_v4 = vpop.f32.mrb[207].mxu0 }
 0x696   :  { %6030 = vmatmul.mubr.bf16.gmra.mrb[56].mxu0 %v20692_v22 }
 0x697   :  { %12409 = vmatprep.mubr.msk.bf16.mxu0 %vm5568_vm2, %v20693_v35  ;;  %v6611_v27 = vpop.f32.mrb[204].mxu1 }
 0x698   :  { %v6613_v49 = vpop.f32.mrb[205].mxu1 }
 0x699   :  { %v18338_v6 = vpop.f32.mrb[208].mxu0  ;;  %v6615_v33 = vpop.f32.mrb[206].mxu1  ;;  %v6994_v39 = vmax.f32 %v6611_v27, %v6613_v49 }
 0x69a   :  { %v18340_v16 = vpop.f32.mrb[209].mxu0  ;;  %v6617_v2 = vpop.f32.mrb[207].mxu1 }
 0x69b   :  { %v18342_v15 = vpop.f32.mrb[210].mxu0  ;;  %v6995_v3 = vmax.f32 %v6615_v33, %v6617_v2  ;;  %v7186_v63 = vmax.f32 %v6994_v39, 0.0 }
 0x69c   :  { %v18344_v5 = vpop.f32.mrb[211].mxu0 }
 0x69d   :  { %v7187_v20 = vmax.f32 %v6995_v3, 0.0 }
 0x69e   :  { %6040 = vmatmul.mubr.bf16.gmra.mrb[60].mxu0 %v20694_v30 }
 0x69f   :  { %12410 = vmatprep.mubr.msk.bf16.mxu0 %vm5568_vm2, %v20695_v43  ;;  %v6621_v62 = vpop.f32.mrb[208].mxu1  ;;  %v18349_v53 = vpack.c.bf16 %v7187_v20, %v7186_v63 }
 0x6a0   :  { %v6623_v47 = vpop.f32.mrb[209].mxu1 }
 0x6a1   :  { %20696 = vst [vmem:[#allocation7_spill] sm:$0xff] %v18349_v53  ;;  %v18351_v46 = vpop.f32.mrb[212].mxu0  ;;  %v6625_v38 = vpop.f32.mrb[210].mxu1  ;;  %v6996_v10 = vmax.f32 %v6621_v62, %v6623_v47  ;;  %v20700_v47 = vld [vmem:[#allocation28_spill] sm:$0xff] }
 0x6a2   :  { %v18359_v11 = vpop.f32.mrb[213].mxu0  ;;  %v6627_v0 = vpop.f32.mrb[211].mxu1 }
 0x6a3   :  { %v18361_v44 = vpop.f32.mrb[214].mxu0  ;;  %v6997_v58 = vmax.f32 %v6625_v38, %v6627_v0  ;;  %v7188_v52 = vmax.f32 %v6996_v10, 0.0  ;;  %v20701_v38 = vld [vmem:[#allocation31_spill] sm:$0xff] }
 0x6a4   :  { %v18363_v28 = vpop.f32.mrb[215].mxu0 }
 0x6a5   :  { %v7189_v42 = vmax.f32 %v6997_v58, 0.0 }
 0x6a6   :  { %6050 = vmatmul.mubr.bf16.gmra.mrb[64].mxu0 %v20697_v40 }
 0x6a7   :  { %12411 = vmatprep.mubr.msk.bf16.mxu0 %vm5568_vm2, %v20698_v57  ;;  %v6631_v22 = vpop.f32.mrb[212].mxu1  ;;  %v18368_v35 = vpack.c.bf16 %v7189_v42, %v7188_v52 }
 0x6a8   :  { %v6633_v27 = vpop.f32.mrb[213].mxu1 }
 0x6a9   :  { %20699 = vst [vmem:[#allocation6_spill] sm:$0xff] %v18368_v35  ;;  %v18370_v49 = vpop.f32.mrb[216].mxu0  ;;  %v6635_v33 = vpop.f32.mrb[214].mxu1  ;;  %v6998_v39 = vmax.f32 %v6631_v22, %v6633_v27 }
 0x6aa   :  { %v18372_v2 = vpop.f32.mrb[217].mxu0  ;;  %v6637_v3 = vpop.f32.mrb[215].mxu1 }
 0x6ab   :  { %v18374_v63 = vpop.f32.mrb[218].mxu0  ;;  %v6999_v20 = vmax.f32 %v6635_v33, %v6637_v3  ;;  %v7190_v43 = vmax.f32 %v6998_v39, 0.0  ;;  %v20703_v3 = vld [vmem:[#allocation30_spill] sm:$0xff] }
 0x6ac   :  { %v18376_v30 = vpop.f32.mrb[219].mxu0 }
 0x6ad   :  { %v7191_v62 = vmax.f32 %v6999_v20, 0.0  ;;  %v20704_v20 = vld [vmem:[#allocation33_spill] sm:$0xff] }
 0x6ae   :  { %6060 = vmatmul.mubr.bf16.gmra.mrb[68].mxu0 %v20700_v47 }
 0x6af   :  { %12412 = vmatprep.mubr.msk.bf16.mxu0 %vm5568_vm2, %v20701_v38  ;;  %v6641_v59 = vpop.f32.mrb[216].mxu1  ;;  %v18381_v23 = vpack.c.bf16 %v7191_v62, %v7190_v43 }
 0x6b0   :  { %v6643_v10 = vpop.f32.mrb[217].mxu1 }
 0x6b1   :  { %20702 = vst [vmem:[#allocation9_spill] sm:$0xff] %v18381_v23  ;;  %v18383_v0 = vpop.f32.mrb[220].mxu0  ;;  %v6645_v58 = vpop.f32.mrb[218].mxu1  ;;  %v7000_v52 = vmax.f32 %v6641_v59, %v6643_v10  ;;  %v4654_v23 = vadd.f32 %v18287_v25, %v15052_v7 }
 0x6b2   :  { %v18385_v42 = vpop.f32.mrb[221].mxu0  ;;  %v6647_v40 = vpop.f32.mrb[219].mxu1 }
 0x6b3   :  { %v18387_v57 = vpop.f32.mrb[222].mxu0  ;;  %v7001_v22 = vmax.f32 %v6645_v58, %v6647_v40  ;;  %v7192_v33 = vmax.f32 %v7000_v52, 0.0 }
 0x6b4   :  { %v18389_v27 = vpop.f32.mrb[223].mxu0 }
 0x6b5   :  { %v7193_v39 = vmax.f32 %v7001_v22, 0.0  ;;  %v4656_v22 = vadd.f32 %v18295_v31, %v15056_v8 }
 0x6b6   :  { %6070 = vmatmul.mubr.bf16.gmra.mrb[72].mxu0 %v20703_v3 }
 0x6b7   :  { %12413 = vmatprep.mubr.msk.bf16.mxu0 %vm5568_vm2, %v20704_v20  ;;  %v6651_v43 = vpop.f32.mrb[220].mxu1  ;;  %v18394_v62 = vpack.c.bf16 %v7193_v39, %v7192_v33  ;;  %v4658_v33 = vadd.f32 %v18297_v56, %v15052_v7  ;;  %v4660_v39 = vadd.f32 %v18300_v12, %v15056_v8 }
 0x6b8   :  { %v6653_v47 = vpop.f32.mrb[221].mxu1 }
 0x6b9   :  { %20705 = vst [vmem:[#allocation8_spill] sm:$0xff] %v18394_v62  ;;  %v4733_v38 = vpop.f32.mrb[224].mxu0  ;;  %v6655_v59 = vpop.f32.mrb[222].mxu1  ;;  %v7002_v10 = vmax.f32 %v6651_v43, %v6653_v47 }
 0x6ba   :  { %v4734_v58 = vadd.f32 %v4733_v38, %v15052_v7  ;;  %v4735_v40 = vpop.f32.mrb[225].mxu0  ;;  %v6657_v52 = vpop.f32.mrb[223].mxu1 }
 0x6bb   :  { %v4736_v3 = vadd.f32 %v4735_v40, %v15056_v8  ;;  %v4737_v20 = vpop.f32.mrb[226].mxu0  ;;  %v7003_v35 = vmax.f32 %v6655_v59, %v6657_v52  ;;  %v7194_v53 = vmax.f32 %v7002_v10, 0.0  ;;  %v20707_v59 = vld [vmem:[#allocation35_spill] sm:$0xff]  ;;  %v4664_v10 = vadd.f32 %v18305_v13, %v15052_v7 }
 0x6bc   :  { %v5164_v43 = vmax.f32 %v4654_v23, %v4734_v58  ;;  %v4738_v25 = vadd.f32 %v4737_v20, %v15052_v7  ;;  %v4739_v47 = vpop.f32.mrb[227].mxu0 }
 0x6bd   :  { %v5165_v38 = vmax.f32 %v4656_v22, %v4736_v3  ;;  %v4740_v62 = vadd.f32 %v4739_v47, %v15056_v8  ;;  %v7195_v54 = vmax.f32 %v7003_v35, 0.0 }
 0x6be   :  { %v5166_v31 = vmax.f32 %v4658_v33, %v4738_v25  ;;  %6080 = vmatmul.mubr.bf16.gmra.mrb[76].mxu0 %v20706_v61 }
 0x6bf   :  { %v5167_v40 = vmax.f32 %v4660_v39, %v4740_v62  ;;  %12414 = vmatprep.mubr.msk.bf16.mxu0 %vm5568_vm2, %v20707_v59  ;;  %v6661_v56 = vpop.f32.mrb[224].mxu1  ;;  %v18411_v52 = vpack.c.bf16 %v7195_v54, %v7194_v53  ;;  %v4666_v62 = vadd.f32 %v18307_v32, %v15056_v8  ;;  %v4668_v39 = vadd.f32 %v18309_v21, %v15052_v7  ;;  %v14378_v21 = vld [vmem:[%s20498_s4 + $0x104] ss:$8 sps:$4 sm:$0xff]  }
 0x6c0   :  { %v5372_v12 = vpack.c.bf16 %v5166_v31, %v5164_v43  ;;  %v6663_v23 = vpop.f32.mrb[225].mxu1  ;;  %v4670_v43 = vadd.f32 %v18311_v26, %v15056_v8  ;;  %8495 = vmatprep.subr.bf16.mxu1 %v14378_v21 }
 0x6c1   :  { %v4743_v58 = vpop.f32.mrb[228].mxu0  ;;  %v6665_v20 = vpop.f32.mrb[226].mxu1  ;;  %v5373_v18 = vpack.c.bf16 %v5167_v40, %v5165_v38  ;;  %v7004_v22 = vmax.f32 %v6661_v56, %v6663_v23  ;;  %v20708_v56 = vld [vmem:[#allocation34_spill] sm:$0xff] }
 0x6c2   :  { %v4744_v35 = vadd.f32 %v4743_v58, %v15052_v7  ;;  %v4745_v3 = vpop.f32.mrb[229].mxu0  ;;  %v6667_v61 = vpop.f32.mrb[227].mxu1 }
 0x6c3   :  { %v4746_v33 = vadd.f32 %v4745_v3, %v15056_v8  ;;  %v4747_v54 = vpop.f32.mrb[230].mxu0  ;;  %12482 = vmatprep.mubr.msk.bf16.mxu1 %vm5568_vm2, %v5373_v18  ;;  %v7005_v53 = vmax.f32 %v6665_v20, %v6667_v61  ;;  %v7196_v31 = vmax.f32 %v7004_v22, 0.0  ;;  %v4674_v22 = vadd.f32 %v18316_v9, %v15052_v7 }
 0x6c4   :  { %v5168_v13 = vmax.f32 %v4664_v10, %v4744_v35  ;;  %v4748_v25 = vadd.f32 %v4747_v54, %v15052_v7  ;;  %v4749_v47 = vpop.f32.mrb[231].mxu0  ;;  %6770 = vmatmul.mubr.bf16.gmra.mrb[12].mxu1 %v5372_v12  ;;  %v4676_v54 = vadd.f32 %v18318_v55, %v15056_v8 }
 0x6c5   :  { %v5169_v38 = vmax.f32 %v4666_v62, %v4746_v33  ;;  %v4750_v32 = vadd.f32 %v4749_v47, %v15056_v8  ;;  %v7197_v40 = vmax.f32 %v7005_v53, 0.0 }
 0x6c6   :  { %v5170_v59 = vmax.f32 %v4668_v39, %v4748_v25  ;;  %6090 = vmatmul.mubr.bf16.gmra.mrb[80].mxu0 %v20708_v56  ;;  %v4680_v25 = vadd.f32 %v18322_v41, %v15056_v8 }
 0x6c7   :  { %v5171_v18 = vmax.f32 %v4670_v43, %v4750_v32  ;;  %v6671_v23 = vpop.f32.mrb[228].mxu1  ;;  %v18430_v26 = vpack.c.bf16 %v7197_v40, %v7196_v31 }
 0x6c8   :  { %v5374_v58 = vpack.c.bf16 %v5170_v59, %v5168_v13  ;;  %v6673_v20 = vpop.f32.mrb[229].mxu1  ;;  %v4678_v13 = vadd.f32 %v18320_v19, %v15052_v7 }
 0x6c9   :  { %v4753_v10 = vpop.f32.mrb[232].mxu0  ;;  %v6675_v12 = vpop.f32.mrb[230].mxu1  ;;  %v5375_v35 = vpack.c.bf16 %v5171_v18, %v5169_v38  ;;  %v7006_v3 = vmax.f32 %v6671_v23, %v6673_v20 }
 0x6ca   :  { %v4754_v61 = vadd.f32 %v4753_v10, %v15052_v7  ;;  %v4755_v62 = vpop.f32.mrb[233].mxu0  ;;  %v6677_v33 = vpop.f32.mrb[231].mxu1 }
 0x6cb   :  { %v4756_v53 = vadd.f32 %v4755_v62, %v15056_v8  ;;  %v4757_v39 = vpop.f32.mrb[234].mxu0  ;;  %12483 = vmatprep.mubr.msk.bf16.mxu1 %vm5568_vm2, %v5375_v35  ;;  %v7007_v43 = vmax.f32 %v6675_v12, %v6677_v33  ;;  %v7198_v31 = vmax.f32 %v7006_v3, 0.0  ;;  %v4684_v35 = vadd.f32 %v18327_v17, %v15052_v7 }
 0x6cc   :  { %v5172_v9 = vmax.f32 %v4674_v22, %v4754_v61  ;;  %v4758_v47 = vadd.f32 %v4757_v39, %v15052_v7  ;;  %v4759_v38 = vpop.f32.mrb[235].mxu0  ;;  %6780 = vmatmul.mubr.bf16.gmra.mrb[16].mxu1 %v5374_v58  ;;  %v4686_v3 = vadd.f32 %v18329_v14, %v15056_v8  ;;  %v4690_v39 = vadd.f32 %v18333_v4, %v15056_v8 }
 0x6cd   :  { %v5173_v32 = vmax.f32 %v4676_v54, %v4756_v53  ;;  %v4760_v55 = vadd.f32 %v4759_v38, %v15056_v8  ;;  %v7199_v40 = vmax.f32 %v7007_v43, 0.0  ;;  %v4688_v53 = vadd.f32 %v18331_v37, %v15052_v7 }
 0x6ce   :  { %v5174_v59 = vmax.f32 %v4678_v13, %v4758_v47  ;;  %v4694_v4 = vadd.f32 %v18338_v6, %v15052_v7  ;;  %v4700_v6 = vadd.f32 %v18344_v5, %v15056_v8 }
 0x6cf   :  { %v5175_v56 = vmax.f32 %v4680_v25, %v4760_v55  ;;  %v6681_v18 = vpop.f32.mrb[232].mxu1  ;;  %v18445_v23 = vpack.c.bf16 %v7199_v40, %v7198_v31 }
 0x6d0   :  { %v5376_v21 = vpack.c.bf16 %v5174_v59, %v5172_v9  ;;  %v6683_v19 = vpop.f32.mrb[233].mxu1 }
 0x6d1   :  { %v4763_v20 = vpop.f32.mrb[236].mxu0  ;;  %v6685_v10 = vpop.f32.mrb[234].mxu1  ;;  %v5377_v41 = vpack.c.bf16 %v5175_v56, %v5173_v32  ;;  %v7008_v12 = vmax.f32 %v6681_v18, %v6683_v19  ;;  %v4696_v18 = vadd.f32 %v18340_v16, %v15056_v8 }
 0x6d2   :  { %v4764_v58 = vadd.f32 %v4763_v20, %v15052_v7  ;;  %v4765_v22 = vpop.f32.mrb[237].mxu0  ;;  %v6687_v61 = vpop.f32.mrb[235].mxu1  ;;  %v4698_v20 = vadd.f32 %v18342_v15, %v15052_v7 }
 0x6d3   :  { %v4766_v62 = vadd.f32 %v4765_v22, %v15056_v8  ;;  %v4767_v33 = vpop.f32.mrb[238].mxu0  ;;  %12484 = vmatprep.mubr.msk.bf16.mxu1 %vm5568_vm2, %v5377_v41  ;;  %v7009_v54 = vmax.f32 %v6685_v10, %v6687_v61  ;;  %v7200_v9 = vmax.f32 %v7008_v12, 0.0 }
 0x6d4   :  { %v5176_v17 = vmax.f32 %v4684_v35, %v4764_v58  ;;  %v4768_v43 = vadd.f32 %v4767_v33, %v15052_v7  ;;  %v4769_v13 = vpop.f32.mrb[239].mxu0  ;;  %6790 = vmatmul.mubr.bf16.gmra.mrb[20].mxu1 %v5376_v21  ;;  %v4704_v33 = vadd.f32 %v18351_v46, %v15052_v7  ;;  %v4710_v46 = vadd.f32 %v18363_v28, %v15056_v8 }
 0x6d5   :  { %v5177_v25 = vmax.f32 %v4686_v3, %v4766_v62  ;;  %v4770_v14 = vadd.f32 %v4769_v13, %v15056_v8  ;;  %v7201_v47 = vmax.f32 %v7009_v54, 0.0 }
 0x6d6   :  { %v5178_v38 = vmax.f32 %v4688_v53, %v4768_v43  ;;  %v4706_v53 = vadd.f32 %v18359_v11, %v15056_v8 }
 0x6d7   :  { %v5179_v32 = vmax.f32 %v4690_v39, %v4770_v14  ;;  %v18460_v55 = vpack.c.bf16 %v7201_v47, %v7200_v9 }
 0x6d8   :  { %v5378_v31 = vpack.c.bf16 %v5178_v38, %v5176_v17  ;;  %v4708_v17 = vadd.f32 %v18361_v44, %v15052_v7 }
 0x6d9   :  { %20709 = vst [vmem:[#allocation11_spill] sm:$0xff] %v18460_v55  ;;  %v4773_v40 = vpop.f32.mrb[240].mxu0  ;;  %v5379_v37 = vpack.c.bf16 %v5179_v32, %v5177_v25  ;;  %v14430_v55 = vld [vmem:[%s20498_s4 + $0x220] ss:$8 sps:$4 sm:$0xff]  }
 0x6da   :  { %v4774_v59 = vadd.f32 %v4773_v40, %v15052_v7  ;;  %v4775_v56 = vpop.f32.mrb[241].mxu0  ;;  %v4714_v40 = vadd.f32 %v18370_v49, %v15052_v7  ;;  %v4720_v49 = vadd.f32 %v18376_v30, %v15056_v8 }
 0x6db   :  { %v4776_v21 = vadd.f32 %v4775_v56, %v15056_v8  ;;  %v4777_v19 = vpop.f32.mrb[242].mxu0  ;;  %12485 = vmatprep.mubr.msk.bf16.mxu1 %vm5568_vm2, %v5379_v37  ;;  %v4718_v56 = vadd.f32 %v18374_v63, %v15052_v7 }
 0x6dc   :  { %v5180_v10 = vmax.f32 %v4694_v4, %v4774_v59  ;;  %v4778_v41 = vadd.f32 %v4777_v19, %v15052_v7  ;;  %v4779_v12 = vpop.f32.mrb[243].mxu0  ;;  %6800 = vmatmul.mubr.bf16.gmra.mrb[24].mxu1 %v5378_v31  ;;  %v4716_v4 = vadd.f32 %v18372_v2, %v15056_v8 }
 0x6dd   :  { %v5181_v35 = vmax.f32 %v4696_v18, %v4776_v21  ;;  %v4780_v58 = vadd.f32 %v4779_v12, %v15056_v8 }
 0x6de   :  { %v5182_v16 = vmax.f32 %v4698_v20, %v4778_v41 }
 0x6df   :  { %v5183_v22 = vmax.f32 %v4700_v6, %v4780_v58  ;;  %v4724_v58 = vadd.f32 %v18383_v0, %v15052_v7  ;;  %v4730_v0 = vadd.f32 %v18389_v27, %v15056_v8 }
 0x6e0   :  { %v5380_v61 = vpack.c.bf16 %v5182_v16, %v5180_v10 }
 0x6e1   :  { %v4783_v3 = vpop.f32.mrb[244].mxu0  ;;  %v5381_v62 = vpack.c.bf16 %v5183_v22, %v5181_v35  ;;  %v4726_v22 = vadd.f32 %v18385_v42, %v15056_v8 }
 0x6e2   :  { %v4784_v15 = vadd.f32 %v4783_v3, %v15052_v7  ;;  %v4785_v54 = vpop.f32.mrb[245].mxu0  ;;  %v4728_v3 = vadd.f32 %v18387_v57, %v15052_v7 }
 0x6e3   :  { %v4786_v39 = vadd.f32 %v4785_v54, %v15056_v8  ;;  %v4787_v5 = vpop.f32.mrb[246].mxu0  ;;  %12486 = vmatprep.mubr.msk.bf16.mxu1 %vm5568_vm2, %v5381_v62 }
 0x6e4   :  { %v5184_v43 = vmax.f32 %v4704_v33, %v4784_v15  ;;  %v4788_v13 = vadd.f32 %v4787_v5, %v15052_v7  ;;  %v4789_v25 = vpop.f32.mrb[247].mxu0  ;;  %6810 = vmatmul.mubr.bf16.gmra.mrb[28].mxu1 %v5380_v61 }
 0x6e5   :  { %v5185_v14 = vmax.f32 %v4706_v53, %v4786_v39  ;;  %v4790_v9 = vadd.f32 %v4789_v25, %v15056_v8 }
 0x6e6   :  { %v5186_v11 = vmax.f32 %v4708_v17, %v4788_v13 }
 0x6e7   :  { %v5187_v47 = vmax.f32 %v4710_v46, %v4790_v9 }
 0x6e8   :  { %v5382_v38 = vpack.c.bf16 %v5186_v11, %v5184_v43 }
 0x6e9   :  { %v4793_v32 = vpop.f32.mrb[248].mxu0  ;;  %v5383_v31 = vpack.c.bf16 %v5187_v47, %v5185_v14 }
 0x6ea   :  { %v4794_v44 = vadd.f32 %v4793_v32, %v15052_v7  ;;  %v4795_v37 = vpop.f32.mrb[249].mxu0 }
 0x6eb   :  { %v4796_v59 = vadd.f32 %v4795_v37, %v15056_v8  ;;  %v4797_v28 = vpop.f32.mrb[250].mxu0  ;;  %12487 = vmatprep.mubr.msk.bf16.mxu1 %vm5568_vm2, %v5383_v31 }
 0x6ec   :  { %v5188_v18 = vmax.f32 %v4714_v40, %v4794_v44  ;;  %v4798_v21 = vadd.f32 %v4797_v28, %v15052_v7  ;;  %v4799_v19 = vpop.f32.mrb[251].mxu0  ;;  %6820 = vmatmul.mubr.bf16.gmra.mrb[32].mxu1 %v5382_v38 }
 0x6ed   :  { %v5189_v20 = vmax.f32 %v4716_v4, %v4796_v59  ;;  %v4800_v10 = vadd.f32 %v4799_v19, %v15056_v8 }
 0x6ee   :  { %v5190_v2 = vmax.f32 %v4718_v56, %v4798_v21 }
 0x6ef   :  { %v5191_v41 = vmax.f32 %v4720_v49, %v4800_v10 }
 0x6f0   :  { %v5384_v12 = vpack.c.bf16 %v5190_v2, %v5188_v18 }
 0x6f1   :  { %v4803_v6 = vpop.f32.mrb[252].mxu0  ;;  %v5385_v35 = vpack.c.bf16 %v5191_v41, %v5189_v20 }
 0x6f2   :  { %v4804_v63 = vadd.f32 %v4803_v6, %v15052_v7  ;;  %v4805_v16 = vpop.f32.mrb[253].mxu0 }
 0x6f3   :  { %v4806_v61 = vadd.f32 %v4805_v16, %v15056_v8  ;;  %v4807_v30 = vpop.f32.mrb[254].mxu0  ;;  %12488 = vmatprep.mubr.msk.bf16.mxu1 %vm5568_vm2, %v5385_v35 }
 0x6f4   :  { %v5192_v62 = vmax.f32 %v4724_v58, %v4804_v63  ;;  %v4808_v33 = vadd.f32 %v4807_v30, %v15052_v7  ;;  %v4809_v15 = vpop.f32.mrb[255].mxu0  ;;  %6830 = vmatmul.mubr.bf16.gmra.mrb[36].mxu1 %v5384_v12 }
 0x6f5   :  { %v5193_v54 = vmax.f32 %v4726_v22, %v4806_v61  ;;  %v4810_v53 = vadd.f32 %v4809_v15, %v15056_v8 }
 0x6f6   :  { %v5194_v42 = vmax.f32 %v4728_v3, %v4808_v33 }
 0x6f7   :  { %v5195_v39 = vmax.f32 %v4730_v0, %v4810_v53 }
 0x6f8   :  { %v5386_v5 = vpack.c.bf16 %v5194_v42, %v5192_v62 }
 0x6f9   :  { %v5891_v17 = vpop.f32.mrb[0].mxu0  ;;  %v5387_v43 = vpack.c.bf16 %v5195_v39, %v5193_v54 }
 0x6fa   :  { %v5893_v13 = vpop.f32.mrb[1].mxu0 }
 0x6fb   :  { %v6850_v25 = vmax.f32 %v5891_v17, %v5893_v13  ;;  %v5895_v46 = vpop.f32.mrb[2].mxu0  ;;  %12489 = vmatprep.mubr.msk.bf16.mxu1 %vm5568_vm2, %v5387_v43 }
 0x6fc   :  { %v5897_v57 = vpop.f32.mrb[3].mxu0  ;;  %6840 = vmatmul.mubr.bf16.gmra.mrb[40].mxu1 %v5386_v5 }
 0x6fd   :  { %v6851_v7 = vmax.f32 %v5895_v46, %v5897_v57  ;;  %v18515_v14 = vmax.f32 %v6850_v25, 0.0 }
 0x6ff   :  { %v18517_v9 = vmax.f32 %v6851_v7, 0.0 }
 0x701   :  { %v7234_v8 = vpack.c.bf16 %v18517_v9, %v18515_v14  ;;  %v5901_v27 = vpop.f32.mrb[4].mxu0 }
 0x702   :  { %v5903_v11 = vpop.f32.mrb[5].mxu0 }
 0x703   :  { %v6852_v47 = vmax.f32 %v5901_v27, %v5903_v11  ;;  %v5905_v38 = vpop.f32.mrb[6].mxu0 }
 0x704   :  { %v5907_v32 = vpop.f32.mrb[7].mxu0 }
 0x705   :  { %v6853_v31 = vmax.f32 %v5905_v38, %v5907_v32  ;;  %v18521_v40 = vmax.f32 %v6852_v47, 0.0 }
 0x707   :  { %v18523_v44 = vmax.f32 %v6853_v31, 0.0 }
 0x709   :  { %v7235_v37 = vpack.c.bf16 %v18523_v44, %v18521_v40  ;;  %v5911_v4 = vpop.f32.mrb[8].mxu0 }
 0x70a   :  { %v5913_v59 = vpop.f32.mrb[9].mxu0 }
 0x70b   :  { %v6854_v28 = vmax.f32 %v5911_v4, %v5913_v59  ;;  %v5915_v56 = vpop.f32.mrb[10].mxu0 }
 0x70c   :  { %v5917_v18 = vpop.f32.mrb[11].mxu0 }
 0x70d   :  { %v6855_v21 = vmax.f32 %v5915_v56, %v5917_v18  ;;  %v18527_v19 = vmax.f32 %v6854_v28, 0.0 }
 0x70f   :  { %v18529_v49 = vmax.f32 %v6855_v21, 0.0 }
 0x711   :  { %v7236_v20 = vpack.c.bf16 %v18529_v49, %v18527_v19  ;;  %v5921_v10 = vpop.f32.mrb[12].mxu0 }
 0x712   :  { %v5923_v2 = vpop.f32.mrb[13].mxu0 }
 0x713   :  { %v6856_v41 = vmax.f32 %v5921_v10, %v5923_v2  ;;  %v5925_v12 = vpop.f32.mrb[14].mxu0 }
 0x714   :  { %v5927_v6 = vpop.f32.mrb[15].mxu0 }
 0x715   :  { %v6857_v35 = vmax.f32 %v5925_v12, %v5927_v6  ;;  %v18533_v58 = vmax.f32 %v6856_v41, 0.0 }
 0x717   :  { %v18535_v63 = vmax.f32 %v6857_v35, 0.0  ;;  %v6691_v16 = vpop.f32.mrb[236].mxu1 }
 0x718   :  { %v6693_v22 = vpop.f32.mrb[237].mxu1 }
 0x719   :  { %v7237_v61 = vpack.c.bf16 %v18535_v63, %v18533_v58  ;;  %v5931_v30 = vpop.f32.mrb[16].mxu0  ;;  %v6695_v3 = vpop.f32.mrb[238].mxu1  ;;  %v7010_v62 = vmax.f32 %v6691_v16, %v6693_v22  ;;  %v14391_v58 = vld [vmem:[%s20498_s4 + $0x150] ss:$8 sps:$4 sm:$0xff]   ;;  %v14393_v63 = vld [vmem:[%s20498_s4 + $0x154] ss:$8 sps:$4 sm:$0xff]  }
 0x71a   :  { %v5933_v33 = vpop.f32.mrb[17].mxu0  ;;  %v6697_v15 = vpop.f32.mrb[239].mxu1 }
 0x71b   :  { %v6858_v0 = vmax.f32 %v5931_v30, %v5933_v33  ;;  %v5935_v54 = vpop.f32.mrb[18].mxu0  ;;  %v7011_v53 = vmax.f32 %v6695_v3, %v6697_v15  ;;  %v7202_v5 = vmax.f32 %v7010_v62, 0.0 }
 0x71c   :  { %v5937_v42 = vpop.f32.mrb[19].mxu0 }
 0x71d   :  { %v6859_v39 = vmax.f32 %v5935_v54, %v5937_v42  ;;  %v7203_v17 = vmax.f32 %v7011_v53, 0.0  ;;  %v18539_v43 = vmax.f32 %v6858_v0, 0.0 }
 0x71f   :  { %v18541_v13 = vmax.f32 %v6859_v39, 0.0  ;;  %v6701_v25 = vpop.f32.mrb[240].mxu1  ;;  %v18543_v46 = vpack.c.bf16 %v7203_v17, %v7202_v5 }
 0x720   :  { %v6703_v57 = vpop.f32.mrb[241].mxu1 }
 0x721   :  { %20710 = vst [vmem:[#allocation10_spill] sm:$0xff] %v18543_v46  ;;  %v7238_v7 = vpack.c.bf16 %v18541_v13, %v18539_v43  ;;  %v5941_v27 = vpop.f32.mrb[20].mxu0  ;;  %v6705_v11 = vpop.f32.mrb[242].mxu1  ;;  %v7012_v47 = vmax.f32 %v6701_v25, %v6703_v57  ;;  %v14432_v46 = vld [vmem:[%s20498_s4 + $0x224] ss:$8 sps:$4 sm:$0xff]  }
 0x722   :  { %v5943_v38 = vpop.f32.mrb[21].mxu0  ;;  %v6707_v32 = vpop.f32.mrb[243].mxu1 }
 0x723   :  { %v6860_v31 = vmax.f32 %v5941_v27, %v5943_v38  ;;  %v5945_v4 = vpop.f32.mrb[22].mxu0  ;;  %v7013_v59 = vmax.f32 %v6705_v11, %v6707_v32  ;;  %v7204_v18 = vmax.f32 %v7012_v47, 0.0 }
 0x724   :  { %v5947_v28 = vpop.f32.mrb[23].mxu0 }
 0x725   :  { %v6861_v56 = vmax.f32 %v5945_v4, %v5947_v28  ;;  %v7205_v21 = vmax.f32 %v7013_v59, 0.0  ;;  %v18547_v10 = vmax.f32 %v6860_v31, 0.0 }
 0x727   :  { %v18549_v2 = vmax.f32 %v6861_v56, 0.0  ;;  %v6711_v41 = vpop.f32.mrb[244].mxu1  ;;  %v18551_v12 = vpack.c.bf16 %v7205_v21, %v7204_v18 }
 0x728   :  { %v6713_v6 = vpop.f32.mrb[245].mxu1 }
 0x729   :  { %20711 = vst [vmem:[#allocation13_spill] sm:$0xff] %v18551_v12  ;;  %v7239_v35 = vpack.c.bf16 %v18549_v2, %v18547_v10  ;;  %v5951_v16 = vpop.f32.mrb[24].mxu0  ;;  %v6715_v22 = vpop.f32.mrb[246].mxu1  ;;  %v7014_v30 = vmax.f32 %v6711_v41, %v6713_v6  ;;  %v14427_v12 = vld [vmem:[%s20498_s4 + $0x210] ss:$8 sps:$4 sm:$0xff]  }
 0x72a   :  { %v5953_v3 = vpop.f32.mrb[25].mxu0  ;;  %v6717_v62 = vpop.f32.mrb[247].mxu1 }
 0x72b   :  { %v6862_v33 = vmax.f32 %v5951_v16, %v5953_v3  ;;  %v5955_v15 = vpop.f32.mrb[26].mxu0  ;;  %v7015_v0 = vmax.f32 %v6715_v22, %v6717_v62  ;;  %v7206_v42 = vmax.f32 %v7014_v30, 0.0 }
 0x72c   :  { %v5957_v54 = vpop.f32.mrb[27].mxu0 }
 0x72d   :  { %v6863_v53 = vmax.f32 %v5955_v15, %v5957_v54  ;;  %v7207_v39 = vmax.f32 %v7015_v0, 0.0  ;;  %v18555_v5 = vmax.f32 %v6862_v33, 0.0 }
 0x72f   :  { %v18557_v17 = vmax.f32 %v6863_v53, 0.0  ;;  %v6721_v25 = vpop.f32.mrb[248].mxu1  ;;  %v18559_v57 = vpack.c.bf16 %v7207_v39, %v7206_v42 }
 0x730   :  { %v6723_v27 = vpop.f32.mrb[249].mxu1 }
 0x731   :  { %20712 = vst [vmem:[#allocation12_spill] sm:$0xff] %v18559_v57  ;;  %v7240_v11 = vpack.c.bf16 %v18557_v17, %v18555_v5  ;;  %v5961_v47 = vpop.f32.mrb[28].mxu0  ;;  %v6725_v38 = vpop.f32.mrb[250].mxu1  ;;  %v7016_v32 = vmax.f32 %v6721_v25, %v6723_v27  ;;  %v14429_v57 = vld [vmem:[%s20498_s4 + $0x214] ss:$8 sps:$4 sm:$0xff]  }
 0x732   :  { %v5963_v31 = vpop.f32.mrb[29].mxu0  ;;  %v6727_v4 = vpop.f32.mrb[251].mxu1 }
 0x733   :  { %v6864_v59 = vmax.f32 %v5961_v47, %v5963_v31  ;;  %v5965_v28 = vpop.f32.mrb[30].mxu0  ;;  %v7017_v56 = vmax.f32 %v6725_v38, %v6727_v4  ;;  %v7208_v41 = vmax.f32 %v7016_v32, 0.0 }
 0x734   :  { %v5967_v18 = vpop.f32.mrb[31].mxu0 }
 0x735   :  { %v6865_v21 = vmax.f32 %v5965_v28, %v5967_v18  ;;  %v7209_v6 = vmax.f32 %v7017_v56, 0.0  ;;  %v18563_v16 = vmax.f32 %v6864_v59, 0.0 }
 0x737   :  { %v18565_v22 = vmax.f32 %v6865_v21, 0.0  ;;  %v6731_v30 = vpop.f32.mrb[252].mxu1  ;;  %v18567_v3 = vpack.c.bf16 %v7209_v6, %v7208_v41 }
 0x738   :  { %v6733_v62 = vpop.f32.mrb[253].mxu1 }
 0x739   :  { %20713 = vst [vmem:[#allocation15_spill] sm:$0xff] %v18567_v3  ;;  %v7241_v33 = vpack.c.bf16 %v18565_v22, %v18563_v16  ;;  %v5971_v15 = vpop.f32.mrb[32].mxu0  ;;  %v6735_v0 = vpop.f32.mrb[254].mxu1  ;;  %v7018_v54 = vmax.f32 %v6731_v30, %v6733_v62  ;;  %v14376_v30 = vld [vmem:[%s20498_s4 + $0x100] ss:$8 sps:$4 sm:$0xff]  }
 0x73a   :  { %v5973_v53 = vpop.f32.mrb[33].mxu0  ;;  %v6737_v42 = vpop.f32.mrb[255].mxu1  ;;  %v14396_v16 = vld [vmem:[%s20498_s4 + $0x164] ss:$8 sps:$4 sm:$0xff]   ;;  %v14424_v3 = vld [vmem:[%s20498_s4 + $0x200] ss:$8 sps:$4 sm:$0xff]  }
 0x73b   :  { %v6866_v39 = vmax.f32 %v5971_v15, %v5973_v53  ;;  %v5975_v25 = vpop.f32.mrb[34].mxu0  ;;  %v7019_v27 = vmax.f32 %v6735_v0, %v6737_v42  ;;  %v7210_v32 = vmax.f32 %v7018_v54, 0.0  ;;  %v14381_v54 = vld [vmem:[%s20498_s4 + $0x114] ss:$8 sps:$4 sm:$0xff]  }
 0x73c   :  { %v5977_v47 = vpop.f32.mrb[35].mxu0 }
 0x73d   :  { %v6867_v38 = vmax.f32 %v5975_v25, %v5977_v47  ;;  %v7211_v31 = vmax.f32 %v7019_v27, 0.0  ;;  %v7058_v4 = vmax.f32 %v6866_v39, 0.0  ;;  %v14379_v47 = vld [vmem:[%s20498_s4 + $0x110] ss:$8 sps:$4 sm:$0xff]  }
 0x73f   :  { %v7059_v59 = vmax.f32 %v6867_v38, 0.0  ;;  %v6741_v28 = vpop.f32.mrb[0].mxu1  ;;  %v18571_v56 = vpack.c.bf16 %v7211_v31, %v7210_v32  ;;  %v14384_v31 = vld [vmem:[%s20498_s4 + $0x124] ss:$8 sps:$4 sm:$0xff]  }
 0x740   :  { %v6743_v18 = vpop.f32.mrb[1].mxu1 }
 0x741   :  { %20714 = vst [vmem:[#allocation14_spill] sm:$0xff] %v18571_v56  ;;  %v5981_v21 = vpop.f32.mrb[36].mxu0  ;;  %v6745_v41 = vpop.f32.mrb[2].mxu1  ;;  %v18573_v6 = vpack.c.bf16 %v7059_v59, %v7058_v4  ;;  %v7020_v62 = vmax.f32 %v6741_v28, %v6743_v18  ;;  %v20774_v56 = vld [vmem:[#allocation4_spill] sm:$0xff] }
 0x742   :  { %v5983_v15 = vpop.f32.mrb[37].mxu0  ;;  %v6747_v0 = vpop.f32.mrb[3].mxu1 }
 0x743   :  { %v6868_v53 = vmax.f32 %v5981_v21, %v5983_v15  ;;  %v5985_v42 = vpop.f32.mrb[38].mxu0  ;;  %7854 = vmatprep.mubr.bf16.mxu1 %v18573_v6  ;;  %v7021_v39 = vmax.f32 %v6745_v41, %v6747_v0  ;;  %v7212_v38 = vmax.f32 %v7020_v62, 0.0  ;;  %v14382_v41 = vld [vmem:[%s20498_s4 + $0x120] ss:$8 sps:$4 sm:$0xff]   ;;  %v14387_v0 = vld [vmem:[%s20498_s4 + $0x134] ss:$8 sps:$4 sm:$0xff]  }
 0x744   :  { %v5987_v25 = vpop.f32.mrb[39].mxu0  ;;  %7855 = vmatmul.mubr.bf16.vlgmr.msra.gmra.mrb[44].mxu1 %v7234_v8 }
 0x745   :  { %v6869_v27 = vmax.f32 %v5985_v42, %v5987_v25  ;;  %8496 = vmatpush1.bf16.msra.mxu1 %v14376_v30  ;;  %v7213_v32 = vmax.f32 %v7021_v39, 0.0  ;;  %v7060_v4 = vmax.f32 %v6868_v53, 0.0 }
 0x746   :  { %8497 = vmatprep.subr.bf16.mxu1 %v14381_v54 }
 0x747   :  { %v7061_v59 = vmax.f32 %v6869_v27, 0.0  ;;  %v6751_v28 = vpop.f32.mrb[4].mxu1  ;;  %v18591_v18 = vpack.c.bf16 %v7213_v32, %v7212_v38  ;;  %v14385_v27 = vld [vmem:[%s20498_s4 + $0x130] ss:$8 sps:$4 sm:$0xff]   ;;  %v14390_v32 = vld [vmem:[%s20498_s4 + $0x144] ss:$8 sps:$4 sm:$0xff]  }
 0x748   :  { %v6753_v14 = vpop.f32.mrb[5].mxu1 }
 0x749   :  { %20715 = vst [vmem:[#allocation17_spill] sm:$0xff] %v18591_v18  ;;  %v5991_v9 = vpop.f32.mrb[40].mxu0  ;;  %v6755_v8 = vpop.f32.mrb[6].mxu1  ;;  %v18593_v21 = vpack.c.bf16 %v7061_v59, %v7060_v4  ;;  %8498 = vmatpush1.bf16.msra.mxu1 %v14379_v47  ;;  %v7022_v30 = vmax.f32 %v6751_v28, %v6753_v14  ;;  %v20773_v18 = vld [vmem:[#allocation5_spill] sm:$0xff] }
 0x74a   :  { %v5993_v62 = vpop.f32.mrb[41].mxu0  ;;  %v6757_v15 = vpop.f32.mrb[7].mxu1  ;;  %8499 = vmatprep.subr.bf16.mxu1 %v14384_v31 }
 0x74b   :  { %v6870_v54 = vmax.f32 %v5991_v9, %v5993_v62  ;;  %v5995_v53 = vpop.f32.mrb[42].mxu0  ;;  %7864 = vmatprep.mubr.bf16.mxu1 %v18593_v21  ;;  %v7023_v42 = vmax.f32 %v6755_v8, %v6757_v15  ;;  %v7214_v47 = vmax.f32 %v7022_v30, 0.0  ;;  %v14388_v9 = vld [vmem:[%s20498_s4 + $0x140] ss:$8 sps:$4 sm:$0xff]  }
 0x74c   :  { %v5997_v39 = vpop.f32.mrb[43].mxu0  ;;  %7865 = vmatmul.mubr.bf16.gmra.mrb[48].mxu1 %v7235_v37 }
 0x74d   :  { %v6871_v25 = vmax.f32 %v5995_v53, %v5997_v39  ;;  %8500 = vmatpush1.bf16.msra.mxu1 %v14382_v41  ;;  %v7215_v38 = vmax.f32 %v7023_v42, 0.0  ;;  %v7062_v31 = vmax.f32 %v6870_v54, 0.0 }
 0x74e   :  { %8501 = vmatprep.subr.bf16.mxu1 %v14387_v0 }
 0x74f   :  { %v7063_v4 = vmax.f32 %v6871_v25, 0.0  ;;  %v6761_v59 = vpop.f32.mrb[8].mxu1  ;;  %v18611_v28 = vpack.c.bf16 %v7215_v38, %v7214_v47 }
 0x750   :  { %v6763_v40 = vpop.f32.mrb[9].mxu1 }
 0x751   :  { %20716 = vst [vmem:[#allocation16_spill] sm:$0xff] %v18611_v28  ;;  %v6001_v44 = vpop.f32.mrb[44].mxu0  ;;  %v6765_v37 = vpop.f32.mrb[10].mxu1  ;;  %v18613_v14 = vpack.c.bf16 %v7063_v4, %v7062_v31  ;;  %8502 = vmatpush1.bf16.msra.mxu1 %v14385_v27  ;;  %v7024_v8 = vmax.f32 %v6761_v59, %v6763_v40  ;;  %v20771_v28 = vld [vmem:[#allocation73_spill] sm:$0xff] }
 0x752   :  { %v6003_v41 = vpop.f32.mrb[45].mxu0  ;;  %v6767_v30 = vpop.f32.mrb[11].mxu1  ;;  %8503 = vmatprep.subr.bf16.mxu1 %v14390_v32 }
 0x753   :  { %v6872_v62 = vmax.f32 %v6001_v44, %v6003_v41  ;;  %v6005_v15 = vpop.f32.mrb[46].mxu0  ;;  %7874 = vmatprep.mubr.bf16.mxu1 %v18613_v14  ;;  %v7025_v0 = vmax.f32 %v6765_v37, %v6767_v30  ;;  %v7216_v42 = vmax.f32 %v7024_v8, 0.0 }
 0x754   :  { %v6007_v54 = vpop.f32.mrb[47].mxu0  ;;  %7875 = vmatmul.mubr.bf16.gmra.mrb[52].mxu1 %v7236_v20 }
 0x755   :  { %v6873_v53 = vmax.f32 %v6005_v15, %v6007_v54  ;;  %8504 = vmatpush1.bf16.msra.mxu1 %v14388_v9  ;;  %v7217_v39 = vmax.f32 %v7025_v0, 0.0  ;;  %v7064_v25 = vmax.f32 %v6872_v62, 0.0 }
 0x756   :  { %8505 = vmatprep.subr.bf16.mxu1 %v14393_v63 }
 0x757   :  { %v7065_v27 = vmax.f32 %v6873_v53, 0.0  ;;  %v18622_v47 = vpack.c.bf16 %v7217_v39, %v7216_v42 }
 0x759   :  { %20717 = vst [vmem:[#allocation19_spill] sm:$0xff] %v18622_v47  ;;  %v6011_v38 = vpop.f32.mrb[48].mxu0  ;;  %v18624_v32 = vpack.c.bf16 %v7065_v27, %v7064_v25  ;;  %8506 = vmatpush1.bf16.msra.mxu1 %v14391_v58  ;;  %v14426_v47 = vld [vmem:[%s20498_s4 + $0x204] ss:$8 sps:$4 sm:$0xff]  }
 0x75a   :  { %v6013_v31 = vpop.f32.mrb[49].mxu0  ;;  %8507 = vmatprep.subr.bf16.mxu1 %v14396_v16 }
 0x75b   :  { %v6874_v4 = vmax.f32 %v6011_v38, %v6013_v31  ;;  %v6015_v59 = vpop.f32.mrb[50].mxu0  ;;  %7884 = vmatprep.mubr.bf16.mxu1 %v18624_v32 }
 0x75c   :  { %v6017_v40 = vpop.f32.mrb[51].mxu0  ;;  %7885 = vmatmul.mubr.bf16.gmra.mrb[56].mxu1 %v7237_v61 }
 0x75d   :  { %v6875_v19 = vmax.f32 %v6015_v59, %v6017_v40  ;;  %v7066_v49 = vmax.f32 %v6874_v4, 0.0 }
 0x75f   :  { %v7067_v20 = vmax.f32 %v6875_v19, 0.0 }
 0x761   :  { %v6021_v44 = vpop.f32.mrb[52].mxu0  ;;  %v18630_v37 = vpack.c.bf16 %v7067_v20, %v7066_v49 }
 0x762   :  { %v6023_v9 = vpop.f32.mrb[53].mxu0 }
 0x763   :  { %v6876_v8 = vmax.f32 %v6021_v44, %v6023_v9  ;;  %v6025_v41 = vpop.f32.mrb[54].mxu0  ;;  %7894 = vmatprep.mubr.bf16.mxu1 %v18630_v37 }
 0x764   :  { %v6027_v30 = vpop.f32.mrb[55].mxu0  ;;  %7895 = vmatmul.mubr.bf16.gmra.mrb[60].mxu1 %v7238_v7 }
 0x765   :  { %v6877_v61 = vmax.f32 %v6025_v41, %v6027_v30  ;;  %v7068_v62 = vmax.f32 %v6876_v8, 0.0 }
 0x767   :  { %v7069_v15 = vmax.f32 %v6877_v61, 0.0 }
 0x769   :  { %v18642_v0 = vpack.c.bf16 %v7069_v15, %v7068_v62  ;;  %v6031_v54 = vpop.f32.mrb[56].mxu0  ;;  %v14394_v15 = vld [vmem:[%s20498_s4 + $0x160] ss:$8 sps:$4 sm:$0xff]  }
 0x76a   :  { %v6033_v53 = vpop.f32.mrb[57].mxu0  ;;  %8508 = vmatpush1.bf16.msra.mxu1 %v14394_v15 }
 0x76b   :  { %v6878_v42 = vmax.f32 %v6031_v54, %v6033_v53  ;;  %v6035_v43 = vpop.f32.mrb[58].mxu0  ;;  %7904 = vmatprep.mubr.bf16.mxu1 %v18642_v0 }
 0x76c   :  { %v6037_v13 = vpop.f32.mrb[59].mxu0  ;;  %7905 = vmatmul.mubr.bf16.gmra.mrb[64].mxu1 %v7239_v35 }
 0x76d   :  { %v6879_v7 = vmax.f32 %v6035_v43, %v6037_v13  ;;  %v7070_v39 = vmax.f32 %v6878_v42, 0.0 }
 0x76f   :  { %v7071_v25 = vmax.f32 %v6879_v7, 0.0 }
 0x771   :  { %v18648_v27 = vpack.c.bf16 %v7071_v25, %v7070_v39  ;;  %v6041_v38 = vpop.f32.mrb[60].mxu0 }
 0x772   :  { %v6043_v31 = vpop.f32.mrb[61].mxu0 }
 0x773   :  { %v6880_v4 = vmax.f32 %v6041_v38, %v6043_v31  ;;  %v6045_v59 = vpop.f32.mrb[62].mxu0  ;;  %7914 = vmatprep.mubr.bf16.mxu1 %v18648_v27 }
 0x774   :  { %v6047_v40 = vpop.f32.mrb[63].mxu0  ;;  %7915 = vmatmul.mubr.bf16.gmra.mrb[68].mxu1 %v7240_v11 }
 0x775   :  { %v6881_v19 = vmax.f32 %v6045_v59, %v6047_v40  ;;  %v7072_v49 = vmax.f32 %v6880_v4, 0.0 }
 0x777   :  { %v7073_v10 = vmax.f32 %v6881_v19, 0.0 }
 0x779   :  { %v18654_v2 = vpack.c.bf16 %v7073_v10, %v7072_v49  ;;  %v6051_v35 = vpop.f32.mrb[64].mxu0 }
 0x77a   :  { %v6053_v20 = vpop.f32.mrb[65].mxu0 }
 0x77b   :  { %v6882_v44 = vmax.f32 %v6051_v35, %v6053_v20  ;;  %v6055_v9 = vpop.f32.mrb[66].mxu0  ;;  %7924 = vmatprep.mubr.bf16.mxu1 %v18654_v2 }
 0x77c   :  { %v6057_v8 = vpop.f32.mrb[67].mxu0  ;;  %7925 = vmatmul.mubr.bf16.gmra.mrb[72].mxu1 %v7241_v33 }
 0x77d   :  { %v6883_v41 = vmax.f32 %v6055_v9, %v6057_v8  ;;  %v7074_v30 = vmax.f32 %v6882_v44, 0.0 }
 0x77f   :  { %v7075_v5 = vmax.f32 %v6883_v41, 0.0 }
 0x781   :  { %v18660_v17 = vpack.c.bf16 %v7075_v5, %v7074_v30  ;;  %v6061_v11 = vpop.f32.mrb[68].mxu0 }
 0x782   :  { %v6063_v58 = vpop.f32.mrb[69].mxu0 }
 0x783   :  { %v6884_v63 = vmax.f32 %v6061_v11, %v6063_v58  ;;  %v6065_v61 = vpop.f32.mrb[70].mxu0  ;;  %7934 = vmatprep.mubr.bf16.mxu1 %v18660_v17 }
 0x784   :  { %v6067_v62 = vpop.f32.mrb[71].mxu0  ;;  %7935 = vmatmul.mubr.bf16.gmra.mrb[76].mxu1 %v18573_v6 }
 0x785   :  { %v6885_v22 = vmax.f32 %v6065_v61, %v6067_v62  ;;  %v7076_v33 = vmax.f32 %v6884_v63, 0.0 }
 0x787   :  { %v7077_v54 = vmax.f32 %v6885_v22, 0.0 }
 0x789   :  { %v18670_v53 = vpack.c.bf16 %v7077_v54, %v7076_v33  ;;  %v6071_v42 = vpop.f32.mrb[72].mxu0  ;;  %v20752_v33 = vld [vmem:[#allocation54_spill] sm:$0xff] }
 0x78a   :  { %v6073_v43 = vpop.f32.mrb[73].mxu0 }
 0x78b   :  { %v6886_v13 = vmax.f32 %v6071_v42, %v6073_v43  ;;  %v6075_v7 = vpop.f32.mrb[74].mxu0  ;;  %7944 = vmatprep.mubr.bf16.mxu1 %v18670_v53 }
 0x78c   :  { %v6077_v6 = vpop.f32.mrb[75].mxu0  ;;  %7945 = vmatmul.mubr.bf16.gmra.mrb[80].mxu1 %v18593_v21 }
 0x78d   :  { %v6887_v39 = vmax.f32 %v6075_v7, %v6077_v6  ;;  %v7078_v25 = vmax.f32 %v6886_v13, 0.0 }
 0x78f   :  { %v7079_v38 = vmax.f32 %v6887_v39, 0.0 }
 0x791   :  { %v18674_v31 = vpack.c.bf16 %v7079_v38, %v7078_v25  ;;  %v6081_v4 = vpop.f32.mrb[76].mxu0  ;;  %v14399_v38 = vld [vmem:[%s20498_s4 + $0x174] ss:$8 sps:$4 sm:$0xff]  }
 0x792   :  { %v6083_v59 = vpop.f32.mrb[77].mxu0  ;;  %8509 = vmatprep.subr.bf16.mxu1 %v14399_v38  ;;  %v20731_v38 = vld [vmem:[#allocation39_spill] sm:$0xff] }
 0x793   :  { %v6888_v40 = vmax.f32 %v6081_v4, %v6083_v59  ;;  %v6085_v19 = vpop.f32.mrb[78].mxu0  ;;  %7954 = vmatprep.mubr.bf16.mxu1 %v18674_v31 }
 0x794   :  { %v6087_v49 = vpop.f32.mrb[79].mxu0  ;;  %7955 = vmatmul.mubr.bf16.gmra.mrb[84].mxu1 %v18613_v14 }
 0x795   :  { %v6889_v10 = vmax.f32 %v6085_v19, %v6087_v49  ;;  %v7080_v35 = vmax.f32 %v6888_v40, 0.0  ;;  %v20722_v40 = vld [vmem:[#allocation36_spill] sm:$0xff]  ;;  %v20751_v19 = vld [vmem:[#allocation53_spill] sm:$0xff] }
 0x797   :  { %v7081_v20 = vmax.f32 %v6889_v10, 0.0  ;;  %v6771_v44 = vpop.f32.mrb[12].mxu1 }
 0x798   :  { %v6773_v9 = vpop.f32.mrb[13].mxu1 }
 0x799   :  { %v18678_v21 = vpack.c.bf16 %v7081_v20, %v7080_v35  ;;  %v7026_v8 = vmax.f32 %v6771_v44, %v6773_v9  ;;  %v6091_v41 = vpop.f32.mrb[80].mxu0  ;;  %v6775_v30 = vpop.f32.mrb[14].mxu1 }
 0x79a   :  { %v6093_v5 = vpop.f32.mrb[81].mxu0  ;;  %v6777_v11 = vpop.f32.mrb[15].mxu1 }
 0x79b   :  { %v6890_v58 = vmax.f32 %v6091_v41, %v6093_v5  ;;  %v7027_v63 = vmax.f32 %v6775_v30, %v6777_v11  ;;  %v6095_v61 = vpop.f32.mrb[82].mxu0  ;;  %7964 = vmatprep.mubr.bf16.mxu1 %v18678_v21  ;;  %v18682_v14 = vmax.f32 %v7026_v8, 0.0  ;;  %v20725_v41 = vld [vmem:[#allocation37_spill] sm:$0xff] }
 0x79c   :  { %v6097_v62 = vpop.f32.mrb[83].mxu0  ;;  %7965 = vmatmul.mubr.bf16.gmra.mrb[88].mxu1 %v18624_v32  ;;  %v14397_v32 = vld [vmem:[%s20498_s4 + $0x170] ss:$8 sps:$4 sm:$0xff]  }
 0x79d   :  { %20718 = vst [vmem:[#allocation18_spill] sm:$0xff] %v18682_v14  ;;  %v18684_v15 = vmax.f32 %v7027_v63, 0.0  ;;  %v6891_v16 = vmax.f32 %v6095_v61, %v6097_v62  ;;  %v7082_v22 = vmax.f32 %v6890_v58, 0.0  ;;  %8510 = vmatpush1.bf16.msra.mxu1 %v14397_v32  ;;  %v14409_v30 = vld [vmem:[%s20498_s4 + $0x1b0] ss:$8 sps:$4 sm:$0xff]  }
 0x79e   :  { %v20767_v14 = vld [vmem:[#allocation69_spill] sm:$0xff] }
 0x79f   :  { %20719 = vst [vmem:[#allocation21_spill] sm:$0xff] %v18684_v15  ;;  %v7083_v54 = vmax.f32 %v6891_v16, 0.0  ;;  %v6781_v42 = vpop.f32.mrb[16].mxu1  ;;  %v20768_v15 = vld [vmem:[#allocation70_spill] sm:$0xff] }
 0x7a0   :  { %v6783_v43 = vpop.f32.mrb[17].mxu1 }
 0x7a1   :  { %v18688_v13 = vpack.c.bf16 %v7083_v54, %v7082_v22  ;;  %v7028_v7 = vmax.f32 %v6781_v42, %v6783_v43  ;;  %v6785_v6 = vpop.f32.mrb[18].mxu1  ;;  %v20728_v22 = vld [vmem:[#allocation38_spill] sm:$0xff]  ;;  %v20749_v54 = vld [vmem:[#allocation51_spill] sm:$0xff] }
 0x7a2   :  { %v6787_v39 = vpop.f32.mrb[19].mxu1 }
 0x7a3   :  { %v7029_v25 = vmax.f32 %v6785_v6, %v6787_v39  ;;  %7974 = vmatprep.mubr.bf16.mxu1 %v18688_v13  ;;  %v18698_v4 = vmax.f32 %v7028_v7, 0.0 }
 0x7a4   :  { %7975 = vmatmul.mubr.bf16.gmra.mrb[92].mxu1 %v18630_v37 }
 0x7a5   :  { %20720 = vst [vmem:[#allocation20_spill] sm:$0xff] %v18698_v4  ;;  %v18700_v59 = vmax.f32 %v7029_v25, 0.0  ;;  %7984 = vmatprep.mubr.bf16.mxu1 %v20722_v40  ;;  %v14421_v4 = vld [vmem:[%s20498_s4 + $0x1f0] ss:$8 sps:$4 sm:$0xff]  }
 0x7a7   :  { %20721 = vst [vmem:[#allocation23_spill] sm:$0xff] %v18700_v59  ;;  %v6791_v49 = vpop.f32.mrb[20].mxu1  ;;  %v20766_v59 = vld [vmem:[#allocation68_spill] sm:$0xff] }
 0x7a8   :  { %v6793_v37 = vpop.f32.mrb[21].mxu1 }
 0x7a9   :  { %v7030_v10 = vmax.f32 %v6791_v49, %v6793_v37  ;;  %v6795_v35 = vpop.f32.mrb[22].mxu1  ;;  %v20748_v49 = vld [vmem:[#allocation50_spill] sm:$0xff] }
 0x7aa   :  { %v6797_v20 = vpop.f32.mrb[23].mxu1 }
 0x7ab   :  { %v7031_v44 = vmax.f32 %v6795_v35, %v6797_v20  ;;  %v18706_v9 = vmax.f32 %v7030_v10, 0.0 }
 0x7ac   :  { %7985 = vmatmul.mubr.bf16.gmra.mrb[96].mxu1 %v18642_v0 }
 0x7ad   :  { %20723 = vst [vmem:[#allocation22_spill] sm:$0xff] %v18706_v9  ;;  %v18708_v8 = vmax.f32 %v7031_v44, 0.0  ;;  %7994 = vmatprep.mubr.bf16.mxu1 %v20725_v41  ;;  %v20763_v9 = vld [vmem:[#allocation65_spill] sm:$0xff] }
 0x7af   :  { %20724 = vst [vmem:[#allocation25_spill] sm:$0xff] %v18708_v8  ;;  %v6801_v5 = vpop.f32.mrb[24].mxu1  ;;  %v20764_v8 = vld [vmem:[#allocation66_spill] sm:$0xff] }
 0x7b0   :  { %v6803_v11 = vpop.f32.mrb[25].mxu1 }
 0x7b1   :  { %v7032_v58 = vmax.f32 %v6801_v5, %v6803_v11  ;;  %v6805_v63 = vpop.f32.mrb[26].mxu1  ;;  %v14402_v11 = vld [vmem:[%s20498_s4 + $0x184] ss:$8 sps:$4 sm:$0xff]  }
 0x7b2   :  { %v6807_v61 = vpop.f32.mrb[27].mxu1  ;;  %8511 = vmatprep.subr.bf16.mxu1 %v14402_v11 }
 0x7b3   :  { %v7033_v62 = vmax.f32 %v6805_v63, %v6807_v61  ;;  %v18714_v16 = vmax.f32 %v7032_v58, 0.0  ;;  %v20734_v61 = vld [vmem:[#allocation40_spill] sm:$0xff] }
 0x7b4   :  { %7995 = vmatmul.mubr.bf16.gmra.mrb[100].mxu1 %v18648_v27 }
 0x7b5   :  { %20726 = vst [vmem:[#allocation24_spill] sm:$0xff] %v18714_v16  ;;  %v18716_v0 = vmax.f32 %v7033_v62, 0.0  ;;  %8004 = vmatprep.mubr.bf16.mxu1 %v20728_v22  ;;  %v20761_v16 = vld [vmem:[#allocation63_spill] sm:$0xff] }
 0x7b7   :  { %20727 = vst [vmem:[#allocation27_spill] sm:$0xff] %v18716_v0  ;;  %v6811_v42 = vpop.f32.mrb[28].mxu1  ;;  %v14418_v0 = vld [vmem:[%s20498_s4 + $0x1e0] ss:$8 sps:$4 sm:$0xff]  }
 0x7b8   :  { %v6813_v43 = vpop.f32.mrb[29].mxu1 }
 0x7b9   :  { %v7034_v7 = vmax.f32 %v6811_v42, %v6813_v43  ;;  %v6815_v6 = vpop.f32.mrb[30].mxu1 }
 0x7ba   :  { %v6817_v39 = vpop.f32.mrb[31].mxu1 }
 0x7bb   :  { %v7035_v25 = vmax.f32 %v6815_v6, %v6817_v39  ;;  %v18722_v32 = vmax.f32 %v7034_v7, 0.0 }
 0x7bc   :  { %8005 = vmatmul.mubr.bf16.gmra.mrb[104].mxu1 %v18654_v2  ;;  %v14400_v2 = vld [vmem:[%s20498_s4 + $0x180] ss:$8 sps:$4 sm:$0xff]  }
 0x7bd   :  { %20729 = vst [vmem:[#allocation26_spill] sm:$0xff] %v18722_v32  ;;  %v18724_v27 = vmax.f32 %v7035_v25, 0.0  ;;  %8014 = vmatprep.mubr.bf16.mxu1 %v20731_v38  ;;  %8512 = vmatpush1.bf16.msra.mxu1 %v14400_v2  ;;  %v20759_v32 = vld [vmem:[#allocation61_spill] sm:$0xff] }
 0x7bf   :  { %20730 = vst [vmem:[#allocation29_spill] sm:$0xff] %v18724_v27  ;;  %v6821_v37 = vpop.f32.mrb[32].mxu1  ;;  %v20760_v27 = vld [vmem:[#allocation62_spill] sm:$0xff] }
 0x7c0   :  { %v6823_v10 = vpop.f32.mrb[33].mxu1 }
 0x7c1   :  { %v7036_v35 = vmax.f32 %v6821_v37, %v6823_v10  ;;  %v6825_v20 = vpop.f32.mrb[34].mxu1 }
 0x7c2   :  { %v6827_v44 = vpop.f32.mrb[35].mxu1 }
 0x7c3   :  { %v7037_v5 = vmax.f32 %v6825_v20, %v6827_v44  ;;  %v18736_v58 = vmax.f32 %v7036_v35, 0.0  ;;  %v20737_v35 = vld [vmem:[#allocation41_spill] sm:$0xff] }
 0x7c4   :  { %8015 = vmatmul.mubr.bf16.gmra.mrb[108].mxu1 %v18660_v17  ;;  %v20747_v20 = vld [vmem:[#allocation49_spill] sm:$0xff] }
 0x7c5   :  { %20732 = vst [vmem:[#allocation28_spill] sm:$0xff] %v18736_v58  ;;  %v18738_v63 = vmax.f32 %v7037_v5, 0.0  ;;  %8024 = vmatprep.mubr.bf16.mxu1 %v20734_v61  ;;  %v20757_v58 = vld [vmem:[#allocation59_spill] sm:$0xff] }
 0x7c7   :  { %20733 = vst [vmem:[#allocation31_spill] sm:$0xff] %v18738_v63  ;;  %v6831_v42 = vpop.f32.mrb[36].mxu1  ;;  %v14415_v63 = vld [vmem:[%s20498_s4 + $0x1d0] ss:$8 sps:$4 sm:$0xff]  }
 0x7c8   :  { %v6833_v43 = vpop.f32.mrb[37].mxu1 }
 0x7c9   :  { %v7038_v7 = vmax.f32 %v6831_v42, %v6833_v43  ;;  %v6835_v6 = vpop.f32.mrb[38].mxu1 }
 0x7ca   :  { %v6837_v39 = vpop.f32.mrb[39].mxu1 }
 0x7cb   :  { %v7039_v25 = vmax.f32 %v6835_v6, %v6837_v39  ;;  %v18744_v37 = vmax.f32 %v7038_v7, 0.0  ;;  %v20740_v7 = vld [vmem:[#allocation42_spill] sm:$0xff] }
 0x7cc   :  { %8025 = vmatmul.mubr.bf16.gmra.mrb[112].mxu1 %v18670_v53  ;;  %v14406_v39 = vld [vmem:[%s20498_s4 + $0x1a0] ss:$8 sps:$4 sm:$0xff]  }
 0x7cd   :  { %20735 = vst [vmem:[#allocation30_spill] sm:$0xff] %v18744_v37  ;;  %v18746_v10 = vmax.f32 %v7039_v25, 0.0  ;;  %8034 = vmatprep.mubr.bf16.mxu1 %v20737_v35  ;;  %v20741_v25 = vld [vmem:[#allocation43_spill] sm:$0xff]  ;;  %v20755_v37 = vld [vmem:[#allocation57_spill] sm:$0xff] }
 0x7cf   :  { %20736 = vst [vmem:[#allocation33_spill] sm:$0xff] %v18746_v10  ;;  %v6841_v44 = vpop.f32.mrb[40].mxu1  ;;  %v20756_v10 = vld [vmem:[#allocation58_spill] sm:$0xff] }
 0x7d0   :  { %v6843_v5 = vpop.f32.mrb[41].mxu1 }
 0x7d1   :  { %v7040_v11 = vmax.f32 %v6841_v44, %v6843_v5  ;;  %v6845_v2 = vpop.f32.mrb[42].mxu1  ;;  %v14405_v44 = vld [vmem:[%s20498_s4 + $0x194] ss:$8 sps:$4 sm:$0xff]  }
 0x7d2   :  { %v6847_v62 = vpop.f32.mrb[43].mxu1  ;;  %v20742_v5 = vld [vmem:[#allocation44_spill] sm:$0xff]  ;;  %8513 = vmatprep.subr.bf16.mxu1 %v14405_v44 }
 0x7d3   :  { %v7041_v42 = vmax.f32 %v6845_v2, %v6847_v62  ;;  %v18752_v43 = vmax.f32 %v7040_v11, 0.0  ;;  %v14403_v62 = vld [vmem:[%s20498_s4 + $0x190] ss:$8 sps:$4 sm:$0xff]   ;;  %v20744_v2 = vld [vmem:[#allocation46_spill] sm:$0xff] }
 0x7d4   :  { %8035 = vmatmul.mubr.bf16.gmra.mrb[116].mxu1 %v18674_v31  ;;  %v20743_v11 = vld [vmem:[#allocation45_spill] sm:$0xff]  ;;  %v20746_v44 = vld [vmem:[#allocation48_spill] sm:$0xff] }
 0x7d5   :  { %20738 = vst [vmem:[#allocation32_spill] sm:$0xff] %v18752_v43  ;;  %v18754_v6 = vmax.f32 %v7041_v42, 0.0  ;;  %8044 = vmatprep.mubr.bf16.mxu1 %v20740_v7  ;;  %8514 = vmatpush1.bf16.msra.mxu1 %v14403_v62  ;;  %v20745_v42 = vld [vmem:[#allocation47_spill] sm:$0xff] }
 0x7d6   :  { %v14408_v62 = vld [vmem:[%s20498_s4 + $0x1a4] ss:$8 sps:$4 sm:$0xff]  }
 0x7d7   :  { %20739 = vst [vmem:[#allocation35_spill] sm:$0xff] %v18754_v6  ;;  %8515 = vmatprep.subr.bf16.mxu1 %v14408_v62  ;;  %v20750_v62 = vld [vmem:[#allocation52_spill] sm:$0xff]  ;;  %v20753_v43 = vld [vmem:[#allocation55_spill] sm:$0xff] }
 0x7d8   :  { %v14412_v6 = vld [vmem:[%s20498_s4 + $0x1c0] ss:$8 sps:$4 sm:$0xff]  }
 0x7d9   :  { %8516 = vmatpush1.bf16.msra.mxu1 %v14406_v39  ;;  %v14411_v39 = vld [vmem:[%s20498_s4 + $0x1b4] ss:$8 sps:$4 sm:$0xff]  }
 0x7da   :  { %8517 = vmatprep.subr.bf16.mxu1 %v14411_v39  ;;  %v20754_v39 = vld [vmem:[#allocation56_spill] sm:$0xff] }
 0x7dc   :  { %8045 = vmatmul.mubr.bf16.gmra.mrb[120].mxu1 %v18678_v21 }
 0x7dd   :  { %8054 = vmatprep.mubr.bf16.mxu1 %v20741_v25  ;;  %8518 = vmatpush1.bf16.msra.mxu1 %v14409_v30  ;;  %v14414_v30 = vld [vmem:[%s20498_s4 + $0x1c4] ss:$8 sps:$4 sm:$0xff]  }
 0x7de   :  { %8519 = vmatprep.subr.bf16.mxu1 %v14414_v30  ;;  %v20758_v30 = vld [vmem:[#allocation60_spill] sm:$0xff] }
 0x7e1   :  { %8520 = vmatpush1.bf16.msra.mxu1 %v14412_v6  ;;  %v14417_v6 = vld [vmem:[%s20498_s4 + $0x1d4] ss:$8 sps:$4 sm:$0xff]  }
 0x7e2   :  { %8521 = vmatprep.subr.bf16.mxu1 %v14417_v6  ;;  %v20762_v6 = vld [vmem:[#allocation64_spill] sm:$0xff] }
 0x7e4   :  { %8055 = vmatmul.mubr.bf16.gmra.mrb[124].mxu1 %v18688_v13 }
 0x7e5   :  { %8064 = vmatprep.mubr.bf16.mxu1 %v20742_v5  ;;  %8522 = vmatpush1.bf16.msra.mxu1 %v14415_v63  ;;  %v14420_v63 = vld [vmem:[%s20498_s4 + $0x1e4] ss:$8 sps:$4 sm:$0xff]  }
 0x7e6   :  { %8523 = vmatprep.subr.bf16.mxu1 %v14420_v63  ;;  %v20765_v63 = vld [vmem:[#allocation67_spill] sm:$0xff] }
 0x7e9   :  { %8524 = vmatpush1.bf16.msra.mxu1 %v14418_v0  ;;  %v14423_v0 = vld [vmem:[%s20498_s4 + $0x1f4] ss:$8 sps:$4 sm:$0xff]  }
 0x7ea   :  { %8525 = vmatprep.subr.bf16.mxu1 %v14423_v0  ;;  %v20769_v0 = vld [vmem:[#allocation71_spill] sm:$0xff] }
 0x7ec   :  { %8065 = vmatmul.mubr.bf16.gmra.mrb[128].mxu1 %v20722_v40 }
 0x7ed   :  { %8074 = vmatprep.mubr.bf16.mxu1 %v20743_v11  ;;  %8526 = vmatpush1.bf16.msra.mxu1 %v14421_v4  ;;  %v20770_v4 = vld [vmem:[#allocation72_spill] sm:$0xff] }
 0x7ee   :  { %9168 = vmatprep.subr.bf16.mxu1 %v14426_v47  ;;  %v20772_v47 = vld [vmem:[#allocation3_spill] sm:$0xff] }
 0x7f4   :  { %8075 = vmatmul.mubr.bf16.gmra.mrb[132].mxu1 %v20725_v41 }
 0x7f5   :  { %8084 = vmatprep.mubr.bf16.mxu1 %v20744_v2 }
 0x7fc   :  { %8085 = vmatmul.mubr.bf16.gmra.mrb[136].mxu1 %v20728_v22 }
 0x7fd   :  { %8094 = vmatprep.mubr.bf16.mxu1 %v20745_v42 }
 0x804   :  { %8095 = vmatmul.mubr.bf16.gmra.mrb[140].mxu1 %v20731_v38 }
 0x805   :  { %8104 = vmatprep.mubr.bf16.mxu1 %v20746_v44 }
 0x80c   :  { %8105 = vmatmul.mubr.bf16.gmra.mrb[144].mxu1 %v20734_v61 }
 0x80d   :  { %8114 = vmatprep.mubr.bf16.mxu1 %v20747_v20 }
 0x814   :  { %8115 = vmatmul.mubr.bf16.gmra.mrb[148].mxu1 %v20737_v35 }
 0x815   :  { %8124 = vmatprep.mubr.bf16.mxu1 %v20748_v49 }
 0x81c   :  { %8125 = vmatmul.mubr.bf16.gmra.mrb[152].mxu1 %v20740_v7 }
 0x81d   :  { %8134 = vmatprep.mubr.bf16.mxu1 %v20749_v54 }
 0x824   :  { %8135 = vmatmul.mubr.bf16.gmra.mrb[156].mxu1 %v20741_v25 }
 0x825   :  { %8144 = vmatprep.mubr.bf16.mxu1 %v20750_v62 }
 0x82c   :  { %8145 = vmatmul.mubr.bf16.gmra.mrb[160].mxu1 %v20742_v5 }
 0x82d   :  { %8154 = vmatprep.mubr.bf16.mxu1 %v20751_v19 }
 0x834   :  { %8155 = vmatmul.mubr.bf16.gmra.mrb[164].mxu1 %v20743_v11 }
 0x835   :  { %8164 = vmatprep.mubr.bf16.mxu1 %v20752_v33 }
 0x83c   :  { %8165 = vmatmul.mubr.bf16.gmra.mrb[168].mxu1 %v20744_v2 }
 0x83d   :  { %8174 = vmatprep.mubr.bf16.mxu1 %v20753_v43 }
 0x844   :  { %8175 = vmatmul.mubr.bf16.gmra.mrb[172].mxu1 %v20745_v42 }
 0x845   :  { %8184 = vmatprep.mubr.bf16.mxu1 %v20754_v39 }
 0x84c   :  { %8185 = vmatmul.mubr.bf16.gmra.mrb[176].mxu1 %v20746_v44 }
 0x84d   :  { %8194 = vmatprep.mubr.bf16.mxu1 %v20755_v37 }
 0x854   :  { %8195 = vmatmul.mubr.bf16.gmra.mrb[180].mxu1 %v20747_v20 }
 0x855   :  { %8204 = vmatprep.mubr.bf16.mxu1 %v20756_v10 }
 0x85c   :  { %8205 = vmatmul.mubr.bf16.gmra.mrb[184].mxu1 %v20748_v49 }
 0x85d   :  { %8214 = vmatprep.mubr.bf16.mxu1 %v20757_v58 }
 0x864   :  { %8215 = vmatmul.mubr.bf16.gmra.mrb[188].mxu1 %v20749_v54 }
 0x865   :  { %8224 = vmatprep.mubr.bf16.mxu1 %v20758_v30 }
 0x86c   :  { %8225 = vmatmul.mubr.bf16.gmra.mrb[192].mxu1 %v20750_v62 }
 0x86d   :  { %8234 = vmatprep.mubr.bf16.mxu1 %v20759_v32 }
 0x874   :  { %8235 = vmatmul.mubr.bf16.gmra.mrb[196].mxu1 %v20751_v19 }
 0x875   :  { %8244 = vmatprep.mubr.bf16.mxu1 %v20760_v27 }
 0x87c   :  { %8245 = vmatmul.mubr.bf16.gmra.mrb[200].mxu1 %v20752_v33 }
 0x87d   :  { %8254 = vmatprep.mubr.bf16.mxu1 %v20761_v16 }
 0x884   :  { %8255 = vmatmul.mubr.bf16.gmra.mrb[204].mxu1 %v20753_v43 }
 0x885   :  { %8264 = vmatprep.mubr.bf16.mxu1 %v20762_v6 }
 0x88c   :  { %8265 = vmatmul.mubr.bf16.gmra.mrb[208].mxu1 %v20754_v39 }
 0x88d   :  { %8274 = vmatprep.mubr.bf16.mxu1 %v20763_v9 }
 0x894   :  { %8275 = vmatmul.mubr.bf16.gmra.mrb[212].mxu1 %v20755_v37 }
 0x895   :  { %8284 = vmatprep.mubr.bf16.mxu1 %v20764_v8 }
 0x89c   :  { %8285 = vmatmul.mubr.bf16.gmra.mrb[216].mxu1 %v20756_v10 }
 0x89d   :  { %8294 = vmatprep.mubr.bf16.mxu1 %v17544_v24 }
 0x8a4   :  { %8295 = vmatmul.mubr.bf16.gmra.mrb[220].mxu1 %v20757_v58 }
 0x8a5   :  { %8304 = vmatprep.mubr.bf16.mxu1 %v20765_v63 }
 0x8ac   :  { %8305 = vmatmul.mubr.bf16.gmra.mrb[224].mxu1 %v20758_v30 }
 0x8ad   :  { %8314 = vmatprep.mubr.bf16.mxu1 %v20766_v59 }
 0x8b4   :  { %8315 = vmatmul.mubr.bf16.gmra.mrb[228].mxu1 %v20759_v32 }
 0x8b5   :  { %8324 = vmatprep.mubr.bf16.mxu1 %v20767_v14 }
 0x8bc   :  { %8325 = vmatmul.mubr.bf16.gmra.mrb[232].mxu1 %v20760_v27 }
 0x8bd   :  { %8334 = vmatprep.mubr.bf16.mxu1 %v20768_v15 }
 0x8c4   :  { %8335 = vmatmul.mubr.bf16.gmra.mrb[236].mxu1 %v20761_v16 }
 0x8c5   :  { %8344 = vmatprep.mubr.bf16.mxu1 %v20769_v0 }
 0x8cc   :  { %8345 = vmatmul.mubr.bf16.gmra.mrb[240].mxu1 %v20762_v6 }
 0x8cd   :  { %8354 = vmatprep.mubr.bf16.mxu1 %v20770_v4 }
 0x8d4   :  { %8355 = vmatmul.mubr.bf16.gmra.mrb[244].mxu1 %v20763_v9 }
 0x8d5   :  { %8364 = vmatprep.mubr.bf16.mxu1 %v20771_v28 }
 0x8dc   :  { %8365 = vmatmul.mubr.bf16.gmra.mrb[248].mxu1 %v20764_v8 }
 0x8dd   :  { %8374 = vmatprep.mubr.bf16.mxu1 %v17858_v45 }
 0x8e4   :  { %8375 = vmatmul.mubr.bf16.gmra.mrb[252].mxu1 %v17544_v24 }
 0x8e5   :  { %8384 = vmatprep.mubr.bf16.mxu1 %v17886_v51 }
 0x8ec   :  { %8385 = vmatmul.mubr.bf16.gmra.mrb[0].mxu1 %v20765_v63 }
 0x8ed   :  { %8394 = vmatprep.mubr.bf16.mxu1 %v17908_v36 }
 0x8f4   :  { %8395 = vmatmul.mubr.bf16.gmra.mrb[4].mxu1 %v20766_v59 }
 0x8f5   :  { %8404 = vmatprep.mubr.bf16.mxu1 %v17930_v34 }
 0x8fc   :  { %8405 = vmatmul.mubr.bf16.gmra.mrb[8].mxu1 %v20767_v14 }
 0x8fd   :  { %8414 = vmatprep.mubr.bf16.mxu1 %v18099_v29 }
 0x904   :  { %8415 = vmatmul.mubr.bf16.gmra.mrb[12].mxu1 %v20768_v15 }
 0x905   :  { %8424 = vmatprep.mubr.bf16.mxu1 %v18112_v48 }
 0x90c   :  { %8425 = vmatmul.mubr.bf16.gmra.mrb[16].mxu1 %v20769_v0 }
 0x90d   :  { %8434 = vmatprep.mubr.bf16.mxu1 %v18131_v1 }
 0x914   :  { %8435 = vmatmul.mubr.bf16.gmra.mrb[20].mxu1 %v20770_v4 }
 0x915   :  { %8444 = vmatprep.mubr.bf16.mxu1 %v18144_v60 }
 0x91c   :  { %8445 = vmatmul.mubr.bf16.gmra.mrb[24].mxu1 %v20771_v28 }
 0x91d   :  { %8454 = vmatprep.mubr.bf16.mxu1 %v18161_v50 }
 0x924   :  { %8455 = vmatmul.mubr.bf16.gmra.mrb[28].mxu1 %v17858_v45 }
 0x925   :  { %8464 = vmatprep.mubr.bf16.mxu1 %v20772_v47 }
 0x92c   :  { %8465 = vmatmul.mubr.bf16.gmra.mrb[32].mxu1 %v17886_v51 }
 0x92d   :  { %8474 = vmatprep.mubr.bf16.mxu1 %v20773_v18 }
 0x934   :  { %8475 = vmatmul.mubr.bf16.gmra.mrb[36].mxu1 %v17908_v36 }
 0x935   :  { %8484 = vmatprep.mubr.bf16.mxu1 %v20774_v56 }
 0x93c   :  { %8485 = vmatmul.mubr.bf16.gmra.mrb[40].mxu1 %v17930_v34 }
 0x93d   :  { %8527 = vmatprep.mubr.bf16.mxu1 %v20731_v38 }
 0x944   :  { %8528 = vmatmul.mubr.bf16.vlgmr.msra.gmra.mrb[44].mxu1 %v18660_v17  ;;  %v14441_v17 = vld [vmem:[%s20498_s4 + $0x254] ss:$8 sps:$4 sm:$0xff]  }
 0x945   :  { %8537 = vmatprep.mubr.bf16.mxu1 %v20734_v61  ;;  %9169 = vmatpush1.bf16.msra.mxu1 %v14424_v3  ;;  %v14439_v3 = vld [vmem:[%s20498_s4 + $0x250] ss:$8 sps:$4 sm:$0xff]  }
 0x946   :  { %9170 = vmatprep.subr.bf16.mxu1 %v14429_v57  ;;  %v14438_v57 = vld [vmem:[%s20498_s4 + $0x244] ss:$8 sps:$4 sm:$0xff]  }
 0x949   :  { %9171 = vmatpush1.bf16.msra.mxu1 %v14427_v12  ;;  %v14436_v12 = vld [vmem:[%s20498_s4 + $0x240] ss:$8 sps:$4 sm:$0xff]  }
 0x94a   :  { %9172 = vmatprep.subr.bf16.mxu1 %v14432_v46  ;;  %v14435_v46 = vld [vmem:[%s20498_s4 + $0x234] ss:$8 sps:$4 sm:$0xff]  }
 0x94c   :  { %8538 = vmatmul.mubr.bf16.gmra.mrb[48].mxu1 %v18670_v53  ;;  %v14442_v53 = vld [vmem:[%s20498_s4 + $0x260] ss:$8 sps:$4 sm:$0xff]  }
 0x94d   :  { %8547 = vmatprep.mubr.bf16.mxu1 %v20737_v35  ;;  %9173 = vmatpush1.bf16.msra.mxu1 %v14430_v55  ;;  %v14433_v55 = vld [vmem:[%s20498_s4 + $0x230] ss:$8 sps:$4 sm:$0xff]  }
 0x94e   :  { %9174 = vmatprep.subr.bf16.mxu1 %v14435_v46  ;;  %v20787_v46 = vld [vmem:[#allocation19_spill] sm:$0xff] }
 0x951   :  { %9175 = vmatpush1.bf16.msra.mxu1 %v14433_v55  ;;  %v20786_v55 = vld [vmem:[#allocation16_spill] sm:$0xff] }
 0x952   :  { %9176 = vmatprep.subr.bf16.mxu1 %v14438_v57  ;;  %v14475_v57 = vld [vmem:[%s20499_s6 + $0x90] ss:$8 sps:$4 sm:$0xff]  }
 0x954   :  { %8548 = vmatmul.mubr.bf16.gmra.mrb[52].mxu1 %v18674_v31  ;;  %v14444_v31 = vld [vmem:[%s20498_s4 + $0x264] ss:$8 sps:$4 sm:$0xff]  }
 0x955   :  { %8557 = vmatprep.mubr.bf16.mxu1 %v20740_v7  ;;  %9177 = vmatpush1.bf16.msra.mxu1 %v14436_v12  ;;  %v20582_v12 = vmov 0  }
 0x956   :  { %9178 = vmatprep.subr.bf16.mxu1 %v14441_v17 }
 0x959   :  { %9179 = vmatpush1.bf16.msra.mxu1 %v14439_v3 }
 0x95a   :  { %9180 = vmatprep.subr.bf16.mxu1 %v14444_v31 }
 0x95c   :  { %8558 = vmatmul.mubr.bf16.gmra.mrb[56].mxu1 %v18678_v21  ;;  %v14445_v21 = vld [vmem:[%s20498_s4 + $0x270] ss:$8 sps:$4 sm:$0xff]  }
 0x95d   :  { %8567 = vmatprep.mubr.bf16.mxu1 %v20741_v25  ;;  %9181 = vmatpush1.bf16.msra.mxu1 %v14442_v53 }
 0x964   :  { %8568 = vmatmul.mubr.bf16.gmra.mrb[60].mxu1 %v18688_v13  ;;  %v14447_v13 = vld [vmem:[%s20498_s4 + $0x274] ss:$8 sps:$4 sm:$0xff]  }
 0x965   :  { %8577 = vmatprep.mubr.bf16.mxu1 %v20742_v5  ;;  %9182 = vmatprep.subr.bf16.mxu1 %v14447_v13 }
 0x966   :  { %9183 = vmatpush1.bf16.msra.mxu1 %v14445_v21 }
 0x96c   :  { %8578 = vmatmul.mubr.bf16.gmra.mrb[64].mxu1 %v20722_v40  ;;  %v20775_v40 = vld [vmem:[#allocation7_spill] sm:$0xff] }
 0x96d   :  { %8587 = vmatprep.mubr.bf16.mxu1 %v20743_v11 }
 0x974   :  { %8588 = vmatmul.mubr.bf16.gmra.mrb[68].mxu1 %v20725_v41  ;;  %v20776_v41 = vld [vmem:[#allocation6_spill] sm:$0xff] }
 0x975   :  { %8597 = vmatprep.mubr.bf16.mxu1 %v20744_v2 }
 0x97c   :  { %8598 = vmatmul.mubr.bf16.gmra.mrb[72].mxu1 %v20728_v22  ;;  %v20777_v22 = vld [vmem:[#allocation9_spill] sm:$0xff] }
 0x97d   :  { %8607 = vmatprep.mubr.bf16.mxu1 %v20745_v42 }
 0x984   :  { %8608 = vmatmul.mubr.bf16.gmra.mrb[76].mxu1 %v20731_v38  ;;  %v20778_v38 = vld [vmem:[#allocation8_spill] sm:$0xff] }
 0x985   :  { %8617 = vmatprep.mubr.bf16.mxu1 %v20746_v44 }
 0x98c   :  { %8618 = vmatmul.mubr.bf16.gmra.mrb[80].mxu1 %v20734_v61  ;;  %v20779_v61 = vld [vmem:[#allocation11_spill] sm:$0xff] }
 0x98d   :  { %8627 = vmatprep.mubr.bf16.mxu1 %v20747_v20 }
 0x994   :  { %8628 = vmatmul.mubr.bf16.gmra.mrb[84].mxu1 %v20737_v35  ;;  %v20780_v35 = vld [vmem:[#allocation10_spill] sm:$0xff] }
 0x995   :  { %8637 = vmatprep.mubr.bf16.mxu1 %v20748_v49 }
 0x99c   :  { %8638 = vmatmul.mubr.bf16.gmra.mrb[88].mxu1 %v20740_v7  ;;  %v20781_v7 = vld [vmem:[#allocation13_spill] sm:$0xff] }
 0x99d   :  { %8647 = vmatprep.mubr.bf16.mxu1 %v20749_v54 }
 0x9a4   :  { %8648 = vmatmul.mubr.bf16.gmra.mrb[92].mxu1 %v20741_v25  ;;  %v20782_v25 = vld [vmem:[#allocation12_spill] sm:$0xff] }
 0x9a5   :  { %8657 = vmatprep.mubr.bf16.mxu1 %v20750_v62 }
 0x9ac   :  { %8658 = vmatmul.mubr.bf16.gmra.mrb[96].mxu1 %v20742_v5  ;;  %v20783_v5 = vld [vmem:[#allocation15_spill] sm:$0xff] }
 0x9ad   :  { %8667 = vmatprep.mubr.bf16.mxu1 %v20751_v19 }
 0x9b4   :  { %8668 = vmatmul.mubr.bf16.gmra.mrb[100].mxu1 %v20743_v11  ;;  %v20784_v11 = vld [vmem:[#allocation14_spill] sm:$0xff] }
 0x9b5   :  { %8677 = vmatprep.mubr.bf16.mxu1 %v20752_v33 }
 0x9bc   :  { %8678 = vmatmul.mubr.bf16.gmra.mrb[104].mxu1 %v20744_v2  ;;  %v20785_v2 = vld [vmem:[#allocation17_spill] sm:$0xff] }
 0x9bd   :  { %8687 = vmatprep.mubr.bf16.mxu1 %v20753_v43 }
 0x9c4   :  { %8688 = vmatmul.mubr.bf16.gmra.mrb[108].mxu1 %v20745_v42 }
 0x9c5   :  { %8697 = vmatprep.mubr.bf16.mxu1 %v20754_v39 }
 0x9cc   :  { %8698 = vmatmul.mubr.bf16.gmra.mrb[112].mxu1 %v20746_v44 }
 0x9cd   :  { %8707 = vmatprep.mubr.bf16.mxu1 %v20755_v37 }
 0x9d4   :  { %8708 = vmatmul.mubr.bf16.gmra.mrb[116].mxu1 %v20747_v20 }
 0x9d5   :  { %8717 = vmatprep.mubr.bf16.mxu1 %v20756_v10 }
 0x9dc   :  { %8718 = vmatmul.mubr.bf16.gmra.mrb[120].mxu1 %v20748_v49 }
 0x9dd   :  { %8727 = vmatprep.mubr.bf16.mxu1 %v20757_v58 }
 0x9e4   :  { %8728 = vmatmul.mubr.bf16.gmra.mrb[124].mxu1 %v20749_v54 }
 0x9e5   :  { %8737 = vmatprep.mubr.bf16.mxu1 %v20758_v30 }
 0x9ec   :  { %8738 = vmatmul.mubr.bf16.gmra.mrb[128].mxu1 %v20750_v62 }
 0x9ed   :  { %8747 = vmatprep.mubr.bf16.mxu1 %v20759_v32 }
 0x9f4   :  { %8748 = vmatmul.mubr.bf16.gmra.mrb[132].mxu1 %v20751_v19 }
 0x9f5   :  { %8757 = vmatprep.mubr.bf16.mxu1 %v20760_v27 }
 0x9fc   :  { %8758 = vmatmul.mubr.bf16.gmra.mrb[136].mxu1 %v20752_v33 }
 0x9fd   :  { %8767 = vmatprep.mubr.bf16.mxu1 %v20761_v16 }
 0xa04   :  { %8768 = vmatmul.mubr.bf16.gmra.mrb[140].mxu1 %v20753_v43 }
 0xa05   :  { %8777 = vmatprep.mubr.bf16.mxu1 %v20762_v6 }
 0xa0c   :  { %8778 = vmatmul.mubr.bf16.gmra.mrb[144].mxu1 %v20754_v39 }
 0xa0d   :  { %8787 = vmatprep.mubr.bf16.mxu1 %v20763_v9 }
 0xa14   :  { %8788 = vmatmul.mubr.bf16.gmra.mrb[148].mxu1 %v20755_v37 }
 0xa15   :  { %8797 = vmatprep.mubr.bf16.mxu1 %v20764_v8 }
 0xa1c   :  { %8798 = vmatmul.mubr.bf16.gmra.mrb[152].mxu1 %v20756_v10 }
 0xa1d   :  { %8807 = vmatprep.mubr.bf16.mxu1 %v17544_v24 }
 0xa24   :  { %8808 = vmatmul.mubr.bf16.gmra.mrb[156].mxu1 %v20757_v58 }
 0xa25   :  { %8817 = vmatprep.mubr.bf16.mxu1 %v20765_v63 }
 0xa2c   :  { %8818 = vmatmul.mubr.bf16.gmra.mrb[160].mxu1 %v20758_v30 }
 0xa2d   :  { %8827 = vmatprep.mubr.bf16.mxu1 %v20766_v59 }
 0xa34   :  { %8828 = vmatmul.mubr.bf16.gmra.mrb[164].mxu1 %v20759_v32 }
 0xa35   :  { %8837 = vmatprep.mubr.bf16.mxu1 %v20767_v14 }
 0xa3c   :  { %8838 = vmatmul.mubr.bf16.gmra.mrb[168].mxu1 %v20760_v27 }
 0xa3d   :  { %8847 = vmatprep.mubr.bf16.mxu1 %v20768_v15 }
 0xa44   :  { %8848 = vmatmul.mubr.bf16.gmra.mrb[172].mxu1 %v20761_v16 }
 0xa45   :  { %8857 = vmatprep.mubr.bf16.mxu1 %v20769_v0 }
 0xa4c   :  { %8858 = vmatmul.mubr.bf16.gmra.mrb[176].mxu1 %v20762_v6 }
 0xa4d   :  { %8867 = vmatprep.mubr.bf16.mxu1 %v20770_v4 }
 0xa54   :  { %8868 = vmatmul.mubr.bf16.gmra.mrb[180].mxu1 %v20763_v9 }
 0xa55   :  { %8877 = vmatprep.mubr.bf16.mxu1 %v20771_v28 }
 0xa5c   :  { %8878 = vmatmul.mubr.bf16.gmra.mrb[184].mxu1 %v20764_v8 }
 0xa5d   :  { %8887 = vmatprep.mubr.bf16.mxu1 %v17858_v45 }
 0xa64   :  { %8888 = vmatmul.mubr.bf16.gmra.mrb[188].mxu1 %v17544_v24 }
 0xa65   :  { %8897 = vmatprep.mubr.bf16.mxu1 %v17886_v51 }
 0xa6c   :  { %8898 = vmatmul.mubr.bf16.gmra.mrb[192].mxu1 %v20765_v63 }
 0xa6d   :  { %8907 = vmatprep.mubr.bf16.mxu1 %v17908_v36 }
 0xa74   :  { %8908 = vmatmul.mubr.bf16.gmra.mrb[196].mxu1 %v20766_v59 }
 0xa75   :  { %8917 = vmatprep.mubr.bf16.mxu1 %v17930_v34 }
 0xa7c   :  { %8918 = vmatmul.mubr.bf16.gmra.mrb[200].mxu1 %v20767_v14 }
 0xa7d   :  { %8927 = vmatprep.mubr.bf16.mxu1 %v18099_v29 }
 0xa84   :  { %8928 = vmatmul.mubr.bf16.gmra.mrb[204].mxu1 %v20768_v15 }
 0xa85   :  { %8937 = vmatprep.mubr.bf16.mxu1 %v18112_v48 }
 0xa8c   :  { %8938 = vmatmul.mubr.bf16.gmra.mrb[208].mxu1 %v20769_v0 }
 0xa8d   :  { %8947 = vmatprep.mubr.bf16.mxu1 %v18131_v1 }
 0xa94   :  { %8948 = vmatmul.mubr.bf16.gmra.mrb[212].mxu1 %v20770_v4 }
 0xa95   :  { %8957 = vmatprep.mubr.bf16.mxu1 %v18144_v60 }
 0xa9c   :  { %8958 = vmatmul.mubr.bf16.gmra.mrb[216].mxu1 %v20771_v28 }
 0xa9d   :  { %8967 = vmatprep.mubr.bf16.mxu1 %v18161_v50 }
 0xaa4   :  { %8968 = vmatmul.mubr.bf16.gmra.mrb[220].mxu1 %v17858_v45 }
 0xaa5   :  { %8977 = vmatprep.mubr.bf16.mxu1 %v20772_v47 }
 0xaac   :  { %8978 = vmatmul.mubr.bf16.gmra.mrb[224].mxu1 %v17886_v51 }
 0xaad   :  { %8987 = vmatprep.mubr.bf16.mxu1 %v20773_v18 }
 0xab4   :  { %8988 = vmatmul.mubr.bf16.gmra.mrb[228].mxu1 %v17908_v36 }
 0xab5   :  { %8997 = vmatprep.mubr.bf16.mxu1 %v20774_v56 }
 0xabc   :  { %8998 = vmatmul.mubr.bf16.gmra.mrb[232].mxu1 %v17930_v34 }
 0xabd   :  { %9007 = vmatprep.mubr.bf16.mxu1 %v20775_v40 }
 0xac4   :  { %9008 = vmatmul.mubr.bf16.gmra.mrb[236].mxu1 %v18099_v29 }
 0xac5   :  { %9017 = vmatprep.mubr.bf16.mxu1 %v20776_v41 }
 0xacc   :  { %9018 = vmatmul.mubr.bf16.gmra.mrb[240].mxu1 %v18112_v48 }
 0xacd   :  { %9027 = vmatprep.mubr.bf16.mxu1 %v20777_v22 }
 0xad4   :  { %9028 = vmatmul.mubr.bf16.gmra.mrb[244].mxu1 %v18131_v1 }
 0xad5   :  { %9037 = vmatprep.mubr.bf16.mxu1 %v20778_v38 }
 0xadc   :  { %9038 = vmatmul.mubr.bf16.gmra.mrb[248].mxu1 %v18144_v60 }
 0xadd   :  { %9047 = vmatprep.mubr.bf16.mxu1 %v18411_v52 }
 0xae4   :  { %9048 = vmatmul.mubr.bf16.gmra.mrb[252].mxu1 %v18161_v50 }
 0xae5   :  { %9057 = vmatprep.mubr.bf16.mxu1 %v18430_v26 }
 0xaec   :  { %9058 = vmatmul.mubr.bf16.gmra.mrb[0].mxu1 %v20772_v47 }
 0xaed   :  { %9067 = vmatprep.mubr.bf16.mxu1 %v18445_v23 }
 0xaf4   :  { %9068 = vmatmul.mubr.bf16.gmra.mrb[4].mxu1 %v20773_v18 }
 0xaf5   :  { %9077 = vmatprep.mubr.bf16.mxu1 %v20779_v61 }
 0xafc   :  { %9078 = vmatmul.mubr.bf16.gmra.mrb[8].mxu1 %v20774_v56 }
 0xafd   :  { %9087 = vmatprep.mubr.bf16.mxu1 %v20780_v35 }
 0xb04   :  { %9088 = vmatmul.mubr.bf16.gmra.mrb[12].mxu1 %v20775_v40 }
 0xb05   :  { %9097 = vmatprep.mubr.bf16.mxu1 %v20781_v7 }
 0xb0c   :  { %9098 = vmatmul.mubr.bf16.gmra.mrb[16].mxu1 %v20776_v41 }
 0xb0d   :  { %9107 = vmatprep.mubr.bf16.mxu1 %v20782_v25  ;;  %v20791_v25 = vmov 0  }
 0xb14   :  { %9108 = vmatmul.mubr.bf16.gmra.mrb[20].mxu1 %v20777_v22 }
 0xb15   :  { %9117 = vmatprep.mubr.bf16.mxu1 %v20783_v5 }
 0xb1c   :  { %9118 = vmatmul.mubr.bf16.gmra.mrb[24].mxu1 %v20778_v38 }
 0xb1d   :  { %9127 = vmatprep.mubr.bf16.mxu1 %v20784_v11 }
 0xb24   :  { %9128 = vmatmul.mubr.bf16.gmra.mrb[28].mxu1 %v18411_v52 }
 0xb25   :  { %9137 = vmatprep.mubr.bf16.mxu1 %v20785_v2 }
 0xb2c   :  { %9138 = vmatmul.mubr.bf16.gmra.mrb[32].mxu1 %v18430_v26 }
 0xb2d   :  { %9147 = vmatprep.mubr.bf16.mxu1 %v20786_v55 }
 0xb34   :  { %9148 = vmatmul.mubr.bf16.gmra.mrb[36].mxu1 %v18445_v23 }
 0xb35   :  { %9157 = vmatprep.mubr.bf16.mxu1 %v20787_v46 }
 0xb3c   :  { %9158 = vmatmul.mubr.bf16.gmra.mrb[40].mxu1 %v20779_v61 }
 0xb3d   :  { %9200 = vmatprep.mubr.bf16.mxu1 %v20582_v12 }
 0xb44   :  { %9201 = vmatmul.mubr.bf16.vlgmr.msra.gmra.mrb[44].mxu1 %v20745_v42  ;;  %v14468_v42 = vld [vmem:[%s20499_s6 + $0x64] ss:$8 sps:$4 sm:$0xff]  }
 0xb45   :  { %9210 = vmatprep.mubr.bf16.mxu1 %v20582_v12 }
 0xb4c   :  { %9211 = vmatmul.mubr.bf16.gmra.mrb[48].mxu1 %v20746_v44  ;;  %v14466_v44 = vld [vmem:[%s20499_s6 + $0x60] ss:$8 sps:$4 sm:$0xff]  }
 0xb4d   :  { %9220 = vmatprep.mubr.bf16.mxu1 %v20582_v12 }
 0xb54   :  { %9221 = vmatmul.mubr.bf16.gmra.mrb[52].mxu1 %v20747_v20  ;;  %v14463_v20 = vld [vmem:[%s20499_s6 + $0x50] ss:$8 sps:$4 sm:$0xff]  }
 0xb55   :  { %9230 = vmatprep.mubr.bf16.mxu1 %v20582_v12 }
 0xb5c   :  { %9231 = vmatmul.mubr.bf16.gmra.mrb[56].mxu1 %v20748_v49  ;;  %v14456_v49 = vld [vmem:[%s20499_s6 + $0x24] ss:$8 sps:$4 sm:$0xff]  }
 0xb5d   :  { %9240 = vmatprep.mubr.bf16.mxu1 %v20582_v12 }
 0xb64   :  { %9241 = vmatmul.mubr.bf16.gmra.mrb[60].mxu1 %v20749_v54  ;;  %v14451_v54 = vld [vmem:[%s20499_s6 + $0x10] ss:$8 sps:$4 sm:$0xff]  }
 0xb65   :  { %9250 = vmatprep.mubr.bf16.mxu1 %v20582_v12 }
 0xb6c   :  { %9251 = vmatmul.mubr.bf16.gmra.mrb[64].mxu1 %v20750_v62  ;;  %v14469_v62 = vld [vmem:[%s20499_s6 + $0x70] ss:$8 sps:$4 sm:$0xff]  }
 0xb6d   :  { %9260 = vmatprep.mubr.bf16.mxu1 %v20582_v12 }
 0xb74   :  { %9261 = vmatmul.mubr.bf16.gmra.mrb[68].mxu1 %v20751_v19  ;;  %v14448_v19 = vld [vmem:[%s20499_s6] ss:$8 sps:$4 sm:$0xff]  }
 0xb75   :  { %9270 = vmatprep.mubr.bf16.mxu1 %v20582_v12 }
 0xb7c   :  { %9271 = vmatmul.mubr.bf16.gmra.mrb[72].mxu1 %v20752_v33  ;;  %v14450_v33 = vld [vmem:[%s20499_s6 + $0x4] ss:$8 sps:$4 sm:$0xff]  }
 0xb7d   :  { %9280 = vmatprep.mubr.bf16.mxu1 %v20582_v12  ;;  %10250 = vmatprep.subr.bf16.mxu0 %v14450_v33 }
 0xb7e   :  { %10251 = vmatpush1.bf16.msra.mxu0 %v14448_v19 }
 0xb84   :  { %9281 = vmatmul.mubr.bf16.gmra.mrb[76].mxu1 %v20753_v43  ;;  %v14465_v43 = vld [vmem:[%s20499_s6 + $0x54] ss:$8 sps:$4 sm:$0xff]  }
 0xb85   :  { %9290 = vmatprep.mubr.bf16.mxu1 %v20582_v12 }
 0xb8c   :  { %9291 = vmatmul.mubr.bf16.gmra.mrb[80].mxu1 %v20754_v39  ;;  %v14471_v39 = vld [vmem:[%s20499_s6 + $0x74] ss:$8 sps:$4 sm:$0xff]  }
 0xb8d   :  { %9300 = vmatprep.mubr.bf16.mxu1 %v20582_v12 }
 0xb94   :  { %9301 = vmatmul.mubr.bf16.gmra.mrb[84].mxu1 %v20755_v37  ;;  %v14459_v37 = vld [vmem:[%s20499_s6 + $0x34] ss:$8 sps:$4 sm:$0xff]  }
 0xb95   :  { %9310 = vmatprep.mubr.bf16.mxu1 %v20582_v12 }
 0xb9c   :  { %9311 = vmatmul.mubr.bf16.gmra.mrb[88].mxu1 %v20756_v10  ;;  %v14462_v10 = vld [vmem:[%s20499_s6 + $0x44] ss:$8 sps:$4 sm:$0xff]  }
 0xb9d   :  { %9320 = vmatprep.mubr.bf16.mxu1 %v20582_v12 }
 0xba4   :  { %9321 = vmatmul.mubr.bf16.gmra.mrb[92].mxu1 %v20757_v58  ;;  %v14457_v58 = vld [vmem:[%s20499_s6 + $0x30] ss:$8 sps:$4 sm:$0xff]  }
 0xba5   :  { %9330 = vmatprep.mubr.bf16.mxu1 %v20582_v12 }
 0xbac   :  { %9331 = vmatmul.mubr.bf16.gmra.mrb[96].mxu1 %v20758_v30  ;;  %v14474_v30 = vld [vmem:[%s20499_s6 + $0x84] ss:$8 sps:$4 sm:$0xff]  }
 0xbad   :  { %9340 = vmatprep.mubr.bf16.mxu1 %v20582_v12 }
 0xbb4   :  { %9341 = vmatmul.mubr.bf16.gmra.mrb[100].mxu1 %v20759_v32  ;;  %v14453_v32 = vld [vmem:[%s20499_s6 + $0x14] ss:$8 sps:$4 sm:$0xff]  }
 0xbb5   :  { %9350 = vmatprep.mubr.bf16.mxu1 %v20582_v12  ;;  %10252 = vmatprep.subr.bf16.mxu0 %v14453_v32 }
 0xbb6   :  { %10253 = vmatpush1.bf16.msra.mxu0 %v14451_v54 }
 0xbb7   :  { %10254 = vmatprep.subr.bf16.mxu0 %v14456_v49 }
 0xbbc   :  { %9351 = vmatmul.mubr.bf16.gmra.mrb[104].mxu1 %v20760_v27  ;;  %v14454_v27 = vld [vmem:[%s20499_s6 + $0x20] ss:$8 sps:$4 sm:$0xff]  }
 0xbbd   :  { %9360 = vmatprep.mubr.bf16.mxu1 %v20582_v12  ;;  %10255 = vmatpush1.bf16.msra.mxu0 %v14454_v27 }
 0xbbe   :  { %10256 = vmatprep.subr.bf16.mxu0 %v14459_v37 }
 0xbc1   :  { %10257 = vmatpush1.bf16.msra.mxu0 %v14457_v58 }
 0xbc2   :  { %10258 = vmatprep.subr.bf16.mxu0 %v14462_v10 }
 0xbc4   :  { %9361 = vmatmul.mubr.bf16.gmra.mrb[108].mxu1 %v20761_v16  ;;  %v14460_v16 = vld [vmem:[%s20499_s6 + $0x40] ss:$8 sps:$4 sm:$0xff]  }
 0xbc5   :  { %9370 = vmatprep.mubr.bf16.mxu1 %v20582_v12  ;;  %10259 = vmatpush1.bf16.msra.mxu0 %v14460_v16 }
 0xbc6   :  { %10260 = vmatprep.subr.bf16.mxu0 %v14465_v43 }
 0xbc9   :  { %10261 = vmatpush1.bf16.msra.mxu0 %v14463_v20 }
 0xbca   :  { %10262 = vmatprep.subr.bf16.mxu0 %v14468_v42 }
 0xbcc   :  { %9371 = vmatmul.mubr.bf16.gmra.mrb[112].mxu1 %v20762_v6  ;;  %v14477_v6 = vld [vmem:[%s20499_s6 + $0x94] ss:$8 sps:$4 sm:$0xff]  }
 0xbcd   :  { %9380 = vmatprep.mubr.bf16.mxu1 %v20582_v12  ;;  %10263 = vmatpush1.bf16.msra.mxu0 %v14466_v44  ;;  %v20788_v44 = vld [vmem:[#allocation2_spill] sm:$0xff] }
 0xbce   :  { %10264 = vmatprep.subr.bf16.mxu0 %v14471_v39 }
 0xbd1   :  { %10265 = vmatpush1.bf16.msra.mxu0 %v14469_v62  ;;  %v20789_v62 = vsub.s32 0, %v20788_v44 }
 0xbd2   :  { %10266 = vmatprep.subr.bf16.mxu0 %v14474_v30 }
 0xbd4   :  { %9381 = vmatmul.mubr.bf16.gmra.mrb[116].mxu1 %v20763_v9  ;;  %v14472_v9 = vld [vmem:[%s20499_s6 + $0x80] ss:$8 sps:$4 sm:$0xff]  }
 0xbd5   :  { %9390 = vmatprep.mubr.bf16.mxu1 %v20582_v12  ;;  %10267 = vmatpush1.bf16.msra.mxu0 %v14472_v9 }
 0xbd6   :  { %10268 = vmatprep.subr.bf16.mxu0 %v14477_v6 }
 0xbd9   :  { %10269 = vmatpush1.bf16.msra.mxu0 %v14475_v57 }
 0xbdc   :  { %9391 = vmatmul.mubr.bf16.gmra.mrb[120].mxu1 %v20764_v8 }
 0xbdd   :  { %9400 = vmatprep.mubr.bf16.mxu1 %v20582_v12 }
 0xbe4   :  { %9401 = vmatmul.mubr.bf16.gmra.mrb[124].mxu1 %v17544_v24 }
 0xbe5   :  { %9410 = vmatprep.mubr.bf16.mxu1 %v20582_v12 }
 0xbec   :  { %9411 = vmatmul.mubr.bf16.gmra.mrb[128].mxu1 %v20765_v63 }
 0xbed   :  { %9420 = vmatprep.mubr.bf16.mxu1 %v20582_v12 }
 0xbf4   :  { %9421 = vmatmul.mubr.bf16.gmra.mrb[132].mxu1 %v20766_v59 }
 0xbf5   :  { %9430 = vmatprep.mubr.bf16.mxu1 %v20582_v12 }
 0xbfc   :  { %9431 = vmatmul.mubr.bf16.gmra.mrb[136].mxu1 %v20767_v14 }
 0xbfd   :  { %9440 = vmatprep.mubr.bf16.mxu1 %v20582_v12 }
 0xc04   :  { %9441 = vmatmul.mubr.bf16.gmra.mrb[140].mxu1 %v20768_v15 }
 0xc05   :  { %9450 = vmatprep.mubr.bf16.mxu1 %v20582_v12 }
 0xc0c   :  { %9451 = vmatmul.mubr.bf16.gmra.mrb[144].mxu1 %v20769_v0 }
 0xc0d   :  { %9460 = vmatprep.mubr.bf16.mxu1 %v20582_v12 }
 0xc14   :  { %9461 = vmatmul.mubr.bf16.gmra.mrb[148].mxu1 %v20770_v4 }
 0xc15   :  { %9470 = vmatprep.mubr.bf16.mxu1 %v20582_v12 }
 0xc17   :  { %v9202_v24 = vpop.f32.mrb[44].mxu1 }
 0xc18   :  { %v9204_v59 = vpop.f32.mrb[45].mxu1 }
 0xc19   :  { %v9206_v8 = vpop.f32.mrb[46].mxu1 }
 0xc1a   :  { %v9208_v63 = vpop.f32.mrb[47].mxu1 }
 0xc1c   :  { %9471 = vmatmul.mubr.bf16.gmra.mrb[152].mxu1 %v20771_v28 }
 0xc1d   :  { %9480 = vmatprep.mubr.bf16.mxu1 %v20582_v12 }
 0xc1f   :  { %v19183_v14 = vpop.f32.mrb[48].mxu1 }
 0xc20   :  { %v19185_v15 = vpop.f32.mrb[49].mxu1 }
 0xc21   :  { %v19187_v3 = vpop.f32.mrb[50].mxu1 }
 0xc22   :  { %v19189_v0 = vpop.f32.mrb[51].mxu1 }
 0xc24   :  { %9481 = vmatmul.mubr.bf16.gmra.mrb[156].mxu1 %v17858_v45 }
 0xc25   :  { %9490 = vmatprep.mubr.bf16.mxu1 %v20582_v12 }
 0xc27   :  { %v19193_v4 = vpop.f32.mrb[52].mxu1 }
 0xc28   :  { %v19195_v17 = vpop.f32.mrb[53].mxu1 }
 0xc29   :  { %v19197_v53 = vpop.f32.mrb[54].mxu1 }
 0xc2a   :  { %v19199_v28 = vpop.f32.mrb[55].mxu1 }
 0xc2c   :  { %9491 = vmatmul.mubr.bf16.gmra.mrb[160].mxu1 %v17886_v51 }
 0xc2d   :  { %9500 = vmatprep.mubr.bf16.mxu1 %v20582_v12 }
 0xc2f   :  { %v19203_v31 = vpop.f32.mrb[56].mxu1 }
 0xc30   :  { %v19205_v21 = vpop.f32.mrb[57].mxu1 }
 0xc31   :  { %v19207_v13 = vpop.f32.mrb[58].mxu1 }
 0xc32   :  { %v19209_v45 = vpop.f32.mrb[59].mxu1 }
 0xc34   :  { %9501 = vmatmul.mubr.bf16.gmra.mrb[164].mxu1 %v17908_v36 }
 0xc35   :  { %9510 = vmatprep.mubr.bf16.mxu1 %v20582_v12 }
 0xc37   :  { %v19213_v33 = vpop.f32.mrb[60].mxu1 }
 0xc38   :  { %v19215_v19 = vpop.f32.mrb[61].mxu1 }
 0xc39   :  { %v19217_v54 = vpop.f32.mrb[62].mxu1 }
 0xc3a   :  { %v19219_v51 = vpop.f32.mrb[63].mxu1 }
 0xc3c   :  { %9511 = vmatmul.mubr.bf16.gmra.mrb[168].mxu1 %v17930_v34 }
 0xc3d   :  { %9520 = vmatprep.mubr.bf16.mxu1 %v20582_v12 }
 0xc3f   :  { %v19223_v32 = vpop.f32.mrb[64].mxu1 }
 0xc40   :  { %v19225_v49 = vpop.f32.mrb[65].mxu1 }
 0xc41   :  { %v19227_v27 = vpop.f32.mrb[66].mxu1 }
 0xc42   :  { %v19229_v36 = vpop.f32.mrb[67].mxu1 }
 0xc44   :  { %9521 = vmatmul.mubr.bf16.gmra.mrb[172].mxu1 %v18099_v29  ;;  %v7410_v29 = vld [vmem:[%s20500_s5] sm:$0x3] }
 0xc45   :  { %9530 = vmatprep.mubr.bf16.mxu1 %v20582_v12  ;;  %v19256_v39 = vrot.slane %v7410_v29, %v20789_v62 }
 0xc47   :  { %v19233_v58 = vpop.f32.mrb[68].mxu1  ;;  %v12911_v6 = vadd.f32 %v9202_v24, %v19256_v39  ;;  %v12913_v11 = vadd.f32 %v9206_v8, %v19256_v39  ;;  %v12915_v8 = vadd.f32 %v19183_v14, %v19256_v39 }
 0xc48   :  { %v19235_v37 = vpop.f32.mrb[69].mxu1 }
 0xc49   :  { %v19237_v10 = vpop.f32.mrb[70].mxu1 }
 0xc4a   :  { %v19239_v34 = vpop.f32.mrb[71].mxu1 }
 0xc4c   :  { %9531 = vmatmul.mubr.bf16.gmra.mrb[176].mxu1 %v18112_v48  ;;  %v20790_v48 = vsub.s32 1, %v20788_v44 }
 0xc4d   :  { %9540 = vmatprep.mubr.bf16.mxu1 %v20582_v12 }
 0xc4e   :  { %v19261_v30 = vrot.slane %v7410_v29, %v20790_v48 }
 0xc4f   :  { %v19243_v16 = vpop.f32.mrb[72].mxu1 }
 0xc50   :  { %v19245_v20 = vpop.f32.mrb[73].mxu1  ;;  %v12912_v55 = vadd.f32 %v9204_v59, %v19261_v30  ;;  %v12914_v48 = vadd.f32 %v9208_v63, %v19261_v30 }
 0xc51   :  { %v19250_v43 = vpop.f32.mrb[74].mxu1 }
 0xc52   :  { %v19252_v42 = vpop.f32.mrb[75].mxu1 }
 0xc54   :  { %9541 = vmatmul.mubr.bf16.gmra.mrb[180].mxu1 %v18131_v1 }
 0xc55   :  { %9550 = vmatprep.mubr.bf16.mxu1 %v20582_v12 }
 0xc57   :  { %v9282_v9 = vpop.f32.mrb[76].mxu1 }
 0xc58   :  { %v12943_v57 = vadd.f32 %v9282_v9, %v19256_v39  ;;  %v9284_v46 = vpop.f32.mrb[77].mxu1 }
 0xc59   :  { %v12944_v2 = vadd.f32 %v9284_v46, %v19261_v30  ;;  %v9286_v62 = vpop.f32.mrb[78].mxu1 }
 0xc5a   :  { %v9841_v1 = vmax.f32 %v12911_v6, %v12943_v57  ;;  %v12945_v44 = vadd.f32 %v9286_v62, %v19256_v39  ;;  %v9288_v29 = vpop.f32.mrb[79].mxu1 }
 0xc5b   :  { %v9842_v12 = vmax.f32 %v12912_v55, %v12944_v2  ;;  %v12946_v5 = vadd.f32 %v9288_v29, %v19261_v30  ;;  %v12916_v2 = vadd.f32 %v19185_v15, %v19261_v30 }
 0xc5c   :  { %v9843_v24 = vmax.f32 %v12913_v11, %v12945_v44  ;;  %9551 = vmatmul.mubr.bf16.gmra.mrb[184].mxu1 %v18144_v60  ;;  %v12917_v60 = vadd.f32 %v19187_v3, %v19256_v39 }
 0xc5d   :  { %v9844_v9 = vmax.f32 %v12914_v48, %v12946_v5  ;;  %9560 = vmatprep.mubr.bf16.mxu1 %v20791_v25  ;;  %v12919_v48 = vadd.f32 %v19193_v4, %v19256_v39  ;;  %v12922_v4 = vadd.f32 %v19199_v28, %v19261_v30  ;;  %v12924_v28 = vadd.f32 %v19205_v21, %v19261_v30 }
 0xc5e   :  { %v9969_v59 = vpack.c.bf16 %v9843_v24, %v9841_v1 }
 0xc5f   :  { %v9970_v46 = vpack.c.bf16 %v9844_v9, %v9842_v12  ;;  %v9292_v7 = vpop.f32.mrb[80].mxu1 }
 0xc60   :  { %v12947_v6 = vadd.f32 %v9292_v7, %v19256_v39  ;;  %v9294_v57 = vpop.f32.mrb[81].mxu1  ;;  %v12918_v7 = vadd.f32 %v19189_v0, %v19261_v30  ;;  %v12920_v0 = vadd.f32 %v19195_v17, %v19261_v30 }
 0xc61   :  { %v12948_v11 = vadd.f32 %v9294_v57, %v19261_v30  ;;  %v9296_v55 = vpop.f32.mrb[82].mxu1  ;;  %12590 = vmatprep.mubr.msk.bf16.mxu0 %vm10153_vm3, %v9970_v46 }
 0xc62   :  { %v9845_v5 = vmax.f32 %v12915_v8, %v12947_v6  ;;  %v12949_v12 = vadd.f32 %v9296_v55, %v19256_v39  ;;  %v9298_v63 = vpop.f32.mrb[83].mxu1  ;;  %10283 = vmatmul.mubr.bf16.vlgmr.msra.gmra.mrb[84].mxu0 %v9969_v59 }
 0xc63   :  { %v9846_v14 = vmax.f32 %v12916_v2, %v12948_v11  ;;  %v12950_v62 = vadd.f32 %v9298_v63, %v19261_v30 }
 0xc64   :  { %v9847_v15 = vmax.f32 %v12917_v60, %v12949_v12  ;;  %9561 = vmatmul.mubr.bf16.gmra.mrb[188].mxu1 %v18161_v50  ;;  %v12921_v50 = vadd.f32 %v19197_v53, %v19256_v39  ;;  %v12923_v12 = vadd.f32 %v19203_v31, %v19256_v39  ;;  %v12926_v31 = vadd.f32 %v19209_v45, %v19261_v30 }
 0xc65   :  { %v9848_v1 = vmax.f32 %v12918_v7, %v12950_v62  ;;  %9570 = vmatprep.mubr.bf16.mxu1 %v20791_v25  ;;  %v12928_v45 = vadd.f32 %v19215_v19, %v19261_v30 }
 0xc66   :  { %v9971_v44 = vpack.c.bf16 %v9847_v15, %v9845_v5 }
 0xc67   :  { %v9972_v29 = vpack.c.bf16 %v9848_v1, %v9846_v14  ;;  %v9302_v3 = vpop.f32.mrb[84].mxu1 }
 0xc68   :  { %v12951_v24 = vadd.f32 %v9302_v3, %v19256_v39  ;;  %v9304_v9 = vpop.f32.mrb[85].mxu1 }
 0xc69   :  { %v12952_v59 = vadd.f32 %v9304_v9, %v19261_v30  ;;  %v9306_v46 = vpop.f32.mrb[86].mxu1  ;;  %12591 = vmatprep.mubr.msk.bf16.mxu0 %vm10153_vm3, %v9972_v29 }
 0xc6a   :  { %v9849_v8 = vmax.f32 %v12919_v48, %v12951_v24  ;;  %v12953_v6 = vadd.f32 %v9306_v46, %v19256_v39  ;;  %v9308_v57 = vpop.f32.mrb[87].mxu1  ;;  %10293 = vmatmul.mubr.bf16.gmra.mrb[88].mxu0 %v9971_v44 }
 0xc6b   :  { %v9850_v2 = vmax.f32 %v12920_v0, %v12952_v59  ;;  %v12954_v11 = vadd.f32 %v9308_v57, %v19261_v30  ;;  %v12927_v0 = vadd.f32 %v19213_v33, %v19256_v39  ;;  %v12930_v33 = vadd.f32 %v19219_v51, %v19261_v30 }
 0xc6c   :  { %v9851_v17 = vmax.f32 %v12921_v50, %v12953_v6  ;;  %9571 = vmatmul.mubr.bf16.gmra.mrb[192].mxu1 %v20772_v47  ;;  %v12925_v47 = vadd.f32 %v19207_v13, %v19256_v39  ;;  %v12932_v51 = vadd.f32 %v19225_v49, %v19261_v30 }
 0xc6d   :  { %v9852_v55 = vmax.f32 %v12922_v4, %v12954_v11  ;;  %9580 = vmatprep.mubr.bf16.mxu1 %v20791_v25 }
 0xc6e   :  { %v9973_v60 = vpack.c.bf16 %v9851_v17, %v9849_v8 }
 0xc6f   :  { %v9974_v5 = vpack.c.bf16 %v9852_v55, %v9850_v2  ;;  %v9312_v53 = vpop.f32.mrb[88].mxu1 }
 0xc70   :  { %v12955_v63 = vadd.f32 %v9312_v53, %v19256_v39  ;;  %v9314_v7 = vpop.f32.mrb[89].mxu1 }
 0xc71   :  { %v12956_v14 = vadd.f32 %v9314_v7, %v19261_v30  ;;  %v9316_v62 = vpop.f32.mrb[90].mxu1  ;;  %12592 = vmatprep.mubr.msk.bf16.mxu0 %vm10153_vm3, %v9974_v5  ;;  %v12931_v5 = vadd.f32 %v19223_v32, %v19256_v39  ;;  %v12934_v32 = vadd.f32 %v19229_v36, %v19261_v30  ;;  %v12936_v36 = vadd.f32 %v19235_v37, %v19261_v30 }
 0xc72   :  { %v9853_v15 = vmax.f32 %v12923_v12, %v12955_v63  ;;  %v12957_v1 = vadd.f32 %v9316_v62, %v19256_v39  ;;  %v9318_v44 = vpop.f32.mrb[91].mxu1  ;;  %10303 = vmatmul.mubr.bf16.gmra.mrb[92].mxu0 %v9973_v60 }
 0xc73   :  { %v9854_v29 = vmax.f32 %v12924_v28, %v12956_v14  ;;  %v12958_v3 = vadd.f32 %v9318_v44, %v19261_v30 }
 0xc74   :  { %v9855_v21 = vmax.f32 %v12925_v47, %v12957_v1  ;;  %9581 = vmatmul.mubr.bf16.gmra.mrb[196].mxu1 %v20773_v18  ;;  %v12929_v18 = vadd.f32 %v19217_v54, %v19256_v39 }
 0xc75   :  { %v9856_v48 = vmax.f32 %v12926_v31, %v12958_v3  ;;  %9590 = vmatprep.mubr.bf16.mxu1 %v20791_v25 }
 0xc76   :  { %v9975_v24 = vpack.c.bf16 %v9855_v21, %v9853_v15 }
 0xc77   :  { %v9976_v9 = vpack.c.bf16 %v9856_v48, %v9854_v29  ;;  %v9322_v13 = vpop.f32.mrb[92].mxu1  ;;  %v12935_v29 = vadd.f32 %v19233_v58, %v19256_v39  ;;  %v12938_v58 = vadd.f32 %v19239_v34, %v19261_v30  ;;  %v12940_v34 = vadd.f32 %v19245_v20, %v19261_v30 }
 0xc78   :  { %v12959_v59 = vadd.f32 %v9322_v13, %v19256_v39  ;;  %v9324_v46 = vpop.f32.mrb[93].mxu1 }
 0xc79   :  { %v12960_v50 = vadd.f32 %v9324_v46, %v19261_v30  ;;  %v9326_v8 = vpop.f32.mrb[94].mxu1  ;;  %12593 = vmatprep.mubr.msk.bf16.mxu0 %vm10153_vm3, %v9976_v9 }
 0xc7a   :  { %v9857_v6 = vmax.f32 %v12927_v0, %v12959_v59  ;;  %v12961_v57 = vadd.f32 %v9326_v8, %v19256_v39  ;;  %v9328_v4 = vpop.f32.mrb[95].mxu1  ;;  %10313 = vmatmul.mubr.bf16.gmra.mrb[96].mxu0 %v9975_v24 }
 0xc7b   :  { %v9858_v2 = vmax.f32 %v12928_v45, %v12960_v50  ;;  %v12962_v11 = vadd.f32 %v9328_v4, %v19261_v30 }
 0xc7c   :  { %v9859_v19 = vmax.f32 %v12929_v18, %v12961_v57  ;;  %9591 = vmatmul.mubr.bf16.gmra.mrb[200].mxu1 %v20774_v56  ;;  %v12933_v56 = vadd.f32 %v19227_v27, %v19256_v39  ;;  %v12939_v18 = vadd.f32 %v19243_v16, %v19256_v39  ;;  %v12942_v16 = vadd.f32 %v19252_v42, %v19261_v30 }
 0xc7d   :  { %v9860_v17 = vmax.f32 %v12930_v33, %v12962_v11  ;;  %9600 = vmatprep.mubr.bf16.mxu1 %v20791_v25 }
 0xc7e   :  { %v9977_v55 = vpack.c.bf16 %v9859_v19, %v9857_v6 }
 0xc7f   :  { %v9978_v60 = vpack.c.bf16 %v9860_v17, %v9858_v2  ;;  %v9332_v54 = vpop.f32.mrb[96].mxu1 }
 0xc80   :  { %v12963_v53 = vadd.f32 %v9332_v54, %v19256_v39  ;;  %v9334_v12 = vpop.f32.mrb[97].mxu1 }
 0xc81   :  { %v12964_v63 = vadd.f32 %v9334_v12, %v19261_v30  ;;  %v9336_v7 = vpop.f32.mrb[98].mxu1  ;;  %12594 = vmatprep.mubr.msk.bf16.mxu0 %vm10153_vm3, %v9978_v60 }
 0xc82   :  { %v9861_v28 = vmax.f32 %v12931_v5, %v12963_v53  ;;  %v12965_v14 = vadd.f32 %v9336_v7, %v19256_v39  ;;  %v9338_v62 = vpop.f32.mrb[99].mxu1  ;;  %10323 = vmatmul.mubr.bf16.gmra.mrb[100].mxu0 %v9977_v55 }
 0xc83   :  { %v9862_v47 = vmax.f32 %v12932_v51, %v12964_v63  ;;  %v12966_v15 = vadd.f32 %v9338_v62, %v19261_v30 }
 0xc84   :  { %v9863_v49 = vmax.f32 %v12933_v56, %v12965_v14  ;;  %9601 = vmatmul.mubr.bf16.gmra.mrb[204].mxu1 %v20775_v40  ;;  %v12937_v40 = vadd.f32 %v19237_v10, %v19256_v39 }
 0xc85   :  { %v9864_v1 = vmax.f32 %v12934_v32, %v12966_v15  ;;  %9610 = vmatprep.mubr.bf16.mxu1 %v20791_v25 }
 0xc86   :  { %v9979_v44 = vpack.c.bf16 %v9863_v49, %v9861_v28 }
 0xc87   :  { %v9980_v31 = vpack.c.bf16 %v9864_v1, %v9862_v47  ;;  %v9342_v27 = vpop.f32.mrb[100].mxu1 }
 0xc88   :  { %v12967_v3 = vadd.f32 %v9342_v27, %v19256_v39  ;;  %v9344_v21 = vpop.f32.mrb[101].mxu1 }
 0xc89   :  { %v12968_v48 = vadd.f32 %v9344_v21, %v19261_v30  ;;  %v9346_v24 = vpop.f32.mrb[102].mxu1  ;;  %12595 = vmatprep.mubr.msk.bf16.mxu0 %vm10153_vm3, %v9980_v31 }
 0xc8a   :  { %v9865_v9 = vmax.f32 %v12935_v29, %v12967_v3  ;;  %v12969_v13 = vadd.f32 %v9346_v24, %v19256_v39  ;;  %v9348_v0 = vpop.f32.mrb[103].mxu1  ;;  %10333 = vmatmul.mubr.bf16.gmra.mrb[104].mxu0 %v9979_v44 }
 0xc8b   :  { %v9866_v59 = vmax.f32 %v12936_v36, %v12968_v48  ;;  %v12970_v46 = vadd.f32 %v9348_v0, %v19261_v30  ;;  %v20792_v36 = vld [vmem:[#allocation13_spill] sm:$0xff] }
 0xc8c   :  { %v9867_v37 = vmax.f32 %v12937_v40, %v12969_v13  ;;  %9611 = vmatmul.mubr.bf16.gmra.mrb[208].mxu1 %v20776_v41  ;;  %v12941_v41 = vadd.f32 %v19250_v43, %v19256_v39 }
 0xc8d   :  { %v9868_v45 = vmax.f32 %v12938_v58, %v12970_v46  ;;  %9620 = vmatprep.mubr.bf16.mxu1 %v20791_v25 }
 0xc8e   :  { %v9981_v50 = vpack.c.bf16 %v9867_v37, %v9865_v9  ;;  %v20793_v9 = vld [vmem:[#allocation12_spill] sm:$0xff] }
 0xc8f   :  { %v9982_v8 = vpack.c.bf16 %v9868_v45, %v9866_v59  ;;  %v9352_v10 = vpop.f32.mrb[104].mxu1 }
 0xc90   :  { %v12971_v6 = vadd.f32 %v9352_v10, %v19256_v39  ;;  %v9354_v57 = vpop.f32.mrb[105].mxu1 }
 0xc91   :  { %v12972_v4 = vadd.f32 %v9354_v57, %v19261_v30  ;;  %v9356_v33 = vpop.f32.mrb[106].mxu1  ;;  %12596 = vmatprep.mubr.msk.bf16.mxu0 %vm10153_vm3, %v9982_v8 }
 0xc92   :  { %v9869_v2 = vmax.f32 %v12939_v18, %v12971_v6  ;;  %v12973_v11 = vadd.f32 %v9356_v33, %v19256_v39  ;;  %v9358_v19 = vpop.f32.mrb[107].mxu1  ;;  %10343 = vmatmul.mubr.bf16.gmra.mrb[108].mxu0 %v9981_v50  ;;  %v20794_v33 = vld [vmem:[#allocation15_spill] sm:$0xff] }
 0xc93   :  { %v9870_v17 = vmax.f32 %v12940_v34, %v12972_v4  ;;  %v12974_v55 = vadd.f32 %v9358_v19, %v19261_v30 }
 0xc94   :  { %v9871_v20 = vmax.f32 %v12941_v41, %v12973_v11  ;;  %9621 = vmatmul.mubr.bf16.gmra.mrb[212].mxu1 %v20777_v22 }
 0xc95   :  { %v9872_v60 = vmax.f32 %v12942_v16, %v12974_v55  ;;  %9630 = vmatprep.mubr.bf16.mxu1 %v20791_v25 }
 0xc96   :  { %v9983_v54 = vpack.c.bf16 %v9871_v20, %v9869_v2 }
 0xc97   :  { %v9984_v5 = vpack.c.bf16 %v9872_v60, %v9870_v17  ;;  %v9362_v43 = vpop.f32.mrb[108].mxu1 }
 0xc98   :  { %v9364_v53 = vpop.f32.mrb[109].mxu1  ;;  %v12975_v0 = vadd.f32 %v9362_v43, %v19256_v39 }
 0xc99   :  { %v9366_v12 = vpop.f32.mrb[110].mxu1  ;;  %12597 = vmatprep.mubr.msk.bf16.mxu0 %vm10153_vm3, %v9984_v5  ;;  %v12976_v46 = vadd.f32 %v9364_v53, %v19261_v30 }
 0xc9a   :  { %v9368_v51 = vpop.f32.mrb[111].mxu1  ;;  %10353 = vmatmul.mubr.bf16.gmra.mrb[112].mxu0 %v9983_v54  ;;  %v12977_v50 = vadd.f32 %v9366_v12, %v19256_v39 }
 0xc9b   :  { %v12978_v6 = vadd.f32 %v9368_v51, %v19261_v30 }
 0xc9c   :  { %9631 = vmatmul.mubr.bf16.gmra.mrb[216].mxu1 %v20778_v38 }
 0xc9d   :  { %9640 = vmatprep.mubr.bf16.mxu1 %v20791_v25 }
 0xc9f   :  { %v19382_v42 = vpop.f32.mrb[112].mxu1 }
 0xca0   :  { %v19384_v63 = vpop.f32.mrb[113].mxu1  ;;  %v12979_v16 = vadd.f32 %v19382_v42, %v19256_v39 }
 0xca1   :  { %v19386_v22 = vpop.f32.mrb[114].mxu1  ;;  %v12980_v20 = vadd.f32 %v19384_v63, %v19261_v30 }
 0xca2   :  { %v19388_v7 = vpop.f32.mrb[115].mxu1  ;;  %v12981_v5 = vadd.f32 %v19386_v22, %v19256_v39 }
 0xca3   :  { %v12982_v51 = vadd.f32 %v19388_v7, %v19261_v30 }
 0xca4   :  { %9641 = vmatmul.mubr.bf16.gmra.mrb[220].mxu1 %v18411_v52 }
 0xca5   :  { %9650 = vmatprep.mubr.bf16.mxu1 %v20791_v25 }
 0xca7   :  { %v19392_v56 = vpop.f32.mrb[116].mxu1 }
 0xca8   :  { %v19394_v28 = vpop.f32.mrb[117].mxu1 }
 0xca9   :  { %v19396_v14 = vpop.f32.mrb[118].mxu1  ;;  %v12984_v7 = vadd.f32 %v19394_v28, %v19261_v30 }
 0xcaa   :  { %v19398_v38 = vpop.f32.mrb[119].mxu1 }
 0xcac   :  { %9651 = vmatmul.mubr.bf16.gmra.mrb[224].mxu1 %v18430_v26 }
 0xcad   :  { %9660 = vmatprep.mubr.bf16.mxu1 %v20791_v25 }
 0xcaf   :  { %v19402_v62 = vpop.f32.mrb[120].mxu1 }
 0xcb0   :  { %v19404_v32 = vpop.f32.mrb[121].mxu1 }
 0xcb1   :  { %v19406_v47 = vpop.f32.mrb[122].mxu1 }
 0xcb2   :  { %v19408_v52 = vpop.f32.mrb[123].mxu1 }
 0xcb4   :  { %9661 = vmatmul.mubr.bf16.gmra.mrb[228].mxu1 %v18445_v23 }
 0xcb5   :  { %9670 = vmatprep.mubr.bf16.mxu1 %v20791_v25 }
 0xcb7   :  { %v19412_v15 = vpop.f32.mrb[124].mxu1 }
 0xcb8   :  { %v19414_v49 = vpop.f32.mrb[125].mxu1 }
 0xcb9   :  { %v19416_v1 = vpop.f32.mrb[126].mxu1 }
 0xcba   :  { %v19418_v26 = vpop.f32.mrb[127].mxu1 }
 0xcbc   :  { %9671 = vmatmul.mubr.bf16.gmra.mrb[232].mxu1 %v20779_v61 }
 0xcbd   :  { %9680 = vmatprep.mubr.bf16.mxu1 %v20791_v25 }
 0xcbf   :  { %v19422_v44 = vpop.f32.mrb[128].mxu1 }
 0xcc0   :  { %v19424_v31 = vpop.f32.mrb[129].mxu1 }
 0xcc1   :  { %v19426_v27 = vpop.f32.mrb[130].mxu1 }
 0xcc2   :  { %v19428_v23 = vpop.f32.mrb[131].mxu1 }
 0xcc4   :  { %9681 = vmatmul.mubr.bf16.gmra.mrb[236].mxu1 %v20780_v35 }
 0xcc5   :  { %9690 = vmatprep.mubr.bf16.mxu1 %v20791_v25 }
 0xcc7   :  { %v19432_v29 = vpop.f32.mrb[132].mxu1 }
 0xcc8   :  { %v19434_v3 = vpop.f32.mrb[133].mxu1 }
 0xcc9   :  { %v19436_v21 = vpop.f32.mrb[134].mxu1 }
 0xcca   :  { %v19438_v61 = vpop.f32.mrb[135].mxu1 }
 0xccc   :  { %9691 = vmatmul.mubr.bf16.gmra.mrb[240].mxu1 %v20792_v36 }
 0xccd   :  { %9700 = vmatprep.mubr.bf16.mxu1 %v20791_v25 }
 0xccf   :  { %v19442_v48 = vpop.f32.mrb[136].mxu1 }
 0xcd0   :  { %v19444_v24 = vpop.f32.mrb[137].mxu1 }
 0xcd1   :  { %v19446_v40 = vpop.f32.mrb[138].mxu1 }
 0xcd2   :  { %v19448_v35 = vpop.f32.mrb[139].mxu1 }
 0xcd4   :  { %9701 = vmatmul.mubr.bf16.gmra.mrb[244].mxu1 %v20793_v9  ;;  %v20795_v9 = vld [vmem:[#allocation14_spill] sm:$0xff] }
 0xcd5   :  { %9710 = vmatprep.mubr.bf16.mxu1 %v20791_v25 }
 0xcd7   :  { %v9442_v13 = vpop.f32.mrb[140].mxu1 }
 0xcd8   :  { %v13007_v58 = vadd.f32 %v9442_v13, %v19256_v39  ;;  %v9444_v59 = vpop.f32.mrb[141].mxu1 }
 0xcd9   :  { %v13008_v37 = vadd.f32 %v9444_v59, %v19261_v30  ;;  %v9446_v45 = vpop.f32.mrb[142].mxu1  ;;  %v12983_v59 = vadd.f32 %v19392_v56, %v19256_v39  ;;  %v12986_v56 = vadd.f32 %v19398_v38, %v19261_v30  ;;  %v12988_v38 = vadd.f32 %v19404_v32, %v19261_v30 }
 0xcda   :  { %v9873_v8 = vmax.f32 %v12975_v0, %v13007_v58  ;;  %v13009_v10 = vadd.f32 %v9446_v45, %v19256_v39  ;;  %v9448_v18 = vpop.f32.mrb[143].mxu1 }
 0xcdb   :  { %v9874_v57 = vmax.f32 %v12976_v46, %v13008_v37  ;;  %v13010_v34 = vadd.f32 %v9448_v18, %v19261_v30 }
 0xcdc   :  { %v9875_v4 = vmax.f32 %v12977_v50, %v13009_v10  ;;  %9711 = vmatmul.mubr.bf16.gmra.mrb[248].mxu1 %v20794_v33 }
 0xcdd   :  { %v9876_v41 = vmax.f32 %v12978_v6, %v13010_v34  ;;  %9720 = vmatprep.mubr.bf16.mxu1 %v20791_v25 }
 0xcde   :  { %v9985_v2 = vpack.c.bf16 %v9875_v4, %v9873_v8  ;;  %v12985_v8 = vadd.f32 %v19396_v14, %v19256_v39  ;;  %v20796_v4 = vld [vmem:[#allocation17_spill] sm:$0xff] }
 0xcdf   :  { %v9986_v11 = vpack.c.bf16 %v9876_v41, %v9874_v57  ;;  %v9452_v19 = vpop.f32.mrb[144].mxu1 }
 0xce0   :  { %v13011_v17 = vadd.f32 %v9452_v19, %v19256_v39  ;;  %v9454_v55 = vpop.f32.mrb[145].mxu1 }
 0xce1   :  { %v13012_v60 = vadd.f32 %v9454_v55, %v19261_v30  ;;  %v9456_v54 = vpop.f32.mrb[146].mxu1  ;;  %12598 = vmatprep.mubr.msk.bf16.mxu0 %vm10153_vm3, %v9986_v11  ;;  %v12987_v11 = vadd.f32 %v19402_v62, %v19256_v39  ;;  %v12990_v62 = vadd.f32 %v19408_v52, %v19261_v30  ;;  %v12992_v52 = vadd.f32 %v19414_v49, %v19261_v30 }
 0xce2   :  { %v9877_v43 = vmax.f32 %v12979_v16, %v13011_v17  ;;  %v13013_v53 = vadd.f32 %v9456_v54, %v19256_v39  ;;  %v9458_v12 = vpop.f32.mrb[147].mxu1  ;;  %10363 = vmatmul.mubr.bf16.gmra.mrb[116].mxu0 %v9985_v2 }
 0xce3   :  { %v9878_v42 = vmax.f32 %v12980_v20, %v13012_v60  ;;  %v13014_v36 = vadd.f32 %v9458_v12, %v19261_v30  ;;  %v12989_v20 = vadd.f32 %v19406_v47, %v19256_v39  ;;  %v20797_v12 = vld [vmem:[#allocation16_spill] sm:$0xff] }
 0xce4   :  { %v9879_v63 = vmax.f32 %v12981_v5, %v13013_v53  ;;  %9721 = vmatmul.mubr.bf16.gmra.mrb[252].mxu1 %v20795_v9 }
 0xce5   :  { %v9880_v13 = vmax.f32 %v12982_v51, %v13014_v36  ;;  %9730 = vmatprep.mubr.bf16.mxu1 %v20791_v25 }
 0xce6   :  { %v9987_v0 = vpack.c.bf16 %v9879_v63, %v9877_v43  ;;  %v12991_v63 = vadd.f32 %v19412_v15, %v19256_v39  ;;  %v12994_v15 = vadd.f32 %v19418_v26, %v19261_v30  ;;  %v12996_v26 = vadd.f32 %v19424_v31, %v19261_v30 }
 0xce7   :  { %v9988_v58 = vpack.c.bf16 %v9880_v13, %v9878_v42  ;;  %v9462_v22 = vpop.f32.mrb[148].mxu1 }
 0xce8   :  { %v13015_v46 = vadd.f32 %v9462_v22, %v19256_v39  ;;  %v9464_v37 = vpop.f32.mrb[149].mxu1  ;;  %v12993_v22 = vadd.f32 %v19416_v1, %v19256_v39 }
 0xce9   :  { %v13016_v45 = vadd.f32 %v9464_v37, %v19261_v30  ;;  %v9466_v50 = vpop.f32.mrb[150].mxu1  ;;  %12599 = vmatprep.mubr.msk.bf16.mxu0 %vm10153_vm3, %v9988_v58 }
 0xcea   :  { %v9881_v10 = vmax.f32 %v12983_v59, %v13015_v46  ;;  %v13017_v18 = vadd.f32 %v9466_v50, %v19256_v39  ;;  %v9468_v6 = vpop.f32.mrb[151].mxu1  ;;  %10373 = vmatmul.mubr.bf16.gmra.mrb[120].mxu0 %v9987_v0  ;;  %v20798_v50 = vld [vmem:[#allocation19_spill] sm:$0xff] }
 0xceb   :  { %v9882_v57 = vmax.f32 %v12984_v7, %v13016_v45  ;;  %v13018_v34 = vadd.f32 %v9468_v6, %v19261_v30  ;;  %v12995_v6 = vadd.f32 %v19422_v44, %v19256_v39  ;;  %v12998_v44 = vadd.f32 %v19428_v23, %v19261_v30  ;;  %v14479_v23 = vld [vmem:[%s20501_s7] sm:$0xff]  }
 0xcec   :  { %v9883_v28 = vmax.f32 %v12985_v8, %v13017_v18  ;;  %9731 = vmatmul.mubr.bf16.gmra.mrb[0].mxu1 %v20796_v4  ;;  %v12997_v4 = vadd.f32 %v19426_v27, %v19256_v39  ;;  %v14478_v27 = vld [vmem:[%s20501_s7 + $0x40] sm:$0xff]  }
 0xced   :  { %v9884_v33 = vmax.f32 %v12986_v56, %v13018_v34  ;;  %9740 = vmatprep.mubr.bf16.mxu1 %v20791_v25  ;;  %12681 = vmatprep.subr.bf16.mxu0 %v14478_v27  ;;  %v20812_v27 = vld [vmem:[#allocation26_spill] sm:$0xff] }
 0xcee   :  { %v9989_v41 = vpack.c.bf16 %v9883_v28, %v9881_v10  ;;  %12682 = vmatpush3.bf16.msra.mxu0 %v14479_v23 }
 0xcef   :  { %v9990_v2 = vpack.c.bf16 %v9884_v33, %v9882_v57  ;;  %v9472_v14 = vpop.f32.mrb[152].mxu1 }
 0xcf0   :  { %v13019_v19 = vadd.f32 %v9472_v14, %v19256_v39  ;;  %v9474_v16 = vpop.f32.mrb[153].mxu1 }
 0xcf1   :  { %v13020_v17 = vadd.f32 %v9474_v16, %v19261_v30  ;;  %v9476_v55 = vpop.f32.mrb[154].mxu1  ;;  %12600 = vmatprep.mubr.msk.bf16.mxu0 %vm10153_vm3, %v9990_v2  ;;  %v20800_v16 = vld [vmem:[#allocation18_spill] sm:$0xff] }
 0xcf2   :  { %v9885_v60 = vmax.f32 %v12987_v11, %v13019_v19  ;;  %v13021_v54 = vadd.f32 %v9476_v55, %v19256_v39  ;;  %v9478_v5 = vpop.f32.mrb[155].mxu1  ;;  %10383 = vmatmul.mubr.bf16.gmra.mrb[124].mxu0 %v9989_v41  ;;  %v20799_v19 = vld [vmem:[#allocation21_spill] sm:$0xff] }
 0xcf3   :  { %v9886_v43 = vmax.f32 %v12988_v38, %v13020_v17  ;;  %v13022_v53 = vadd.f32 %v9478_v5, %v19261_v30  ;;  %v20801_v38 = vpack.c.bf16 %v20799_v19, %v20800_v16  ;;  %v14481_v16 = vld [vmem:[%s20501_s7 + $0x8] sm:$0xff]  }
 0xcf4   :  { %v9887_v32 = vmax.f32 %v12989_v20, %v13021_v54  ;;  %9741 = vmatmul.mubr.bf16.gmra.mrb[4].mxu1 %v20797_v12  ;;  %v12999_v54 = vadd.f32 %v19432_v29, %v19256_v39  ;;  %v13001_v12 = vadd.f32 %v19436_v21, %v19256_v39  ;;  %v13002_v29 = vadd.f32 %v19438_v61, %v19261_v30 }
 0xcf5   :  { %v9888_v51 = vmax.f32 %v12990_v62, %v13022_v53  ;;  %9750 = vmatprep.mubr.bf16.mxu1 %v20791_v25 }
 0xcf6   :  { %v9991_v42 = vpack.c.bf16 %v9887_v32, %v9885_v60 }
 0xcf7   :  { %v9992_v36 = vpack.c.bf16 %v9888_v51, %v9886_v43  ;;  %v9482_v47 = vpop.f32.mrb[156].mxu1  ;;  %v13000_v43 = vadd.f32 %v19434_v3, %v19261_v30 }
 0xcf8   :  { %v13023_v9 = vadd.f32 %v9482_v47, %v19256_v39  ;;  %v9484_v13 = vpop.f32.mrb[157].mxu1 }
 0xcf9   :  { %v13024_v0 = vadd.f32 %v9484_v13, %v19261_v30  ;;  %v9486_v58 = vpop.f32.mrb[158].mxu1  ;;  %12601 = vmatprep.mubr.msk.bf16.mxu0 %vm10153_vm3, %v9992_v36  ;;  %v20803_v13 = vld [vmem:[#allocation20_spill] sm:$0xff] }
 0xcfa   :  { %v9889_v59 = vmax.f32 %v12991_v63, %v13023_v9  ;;  %v13025_v46 = vadd.f32 %v9486_v58, %v19256_v39  ;;  %v9488_v37 = vpop.f32.mrb[159].mxu1  ;;  %10393 = vmatmul.mubr.bf16.gmra.mrb[128].mxu0 %v9991_v42  ;;  %v20802_v9 = vld [vmem:[#allocation23_spill] sm:$0xff] }
 0xcfb   :  { %v9890_v7 = vmax.f32 %v12992_v52, %v13024_v0  ;;  %v13026_v45 = vadd.f32 %v9488_v37, %v19261_v30  ;;  %v20804_v52 = vpack.c.bf16 %v20802_v9, %v20803_v13  ;;  %v13004_v37 = vadd.f32 %v19444_v24, %v19261_v30 }
 0xcfc   :  { %v9891_v49 = vmax.f32 %v12993_v22, %v13025_v46  ;;  %9751 = vmatmul.mubr.bf16.gmra.mrb[8].mxu1 %v20798_v50 }
 0xcfd   :  { %v9892_v8 = vmax.f32 %v12994_v15, %v13026_v45  ;;  %9760 = vmatprep.mubr.bf16.mxu1 %v20791_v25  ;;  %v13005_v45 = vadd.f32 %v19446_v40, %v19256_v39 }
 0xcfe   :  { %v9993_v10 = vpack.c.bf16 %v9891_v49, %v9889_v59  ;;  %v13003_v59 = vadd.f32 %v19442_v48, %v19256_v39  ;;  %v13006_v48 = vadd.f32 %v19448_v35, %v19261_v30 }
 0xcff   :  { %v9994_v18 = vpack.c.bf16 %v9892_v8, %v9890_v7  ;;  %v9492_v1 = vpop.f32.mrb[160].mxu1 }
 0xd00   :  { %v13027_v56 = vadd.f32 %v9492_v1, %v19256_v39  ;;  %v9494_v57 = vpop.f32.mrb[161].mxu1  ;;  %v20805_v1 = vld [vmem:[#allocation25_spill] sm:$0xff] }
 0xd01   :  { %v13028_v34 = vadd.f32 %v9494_v57, %v19261_v30  ;;  %v9496_v28 = vpop.f32.mrb[162].mxu1  ;;  %12602 = vmatprep.mubr.msk.bf16.mxu0 %vm10153_vm3, %v9994_v18 }
 0xd02   :  { %v9893_v33 = vmax.f32 %v12995_v6, %v13027_v56  ;;  %v13029_v41 = vadd.f32 %v9496_v28, %v19256_v39  ;;  %v9498_v2 = vpop.f32.mrb[163].mxu1  ;;  %10403 = vmatmul.mubr.bf16.gmra.mrb[132].mxu0 %v9993_v10  ;;  %v20806_v6 = vld [vmem:[#allocation22_spill] sm:$0xff] }
 0xd03   :  { %v9894_v14 = vmax.f32 %v12996_v26, %v13028_v34  ;;  %v13030_v11 = vadd.f32 %v9498_v2, %v19261_v30  ;;  %v20807_v56 = vpack.c.bf16 %v20805_v1, %v20806_v6 }
 0xd04   :  { %v9895_v31 = vmax.f32 %v12997_v4, %v13029_v41  ;;  %9761 = vmatmul.mubr.bf16.gmra.mrb[12].mxu1 %v20801_v38  ;;  %v20809_v41 = vld [vmem:[#allocation24_spill] sm:$0xff]  ;;  %v20811_v38 = vld [vmem:[#allocation29_spill] sm:$0xff] }
 0xd05   :  { %v9896_v17 = vmax.f32 %v12998_v44, %v13030_v11  ;;  %9770 = vmatprep.mubr.bf16.mxu1 %v20791_v25 }
 0xd06   :  { %v9995_v55 = vpack.c.bf16 %v9895_v31, %v9893_v33  ;;  %v20808_v33 = vld [vmem:[#allocation27_spill] sm:$0xff] }
 0xd07   :  { %v9996_v20 = vpack.c.bf16 %v9896_v17, %v9894_v14  ;;  %v9502_v60 = vpop.f32.mrb[164].mxu1  ;;  %v20810_v2 = vpack.c.bf16 %v20808_v33, %v20809_v41  ;;  %v14480_v31 = vld [vmem:[%s20501_s7 + $0x48] sm:$0xff]   ;;  %v20813_v17 = vpack.c.bf16 %v20811_v38, %v20812_v27 }
 0xd08   :  { %v13031_v5 = vadd.f32 %v9502_v60, %v19256_v39  ;;  %v9504_v62 = vpop.f32.mrb[165].mxu1  ;;  %12683 = vmatprep.subr.bf16.mxu0 %v14480_v31 }
 0xd09   :  { %v13032_v53 = vadd.f32 %v9504_v62, %v19261_v30  ;;  %v9506_v32 = vpop.f32.mrb[166].mxu1  ;;  %12603 = vmatprep.mubr.msk.bf16.mxu0 %vm10153_vm3, %v9996_v20  ;;  %12684 = vmatpush3.bf16.msra.mxu0 %v14481_v16 }
 0xd0a   :  { %v9897_v51 = vmax.f32 %v12999_v54, %v13031_v5  ;;  %v13033_v42 = vadd.f32 %v9506_v32, %v19256_v39  ;;  %v9508_v36 = vpop.f32.mrb[167].mxu1  ;;  %10413 = vmatmul.mubr.bf16.gmra.mrb[136].mxu0 %v9995_v55  ;;  %v20814_v54 = vld [vmem:[#allocation31_spill] sm:$0xff]  ;;  %v20815_v5 = vld [vmem:[#allocation28_spill] sm:$0xff] }
 0xd0b   :  { %v9898_v47 = vmax.f32 %v13000_v43, %v13032_v53  ;;  %v13034_v63 = vadd.f32 %v9508_v36, %v19261_v30  ;;  %v20816_v62 = vpack.c.bf16 %v20814_v54, %v20815_v5 }
 0xd0c   :  { %v9899_v3 = vmax.f32 %v13001_v12, %v13033_v42  ;;  %9771 = vmatmul.mubr.bf16.gmra.mrb[16].mxu1 %v20804_v52  ;;  %v20818_v42 = vld [vmem:[#allocation30_spill] sm:$0xff] }
 0xd0d   :  { %v9900_v0 = vmax.f32 %v13002_v29, %v13034_v63  ;;  %9780 = vmatprep.mubr.bf16.mxu1 %v20791_v25 }
 0xd0e   :  { %v9997_v21 = vpack.c.bf16 %v9899_v3, %v9897_v51  ;;  %v20817_v51 = vld [vmem:[#allocation33_spill] sm:$0xff] }
 0xd0f   :  { %v9998_v58 = vpack.c.bf16 %v9900_v0, %v9898_v47  ;;  %v9512_v22 = vpop.f32.mrb[168].mxu1  ;;  %v20819_v36 = vpack.c.bf16 %v20817_v51, %v20818_v42 }
 0xd10   :  { %v13035_v46 = vadd.f32 %v9512_v22, %v19256_v39  ;;  %v9514_v61 = vpop.f32.mrb[169].mxu1 }
 0xd11   :  { %v13036_v15 = vadd.f32 %v9514_v61, %v19261_v30  ;;  %v9516_v7 = vpop.f32.mrb[170].mxu1  ;;  %12604 = vmatprep.mubr.msk.bf16.mxu0 %vm10153_vm3, %v9998_v58  ;;  %v20821_v61 = vld [vmem:[#allocation32_spill] sm:$0xff] }
 0xd12   :  { %v9901_v49 = vmax.f32 %v13003_v59, %v13035_v46  ;;  %v13037_v50 = vadd.f32 %v9516_v7, %v19256_v39  ;;  %v9518_v8 = vpop.f32.mrb[171].mxu1  ;;  %10423 = vmatmul.mubr.bf16.gmra.mrb[140].mxu0 %v9997_v21  ;;  %v20820_v46 = vld [vmem:[#allocation35_spill] sm:$0xff] }
 0xd13   :  { %v9902_v10 = vmax.f32 %v13004_v37, %v13036_v15  ;;  %v13038_v18 = vadd.f32 %v9518_v8, %v19261_v30 }
 0xd14   :  { %v9903_v24 = vmax.f32 %v13005_v45, %v13037_v50  ;;  %9781 = vmatmul.mubr.bf16.gmra.mrb[20].mxu1 %v20807_v56 }
 0xd15   :  { %v9904_v57 = vmax.f32 %v13006_v48, %v13038_v18  ;;  %9790 = vmatprep.mubr.bf16.mxu1 %v20791_v25 }
 0xd16   :  { %v9999_v40 = vpack.c.bf16 %v9903_v24, %v9901_v49 }
 0xd17   :  { %v10000_v26 = vpack.c.bf16 %v9904_v57, %v9902_v10  ;;  %v19579_v34 = vpop.f32.mrb[172].mxu1 }
 0xd18   :  { %v19581_v28 = vpop.f32.mrb[173].mxu1 }
 0xd19   :  { %v19583_v4 = vpop.f32.mrb[174].mxu1  ;;  %12605 = vmatprep.mubr.msk.bf16.mxu0 %vm10153_vm3, %v10000_v26  ;;  %v14483_v26 = vld [vmem:[%s20501_s7 + $0x10] sm:$0xff]  }
 0xd1a   :  { %v19586_v35 = vpop.f32.mrb[175].mxu1  ;;  %10433 = vmatmul.mubr.bf16.gmra.mrb[144].mxu0 %v9999_v40  ;;  %v14482_v40 = vld [vmem:[%s20501_s7 + $0x50] sm:$0xff]  }
 0xd1b   :  { %12685 = vmatprep.subr.bf16.mxu0 %v14482_v40  ;;  %v13039_v40 = vadd.f32 %v19579_v34, %v19256_v39 }
 0xd1c   :  { %9791 = vmatmul.mubr.bf16.gmra.mrb[24].mxu1 %v20810_v2  ;;  %12686 = vmatpush3.bf16.msra.mxu0 %v14483_v26 }
 0xd1d   :  { %9800 = vmatprep.mubr.bf16.mxu1 %v20791_v25 }
 0xd1f   :  { %v19592_v44 = vpop.f32.mrb[176].mxu1 }
 0xd20   :  { %v19594_v14 = vpop.f32.mrb[177].mxu1 }
 0xd21   :  { %v19596_v11 = vpop.f32.mrb[178].mxu1 }
 0xd22   :  { %v19601_v19 = vpop.f32.mrb[179].mxu1 }
 0xd24   :  { %9801 = vmatmul.mubr.bf16.gmra.mrb[28].mxu1 %v20813_v17 }
 0xd25   :  { %9810 = vmatprep.mubr.bf16.mxu1 %v20791_v25 }
 0xd27   :  { %v19610_v55 = vpop.f32.mrb[180].mxu1 }
 0xd28   :  { %v19612_v23 = vpop.f32.mrb[181].mxu1 }
 0xd29   :  { %v19614_v20 = vpop.f32.mrb[182].mxu1 }
 0xd2a   :  { %v19616_v60 = vpop.f32.mrb[183].mxu1 }
 0xd2c   :  { %9811 = vmatmul.mubr.bf16.gmra.mrb[32].mxu1 %v20816_v62 }
 0xd2d   :  { %9820 = vmatprep.mubr.bf16.mxu1 %v20791_v25 }
 0xd2f   :  { %v19622_v43 = vpop.f32.mrb[184].mxu1 }
 0xd30   :  { %v19624_v53 = vpop.f32.mrb[185].mxu1 }
 0xd31   :  { %v19626_v32 = vpop.f32.mrb[186].mxu1 }
 0xd32   :  { %v19628_v12 = vpop.f32.mrb[187].mxu1 }
 0xd34   :  { %9821 = vmatmul.mubr.bf16.gmra.mrb[36].mxu1 %v20819_v36 }
 0xd35   :  { %v10284_v29 = vpop.f32.mrb[84].mxu0  ;;  %9830 = vmatprep.mubr.bf16.mxu1 %v20791_v25  ;;  %v20822_v25 = vpack.c.bf16 %v20820_v46, %v20821_v61 }
 0xd36   :  { %v10286_v47 = vpop.f32.mrb[85].mxu0 }
 0xd37   :  { %v10603_v63 = vmax.f32 %v10284_v29, %v10286_v47  ;;  %v19634_v3 = vpop.f32.mrb[188].mxu1  ;;  %v10288_v9 = vpop.f32.mrb[86].mxu0 }
 0xd38   :  { %v19636_v13 = vpop.f32.mrb[189].mxu1  ;;  %v10290_v52 = vpop.f32.mrb[87].mxu0 }
 0xd39   :  { %v10604_v0 = vmax.f32 %v10288_v9, %v10290_v52  ;;  %v19638_v21 = vpop.f32.mrb[190].mxu1  ;;  %v19642_v22 = vmax.f32 %v10603_v63, 0.0 }
 0xd3a   :  { %v19640_v58 = vpop.f32.mrb[191].mxu1 }
 0xd3b   :  { %v19644_v59 = vmax.f32 %v10604_v0, 0.0 }
 0xd3c   :  { %9831 = vmatmul.mubr.bf16.gmra.mrb[40].mxu1 %v20822_v25 }
 0xd3d   :  { %v10294_v15 = vpop.f32.mrb[88].mxu0 }
 0xd3e   :  { %v10296_v7 = vpop.f32.mrb[89].mxu0 }
 0xd3f   :  { %v10605_v45 = vmax.f32 %v10294_v15, %v10296_v7  ;;  %v19651_v49 = vpop.f32.mrb[192].mxu1  ;;  %v10298_v50 = vpop.f32.mrb[90].mxu0 }
 0xd40   :  { %v19653_v8 = vpop.f32.mrb[193].mxu1  ;;  %v10300_v48 = vpop.f32.mrb[91].mxu0 }
 0xd41   :  { %v10606_v10 = vmax.f32 %v10298_v50, %v10300_v48  ;;  %v19655_v18 = vpop.f32.mrb[194].mxu1  ;;  %v19659_v1 = vmax.f32 %v10605_v45, 0.0 }
 0xd42   :  { %v19657_v24 = vpop.f32.mrb[195].mxu1 }
 0xd43   :  { %v19661_v6 = vmax.f32 %v10606_v10, 0.0 }
 0xd45   :  { %v10304_v57 = vpop.f32.mrb[92].mxu0 }
 0xd46   :  { %v10306_v33 = vpop.f32.mrb[93].mxu0 }
 0xd47   :  { %v10607_v41 = vmax.f32 %v10304_v57, %v10306_v33  ;;  %v19671_v2 = vpop.f32.mrb[196].mxu1  ;;  %v10308_v31 = vpop.f32.mrb[94].mxu0 }
 0xd48   :  { %v19673_v16 = vpop.f32.mrb[197].mxu1  ;;  %v10310_v38 = vpop.f32.mrb[95].mxu0 }
 0xd49   :  { %v10608_v27 = vmax.f32 %v10308_v31, %v10310_v38  ;;  %v19675_v17 = vpop.f32.mrb[198].mxu1  ;;  %v19679_v5 = vmax.f32 %v10607_v41, 0.0  ;;  %v13040_v31 = vadd.f32 %v19581_v28, %v19261_v30 }
 0xd4a   :  { %v19677_v54 = vpop.f32.mrb[199].mxu1 }
 0xd4b   :  { %20823 = vst [vmem:[#allocation34_spill] sm:$0xff] %v19679_v5  ;;  %v19681_v62 = vmax.f32 %v10608_v27, 0.0 }
 0xd4d   :  { %v10314_v42 = vpop.f32.mrb[96].mxu0 }
 0xd4e   :  { %v10316_v36 = vpop.f32.mrb[97].mxu0 }
 0xd4f   :  { %v10609_v29 = vmax.f32 %v10314_v42, %v10316_v36  ;;  %v19685_v47 = vpop.f32.mrb[200].mxu1  ;;  %v10318_v63 = vpop.f32.mrb[98].mxu0  ;;  %v13041_v36 = vadd.f32 %v19583_v4, %v19256_v39 }
 0xd50   :  { %v19687_v9 = vpop.f32.mrb[201].mxu1  ;;  %v10320_v52 = vpop.f32.mrb[99].mxu0 }
 0xd51   :  { %v10610_v0 = vmax.f32 %v10318_v63, %v10320_v52  ;;  %v19689_v46 = vpop.f32.mrb[202].mxu1  ;;  %v19693_v25 = vmax.f32 %v10609_v29, 0.0  ;;  %v13042_v29 = vadd.f32 %v19586_v35, %v19261_v30 }
 0xd52   :  { %v19691_v61 = vpop.f32.mrb[203].mxu1 }
 0xd53   :  { %20824 = vst [vmem:[#allocation36_spill] sm:$0xff] %v19693_v25  ;;  %v19695_v15 = vmax.f32 %v10610_v0, 0.0 }
 0xd55   :  { %20825 = vst [vmem:[#allocation37_spill] sm:$0xff] %v19695_v15  ;;  %v10324_v45 = vpop.f32.mrb[100].mxu0 }
 0xd56   :  { %v10326_v50 = vpop.f32.mrb[101].mxu0 }
 0xd57   :  { %v10611_v48 = vmax.f32 %v10324_v45, %v10326_v50  ;;  %v9602_v10 = vpop.f32.mrb[204].mxu1  ;;  %v10328_v57 = vpop.f32.mrb[102].mxu0 }
 0xd58   :  { %v13071_v26 = vadd.f32 %v9602_v10, %v19256_v39  ;;  %v9604_v33 = vpop.f32.mrb[205].mxu1  ;;  %v10330_v41 = vpop.f32.mrb[103].mxu0 }
 0xd59   :  { %v13072_v38 = vadd.f32 %v9604_v33, %v19261_v30  ;;  %v10612_v27 = vmax.f32 %v10328_v57, %v10330_v41  ;;  %v9606_v42 = vpop.f32.mrb[206].mxu1  ;;  %v19710_v0 = vmax.f32 %v10611_v48, 0.0  ;;  %v13043_v48 = vadd.f32 %v19592_v44, %v19256_v39 }
 0xd5a   :  { %v9905_v63 = vmax.f32 %v13039_v40, %v13071_v26  ;;  %v13073_v34 = vadd.f32 %v9606_v42, %v19256_v39  ;;  %v9608_v52 = vpop.f32.mrb[207].mxu1 }
 0xd5b   :  { %20826 = vst [vmem:[#allocation38_spill] sm:$0xff] %v19710_v0  ;;  %v9906_v45 = vmax.f32 %v13040_v31, %v13072_v38  ;;  %v19712_v50 = vmax.f32 %v10612_v27, 0.0  ;;  %v13074_v28 = vadd.f32 %v9608_v52, %v19261_v30 }
 0xd5c   :  { %v9907_v10 = vmax.f32 %v13041_v36, %v13073_v34  ;;  %v13044_v36 = vadd.f32 %v19594_v14, %v19261_v30 }
 0xd5d   :  { %20827 = vst [vmem:[#allocation39_spill] sm:$0xff] %v19712_v50  ;;  %v9908_v33 = vmax.f32 %v13042_v29, %v13074_v28  ;;  %v10334_v4 = vpop.f32.mrb[104].mxu0 }
 0xd5e   :  { %v10001_v41 = vpack.c.bf16 %v9907_v10, %v9905_v63  ;;  %v10336_v7 = vpop.f32.mrb[105].mxu0  ;;  %v13046_v63 = vadd.f32 %v19601_v19, %v19261_v30  ;;  %v14484_v19 = vld [vmem:[%s20501_s7 + $0x58] sm:$0xff]  }
 0xd5f   :  { %v10002_v35 = vpack.c.bf16 %v9908_v33, %v9906_v45  ;;  %v10613_v40 = vmax.f32 %v10334_v4, %v10336_v7  ;;  %v9612_v26 = vpop.f32.mrb[208].mxu1  ;;  %v10338_v42 = vpop.f32.mrb[106].mxu0  ;;  %v13045_v7 = vadd.f32 %v19596_v11, %v19256_v39  ;;  %12687 = vmatprep.subr.bf16.mxu0 %v14484_v19 }
 0xd60   :  { %v13075_v31 = vadd.f32 %v9612_v26, %v19256_v39  ;;  %v9614_v38 = vpop.f32.mrb[209].mxu1  ;;  %v10340_v27 = vpop.f32.mrb[107].mxu0 }
 0xd61   :  { %v13076_v34 = vadd.f32 %v9614_v38, %v19261_v30  ;;  %v10614_v29 = vmax.f32 %v10338_v42, %v10340_v27  ;;  %v9616_v52 = vpop.f32.mrb[210].mxu1  ;;  %12606 = vmatprep.mubr.msk.bf16.mxu0 %vm10153_vm3, %v10002_v35  ;;  %v19729_v10 = vmax.f32 %v10613_v40, 0.0 }
 0xd62   :  { %v9909_v44 = vmax.f32 %v13043_v48, %v13075_v31  ;;  %v13077_v45 = vadd.f32 %v9616_v52, %v19256_v39  ;;  %v9618_v28 = vpop.f32.mrb[211].mxu1  ;;  %10443 = vmatmul.mubr.bf16.gmra.mrb[148].mxu0 %v10001_v41  ;;  %v14485_v41 = vld [vmem:[%s20501_s7 + $0x18] sm:$0xff]  }
 0xd63   :  { %20828 = vst [vmem:[#allocation40_spill] sm:$0xff] %v19729_v10  ;;  %v9910_v14 = vmax.f32 %v13044_v36, %v13076_v34  ;;  %v19731_v33 = vmax.f32 %v10614_v29, 0.0  ;;  %v13078_v4 = vadd.f32 %v9618_v28, %v19261_v30  ;;  %v13047_v34 = vadd.f32 %v19610_v55, %v19256_v39  ;;  %12688 = vmatpush3.bf16.msra.mxu0 %v14485_v41 }
 0xd64   :  { %v9911_v26 = vmax.f32 %v13045_v7, %v13077_v45  ;;  %v13050_v55 = vadd.f32 %v19616_v60, %v19261_v30 }
 0xd65   :  { %20829 = vst [vmem:[#allocation41_spill] sm:$0xff] %v19731_v33  ;;  %v9912_v11 = vmax.f32 %v13046_v63, %v13078_v4  ;;  %v10344_v42 = vpop.f32.mrb[108].mxu0  ;;  %v13048_v63 = vadd.f32 %v19612_v23, %v19261_v30 }
 0xd66   :  { %v10003_v48 = vpack.c.bf16 %v9911_v26, %v9909_v44  ;;  %v10346_v31 = vpop.f32.mrb[109].mxu0 }
 0xd67   :  { %v10004_v40 = vpack.c.bf16 %v9912_v11, %v9910_v14  ;;  %v10615_v38 = vmax.f32 %v10344_v42, %v10346_v31  ;;  %v9622_v27 = vpop.f32.mrb[212].mxu1  ;;  %v10348_v36 = vpop.f32.mrb[110].mxu0  ;;  %v13049_v14 = vadd.f32 %v19614_v20, %v19256_v39 }
 0xd68   :  { %v13079_v29 = vadd.f32 %v9622_v27, %v19256_v39  ;;  %v9624_v52 = vpop.f32.mrb[213].mxu1  ;;  %v10350_v7 = vpop.f32.mrb[111].mxu0 }
 0xd69   :  { %v13080_v44 = vadd.f32 %v9624_v52, %v19261_v30  ;;  %v10616_v45 = vmax.f32 %v10348_v36, %v10350_v7  ;;  %v9626_v28 = vpop.f32.mrb[214].mxu1  ;;  %12607 = vmatprep.mubr.msk.bf16.mxu0 %vm10153_vm3, %v10004_v40  ;;  %v19754_v42 = vmax.f32 %v10615_v38, 0.0 }
 0xd6a   :  { %v9913_v4 = vmax.f32 %v13047_v34, %v13079_v29  ;;  %v13081_v26 = vadd.f32 %v9626_v28, %v19256_v39  ;;  %v9628_v11 = vpop.f32.mrb[215].mxu1  ;;  %10453 = vmatmul.mubr.bf16.gmra.mrb[152].mxu0 %v10003_v48  ;;  %v13051_v48 = vadd.f32 %v19622_v43, %v19256_v39 }
 0xd6b   :  { %20830 = vst [vmem:[#allocation42_spill] sm:$0xff] %v19754_v42  ;;  %v9914_v23 = vmax.f32 %v13048_v63, %v13080_v44  ;;  %v19756_v19 = vmax.f32 %v10616_v45, 0.0  ;;  %v13082_v31 = vadd.f32 %v9628_v11, %v19261_v30  ;;  %v13052_v45 = vadd.f32 %v19624_v53, %v19261_v30 }
 0xd6c   :  { %v9915_v41 = vmax.f32 %v13049_v14, %v13081_v26  ;;  %v13054_v26 = vadd.f32 %v19628_v12, %v19261_v30 }
 0xd6d   :  { %20831 = vst [vmem:[#allocation43_spill] sm:$0xff] %v19756_v19  ;;  %v9916_v20 = vmax.f32 %v13050_v55, %v13082_v31  ;;  %v10354_v27 = vpop.f32.mrb[112].mxu0 }
 0xd6e   :  { %v10005_v36 = vpack.c.bf16 %v9915_v41, %v9913_v4  ;;  %v10356_v60 = vpop.f32.mrb[113].mxu0  ;;  %v13053_v4 = vadd.f32 %v19626_v32, %v19256_v39 }
 0xd6f   :  { %v10006_v34 = vpack.c.bf16 %v9916_v20, %v9914_v23  ;;  %v10617_v29 = vmax.f32 %v10354_v27, %v10356_v60  ;;  %v9632_v52 = vpop.f32.mrb[216].mxu1  ;;  %v10358_v7 = vpop.f32.mrb[114].mxu0 }
 0xd70   :  { %v13083_v38 = vadd.f32 %v9632_v52, %v19256_v39  ;;  %v9634_v63 = vpop.f32.mrb[217].mxu1  ;;  %v10360_v44 = vpop.f32.mrb[115].mxu0 }
 0xd71   :  { %v13084_v28 = vadd.f32 %v9634_v63, %v19261_v30  ;;  %v10618_v14 = vmax.f32 %v10358_v7, %v10360_v44  ;;  %v9636_v55 = vpop.f32.mrb[218].mxu1  ;;  %12608 = vmatprep.mubr.msk.bf16.mxu0 %vm10153_vm3, %v10006_v34  ;;  %v19773_v31 = vmax.f32 %v10617_v29, 0.0  ;;  %v13055_v7 = vadd.f32 %v19634_v3, %v19256_v39 }
 0xd72   :  { %v9917_v43 = vmax.f32 %v13051_v48, %v13083_v38  ;;  %v13085_v11 = vadd.f32 %v9636_v55, %v19256_v39  ;;  %v9638_v23 = vpop.f32.mrb[219].mxu1  ;;  %10463 = vmatmul.mubr.bf16.gmra.mrb[156].mxu0 %v10005_v36  ;;  %v13056_v48 = vadd.f32 %v19636_v13, %v19261_v30  ;;  %v13057_v44 = vadd.f32 %v19638_v21, %v19256_v39 }
 0xd73   :  { %20832 = vst [vmem:[#allocation44_spill] sm:$0xff] %v19773_v31  ;;  %v9918_v53 = vmax.f32 %v13052_v45, %v13084_v28  ;;  %v19775_v41 = vmax.f32 %v10618_v14, 0.0  ;;  %v13086_v20 = vadd.f32 %v9638_v23, %v19261_v30  ;;  %v13058_v3 = vadd.f32 %v19640_v58, %v19261_v30 }
 0xd74   :  { %v9919_v27 = vmax.f32 %v13053_v4, %v13085_v11 }
 0xd75   :  { %20833 = vst [vmem:[#allocation45_spill] sm:$0xff] %v19775_v41  ;;  %v9920_v32 = vmax.f32 %v13054_v26, %v13086_v20 }
 0xd76   :  { %v10007_v34 = vpack.c.bf16 %v9919_v27, %v9917_v43  ;;  %v13060_v27 = vadd.f32 %v19653_v8, %v19261_v30  ;;  %v14486_v8 = vld [vmem:[%s20501_s7 + $0x60] sm:$0xff]  }
 0xd77   :  { %v10008_v52 = vpack.c.bf16 %v9920_v32, %v9918_v53  ;;  %v9642_v12 = vpop.f32.mrb[220].mxu1  ;;  %v13059_v53 = vadd.f32 %v19651_v49, %v19256_v39  ;;  %v13062_v49 = vadd.f32 %v19657_v24, %v19261_v30  ;;  %12689 = vmatprep.subr.bf16.mxu0 %v14486_v8  ;;  %v13063_v24 = vadd.f32 %v19671_v2, %v19256_v39 }
 0xd78   :  { %v13087_v36 = vadd.f32 %v9642_v12, %v19256_v39  ;;  %v9644_v29 = vpop.f32.mrb[221].mxu1  ;;  %v13066_v2 = vadd.f32 %v19677_v54, %v19261_v30 }
 0xd79   :  { %v13088_v38 = vadd.f32 %v9644_v29, %v19261_v30  ;;  %v9646_v63 = vpop.f32.mrb[222].mxu1  ;;  %12609 = vmatprep.mubr.msk.bf16.mxu0 %vm10153_vm3, %v10008_v52 }
 0xd7a   :  { %v9921_v45 = vmax.f32 %v13055_v7, %v13087_v36  ;;  %v13089_v28 = vadd.f32 %v9646_v63, %v19256_v39  ;;  %v9648_v14 = vpop.f32.mrb[223].mxu1  ;;  %10473 = vmatmul.mubr.bf16.gmra.mrb[160].mxu0 %v10007_v34  ;;  %v13061_v34 = vadd.f32 %v19655_v18, %v19256_v39  ;;  %v14487_v18 = vld [vmem:[%s20501_s7 + $0x20] sm:$0xff]  }
 0xd7b   :  { %v9922_v55 = vmax.f32 %v13056_v48, %v13088_v38  ;;  %v13090_v4 = vadd.f32 %v9648_v14, %v19261_v30  ;;  %12690 = vmatpush3.bf16.msra.mxu0 %v14487_v18 }
 0xd7c   :  { %v9923_v13 = vmax.f32 %v13057_v44, %v13089_v28 }
 0xd7d   :  { %v9924_v26 = vmax.f32 %v13058_v3, %v13090_v4  ;;  %v13064_v3 = vadd.f32 %v19673_v16, %v19261_v30 }
 0xd7e   :  { %v10009_v43 = vpack.c.bf16 %v9923_v13, %v9921_v45  ;;  %v13065_v13 = vadd.f32 %v19675_v17, %v19256_v39 }
 0xd7f   :  { %v10010_v11 = vpack.c.bf16 %v9924_v26, %v9922_v55  ;;  %v9652_v23 = vpop.f32.mrb[224].mxu1 }
 0xd80   :  { %v13091_v21 = vadd.f32 %v9652_v23, %v19256_v39  ;;  %v9654_v20 = vpop.f32.mrb[225].mxu1 }
 0xd81   :  { %v13092_v32 = vadd.f32 %v9654_v20, %v19261_v30  ;;  %v9656_v58 = vpop.f32.mrb[226].mxu1  ;;  %12610 = vmatprep.mubr.msk.bf16.mxu0 %vm10153_vm3, %v10010_v11 }
 0xd82   :  { %v9925_v52 = vmax.f32 %v13059_v53, %v13091_v21  ;;  %v13093_v12 = vadd.f32 %v9656_v58, %v19256_v39  ;;  %v9658_v7 = vpop.f32.mrb[227].mxu1  ;;  %10483 = vmatmul.mubr.bf16.gmra.mrb[164].mxu0 %v10009_v43  ;;  %v13067_v58 = vadd.f32 %v19685_v47, %v19256_v39  ;;  %v13070_v47 = vadd.f32 %v19691_v61, %v19261_v30 }
 0xd83   :  { %v9926_v36 = vmax.f32 %v13060_v27, %v13092_v32  ;;  %v13094_v29 = vadd.f32 %v9658_v7, %v19261_v30  ;;  %v13069_v7 = vadd.f32 %v19689_v46, %v19256_v39  ;;  %v14489_v46 = vld [vmem:[%s20501_s7 + $0x28] sm:$0xff]  }
 0xd84   :  { %v9927_v48 = vmax.f32 %v13061_v34, %v13093_v12 }
 0xd85   :  { %v9928_v38 = vmax.f32 %v13062_v49, %v13094_v29 }
 0xd86   :  { %v10011_v63 = vpack.c.bf16 %v9927_v48, %v9925_v52  ;;  %v13068_v52 = vadd.f32 %v19687_v9, %v19261_v30 }
 0xd87   :  { %v10012_v44 = vpack.c.bf16 %v9928_v38, %v9926_v36  ;;  %v9662_v45 = vpop.f32.mrb[228].mxu1  ;;  %v14488_v38 = vld [vmem:[%s20501_s7 + $0x68] sm:$0xff]  }
 0xd88   :  { %v13095_v28 = vadd.f32 %v9662_v45, %v19256_v39  ;;  %v9664_v14 = vpop.f32.mrb[229].mxu1  ;;  %12691 = vmatprep.subr.bf16.mxu0 %v14488_v38 }
 0xd89   :  { %v13096_v55 = vadd.f32 %v9664_v14, %v19261_v30  ;;  %v9666_v4 = vpop.f32.mrb[230].mxu1  ;;  %12611 = vmatprep.mubr.msk.bf16.mxu0 %vm10153_vm3, %v10012_v44  ;;  %12692 = vmatpush3.bf16.msra.mxu0 %v14489_v46  ;;  %v14491_v14 = vld [vmem:[%s20501_s7 + $0x30] sm:$0xff]  }
 0xd8a   :  { %v9929_v26 = vmax.f32 %v13063_v24, %v13095_v28  ;;  %v13097_v43 = vadd.f32 %v9666_v4, %v19256_v39  ;;  %v9668_v11 = vpop.f32.mrb[231].mxu1  ;;  %10493 = vmatmul.mubr.bf16.gmra.mrb[168].mxu0 %v10011_v63  ;;  %v14490_v24 = vld [vmem:[%s20501_s7 + $0x70] sm:$0xff]   ;;  %v14493_v4 = vld [vmem:[%s20501_s7 + $0x38] sm:$0xff]  }
 0xd8b   :  { %v9930_v23 = vmax.f32 %v13064_v3, %v13096_v55  ;;  %v13098_v53 = vadd.f32 %v9668_v11, %v19261_v30  ;;  %12693 = vmatprep.subr.bf16.mxu0 %v14490_v24  ;;  %v14492_v55 = vld [vmem:[%s20501_s7 + $0x78] sm:$0xff]  }
 0xd8c   :  { %v9931_v16 = vmax.f32 %v13065_v13, %v13097_v43 }
 0xd8d   :  { %v9932_v21 = vmax.f32 %v13066_v2, %v13098_v53  ;;  %12694 = vmatpush3.bf16.msra.mxu0 %v14491_v14 }
 0xd8e   :  { %v10013_v20 = vpack.c.bf16 %v9931_v16, %v9929_v26  ;;  %12695 = vmatprep.subr.bf16.mxu0 %v14492_v55 }
 0xd8f   :  { %v10014_v27 = vpack.c.bf16 %v9932_v21, %v9930_v23  ;;  %v9672_v32 = vpop.f32.mrb[232].mxu1 }
 0xd90   :  { %v13099_v17 = vadd.f32 %v9672_v32, %v19256_v39  ;;  %v9674_v34 = vpop.f32.mrb[233].mxu1 }
 0xd91   :  { %v13100_v12 = vadd.f32 %v9674_v34, %v19261_v30  ;;  %v9676_v54 = vpop.f32.mrb[234].mxu1  ;;  %12612 = vmatprep.mubr.msk.bf16.mxu0 %vm10153_vm3, %v10014_v27  ;;  %12696 = vmatpush3.bf16.msra.mxu0 %v14493_v4 }
 0xd92   :  { %v9933_v49 = vmax.f32 %v13067_v58, %v13099_v17  ;;  %v13101_v36 = vadd.f32 %v9676_v54, %v19256_v39  ;;  %v9678_v29 = vpop.f32.mrb[235].mxu1  ;;  %10503 = vmatmul.mubr.bf16.gmra.mrb[172].mxu0 %v10013_v20 }
 0xd93   :  { %v9934_v8 = vmax.f32 %v13068_v52, %v13100_v12  ;;  %v13102_v48 = vadd.f32 %v9678_v29, %v19261_v30 }
 0xd94   :  { %v9935_v9 = vmax.f32 %v13069_v7, %v13101_v36 }
 0xd95   :  { %v9936_v63 = vmax.f32 %v13070_v47, %v13102_v48 }
 0xd96   :  { %v10015_v18 = vpack.c.bf16 %v9935_v9, %v9933_v49 }
 0xd97   :  { %v10016_v44 = vpack.c.bf16 %v9936_v63, %v9934_v8  ;;  %v19844_v45 = vpop.f32.mrb[236].mxu1 }
 0xd98   :  { %v19846_v61 = vpop.f32.mrb[237].mxu1  ;;  %v13103_v10 = vadd.f32 %v19844_v45, %v19256_v39 }
 0xd99   :  { %v19851_v28 = vpop.f32.mrb[238].mxu1  ;;  %12613 = vmatprep.mubr.msk.bf16.mxu0 %vm10153_vm3, %v10016_v44 }
 0xd9a   :  { %v19857_v3 = vpop.f32.mrb[239].mxu1  ;;  %10513 = vmatmul.mubr.bf16.gmra.mrb[176].mxu0 %v10015_v18  ;;  %v13105_v57 = vadd.f32 %v19851_v28, %v19256_v39 }
 0xd9f   :  { %v19865_v13 = vpop.f32.mrb[240].mxu1 }
 0xda0   :  { %v19867_v26 = vpop.f32.mrb[241].mxu1 }
 0xda1   :  { %v19869_v43 = vpop.f32.mrb[242].mxu1 }
 0xda2   :  { %v19871_v11 = vpop.f32.mrb[243].mxu1 }
 0xda7   :  { %v19873_v2 = vpop.f32.mrb[244].mxu1 }
 0xda8   :  { %v19875_v23 = vpop.f32.mrb[245].mxu1 }
 0xda9   :  { %v19877_v53 = vpop.f32.mrb[246].mxu1 }
 0xdaa   :  { %v19879_v16 = vpop.f32.mrb[247].mxu1 }
 0xdaf   :  { %v19881_v21 = vpop.f32.mrb[248].mxu1 }
 0xdb0   :  { %v19883_v20 = vpop.f32.mrb[249].mxu1 }
 0xdb1   :  { %v19885_v27 = vpop.f32.mrb[250].mxu1 }
 0xdb2   :  { %v19887_v32 = vpop.f32.mrb[251].mxu1 }
 0xdb5   :  { %v10364_v58 = vpop.f32.mrb[116].mxu0 }
 0xdb6   :  { %v10366_v17 = vpop.f32.mrb[117].mxu0 }
 0xdb7   :  { %v10619_v34 = vmax.f32 %v10364_v58, %v10366_v17  ;;  %v19889_v52 = vpop.f32.mrb[252].mxu1  ;;  %v10368_v12 = vpop.f32.mrb[118].mxu0 }
 0xdb8   :  { %v19891_v54 = vpop.f32.mrb[253].mxu1  ;;  %v10370_v7 = vpop.f32.mrb[119].mxu0 }
 0xdb9   :  { %v10620_v49 = vmax.f32 %v10368_v12, %v10370_v7  ;;  %v19893_v36 = vpop.f32.mrb[254].mxu1  ;;  %v19897_v47 = vmax.f32 %v10619_v34, 0.0 }
 0xdba   :  { %v19895_v29 = vpop.f32.mrb[255].mxu1 }
 0xdbb   :  { %v19899_v8 = vmax.f32 %v10620_v49, 0.0 }
 0xdbd   :  { %v10374_v9 = vpop.f32.mrb[120].mxu0 }
 0xdbe   :  { %v10376_v38 = vpop.f32.mrb[121].mxu0 }
 0xdbf   :  { %v10621_v63 = vmax.f32 %v10374_v9, %v10376_v38  ;;  %v19903_v46 = vpop.f32.mrb[0].mxu1  ;;  %v10378_v18 = vpop.f32.mrb[122].mxu0 }
 0xdc0   :  { %v19905_v44 = vpop.f32.mrb[1].mxu1  ;;  %v10380_v24 = vpop.f32.mrb[123].mxu0 }
 0xdc1   :  { %v10622_v14 = vmax.f32 %v10378_v18, %v10380_v24  ;;  %v19907_v55 = vpop.f32.mrb[2].mxu1  ;;  %v19911_v58 = vmax.f32 %v10621_v63, 0.0 }
 0xdc2   :  { %v19909_v4 = vpop.f32.mrb[3].mxu1 }
 0xdc3   :  { %v19913_v17 = vmax.f32 %v10622_v14, 0.0 }
 0xdc5   :  { %v10384_v12 = vpop.f32.mrb[124].mxu0 }
 0xdc6   :  { %v10386_v7 = vpop.f32.mrb[125].mxu0 }
 0xdc7   :  { %v10623_v49 = vmax.f32 %v10384_v12, %v10386_v7  ;;  %v19917_v9 = vpop.f32.mrb[4].mxu1  ;;  %v10388_v38 = vpop.f32.mrb[126].mxu0 }
 0xdc8   :  { %v19919_v60 = vpop.f32.mrb[5].mxu1  ;;  %v10390_v18 = vpop.f32.mrb[127].mxu0 }
 0xdc9   :  { %v10624_v24 = vmax.f32 %v10388_v38, %v10390_v18  ;;  %v19921_v40 = vpop.f32.mrb[6].mxu1  ;;  %v19925_v63 = vmax.f32 %v10623_v49, 0.0 }
 0xdca   :  { %v19923_v35 = vpop.f32.mrb[7].mxu1 }
 0xdcb   :  { %v19927_v14 = vmax.f32 %v10624_v24, 0.0 }
 0xdcd   :  { %v10394_v51 = vpop.f32.mrb[128].mxu0 }
 0xdce   :  { %v10396_v12 = vpop.f32.mrb[129].mxu0 }
 0xdcf   :  { %v10625_v7 = vmax.f32 %v10394_v51, %v10396_v12  ;;  %v19931_v56 = vpop.f32.mrb[8].mxu1  ;;  %v10398_v34 = vpop.f32.mrb[130].mxu0 }
 0xdd0   :  { %v19933_v37 = vpop.f32.mrb[9].mxu1  ;;  %v10400_v38 = vpop.f32.mrb[131].mxu0 }
 0xdd1   :  { %v10626_v18 = vmax.f32 %v10398_v34, %v10400_v38  ;;  %v19935_v48 = vpop.f32.mrb[10].mxu1  ;;  %v19939_v49 = vmax.f32 %v10625_v7, 0.0  ;;  %v13104_v7 = vadd.f32 %v19846_v61, %v19261_v30 }
 0xdd2   :  { %v19937_v31 = vpop.f32.mrb[11].mxu1 }
 0xdd3   :  { %20834 = vst [vmem:[#allocation46_spill] sm:$0xff] %v19939_v49  ;;  %v19941_v24 = vmax.f32 %v10626_v18, 0.0 }
 0xdd5   :  { %20835 = vst [vmem:[#allocation47_spill] sm:$0xff] %v19941_v24  ;;  %v10404_v41 = vpop.f32.mrb[132].mxu0 }
 0xdd6   :  { %v10406_v51 = vpop.f32.mrb[133].mxu0 }
 0xdd7   :  { %v10627_v12 = vmax.f32 %v10404_v41, %v10406_v51  ;;  %v9762_v42 = vpop.f32.mrb[12].mxu1  ;;  %v10408_v19 = vpop.f32.mrb[134].mxu0  ;;  %v13106_v41 = vadd.f32 %v19857_v3, %v19261_v30 }
 0xdd8   :  { %v13135_v34 = vadd.f32 %v9762_v42, %v19256_v39  ;;  %v9764_v38 = vpop.f32.mrb[13].mxu1  ;;  %v10410_v33 = vpop.f32.mrb[135].mxu0 }
 0xdd9   :  { %v13136_v18 = vadd.f32 %v9764_v38, %v19261_v30  ;;  %v10628_v0 = vmax.f32 %v10408_v19, %v10410_v33  ;;  %v9766_v50 = vpop.f32.mrb[14].mxu1  ;;  %v19956_v42 = vmax.f32 %v10627_v12, 0.0  ;;  %v13107_v12 = vadd.f32 %v19865_v13, %v19256_v39 }
 0xdda   :  { %v9937_v51 = vmax.f32 %v13103_v10, %v13135_v34  ;;  %v13137_v45 = vadd.f32 %v9766_v50, %v19256_v39  ;;  %v9768_v25 = vpop.f32.mrb[15].mxu1 }
 0xddb   :  { %v9938_v15 = vmax.f32 %v13104_v7, %v13136_v18  ;;  %v19958_v49 = vmax.f32 %v10628_v0, 0.0  ;;  %v13138_v61 = vadd.f32 %v9768_v25, %v19261_v30  ;;  %v13108_v25 = vadd.f32 %v19867_v26, %v19261_v30 }
 0xddc   :  { %v9939_v38 = vmax.f32 %v13105_v57, %v13137_v45 }
 0xddd   :  { %v10743_v33 = vpack.c.bf16 %v19958_v49, %v19956_v42  ;;  %v9940_v19 = vmax.f32 %v13106_v41, %v13138_v61  ;;  %v10414_v28 = vpop.f32.mrb[136].mxu0 }
 0xdde   :  { %v10017_v24 = vpack.c.bf16 %v9939_v38, %v9937_v51  ;;  %v10416_v5 = vpop.f32.mrb[137].mxu0 }
 0xddf   :  { %v10018_v3 = vpack.c.bf16 %v9940_v19, %v9938_v15  ;;  %v10629_v10 = vmax.f32 %v10414_v28, %v10416_v5  ;;  %v9772_v34 = vpop.f32.mrb[16].mxu1  ;;  %v10418_v50 = vpop.f32.mrb[138].mxu0  ;;  %v13109_v5 = vadd.f32 %v19869_v43, %v19256_v39  ;;  %v13110_v15 = vadd.f32 %v19871_v11, %v19261_v30 }
 0xde0   :  { %v13139_v0 = vadd.f32 %v9772_v34, %v19256_v39  ;;  %v9774_v7 = vpop.f32.mrb[17].mxu1  ;;  %v10420_v18 = vpop.f32.mrb[139].mxu0 }
 0xde1   :  { %v13140_v57 = vadd.f32 %v9774_v7, %v19261_v30  ;;  %v10630_v41 = vmax.f32 %v10418_v50, %v10420_v18  ;;  %v9776_v45 = vpop.f32.mrb[18].mxu1  ;;  %12614 = vmatprep.mubr.msk.bf16.mxu0 %vm10153_vm3, %v10018_v3  ;;  %v19975_v38 = vmax.f32 %v10629_v10, 0.0 }
 0xde2   :  { %v9941_v13 = vmax.f32 %v13107_v12, %v13139_v0  ;;  %v13141_v51 = vadd.f32 %v9776_v45, %v19256_v39  ;;  %v9778_v61 = vpop.f32.mrb[19].mxu1  ;;  %10523 = vmatmul.mubr.bf16.gmra.mrb[180].mxu0 %v10017_v24  ;;  %v13111_v24 = vadd.f32 %v19873_v2, %v19256_v39 }
 0xde3   :  { %v9942_v26 = vmax.f32 %v13108_v25, %v13140_v57  ;;  %v19977_v19 = vmax.f32 %v10630_v41, 0.0  ;;  %v13142_v28 = vadd.f32 %v9778_v61, %v19261_v30  ;;  %v13112_v41 = vadd.f32 %v19875_v23, %v19261_v30 }
 0xde4   :  { %v9943_v34 = vmax.f32 %v13109_v5, %v13141_v51  ;;  %v13114_v61 = vadd.f32 %v19879_v16, %v19261_v30 }
 0xde5   :  { %v10744_v3 = vpack.c.bf16 %v19977_v19, %v19975_v38  ;;  %v9944_v43 = vmax.f32 %v13110_v15, %v13142_v28  ;;  %v10424_v50 = vpop.f32.mrb[140].mxu0 }
 0xde6   :  { %v10019_v7 = vpack.c.bf16 %v9943_v34, %v9941_v13  ;;  %v10426_v11 = vpop.f32.mrb[141].mxu0  ;;  %v13113_v13 = vadd.f32 %v19877_v53, %v19256_v39 }
 0xde7   :  { %v10020_v12 = vpack.c.bf16 %v9944_v43, %v9942_v26  ;;  %v10631_v0 = vmax.f32 %v10424_v50, %v10426_v11  ;;  %v9782_v18 = vpop.f32.mrb[20].mxu1  ;;  %v10428_v45 = vpop.f32.mrb[142].mxu0 }
 0xde8   :  { %v13143_v10 = vadd.f32 %v9782_v18, %v19256_v39  ;;  %v9784_v25 = vpop.f32.mrb[21].mxu1  ;;  %v10430_v57 = vpop.f32.mrb[143].mxu0 }
 0xde9   :  { %v13144_v5 = vadd.f32 %v9784_v25, %v19261_v30  ;;  %v10632_v15 = vmax.f32 %v10428_v45, %v10430_v57  ;;  %v9786_v51 = vpop.f32.mrb[22].mxu1  ;;  %12615 = vmatprep.mubr.msk.bf16.mxu0 %vm10153_vm3, %v10020_v12  ;;  %v19994_v34 = vmax.f32 %v10631_v0, 0.0 }
 0xdea   :  { %v9945_v2 = vmax.f32 %v13111_v24, %v13143_v10  ;;  %v13145_v26 = vadd.f32 %v9786_v51, %v19256_v39  ;;  %v9788_v28 = vpop.f32.mrb[23].mxu1  ;;  %10533 = vmatmul.mubr.bf16.gmra.mrb[184].mxu0 %v10019_v7  ;;  %v13115_v7 = vadd.f32 %v19881_v21, %v19256_v39 }
 0xdeb   :  { %v9946_v23 = vmax.f32 %v13112_v41, %v13144_v5  ;;  %v19996_v43 = vmax.f32 %v10632_v15, 0.0  ;;  %v13146_v50 = vadd.f32 %v9788_v28, %v19261_v30  ;;  %v13116_v15 = vadd.f32 %v19883_v20, %v19261_v30 }
 0xdec   :  { %v9947_v11 = vmax.f32 %v13113_v13, %v13145_v26  ;;  %v13118_v26 = vadd.f32 %v19887_v32, %v19261_v30  ;;  %v14494_v32 = vld [vmem:[%s20501_s7 + $0xc0] sm:$0xff]  }
 0xded   :  { %v10745_v12 = vpack.c.bf16 %v19996_v43, %v19994_v34  ;;  %v9948_v53 = vmax.f32 %v13114_v61, %v13146_v50  ;;  %v10434_v18 = vpop.f32.mrb[144].mxu0  ;;  %12745 = vmatprep.subr.bf16.mxu0 %v14494_v32 }
 0xdee   :  { %v10021_v45 = vpack.c.bf16 %v9947_v11, %v9945_v2  ;;  %v10436_v16 = vpop.f32.mrb[145].mxu0  ;;  %v13117_v2 = vadd.f32 %v19885_v27, %v19256_v39 }
 0xdef   :  { %v10022_v24 = vpack.c.bf16 %v9948_v53, %v9946_v23  ;;  %v10633_v10 = vmax.f32 %v10434_v18, %v10436_v16  ;;  %v9792_v25 = vpop.f32.mrb[24].mxu1  ;;  %v10438_v57 = vpop.f32.mrb[146].mxu0 }
 0xdf0   :  { %v13147_v0 = vadd.f32 %v9792_v25, %v19256_v39  ;;  %v9794_v41 = vpop.f32.mrb[25].mxu1  ;;  %v10440_v5 = vpop.f32.mrb[147].mxu0 }
 0xdf1   :  { %v13148_v51 = vadd.f32 %v9794_v41, %v19261_v30  ;;  %v10634_v13 = vmax.f32 %v10438_v57, %v10440_v5  ;;  %v9796_v61 = vpop.f32.mrb[26].mxu1  ;;  %12616 = vmatprep.mubr.msk.bf16.mxu0 %vm10153_vm3, %v10022_v24  ;;  %v20013_v50 = vmax.f32 %v10633_v10, 0.0 }
 0xdf2   :  { %v9949_v21 = vmax.f32 %v13115_v7, %v13147_v0  ;;  %v13149_v28 = vadd.f32 %v9796_v61, %v19256_v39  ;;  %v9798_v23 = vpop.f32.mrb[27].mxu1  ;;  %10543 = vmatmul.mubr.bf16.gmra.mrb[188].mxu0 %v10021_v45  ;;  %v13119_v45 = vadd.f32 %v19889_v52, %v19256_v39  ;;  %v13120_v0 = vadd.f32 %v19891_v54, %v19261_v30 }
 0xdf3   :  { %v9950_v20 = vmax.f32 %v13116_v15, %v13148_v51  ;;  %v20015_v11 = vmax.f32 %v10634_v13, 0.0  ;;  %v13150_v53 = vadd.f32 %v9798_v23, %v19261_v30  ;;  %v13121_v15 = vadd.f32 %v19893_v36, %v19256_v39 }
 0xdf4   :  { %v9951_v18 = vmax.f32 %v13117_v2, %v13149_v28  ;;  %v13122_v52 = vadd.f32 %v19895_v29, %v19261_v30 }
 0xdf5   :  { %v10746_v16 = vpack.c.bf16 %v20015_v11, %v20013_v50  ;;  %v9952_v27 = vmax.f32 %v13118_v26, %v13150_v53  ;;  %v13123_v53 = vadd.f32 %v19903_v46, %v19256_v39  ;;  %v13126_v46 = vadd.f32 %v19909_v4, %v19261_v30 }
 0xdf6   :  { %v10023_v24 = vpack.c.bf16 %v9951_v18, %v9949_v21 }
 0xdf7   :  { %v10024_v25 = vpack.c.bf16 %v9952_v27, %v9950_v20  ;;  %v9802_v57 = vpop.f32.mrb[28].mxu1  ;;  %v13124_v27 = vadd.f32 %v19905_v44, %v19261_v30 }
 0xdf8   :  { %v13151_v10 = vadd.f32 %v9802_v57, %v19256_v39  ;;  %v9804_v7 = vpop.f32.mrb[29].mxu1 }
 0xdf9   :  { %v13152_v41 = vadd.f32 %v9804_v7, %v19261_v30  ;;  %v9806_v5 = vpop.f32.mrb[30].mxu1  ;;  %12617 = vmatprep.mubr.msk.bf16.mxu0 %vm10153_vm3, %v10024_v25 }
 0xdfa   :  { %v9953_v51 = vmax.f32 %v13119_v45, %v13151_v10  ;;  %v13153_v13 = vadd.f32 %v9806_v5, %v19256_v39  ;;  %v9808_v61 = vpop.f32.mrb[31].mxu1  ;;  %10553 = vmatmul.mubr.bf16.gmra.mrb[192].mxu0 %v10023_v24  ;;  %v13125_v24 = vadd.f32 %v19907_v55, %v19256_v39 }
 0xdfb   :  { %v9954_v2 = vmax.f32 %v13120_v0, %v13152_v41  ;;  %v13154_v26 = vadd.f32 %v9808_v61, %v19261_v30  ;;  %v13128_v61 = vadd.f32 %v19919_v60, %v19261_v30 }
 0xdfc   :  { %v9955_v54 = vmax.f32 %v13121_v15, %v13153_v13 }
 0xdfd   :  { %v9956_v21 = vmax.f32 %v13122_v52, %v13154_v26 }
 0xdfe   :  { %v10025_v28 = vpack.c.bf16 %v9955_v54, %v9953_v51  ;;  %v13127_v51 = vadd.f32 %v19917_v9, %v19256_v39  ;;  %v13130_v9 = vadd.f32 %v19923_v35, %v19261_v30 }
 0xdff   :  { %v10026_v23 = vpack.c.bf16 %v9956_v21, %v9954_v2  ;;  %v9812_v20 = vpop.f32.mrb[32].mxu1  ;;  %v13129_v2 = vadd.f32 %v19921_v40, %v19256_v39 }
 0xe00   :  { %v13155_v36 = vadd.f32 %v9812_v20, %v19256_v39  ;;  %v9814_v18 = vpop.f32.mrb[33].mxu1 }
 0xe01   :  { %v13156_v32 = vadd.f32 %v9814_v18, %v19261_v30  ;;  %v9816_v29 = vpop.f32.mrb[34].mxu1  ;;  %12618 = vmatprep.mubr.msk.bf16.mxu0 %vm10153_vm3, %v10026_v23 }
 0xe02   :  { %v9957_v25 = vmax.f32 %v13123_v53, %v13155_v36  ;;  %v13157_v57 = vadd.f32 %v9816_v29, %v19256_v39  ;;  %v9818_v45 = vpop.f32.mrb[35].mxu1  ;;  %10563 = vmatmul.mubr.bf16.gmra.mrb[196].mxu0 %v10025_v28  ;;  %v13132_v29 = vadd.f32 %v19933_v37, %v19261_v30 }
 0xe03   :  { %v9958_v10 = vmax.f32 %v13124_v27, %v13156_v32  ;;  %v13158_v7 = vadd.f32 %v9818_v45, %v19261_v30  ;;  %v13131_v27 = vadd.f32 %v19931_v56, %v19256_v39  ;;  %v13134_v56 = vadd.f32 %v19937_v31, %v19261_v30  ;;  %v14496_v31 = vld [vmem:[%s20501_s7 + $0xc8] sm:$0xff]  }
 0xe04   :  { %v9959_v44 = vmax.f32 %v13125_v24, %v13157_v57 }
 0xe05   :  { %v9960_v0 = vmax.f32 %v13126_v46, %v13158_v7 }
 0xe06   :  { %v10027_v41 = vpack.c.bf16 %v9959_v44, %v9957_v25  ;;  %v13133_v25 = vadd.f32 %v19935_v48, %v19256_v39  ;;  %v20836_v48 = vpack.c.bf16 %v19899_v8, %v19897_v47  ;;  %v14497_v47 = vld [vmem:[%s20501_s7 + $0x88] sm:$0xff]   ;;  %v14498_v8 = vld [vmem:[%s20501_s7 + $0xd0] sm:$0xff]  }
 0xe07   :  { %v10028_v5 = vpack.c.bf16 %v9960_v0, %v9958_v10  ;;  %v9822_v15 = vpop.f32.mrb[36].mxu1 }
 0xe08   :  { %v13159_v55 = vadd.f32 %v9822_v15, %v19256_v39  ;;  %v9824_v13 = vpop.f32.mrb[37].mxu1  ;;  %v14501_v15 = vld [vmem:[%s20501_s7 + $0x98] sm:$0xff]  }
 0xe09   :  { %v13160_v52 = vadd.f32 %v9824_v13, %v19261_v30  ;;  %v9826_v4 = vpop.f32.mrb[38].mxu1  ;;  %12619 = vmatprep.mubr.msk.bf16.mxu0 %vm10153_vm3, %v10028_v5  ;;  %v20838_v5 = vpack.c.bf16 %v19913_v17, %v19911_v58  ;;  %v20839_v58 = vpack.c.bf16 %v19661_v6, %v19659_v1  ;;  %v20840_v17 = vpack.c.bf16 %v19927_v14, %v19925_v63  ;;  %v14503_v1 = vld [vmem:[%s20501_s7 + $0xa0] sm:$0xff]   ;;  %v14504_v6 = vld [vmem:[%s20501_s7 + $0xe8] sm:$0xff]  }
 0xe0a   :  { %v9961_v26 = vmax.f32 %v13127_v51, %v13159_v55  ;;  %v13161_v54 = vadd.f32 %v9826_v4, %v19256_v39  ;;  %v9828_v21 = vpop.f32.mrb[39].mxu1  ;;  %10573 = vmatmul.mubr.bf16.gmra.mrb[200].mxu0 %v10027_v41  ;;  %v14502_v51 = vld [vmem:[%s20501_s7 + $0xe0] sm:$0xff]   ;;  %v20843_v55 = vld [vmem:[#allocation47_spill] sm:$0xff]  ;;  %v14506_v4 = vld [vmem:[%s20501_s7 + $0xf0] sm:$0xff]  }
 0xe0b   :  { %v9962_v28 = vmax.f32 %v13128_v61, %v13160_v52  ;;  %v13162_v23 = vadd.f32 %v9828_v21, %v19261_v30  ;;  %v20841_v63 = vld [vmem:[#allocation34_spill] sm:$0xff]  ;;  %v14505_v52 = vld [vmem:[%s20501_s7 + $0xa8] sm:$0xff]  }
 0xe0c   :  { %v9963_v60 = vmax.f32 %v13129_v2, %v13161_v54  ;;  %v20842_v14 = vpack.c.bf16 %v19681_v62, %v20841_v63  ;;  %v20844_v13 = vld [vmem:[#allocation46_spill] sm:$0xff]  ;;  %v14507_v62 = vld [vmem:[%s20501_s7 + $0xb0] sm:$0xff]  }
 0xe0d   :  { %v9964_v20 = vmax.f32 %v13130_v9, %v13162_v23  ;;  %v20845_v61 = vpack.c.bf16 %v20843_v55, %v20844_v13  ;;  %v20846_v23 = vld [vmem:[#allocation37_spill] sm:$0xff] }
 0xe0e   :  { %v10029_v53 = vpack.c.bf16 %v9963_v60, %v9961_v26  ;;  %v20847_v60 = vld [vmem:[#allocation36_spill] sm:$0xff]  ;;  %v20858_v13 = vld [vmem:[#allocation45_spill] sm:$0xff] }
 0xe0f   :  { %v10030_v36 = vpack.c.bf16 %v9964_v20, %v9962_v28  ;;  %v9832_v18 = vpop.f32.mrb[40].mxu1  ;;  %v20848_v20 = vpack.c.bf16 %v20846_v23, %v20847_v60 }
 0xe10   :  { %v13163_v40 = vadd.f32 %v9832_v18, %v19256_v39  ;;  %v9834_v32 = vpop.f32.mrb[41].mxu1 }
 0xe11   :  { %v13164_v24 = vadd.f32 %v9834_v32, %v19261_v30  ;;  %v9836_v35 = vpop.f32.mrb[42].mxu1  ;;  %12620 = vmatprep.mubr.msk.bf16.mxu0 %vm10153_vm3, %v10030_v36 }
 0xe12   :  { %v9965_v57 = vmax.f32 %v13131_v27, %v13163_v40  ;;  %v13165_v45 = vadd.f32 %v9836_v35, %v19256_v39  ;;  %v9838_v46 = vpop.f32.mrb[43].mxu1  ;;  %10583 = vmatmul.mubr.bf16.gmra.mrb[204].mxu0 %v10029_v53  ;;  %v14495_v39 = vld [vmem:[%s20501_s7 + $0x80] sm:$0xff]   ;;  %v14508_v53 = vld [vmem:[%s20501_s7 + $0xf8] sm:$0xff]  }
 0xe13   :  { %v9966_v10 = vmax.f32 %v13132_v29, %v13164_v24  ;;  %v13166_v7 = vadd.f32 %v9838_v46, %v19261_v30  ;;  %v20837_v30 = vpack.c.bf16 %v19644_v59, %v19642_v22  ;;  %v14499_v22 = vld [vmem:[%s20501_s7 + $0x90] sm:$0xff]   ;;  %v14500_v59 = vld [vmem:[%s20501_s7 + $0xd8] sm:$0xff]   ;;  %v20850_v46 = vld [vmem:[#allocation38_spill] sm:$0xff] }
 0xe14   :  { %v9967_v37 = vmax.f32 %v13133_v25, %v13165_v45  ;;  %v14509_v27 = vld [vmem:[%s20501_s7 + $0xb8] sm:$0xff]   ;;  %v20849_v45 = vld [vmem:[#allocation39_spill] sm:$0xff] }
 0xe15   :  { %v9968_v44 = vmax.f32 %v13134_v56, %v13166_v7  ;;  %v20851_v49 = vpack.c.bf16 %v20849_v45, %v20850_v46 }
 0xe16   :  { %v10031_v0 = vpack.c.bf16 %v9967_v37, %v9965_v57 }
 0xe17   :  { %v10032_v41 = vpack.c.bf16 %v9968_v44, %v9966_v10 }
 0xe19   :  { %12621 = vmatprep.mubr.msk.bf16.mxu0 %vm10153_vm3, %v10032_v41 }
 0xe1a   :  { %10593 = vmatmul.mubr.bf16.gmra.mrb[208].mxu0 %v10031_v0 }
 0xe1b   :  { %11058 = vmatprep.mubr.bf16.mxu0 %v20836_v48  ;;  %v20852_v48 = vld [vmem:[#allocation41_spill] sm:$0xff] }
 0xe22   :  { %11059 = vmatmul.mubr.bf16.vlgmr.msra.gmra.mrb[212].mxu0 %v20837_v30 }
 0xe23   :  { %11066 = vmatprep.mubr.bf16.mxu0 %v20838_v5  ;;  %12746 = vmatpush3.bf16.msra.mxu0 %v14495_v39  ;;  %v20853_v39 = vld [vmem:[#allocation40_spill] sm:$0xff] }
 0xe24   :  { %12747 = vmatprep.subr.bf16.mxu0 %v14496_v31  ;;  %v20854_v31 = vpack.c.bf16 %v20852_v48, %v20853_v39 }
 0xe27   :  { %12748 = vmatpush3.bf16.msra.mxu0 %v14497_v47 }
 0xe28   :  { %12749 = vmatprep.subr.bf16.mxu0 %v14498_v8 }
 0xe2a   :  { %11067 = vmatmul.mubr.bf16.gmra.mrb[216].mxu0 %v20839_v58  ;;  %v20855_v58 = vld [vmem:[#allocation43_spill] sm:$0xff] }
 0xe2b   :  { %11074 = vmatprep.mubr.bf16.mxu0 %v20840_v17  ;;  %12750 = vmatpush3.bf16.msra.mxu0 %v14499_v22  ;;  %v20856_v17 = vld [vmem:[#allocation42_spill] sm:$0xff] }
 0xe2c   :  { %12751 = vmatprep.subr.bf16.mxu0 %v14500_v59 }
 0xe2f   :  { %12752 = vmatpush3.bf16.msra.mxu0 %v14501_v15  ;;  %v20857_v15 = vpack.c.bf16 %v20855_v58, %v20856_v17 }
 0xe30   :  { %12753 = vmatprep.subr.bf16.mxu0 %v14502_v51 }
 0xe32   :  { %11075 = vmatmul.mubr.bf16.gmra.mrb[220].mxu0 %v20842_v14 }
 0xe33   :  { %11082 = vmatprep.mubr.bf16.mxu0 %v20845_v61  ;;  %12754 = vmatpush3.bf16.msra.mxu0 %v14503_v1  ;;  %v20859_v61 = vld [vmem:[#allocation44_spill] sm:$0xff] }
 0xe34   :  { %12755 = vmatprep.subr.bf16.mxu0 %v14504_v6 }
 0xe35   :  { %v10444_v2 = vpop.f32.mrb[148].mxu0 }
 0xe36   :  { %v10446_v26 = vpop.f32.mrb[149].mxu0 }
 0xe37   :  { %v10635_v54 = vmax.f32 %v10444_v2, %v10446_v26  ;;  %v10448_v21 = vpop.f32.mrb[150].mxu0  ;;  %12756 = vmatpush3.bf16.msra.mxu0 %v14505_v52  ;;  %v20860_v52 = vpack.c.bf16 %v20858_v13, %v20859_v61 }
 0xe38   :  { %v10450_v9 = vpop.f32.mrb[151].mxu0  ;;  %12757 = vmatprep.subr.bf16.mxu0 %v14506_v4 }
 0xe39   :  { %v10636_v28 = vmax.f32 %v10448_v21, %v10450_v9  ;;  %v20142_v36 = vmax.f32 %v10635_v54, 0.0 }
 0xe3a   :  { %11083 = vmatmul.mubr.bf16.gmra.mrb[224].mxu0 %v20848_v20 }
 0xe3b   :  { %v20144_v18 = vmax.f32 %v10636_v28, 0.0  ;;  %11090 = vmatprep.mubr.bf16.mxu0 %v10743_v33  ;;  %12758 = vmatpush3.bf16.msra.mxu0 %v14507_v62 }
 0xe3c   :  { %12759 = vmatprep.subr.bf16.mxu0 %v14508_v53 }
 0xe3d   :  { %v10747_v40 = vpack.c.bf16 %v20144_v18, %v20142_v36  ;;  %v10454_v32 = vpop.f32.mrb[152].mxu0 }
 0xe3e   :  { %v10456_v29 = vpop.f32.mrb[153].mxu0 }
 0xe3f   :  { %v10637_v24 = vmax.f32 %v10454_v32, %v10456_v29  ;;  %v10458_v35 = vpop.f32.mrb[154].mxu0  ;;  %12760 = vmatpush3.bf16.msra.mxu0 %v14509_v27 }
 0xe40   :  { %v10460_v25 = vpop.f32.mrb[155].mxu0 }
 0xe41   :  { %v10638_v57 = vmax.f32 %v10458_v35, %v10460_v25  ;;  %v20157_v42 = vmax.f32 %v10637_v24, 0.0 }
 0xe42   :  { %11091 = vmatmul.mubr.bf16.gmra.mrb[228].mxu0 %v20851_v49 }
 0xe43   :  { %v20159_v33 = vmax.f32 %v10638_v57, 0.0  ;;  %11098 = vmatprep.mubr.bf16.mxu0 %v10744_v3 }
 0xe45   :  { %v10748_v56 = vpack.c.bf16 %v20159_v33, %v20157_v42  ;;  %v10464_v10 = vpop.f32.mrb[156].mxu0 }
 0xe46   :  { %v10466_v7 = vpop.f32.mrb[157].mxu0 }
 0xe47   :  { %v10639_v37 = vmax.f32 %v10464_v10, %v10466_v7  ;;  %v10468_v44 = vpop.f32.mrb[158].mxu0 }
 0xe48   :  { %v10470_v0 = vpop.f32.mrb[159].mxu0 }
 0xe49   :  { %v10640_v41 = vmax.f32 %v10468_v44, %v10470_v0  ;;  %v20169_v30 = vmax.f32 %v10639_v37, 0.0 }
 0xe4a   :  { %11099 = vmatmul.mubr.bf16.gmra.mrb[232].mxu0 %v20854_v31 }
 0xe4b   :  { %v20171_v5 = vmax.f32 %v10640_v41, 0.0  ;;  %11106 = vmatprep.mubr.bf16.mxu0 %v10745_v12  ;;  %v14510_v41 = vld [vmem:[%s20502_s9] sm:$0xff]  }
 0xe4c   :  { %12833 = vmatprep.subr.bf16.mxu0 %v14510_v41 }
 0xe4d   :  { %v10749_v38 = vpack.c.bf16 %v20171_v5, %v20169_v30  ;;  %v10474_v19 = vpop.f32.mrb[160].mxu0 }
 0xe4e   :  { %v10476_v3 = vpop.f32.mrb[161].mxu0 }
 0xe4f   :  { %v10641_v47 = vmax.f32 %v10474_v19, %v10476_v3  ;;  %v10478_v8 = vpop.f32.mrb[162].mxu0 }
 0xe50   :  { %v10480_v22 = vpop.f32.mrb[163].mxu0 }
 0xe51   :  { %v10642_v59 = vmax.f32 %v10478_v8, %v10480_v22  ;;  %v20181_v51 = vmax.f32 %v10641_v47, 0.0 }
 0xe52   :  { %11107 = vmatmul.mubr.bf16.gmra.mrb[236].mxu0 %v20857_v15  ;;  %v14511_v15 = vld [vmem:[%s20502_s9 + $0x8] sm:$0xff]  }
 0xe53   :  { %v20183_v1 = vmax.f32 %v10642_v59, 0.0  ;;  %11114 = vmatprep.mubr.bf16.mxu0 %v10746_v16 }
 0xe55   :  { %v10750_v34 = vpack.c.bf16 %v20183_v1, %v20181_v51  ;;  %v10484_v43 = vpop.f32.mrb[164].mxu0 }
 0xe56   :  { %v10486_v12 = vpop.f32.mrb[165].mxu0 }
 0xe57   :  { %v10643_v6 = vmax.f32 %v10484_v43, %v10486_v12  ;;  %v10488_v63 = vpop.f32.mrb[166].mxu0 }
 0xe58   :  { %v10490_v14 = vpop.f32.mrb[167].mxu0 }
 0xe59   :  { %v10644_v55 = vmax.f32 %v10488_v63, %v10490_v14  ;;  %v20193_v4 = vmax.f32 %v10643_v6, 0.0 }
 0xe5a   :  { %11115 = vmatmul.mubr.bf16.gmra.mrb[240].mxu0 %v20860_v52 }
 0xe5b   :  { %v20195_v2 = vmax.f32 %v10644_v55, 0.0 }
 0xe5d   :  { %v10751_v50 = vpack.c.bf16 %v20195_v2, %v20193_v4  ;;  %v10494_v11 = vpop.f32.mrb[168].mxu0 }
 0xe5e   :  { %v10496_v16 = vpop.f32.mrb[169].mxu0 }
 0xe5f   :  { %v10645_v26 = vmax.f32 %v10494_v11, %v10496_v16  ;;  %v10498_v54 = vpop.f32.mrb[170].mxu0 }
 0xe60   :  { %v10500_v21 = vpop.f32.mrb[171].mxu0 }
 0xe61   :  { %v10646_v62 = vmax.f32 %v10498_v54, %v10500_v21  ;;  %v20199_v9 = vmax.f32 %v10645_v26, 0.0 }
 0xe63   :  { %v20201_v28 = vmax.f32 %v10646_v62, 0.0 }
 0xe65   :  { %v10752_v23 = vpack.c.bf16 %v20201_v28, %v20199_v9  ;;  %v10504_v60 = vpop.f32.mrb[172].mxu0 }
 0xe66   :  { %v10506_v20 = vpop.f32.mrb[173].mxu0 }
 0xe67   :  { %v10647_v53 = vmax.f32 %v10504_v60, %v10506_v20  ;;  %v10508_v27 = vpop.f32.mrb[174].mxu0 }
 0xe68   :  { %v10510_v32 = vpop.f32.mrb[175].mxu0 }
 0xe69   :  { %v10648_v29 = vmax.f32 %v10508_v27, %v10510_v32  ;;  %v20205_v24 = vmax.f32 %v10647_v53, 0.0 }
 0xe6b   :  { %v20207_v35 = vmax.f32 %v10648_v29, 0.0 }
 0xe6d   :  { %v10753_v25 = vpack.c.bf16 %v20207_v35, %v20205_v24  ;;  %v10514_v57 = vpop.f32.mrb[176].mxu0 }
 0xe6e   :  { %v10516_v45 = vpop.f32.mrb[177].mxu0 }
 0xe6f   :  { %v10649_v46 = vmax.f32 %v10514_v57, %v10516_v45  ;;  %v10518_v49 = vpop.f32.mrb[178].mxu0 }
 0xe70   :  { %v10520_v10 = vpop.f32.mrb[179].mxu0 }
 0xe71   :  { %v10650_v7 = vmax.f32 %v10518_v49, %v10520_v10  ;;  %v20211_v37 = vmax.f32 %v10649_v46, 0.0 }
 0xe73   :  { %v20213_v44 = vmax.f32 %v10650_v7, 0.0 }
 0xe75   :  { %v10754_v0 = vpack.c.bf16 %v20213_v44, %v20211_v37 }
 0xeb5   :  { %v10524_v48 = vpop.f32.mrb[180].mxu0 }
 0xeb6   :  { %v10526_v39 = vpop.f32.mrb[181].mxu0 }
 0xeb7   :  { %v10651_v31 = vmax.f32 %v10524_v48, %v10526_v39  ;;  %v10528_v19 = vpop.f32.mrb[182].mxu0 }
 0xeb8   :  { %v10530_v3 = vpop.f32.mrb[183].mxu0 }
 0xeb9   :  { %v10652_v47 = vmax.f32 %v10528_v19, %v10530_v3  ;;  %v10715_v8 = vmax.f32 %v10651_v31, 0.0 }
 0xebb   :  { %v10716_v22 = vmax.f32 %v10652_v47, 0.0 }
 0xebd   :  { %v10755_v59 = vpack.c.bf16 %v10716_v22, %v10715_v8  ;;  %v10534_v58 = vpop.f32.mrb[184].mxu0 }
 0xebe   :  { %v10536_v17 = vpop.f32.mrb[185].mxu0 }
 0xebf   :  { %v10653_v43 = vmax.f32 %v10534_v58, %v10536_v17  ;;  %v10538_v12 = vpop.f32.mrb[186].mxu0  ;;  %11155 = vmatprep.mubr.bf16.mxu0 %v10755_v59 }
 0xec0   :  { %v10540_v6 = vpop.f32.mrb[187].mxu0  ;;  %11156 = vmatmul.mubr.bf16.vlgmr.msra.gmra.mrb[244].mxu0 %v10747_v40 }
 0xec1   :  { %v10654_v63 = vmax.f32 %v10538_v12, %v10540_v6  ;;  %12834 = vmatpush3.bf16.msra.mxu0 %v14510_v41  ;;  %v10717_v14 = vmax.f32 %v10653_v43, 0.0 }
 0xec2   :  { %12835 = vmatprep.subr.bf16.mxu0 %v14511_v15 }
 0xec3   :  { %v10718_v55 = vmax.f32 %v10654_v63, 0.0 }
 0xec5   :  { %v10756_v13 = vpack.c.bf16 %v10718_v55, %v10717_v14  ;;  %v10544_v61 = vpop.f32.mrb[188].mxu0  ;;  %12836 = vmatpush3.bf16.msra.mxu0 %v14511_v15 }
 0xec6   :  { %v10546_v52 = vpop.f32.mrb[189].mxu0 }
 0xec7   :  { %v10655_v11 = vmax.f32 %v10544_v61, %v10546_v52  ;;  %v10548_v16 = vpop.f32.mrb[190].mxu0  ;;  %11163 = vmatprep.mubr.bf16.mxu0 %v10756_v13 }
 0xec8   :  { %v10550_v26 = vpop.f32.mrb[191].mxu0  ;;  %11164 = vmatmul.mubr.bf16.gmra.mrb[248].mxu0 %v10748_v56 }
 0xec9   :  { %v10656_v54 = vmax.f32 %v10548_v16, %v10550_v26  ;;  %v10719_v36 = vmax.f32 %v10655_v11, 0.0 }
 0xecb   :  { %v10720_v18 = vmax.f32 %v10656_v54, 0.0 }
 0xecd   :  { %v10757_v40 = vpack.c.bf16 %v10720_v18, %v10719_v36  ;;  %v10554_v21 = vpop.f32.mrb[192].mxu0 }
 0xece   :  { %v10556_v62 = vpop.f32.mrb[193].mxu0 }
 0xecf   :  { %v10657_v60 = vmax.f32 %v10554_v21, %v10556_v62  ;;  %v10558_v20 = vpop.f32.mrb[194].mxu0  ;;  %11171 = vmatprep.mubr.bf16.mxu0 %v10757_v40 }
 0xed0   :  { %v10560_v53 = vpop.f32.mrb[195].mxu0  ;;  %11172 = vmatmul.mubr.bf16.gmra.mrb[252].mxu0 %v10749_v38 }
 0xed1   :  { %v10658_v27 = vmax.f32 %v10558_v20, %v10560_v53  ;;  %v10721_v32 = vmax.f32 %v10657_v60, 0.0 }
 0xed3   :  { %v10722_v29 = vmax.f32 %v10658_v27, 0.0 }
 0xed5   :  { %v10758_v57 = vpack.c.bf16 %v10722_v29, %v10721_v32  ;;  %v10564_v42 = vpop.f32.mrb[196].mxu0 }
 0xed6   :  { %v10566_v33 = vpop.f32.mrb[197].mxu0 }
 0xed7   :  { %v10659_v56 = vmax.f32 %v10564_v42, %v10566_v33  ;;  %v10568_v45 = vpop.f32.mrb[198].mxu0  ;;  %11179 = vmatprep.mubr.bf16.mxu0 %v10758_v57 }
 0xed8   :  { %v10570_v46 = vpop.f32.mrb[199].mxu0  ;;  %11180 = vmatmul.mubr.bf16.gmra.mrb[0].mxu0 %v10750_v34 }
 0xed9   :  { %v10660_v49 = vmax.f32 %v10568_v45, %v10570_v46  ;;  %v10723_v10 = vmax.f32 %v10659_v56, 0.0  ;;  %v14512_v45 = vld [vmem:[%s20502_s9 + $0x10] sm:$0xff]  }
 0xeda   :  { %12837 = vmatprep.subr.bf16.mxu0 %v14512_v45 }
 0xedb   :  { %v10724_v7 = vmax.f32 %v10660_v49, 0.0  ;;  %12838 = vmatpush3.bf16.msra.mxu0 %v14512_v45 }
 0xedd   :  { %v10759_v41 = vpack.c.bf16 %v10724_v7, %v10723_v10  ;;  %v10574_v30 = vpop.f32.mrb[200].mxu0 }
 0xede   :  { %v10576_v5 = vpop.f32.mrb[201].mxu0 }
 0xedf   :  { %v10661_v38 = vmax.f32 %v10574_v30, %v10576_v5  ;;  %v10578_v48 = vpop.f32.mrb[202].mxu0  ;;  %11187 = vmatprep.mubr.bf16.mxu0 %v10759_v41  ;;  %v14513_v30 = vld [vmem:[%s20502_s9 + $0x18] sm:$0xff]  }
 0xee0   :  { %v10580_v39 = vpop.f32.mrb[203].mxu0  ;;  %11188 = vmatmul.mubr.bf16.gmra.mrb[4].mxu0 %v10751_v50  ;;  %12839 = vmatprep.subr.bf16.mxu0 %v14513_v30 }
 0xee1   :  { %v10662_v31 = vmax.f32 %v10578_v48, %v10580_v39  ;;  %v10725_v19 = vmax.f32 %v10661_v38, 0.0  ;;  %12840 = vmatpush3.bf16.msra.mxu0 %v14513_v30 }
 0xee3   :  { %v10726_v3 = vmax.f32 %v10662_v31, 0.0 }
 0xee5   :  { %v10760_v47 = vpack.c.bf16 %v10726_v3, %v10725_v19  ;;  %v10584_v51 = vpop.f32.mrb[204].mxu0 }
 0xee6   :  { %v10586_v1 = vpop.f32.mrb[205].mxu0 }
 0xee7   :  { %v10663_v34 = vmax.f32 %v10584_v51, %v10586_v1  ;;  %v10588_v8 = vpop.f32.mrb[206].mxu0  ;;  %11195 = vmatprep.mubr.bf16.mxu0 %v10760_v47 }
 0xee8   :  { %v10590_v22 = vpop.f32.mrb[207].mxu0  ;;  %11196 = vmatmul.mubr.bf16.gmra.mrb[8].mxu0 %v10752_v23 }
 0xee9   :  { %v10664_v59 = vmax.f32 %v10588_v8, %v10590_v22  ;;  %v10727_v58 = vmax.f32 %v10663_v34, 0.0  ;;  %v14514_v22 = vld [vmem:[%s20503_s11] sm:$0xff]  }
 0xeea   :  { %12857 = vmatprep.subr.bf16.mxu0 %v14514_v22 }
 0xeeb   :  { %v10728_v17 = vmax.f32 %v10664_v59, 0.0  ;;  %v20287_v59 = vld [vmem:[%s20504_s8] ss:$0 sm:$0xff] }
 0xeed   :  { %v10761_v15 = vpack.c.bf16 %v10728_v17, %v10727_v58  ;;  %v10594_v4 = vpop.f32.mrb[208].mxu0 }
 0xeee   :  { %v10596_v2 = vpop.f32.mrb[209].mxu0 }
 0xeef   :  { %v10665_v50 = vmax.f32 %v10594_v4, %v10596_v2  ;;  %v10598_v43 = vpop.f32.mrb[210].mxu0  ;;  %11203 = vmatprep.mubr.bf16.mxu0 %v10761_v15 }
 0xef0   :  { %v10600_v12 = vpop.f32.mrb[211].mxu0  ;;  %11204 = vmatmul.mubr.bf16.gmra.mrb[12].mxu0 %v10753_v25 }
 0xef1   :  { %v10666_v6 = vmax.f32 %v10598_v43, %v10600_v12  ;;  %v10729_v63 = vmax.f32 %v10665_v50, 0.0 }
 0xef3   :  { %v10730_v14 = vmax.f32 %v10666_v6, 0.0 }
 0xef5   :  { %v10762_v55 = vpack.c.bf16 %v10730_v14, %v10729_v63  ;;  %v12697_v9 = vpop.f32.mrb[212].mxu0 }
 0xef6   :  { %v12698_v28 = vpop.f32.mrb[213].mxu0 }
 0xef7   :  { %v12699_v23 = vadd.f32 %v12698_v28, %v12697_v9  ;;  %v12700_v13 = vpop.f32.mrb[214].mxu0  ;;  %11211 = vmatprep.mubr.bf16.mxu0 %v10762_v55 }
 0xef8   :  { %v12701_v61 = vpop.f32.mrb[215].mxu0  ;;  %11212 = vmatmul.mubr.bf16.gmra.mrb[16].mxu0 %v10754_v0 }
 0xef9   :  { %v12702_v52 = vadd.f32 %v12701_v61, %v12700_v13  ;;  %v11061_v15 = vadd.f32 %v12699_v23, %v20287_v59 }
 0xefb   :  { %v11064_v43 = vadd.f32 %v12702_v52, %v20287_v59 }
 0xefd   :  { %v12703_v11 = vpop.f32.mrb[216].mxu0 }
 0xefe   :  { %v12704_v16 = vpop.f32.mrb[217].mxu0 }
 0xeff   :  { %v20247_v26 = vadd.f32 %v12704_v16, %v12703_v11  ;;  %v12706_v24 = vpop.f32.mrb[218].mxu0 }
 0xf00   :  { %v12707_v35 = vpop.f32.mrb[219].mxu0 }
 0xf01   :  { %v20249_v25 = vadd.f32 %v12707_v35, %v12706_v24  ;;  %v11069_v13 = vadd.f32 %v20247_v26, %v20287_v59 }
 0xf03   :  { %v11072_v24 = vadd.f32 %v20249_v25, %v20287_v59 }
 0xf05   :  { %v12709_v54 = vpop.f32.mrb[220].mxu0 }
 0xf06   :  { %v12710_v36 = vpop.f32.mrb[221].mxu0 }
 0xf07   :  { %v20251_v18 = vadd.f32 %v12710_v36, %v12709_v54  ;;  %v12712_v40 = vpop.f32.mrb[222].mxu0 }
 0xf08   :  { %v12713_v21 = vpop.f32.mrb[223].mxu0 }
 0xf09   :  { %v20253_v62 = vadd.f32 %v12713_v21, %v12712_v40 }
 0xf0d   :  { %v12715_v60 = vpop.f32.mrb[224].mxu0 }
 0xf0e   :  { %v12716_v37 = vpop.f32.mrb[225].mxu0 }
 0xf0f   :  { %v20255_v44 = vadd.f32 %v12716_v37, %v12715_v60  ;;  %v12718_v0 = vpop.f32.mrb[226].mxu0  ;;  %v11077_v37 = vadd.f32 %v20251_v18, %v20287_v59 }
 0xf10   :  { %v12719_v20 = vpop.f32.mrb[227].mxu0 }
 0xf11   :  { %v20257_v53 = vadd.f32 %v12719_v20, %v12718_v0 }
 0xf15   :  { %v12721_v27 = vpop.f32.mrb[228].mxu0 }
 0xf16   :  { %v12722_v32 = vpop.f32.mrb[229].mxu0 }
 0xf17   :  { %v20259_v29 = vadd.f32 %v12722_v32, %v12721_v27  ;;  %v12724_v57 = vpop.f32.mrb[230].mxu0  ;;  %v14515_v27 = vld [vmem:[%s20503_s11 + $0x8] sm:$0xff]   ;;  %v11080_v32 = vadd.f32 %v20253_v62, %v20287_v59  ;;  %v11088_v62 = vadd.f32 %v20257_v53, %v20287_v59 }
 0xf18   :  { %v12725_v42 = vpop.f32.mrb[231].mxu0 }
 0xf19   :  { %v20261_v33 = vadd.f32 %v12725_v42, %v12724_v57 }
 0xf1d   :  { %v12727_v56 = vpop.f32.mrb[232].mxu0 }
 0xf1e   :  { %v12728_v46 = vpop.f32.mrb[233].mxu0 }
 0xf1f   :  { %v20266_v49 = vadd.f32 %v12728_v46, %v12727_v56  ;;  %v12730_v10 = vpop.f32.mrb[234].mxu0 }
 0xf20   :  { %v12731_v7 = vpop.f32.mrb[235].mxu0 }
 0xf21   :  { %v20268_v41 = vadd.f32 %v12731_v7, %v12730_v10  ;;  %v11085_v7 = vadd.f32 %v20255_v44, %v20287_v59 }
 0xf25   :  { %v12733_v5 = vpop.f32.mrb[236].mxu0 }
 0xf26   :  { %v12734_v38 = vpop.f32.mrb[237].mxu0 }
 0xf27   :  { %v20273_v48 = vadd.f32 %v12734_v38, %v12733_v5  ;;  %v12736_v39 = vpop.f32.mrb[238].mxu0 }
 0xf28   :  { %v12737_v31 = vpop.f32.mrb[239].mxu0 }
 0xf29   :  { %v20275_v19 = vadd.f32 %v12737_v31, %v12736_v39 }
 0xf2d   :  { %v12739_v3 = vpop.f32.mrb[240].mxu0 }
 0xf2e   :  { %v12740_v47 = vpop.f32.mrb[241].mxu0 }
 0xf2f   :  { %v20277_v51 = vadd.f32 %v12740_v47, %v12739_v3  ;;  %v12742_v1 = vpop.f32.mrb[242].mxu0 }
 0xf30   :  { %v12743_v34 = vpop.f32.mrb[243].mxu0 }
 0xf31   :  { %v20279_v8 = vadd.f32 %v12743_v34, %v12742_v1 }
 0xf93   :  { %v12761_v58 = vpop.f32.mrb[244].mxu0 }
 0xf94   :  { %v12762_v17 = vpop.f32.mrb[245].mxu0 }
 0xf95   :  { %v12763_v4 = vadd.f32 %v12762_v17, %v12761_v58  ;;  %v12764_v2 = vpop.f32.mrb[246].mxu0  ;;  %v11093_v17 = vadd.f32 %v20259_v29, %v20287_v59 }
 0xf96   :  { %v12765_v50 = vpop.f32.mrb[247].mxu0 }
 0xf97   :  { %v11158_v12 = vadd.f32 %v12763_v4, %v11061_v15  ;;  %v12766_v6 = vadd.f32 %v12765_v50, %v12764_v2  ;;  %v11096_v50 = vadd.f32 %v20261_v33, %v20287_v59 }
 0xf99   :  { %v11161_v63 = vadd.f32 %v12766_v6, %v11064_v43  ;;  %v11220_v14 = vmax.f32 %v11158_v12, 0.0 }
 0xf9b   :  { %v11221_v55 = vmax.f32 %v11161_v63, 0.0  ;;  %v12767_v9 = vpop.f32.mrb[248].mxu0 }
 0xf9c   :  { %v12768_v28 = vpop.f32.mrb[249].mxu0 }
 0xf9d   :  { %v11236_v61 = vpack.c.bf16 %v11221_v55, %v11220_v14  ;;  %v12769_v11 = vadd.f32 %v12768_v28, %v12767_v9  ;;  %v12770_v16 = vpop.f32.mrb[250].mxu0  ;;  %v11101_v9 = vadd.f32 %v20266_v49, %v20287_v59 }
 0xf9e   :  { %v12771_v23 = vpop.f32.mrb[251].mxu0 }
 0xf9f   :  { %v11166_v35 = vadd.f32 %v12769_v11, %v11069_v13  ;;  %v12772_v52 = vadd.f32 %v12771_v23, %v12770_v16  ;;  %12841 = vmatprep.mubr.msk.bf16.mxu0 %vm11283_vm4, %v11236_v61  ;;  %v11104_v11 = vadd.f32 %v20268_v41, %v20287_v59 }
 0xfa1   :  { %v11169_v54 = vadd.f32 %v12772_v52, %v11072_v24  ;;  %v11222_v36 = vmax.f32 %v11166_v35, 0.0 }
 0xfa3   :  { %v11223_v40 = vmax.f32 %v11169_v54, 0.0  ;;  %v12773_v21 = vpop.f32.mrb[252].mxu0 }
 0xfa4   :  { %v12774_v60 = vpop.f32.mrb[253].mxu0 }
 0xfa5   :  { %v11237_v26 = vpack.c.bf16 %v11223_v40, %v11222_v36  ;;  %v12775_v0 = vadd.f32 %v12774_v60, %v12773_v21  ;;  %v12776_v20 = vpop.f32.mrb[254].mxu0  ;;  %v11109_v36 = vadd.f32 %v20273_v48, %v20287_v59 }
 0xfa6   :  { %v12777_v25 = vpop.f32.mrb[255].mxu0 }
 0xfa7   :  { %v11174_v57 = vadd.f32 %v12775_v0, %v11077_v37  ;;  %v12778_v42 = vadd.f32 %v12777_v25, %v12776_v20  ;;  %12842 = vmatmul.mubr.msk.bf16.vlgmr.msra.gmra.mrb[20].mxu0 %vm11283_vm4, %v11237_v26  ;;  %v11112_v37 = vadd.f32 %v20275_v19, %v20287_v59 }
 0xfa8   :  { %12858 = vmatpush3.bf16.msra.mxu0 %v14514_v22 }
 0xfa9   :  { %v11177_v56 = vadd.f32 %v12778_v42, %v11080_v32  ;;  %12859 = vmatprep.subr.bf16.mxu0 %v14515_v27  ;;  %v11224_v45 = vmax.f32 %v11174_v57, 0.0  ;;  %v11117_v57 = vadd.f32 %v20277_v51, %v20287_v59  ;;  %v14516_v51 = vld [vmem:[%s20503_s11 + $0x10] sm:$0xff]  }
 0xfab   :  { %v11225_v18 = vmax.f32 %v11177_v56, 0.0  ;;  %v12779_v46 = vpop.f32.mrb[0].mxu0 }
 0xfac   :  { %v12780_v10 = vpop.f32.mrb[1].mxu0  ;;  %12860 = vmatpush3.bf16.msra.mxu0 %v14515_v27 }
 0xfad   :  { %v11238_v30 = vpack.c.bf16 %v11225_v18, %v11224_v45  ;;  %v12781_v5 = vadd.f32 %v12780_v10, %v12779_v46  ;;  %v12782_v38 = vpop.f32.mrb[2].mxu0  ;;  %v11120_v18 = vadd.f32 %v20279_v8, %v20287_v59  ;;  %12861 = vmatprep.subr.bf16.mxu0 %v14516_v51  ;;  %v14517_v8 = vld [vmem:[%s20503_s11 + $0x18] sm:$0xff]   ;;  %v12655_v59 = vld [vmem:[%s20505_s10] ss:$0 sm:$0xff] }
 0xfae   :  { %v12783_v39 = vpop.f32.mrb[3].mxu0 }
 0xfaf   :  { %v11182_v31 = vadd.f32 %v12781_v5, %v11085_v7  ;;  %v12784_v3 = vadd.f32 %v12783_v39, %v12782_v38  ;;  %12845 = vmatprep.mubr.msk.bf16.mxu0 %vm11283_vm4, %v11238_v30 }
 0xfb0   :  { %12862 = vmatpush3.bf16.msra.mxu0 %v14516_v51 }
 0xfb1   :  { %v11185_v47 = vadd.f32 %v12784_v3, %v11088_v62  ;;  %v11226_v1 = vmax.f32 %v11182_v31, 0.0  ;;  %12863 = vmatprep.subr.bf16.mxu0 %v14517_v8 }
 0xfb3   :  { %v11227_v34 = vmax.f32 %v11185_v47, 0.0  ;;  %v12785_v22 = vpop.f32.mrb[4].mxu0 }
 0xfb4   :  { %v12786_v58 = vpop.f32.mrb[5].mxu0  ;;  %12864 = vmatpush3.bf16.msra.mxu0 %v14517_v8 }
 0xfb5   :  { %v11239_v44 = vpack.c.bf16 %v11227_v34, %v11226_v1  ;;  %v12787_v15 = vadd.f32 %v12786_v58, %v12785_v22  ;;  %v12788_v4 = vpop.f32.mrb[6].mxu0 }
 0xfb6   :  { %v12789_v2 = vpop.f32.mrb[7].mxu0 }
 0xfb7   :  { %v11190_v53 = vadd.f32 %v12787_v15, %v11093_v17  ;;  %v12790_v43 = vadd.f32 %v12789_v2, %v12788_v4  ;;  %12846 = vmatmul.mubr.msk.bf16.gmra.mrb[24].mxu0 %vm11283_vm4, %v11239_v44 }
 0xfb9   :  { %v11193_v12 = vadd.f32 %v12790_v43, %v11096_v50  ;;  %v11228_v6 = vmax.f32 %v11190_v53, 0.0 }
 0xfbb   :  { %v11229_v63 = vmax.f32 %v11193_v12, 0.0  ;;  %v12791_v14 = vpop.f32.mrb[8].mxu0 }
 0xfbc   :  { %v12792_v55 = vpop.f32.mrb[9].mxu0 }
 0xfbd   :  { %v11240_v29 = vpack.c.bf16 %v11229_v63, %v11228_v6  ;;  %v12793_v28 = vadd.f32 %v12792_v55, %v12791_v14  ;;  %v12794_v13 = vpop.f32.mrb[10].mxu0 }
 0xfbe   :  { %v12795_v61 = vpop.f32.mrb[11].mxu0 }
 0xfbf   :  { %v11198_v33 = vadd.f32 %v12793_v28, %v11101_v9  ;;  %v12796_v16 = vadd.f32 %v12795_v61, %v12794_v13  ;;  %12849 = vmatprep.mubr.msk.bf16.mxu0 %vm11283_vm4, %v11240_v29 }
 0xfc1   :  { %v11201_v23 = vadd.f32 %v12796_v16, %v11104_v11  ;;  %v11230_v24 = vmax.f32 %v11198_v33, 0.0 }
 0xfc3   :  { %v11231_v35 = vmax.f32 %v11201_v23, 0.0  ;;  %v12797_v52 = vpop.f32.mrb[12].mxu0 }
 0xfc4   :  { %v12798_v54 = vpop.f32.mrb[13].mxu0 }
 0xfc5   :  { %v11241_v49 = vpack.c.bf16 %v11231_v35, %v11230_v24  ;;  %v12799_v40 = vadd.f32 %v12798_v54, %v12797_v52  ;;  %v12800_v21 = vpop.f32.mrb[14].mxu0 }
 0xfc6   :  { %v12801_v60 = vpop.f32.mrb[15].mxu0 }
 0xfc7   :  { %v11206_v41 = vadd.f32 %v12799_v40, %v11109_v36  ;;  %v12802_v26 = vadd.f32 %v12801_v60, %v12800_v21  ;;  %12850 = vmatmul.mubr.msk.bf16.gmra.mrb[28].mxu0 %vm11283_vm4, %v11241_v49 }
 0xfc9   :  { %v11209_v0 = vadd.f32 %v12802_v26, %v11112_v37  ;;  %v11232_v20 = vmax.f32 %v11206_v41, 0.0 }
 0xfcb   :  { %v11233_v27 = vmax.f32 %v11209_v0, 0.0  ;;  %v12803_v25 = vpop.f32.mrb[16].mxu0 }
 0xfcc   :  { %v12804_v32 = vpop.f32.mrb[17].mxu0 }
 0xfcd   :  { %v11242_v48 = vpack.c.bf16 %v11233_v27, %v11232_v20  ;;  %v12805_v42 = vadd.f32 %v12804_v32, %v12803_v25  ;;  %v12806_v56 = vpop.f32.mrb[18].mxu0 }
 0xfce   :  { %v12807_v45 = vpop.f32.mrb[19].mxu0 }
 0xfcf   :  { %v11214_v19 = vadd.f32 %v12805_v42, %v11117_v57  ;;  %v12808_v46 = vadd.f32 %v12807_v45, %v12806_v56  ;;  %12853 = vmatprep.mubr.msk.bf16.mxu0 %vm11283_vm4, %v11242_v48 }
 0xfd1   :  { %v11217_v10 = vadd.f32 %v12808_v46, %v11120_v18  ;;  %v11234_v7 = vmax.f32 %v11214_v19, 0.0  ;;  %v12668_v46 = vld [vmem:[%s20506_s12] ss:$0 sm:$0xff] }
 0xfd3   :  { %v11235_v30 = vmax.f32 %v11217_v10, 0.0 }
 0xfd5   :  { %v11243_v5 = vpack.c.bf16 %v11235_v30, %v11234_v7 }
 0xfd7   :  { %12854 = vmatmul.mubr.msk.bf16.gmra.mrb[32].mxu0 %vm11283_vm4, %v11243_v5 }
0x107a   :  { %v12843_v38 = vpop.f32.mrb[20].mxu0 }
0x107b   :  { %v11351_v39 = vadd.f32 %v12843_v38, %v12655_v59  ;;  %v11342_v62 = vpop.f32.mrb[21].mxu0 }
0x107c   :  { %v11343_v31 = vadd.f32 %v12655_v59, %v11342_v62  ;;  %v12844_v3 = vpop.f32.mrb[22].mxu0 }
0x107d   :  { %v11354_v47 = vadd.f32 %v12844_v3, %v12655_v59  ;;  %v11345_v1 = vpop.f32.mrb[23].mxu0  ;;  %v11407_v22 = vmax.f32 %v11351_v39, 0.0 }
0x107e   :  { %v11346_v34 = vadd.f32 %v12655_v59, %v11345_v1  ;;  %v11405_v17 = vmax.f32 %v11343_v31, 0.0 }
0x107f   :  { %v11408_v58 = vmax.f32 %v11354_v47, 0.0 }
0x1080   :  { %v11406_v44 = vmax.f32 %v11346_v34, 0.0 }
0x1081   :  { %v11422_v15 = vpack.c.bf16 %v11408_v58, %v11407_v22 }
0x1082   :  { %v11421_v4 = vpack.c.bf16 %v11406_v44, %v11405_v17 }
0x1084   :  { %12865 = vmatprep.mubr.msk.bf16.mxu0 %vm11283_vm4, %v11421_v4 }
0x1085   :  { %12866 = vmatmul.mubr.msk.bf16.vlgmr.msra.gmra.mrb[36].mxu0 %vm11283_vm4, %v11422_v15 }
0x108a   :  { %v12847_v2 = vpop.f32.mrb[24].mxu0 }
0x108b   :  { %v11367_v50 = vadd.f32 %v12847_v2, %v12655_v59  ;;  %v11358_v53 = vpop.f32.mrb[25].mxu0 }
0x108c   :  { %v11359_v43 = vadd.f32 %v12655_v59, %v11358_v53  ;;  %v12848_v12 = vpop.f32.mrb[26].mxu0 }
0x108d   :  { %v11370_v6 = vadd.f32 %v12848_v12, %v12655_v59  ;;  %v11361_v63 = vpop.f32.mrb[27].mxu0  ;;  %v11411_v55 = vmax.f32 %v11367_v50, 0.0 }
0x108e   :  { %v11362_v14 = vadd.f32 %v12655_v59, %v11361_v63  ;;  %v11409_v29 = vmax.f32 %v11359_v43, 0.0 }
0x108f   :  { %v11412_v9 = vmax.f32 %v11370_v6, 0.0 }
0x1090   :  { %v11410_v28 = vmax.f32 %v11362_v14, 0.0 }
0x1091   :  { %v11424_v13 = vpack.c.bf16 %v11412_v9, %v11411_v55 }
0x1092   :  { %v11423_v61 = vpack.c.bf16 %v11410_v28, %v11409_v29 }
0x1094   :  { %12869 = vmatprep.mubr.msk.bf16.mxu0 %vm11283_vm4, %v11423_v61 }
0x1095   :  { %12870 = vmatmul.mubr.msk.bf16.gmra.mrb[40].mxu0 %vm11283_vm4, %v11424_v13 }
0x109a   :  { %v12851_v11 = vpop.f32.mrb[28].mxu0 }
0x109b   :  { %v11383_v33 = vadd.f32 %v12851_v11, %v12655_v59  ;;  %v11374_v16 = vpop.f32.mrb[29].mxu0 }
0x109c   :  { %v11375_v23 = vadd.f32 %v12655_v59, %v11374_v16  ;;  %v12852_v24 = vpop.f32.mrb[30].mxu0 }
0x109d   :  { %v11386_v35 = vadd.f32 %v12852_v24, %v12655_v59  ;;  %v11377_v52 = vpop.f32.mrb[31].mxu0  ;;  %v11415_v36 = vmax.f32 %v11383_v33, 0.0 }
0x109e   :  { %v11378_v54 = vadd.f32 %v12655_v59, %v11377_v52  ;;  %v11413_v40 = vmax.f32 %v11375_v23, 0.0 }
0x109f   :  { %v11416_v49 = vmax.f32 %v11386_v35, 0.0 }
0x10a0   :  { %v11414_v21 = vmax.f32 %v11378_v54, 0.0 }
0x10a1   :  { %v11426_v60 = vpack.c.bf16 %v11416_v49, %v11415_v36 }
0x10a2   :  { %v11425_v37 = vpack.c.bf16 %v11414_v21, %v11413_v40 }
0x10a4   :  { %12873 = vmatprep.mubr.msk.bf16.mxu0 %vm11283_vm4, %v11425_v37 }
0x10a5   :  { %12874 = vmatmul.mubr.msk.bf16.gmra.mrb[44].mxu0 %vm11283_vm4, %v11426_v60 }
0x10aa   :  { %v12855_v41 = vpop.f32.mrb[32].mxu0 }
0x10ab   :  { %v11399_v26 = vadd.f32 %v12855_v41, %v12655_v59  ;;  %v11390_v0 = vpop.f32.mrb[33].mxu0 }
0x10ac   :  { %v11391_v20 = vadd.f32 %v12655_v59, %v11390_v0  ;;  %v12856_v27 = vpop.f32.mrb[34].mxu0 }
0x10ad   :  { %v11402_v25 = vadd.f32 %v12856_v27, %v12655_v59  ;;  %v11393_v32 = vpop.f32.mrb[35].mxu0  ;;  %v11419_v48 = vmax.f32 %v11399_v26, 0.0 }
0x10ae   :  { %v11394_v57 = vadd.f32 %v12655_v59, %v11393_v32  ;;  %v11417_v56 = vmax.f32 %v11391_v20, 0.0 }
0x10af   :  { %v11420_v42 = vmax.f32 %v11402_v25, 0.0 }
0x10b0   :  { %v11418_v45 = vmax.f32 %v11394_v57, 0.0 }
0x10b1   :  { %v11428_v18 = vpack.c.bf16 %v11420_v42, %v11419_v48 }
0x10b2   :  { %v11427_v19 = vpack.c.bf16 %v11418_v45, %v11417_v56 }
0x10b4   :  { %12877 = vmatprep.mubr.msk.bf16.mxu0 %vm11283_vm4, %v11427_v19 }
0x10b5   :  { %12878 = vmatmul.mubr.msk.bf16.gmra.mrb[48].mxu0 %vm11283_vm4, %v11428_v18 }
0x1158   :  { %v12867_v10 = vpop.f32.mrb[36].mxu0 }
0x1159   :  { %v11535_v7 = vadd.f32 %v12867_v10, %v12668_v46  ;;  %v11526_v30 = vpop.f32.mrb[37].mxu0 }
0x115a   :  { %v11527_v5 = vadd.f32 %v12668_v46, %v11526_v30  ;;  %v12868_v51 = vpop.f32.mrb[38].mxu0 }
0x115b   :  { %11593 = vmax.xlane.f32.xlu1 %v11535_v7  ;;  %v11529_v8 = vpop.f32.mrb[39].mxu0  ;;  %v11538_v59 = vadd.f32 %v12868_v51, %v12668_v46 }
0x115c   :  { %11589 = vmax.xlane.f32.xlu0 %v11527_v5  ;;  %v11530_v38 = vadd.f32 %v12668_v46, %v11529_v8 }
0x115f   :  { %11595 = vmax.xlane.f32.xlu1 %v11538_v59 }
0x1160   :  { %11591 = vmax.xlane.f32.xlu0 %v11530_v38 }
0x1168   :  { %v12871_v39 = vpop.f32.mrb[40].mxu0 }
0x1169   :  { %v11551_v62 = vadd.f32 %v12871_v39, %v12668_v46  ;;  %v11542_v31 = vpop.f32.mrb[41].mxu0 }
0x116a   :  { %v12872_v3 = vpop.f32.mrb[42].mxu0  ;;  %v11543_v34 = vadd.f32 %v12668_v46, %v11542_v31 }
0x116b   :  { %v11554_v47 = vadd.f32 %v12872_v3, %v12668_v46  ;;  %v11545_v1 = vpop.f32.mrb[43].mxu0  ;;  %11601 = vmax.xlane.f32.xlu0 %v11551_v62 }
0x116c   :  { %v11546_v22 = vadd.f32 %v12668_v46, %v11545_v1 }
0x116d   :  { %11603 = vmax.xlane.f32.xlu1 %v11554_v47 }
0x116f   :  { %11597 = vmax.xlane.f32.xlu0 %v11543_v34 }
0x1171   :  { %11599 = vmax.xlane.f32.xlu1 %v11546_v22 }
0x1178   :  { %v12875_v58 = vpop.f32.mrb[44].mxu0 }
0x1179   :  { %v20350_v17 = vadd.f32 %v12875_v58, %v12668_v46  ;;  %v11558_v44 = vpop.f32.mrb[45].mxu0 }
0x117a   :  { %v12876_v15 = vpop.f32.mrb[46].mxu0  ;;  %v20355_v50 = vadd.f32 %v12668_v46, %v11558_v44 }
0x117b   :  { %v20352_v4 = vadd.f32 %v12876_v15, %v12668_v46  ;;  %v11561_v2 = vpop.f32.mrb[47].mxu0  ;;  %11609 = vmax.xlane.f32.xlu0 %v20350_v17 }
0x117c   :  { %v20358_v53 = vadd.f32 %v12668_v46, %v11561_v2 }
0x117d   :  { %11611 = vmax.xlane.f32.xlu1 %v20352_v4 }
0x117f   :  { %11605 = vmax.xlane.f32.xlu0 %v20355_v50 }
0x1181   :  { %11607 = vmax.xlane.f32.xlu1 %v20358_v53 }
0x1188   :  { %v12879_v43 = vpop.f32.mrb[48].mxu0 }
0x1189   :  { %v11574_v12 = vpop.f32.mrb[49].mxu0  ;;  %v20367_v9 = vadd.f32 %v12879_v43, %v12668_v46 }
0x118a   :  { %v20362_v6 = vadd.f32 %v12668_v46, %v11574_v12  ;;  %v12880_v63 = vpop.f32.mrb[50].mxu0 }
0x118b   :  { %v11577_v14 = vpop.f32.mrb[51].mxu0  ;;  %v20370_v29 = vadd.f32 %v12880_v63, %v12668_v46 }
0x118c   :  { %v20364_v55 = vadd.f32 %v12668_v46, %v11577_v14  ;;  %11613 = vmax.xlane.f32.xlu0 %v20362_v6 }
0x118e   :  { %11615 = vmax.xlane.f32.xlu1 %v20364_v55 }
0x1190   :  { %11617 = vmax.xlane.f32.xlu0 %v20367_v9 }
0x1192   :  { %11619 = vmax.xlane.f32.xlu1 %v20370_v29 }
0x11e8   :  { %v11594_v28 = vpop.xlane.xlu1 %11593 }
0x11e9   :  { %v20374_v13 = vsub.f32 %v11535_v7, %v11594_v28  ;;  %v11590_v61 = vpop.xlane.xlu0 %11589 }
0x11ea   :  { %v20376_v11 = vsub.f32 %v11527_v5, %v11590_v61 }
0x11eb   :  { %v11641_v33 = vmul.f32 1.442695, %v20374_v13 }
0x11ec   :  { %v11637_v16 = vmul.f32 1.442695, %v20376_v11  ;;  %v11596_v23 = vpop.xlane.xlu1 %11595 }
0x11ed   :  { %14518 = vpow2.f32 %v11641_v33  ;;  %v20380_v24 = vsub.f32 %v11538_v59, %v11596_v23  ;;  %v11592_v35 = vpop.xlane.xlu0 %11591 }
0x11ee   :  { %v20382_v52 = vsub.f32 %v11530_v38, %v11592_v35  ;;  %14520 = vpow2.f32 %v11637_v16 }
0x11ef   :  { %v11643_v54 = vmul.f32 1.442695, %v20380_v24 }
0x11f0   :  { %v11639_v36 = vmul.f32 1.442695, %v20382_v52 }
0x11f1   :  { %14522 = vpow2.f32 %v11643_v54 }
0x11f2   :  { %14524 = vpow2.f32 %v11639_v36 }
0x11f7   :  { %v14519_v49 = vpop.eup %14518 }
0x11f8   :  { %v11602_v40 = vpop.xlane.xlu0 %11601  ;;  %11673 = vadd.xlane.f32.xlu0 %v14519_v49  ;;  %v14521_v60 = vpop.eup %14520 }
0x11f9   :  { %v20386_v21 = vsub.f32 %v11551_v62, %v11602_v40 }
0x11fa   :  { %v11604_v37 = vpop.xlane.xlu1 %11603 }
0x11fb   :  { %v14523_v41 = vpop.eup %14522  ;;  %v11649_v26 = vmul.f32 1.442695, %v20386_v21  ;;  %v20389_v0 = vsub.f32 %v11554_v47, %v11604_v37 }
0x11fc   :  { %v11598_v20 = vpop.xlane.xlu0 %11597  ;;  %11675 = vadd.xlane.f32.xlu1 %v14523_v41  ;;  %11669 = vadd.xlane.f32.xlu0 %v14521_v60  ;;  %v14525_v57 = vpop.eup %14524 }
0x11fd   :  { %14526 = vpow2.f32 %v11649_v26  ;;  %v11651_v27 = vmul.f32 1.442695, %v20389_v0  ;;  %v20392_v25 = vsub.f32 %v11543_v34, %v11598_v20 }
0x11fe   :  { %v11600_v32 = vpop.xlane.xlu1 %11599 }
0x11ff   :  { %14528 = vpow2.f32 %v11651_v27  ;;  %v11645_v48 = vmul.f32 1.442695, %v20392_v25  ;;  %v20395_v42 = vsub.f32 %v11546_v22, %v11600_v32 }
0x1200   :  { %11671 = vadd.xlane.f32.xlu1 %v14525_v57 }
0x1201   :  { %14530 = vpow2.f32 %v11645_v48  ;;  %v11647_v56 = vmul.f32 1.442695, %v20395_v42 }
0x1203   :  { %14532 = vpow2.f32 %v11647_v56 }
0x1207   :  { %v14527_v45 = vpop.eup %14526 }
0x1208   :  { %v11610_v18 = vpop.xlane.xlu0 %11609  ;;  %11681 = vadd.xlane.f32.xlu0 %v14527_v45 }
0x1209   :  { %v14529_v19 = vpop.eup %14528  ;;  %v20399_v46 = vsub.f32 %v20350_v17, %v11610_v18 }
0x120a   :  { %v11612_v10 = vpop.xlane.xlu1 %11611  ;;  %11683 = vadd.xlane.f32.xlu1 %v14529_v19 }
0x120b   :  { %v14531_v7 = vpop.eup %14530  ;;  %v11657_v30 = vmul.f32 1.442695, %v20399_v46  ;;  %v20403_v5 = vsub.f32 %v20352_v4, %v11612_v10 }
0x120c   :  { %v11606_v51 = vpop.xlane.xlu0 %11605  ;;  %11677 = vadd.xlane.f32.xlu0 %v14531_v7 }
0x120d   :  { %v14533_v8 = vpop.eup %14532  ;;  %14534 = vpow2.f32 %v11657_v30  ;;  %v11659_v59 = vmul.f32 1.442695, %v20403_v5  ;;  %v20407_v38 = vsub.f32 %v20355_v50, %v11606_v51 }
0x120e   :  { %v11608_v39 = vpop.xlane.xlu1 %11607  ;;  %11679 = vadd.xlane.f32.xlu1 %v14533_v8 }
0x120f   :  { %14536 = vpow2.f32 %v11659_v59  ;;  %v11653_v62 = vmul.f32 1.442695, %v20407_v38  ;;  %v20411_v31 = vsub.f32 %v20358_v53, %v11608_v39 }
0x1211   :  { %14538 = vpow2.f32 %v11653_v62  ;;  %v11655_v3 = vmul.f32 1.442695, %v20411_v31 }
0x1213   :  { %14540 = vpow2.f32 %v11655_v3 }
0x1217   :  { %v14535_v47 = vpop.eup %14534 }
0x1218   :  { %11689 = vadd.xlane.f32.xlu0 %v14535_v47 }
0x1219   :  { %v14537_v1 = vpop.eup %14536  ;;  %v11614_v34 = vpop.xlane.xlu0 %11613 }
0x121a   :  { %v20415_v22 = vsub.f32 %v20362_v6, %v11614_v34  ;;  %11691 = vadd.xlane.f32.xlu1 %v14537_v1 }
0x121b   :  { %v14539_v58 = vpop.eup %14538  ;;  %v11616_v17 = vpop.xlane.xlu1 %11615 }
0x121c   :  { %v11661_v44 = vmul.f32 1.442695, %v20415_v22  ;;  %v20419_v15 = vsub.f32 %v20364_v55, %v11616_v17  ;;  %11685 = vadd.xlane.f32.xlu0 %v14539_v58 }
0x121d   :  { %v14541_v4 = vpop.eup %14540  ;;  %v11618_v2 = vpop.xlane.xlu0 %11617 }
0x121e   :  { %14542 = vpow2.f32 %v11661_v44  ;;  %v11663_v50 = vmul.f32 1.442695, %v20419_v15  ;;  %v20423_v53 = vsub.f32 %v20367_v9, %v11618_v2  ;;  %11687 = vadd.xlane.f32.xlu1 %v14541_v4 }
0x121f   :  { %v11620_v43 = vpop.xlane.xlu1 %11619 }
0x1220   :  { %14544 = vpow2.f32 %v11663_v50  ;;  %v11665_v12 = vmul.f32 1.442695, %v20423_v53  ;;  %v20427_v6 = vsub.f32 %v20370_v29, %v11620_v43 }
0x1222   :  { %14546 = vpow2.f32 %v11665_v12  ;;  %v11667_v63 = vmul.f32 1.442695, %v20427_v6 }
0x1224   :  { %14548 = vpow2.f32 %v11667_v63 }
0x1228   :  { %v14543_v14 = vpop.eup %14542 }
0x1229   :  { %11693 = vadd.xlane.f32.xlu0 %v14543_v14 }
0x122a   :  { %v14545_v55 = vpop.eup %14544 }
0x122b   :  { %11695 = vadd.xlane.f32.xlu1 %v14545_v55 }
0x122c   :  { %v14547_v28 = vpop.eup %14546 }
0x122d   :  { %11697 = vadd.xlane.f32.xlu0 %v14547_v28 }
0x122e   :  { %v14549_v9 = vpop.eup %14548 }
0x122f   :  { %11699 = vadd.xlane.f32.xlu1 %v14549_v9 }
0x1285   :  { %v11674_v61 = vpop.xlane.xlu0 %11673 }
0x1286   :  { %14550 = vlog2.f32 %v11674_v61 }
0x1289   :  { %v11676_v33 = vpop.xlane.xlu1 %11675  ;;  %v11670_v16 = vpop.xlane.xlu0 %11669 }
0x128a   :  { %14552 = vlog2.f32 %v11676_v33 }
0x128b   :  { %14554 = vlog2.f32 %v11670_v16 }
0x128d   :  { %v11672_v29 = vpop.xlane.xlu1 %11671 }
0x128e   :  { %14556 = vlog2.f32 %v11672_v29 }
0x1290   :  { %v14551_v23 = vpop.eup %14550 }
0x1291   :  { %v11706_v35 = vmul.f32 0.6931472, %v14551_v23 }
0x1293   :  { %v11735_v54 = vsub.f32 %v20374_v13, %v11706_v35 }
0x1294   :  { %v14553_v36 = vpop.eup %14552 }
0x1295   :  { %v14555_v49 = vpop.eup %14554  ;;  %11751 = vst [vmem:[%s20507_s13 + $0x10] sm:$0xff] %v11735_v54  ;;  %v11708_v40 = vmul.f32 0.6931472, %v14553_v36  ;;  %v11682_v60 = vpop.xlane.xlu0 %11681 }
0x1296   :  { %v11702_v37 = vmul.f32 0.6931472, %v14555_v49  ;;  %14558 = vlog2.f32 %v11682_v60 }
0x1297   :  { %v11736_v41 = vsub.f32 %v20380_v24, %v11708_v40  ;;  %v11684_v26 = vpop.xlane.xlu1 %11683 }
0x1298   :  { %v14557_v20 = vpop.eup %14556  ;;  %v11733_v27 = vsub.f32 %v20376_v11, %v11702_v37  ;;  %14560 = vlog2.f32 %v11684_v26 }
0x1299   :  { %11752 = vst [vmem:[%s20507_s13 + $0x18] sm:$0xff] %v11736_v41  ;;  %v11704_v13 = vmul.f32 0.6931472, %v14557_v20  ;;  %v11678_v32 = vpop.xlane.xlu0 %11677 }
0x129a   :  { %11749 = vst [vmem:[%s20507_s13] sm:$0xff] %v11733_v27  ;;  %14562 = vlog2.f32 %v11678_v32 }
0x129b   :  { %v11734_v57 = vsub.f32 %v20382_v52, %v11704_v13  ;;  %v11680_v48 = vpop.xlane.xlu1 %11679 }
0x129c   :  { %14564 = vlog2.f32 %v11680_v48 }
0x129d   :  { %11750 = vst [vmem:[%s20507_s13 + $0x8] sm:$0xff] %v11734_v57 }
0x12a0   :  { %v14559_v11 = vpop.eup %14558 }
0x12a1   :  { %v11714_v24 = vmul.f32 0.6931472, %v14559_v11 }
0x12a2   :  { %v14561_v56 = vpop.eup %14560 }
0x12a3   :  { %v11739_v45 = vsub.f32 %v20386_v21, %v11714_v24  ;;  %v11716_v18 = vmul.f32 0.6931472, %v14561_v56 }
0x12a4   :  { %v14563_v19 = vpop.eup %14562 }
0x12a5   :  { %11755 = vst [vmem:[%s20507_s13 + $0x30] sm:$0xff] %v11739_v45  ;;  %v11740_v10 = vsub.f32 %v20389_v0, %v11716_v18  ;;  %v11710_v52 = vmul.f32 0.6931472, %v14563_v19  ;;  %v11690_v7 = vpop.xlane.xlu0 %11689 }
0x12a6   :  { %v14565_v30 = vpop.eup %14564  ;;  %14566 = vlog2.f32 %v11690_v7 }
0x12a7   :  { %11756 = vst [vmem:[%s20507_s13 + $0x38] sm:$0xff] %v11740_v10  ;;  %v11737_v51 = vsub.f32 %v20392_v25, %v11710_v52  ;;  %v11712_v8 = vmul.f32 0.6931472, %v14565_v30  ;;  %v11692_v21 = vpop.xlane.xlu1 %11691 }
0x12a8   :  { %14568 = vlog2.f32 %v11692_v21 }
0x12a9   :  { %11753 = vst [vmem:[%s20507_s13 + $0x20] sm:$0xff] %v11737_v51  ;;  %v11738_v59 = vsub.f32 %v20395_v42, %v11712_v8  ;;  %v11686_v0 = vpop.xlane.xlu0 %11685 }
0x12aa   :  { %14570 = vlog2.f32 %v11686_v0 }
0x12ab   :  { %11754 = vst [vmem:[%s20507_s13 + $0x28] sm:$0xff] %v11738_v59  ;;  %v11688_v39 = vpop.xlane.xlu1 %11687 }
0x12ac   :  { %14572 = vlog2.f32 %v11688_v39 }
0x12b0   :  { %v14567_v62 = vpop.eup %14566 }
0x12b1   :  { %v11722_v3 = vmul.f32 0.6931472, %v14567_v62 }
0x12b2   :  { %v14569_v25 = vpop.eup %14568 }
0x12b3   :  { %v11743_v47 = vsub.f32 %v20399_v46, %v11722_v3  ;;  %v11724_v1 = vmul.f32 0.6931472, %v14569_v25 }
0x12b4   :  { %v14571_v34 = vpop.eup %14570 }
0x12b5   :  { %11759 = vst [vmem:[%s20507_s13 + $0x50] sm:$0xff] %v11743_v47  ;;  %v11744_v42 = vsub.f32 %v20403_v5, %v11724_v1  ;;  %v11718_v58 = vmul.f32 0.6931472, %v14571_v34 }
0x12b6   :  { %v14573_v17 = vpop.eup %14572  ;;  %v11694_v44 = vpop.xlane.xlu0 %11693 }
0x12b7   :  { %11760 = vst [vmem:[%s20507_s13 + $0x58] sm:$0xff] %v11744_v42  ;;  %v11741_v4 = vsub.f32 %v20407_v38, %v11718_v58  ;;  %v11720_v2 = vmul.f32 0.6931472, %v14573_v17  ;;  %14574 = vlog2.f32 %v11694_v44 }
0x12b8   :  { %v11696_v46 = vpop.xlane.xlu1 %11695 }
0x12b9   :  { %11757 = vst [vmem:[%s20507_s13 + $0x40] sm:$0xff] %v11741_v4  ;;  %v11742_v50 = vsub.f32 %v20411_v31, %v11720_v2  ;;  %14576 = vlog2.f32 %v11696_v46 }
0x12ba   :  { %v11698_v5 = vpop.xlane.xlu0 %11697 }
0x12bb   :  { %11758 = vst [vmem:[%s20507_s13 + $0x48] sm:$0xff] %v11742_v50  ;;  %14578 = vlog2.f32 %v11698_v5 }
0x12bc   :  { %v11700_v43 = vpop.xlane.xlu1 %11699 }
0x12bd   :  { %14580 = vlog2.f32 %v11700_v43 }
0x12c1   :  { %v14575_v12 = vpop.eup %14574 }
0x12c2   :  { %v11726_v38 = vmul.f32 0.6931472, %v14575_v12 }
0x12c3   :  { %v14577_v63 = vpop.eup %14576 }
0x12c4   :  { %v11745_v14 = vsub.f32 %v20415_v22, %v11726_v38  ;;  %v11728_v55 = vmul.f32 0.6931472, %v14577_v63 }
0x12c5   :  { %v14579_v28 = vpop.eup %14578 }
0x12c6   :  { %11761 = vst [vmem:[%s20507_s13 + $0x60] sm:$0xff] %v11745_v14  ;;  %v11746_v31 = vsub.f32 %v20419_v15, %v11728_v55  ;;  %v11730_v9 = vmul.f32 0.6931472, %v14579_v28 }
0x12c7   :  { %v14581_v61 = vpop.eup %14580 }
0x12c8   :  { %11762 = vst [vmem:[%s20507_s13 + $0x68] sm:$0xff] %v11746_v31  ;;  %v11747_v33 = vsub.f32 %v20423_v53, %v11730_v9  ;;  %v11732_v16 = vmul.f32 0.6931472, %v14581_v61 }
0x12ca   :  { %11763 = vst [vmem:[%s20507_s13 + $0x70] sm:$0xff] %v11747_v33  ;;  %v11748_v22 = vsub.f32 %v20427_v6, %v11732_v16 }
0x12cc   :  { %11764 = vst [vmem:[%s20507_s13 + $0x78] sm:$0xff] %v11748_v22 }

</bundles_post_ra>
